<compile_context>
chip_gen: v7x
topology: tpu7x:2x2x1
jax: 0.10.0
libtpu: 0.0.40
codegen_flags: <defaults>
</compile_context>

<pallas_src>
import functools
import math

import jax
import jax.numpy as jnp
from jax.experimental import pallas as pl
from jax.experimental.pallas import tpu as pltpu


# --------------------------------------------------------------------------------------
# Small helpers
# --------------------------------------------------------------------------------------
def _round_up(x, m):
    return ((x + m - 1) // m) * m


def _pad_rows(x, rows):
    if x.shape[0] == rows:
        return x
    pad = [(0, rows - x.shape[0])] + [(0, 0)] * (x.ndim - 1)
    return jnp.pad(x, pad)


# --------------------------------------------------------------------------------------
# Fused ResGCN module kernel: lin_in + 3 EdgeConv layers + lin_out (+ max-pool)
# One grid step == one window; everything stays resident in VMEM/vregs.
# --------------------------------------------------------------------------------------
def _resgcn_kernel(feat_ref, m0_ref, m1_ref, m2_ref,
                   w_in_ref, b_in_ref, wb_ref, wn_ref, be_ref,
                   w_out_ref, b_out_ref, o_ref, *, pool):
    feat = feat_ref[0].astype(jnp.bfloat16)                               # [P, Cin]
    x = jnp.dot(feat, w_in_ref[...], preferred_element_type=jnp.float32)  # [P, C] f32
    x = jnp.maximum(x + b_in_ref[...], 0.0)

    masks = (m0_ref, m1_ref, m2_ref)
    n_layers = wb_ref.shape[0]
    for l in range(n_layers):
        xb = x.astype(jnp.bfloat16)
        # base_i = x_i @ (W_ctr - W_nbr) + b ;  z_p = x_p @ W_nbr   (folded at init)
        base = jnp.dot(xb, wb_ref[l], preferred_element_type=jnp.float32) + be_ref[l]
        z = jnp.dot(xb, wn_ref[l], preferred_element_type=jnp.float32)    # [P, C]
        m = masks[l][0]                                                   # [P, P, 1] 0/-1e30
        # max over neighbors via additive mask (relu is monotone -> pulled outside max)
        zmax = jnp.max(z[None, :, :] + m, axis=1)                         # [P, C]
        x = x + jnp.maximum(base + zmax, 0.0)                             # residual EdgeConv

    y = jnp.dot(x.astype(jnp.bfloat16), w_out_ref[...],
                preferred_element_type=jnp.float32)                       # [P, Cout]
    if pool:
        o_ref[0] = (jnp.max(y, axis=0, keepdims=True) + b_out_ref[...]).astype(o_ref.dtype)
    else:
        o_ref[0] = (y + b_out_ref[...]).astype(o_ref.dtype)


def apply_resgcn(params, feat, masks, pool=False):
    """feat: [B, P, Cin]; masks: list of 3 additive neighbor masks [B, P, P, 1]."""
    B, P, Cin = feat.shape
    C = params["w_in"].shape[1]
    Cout = params["w_out"].shape[1]
    L = params["wb"].shape[0]
    assert L == 3 and len(masks) == 3
    out_shape = (B, 1, Cout) if pool else (B, P, Cout)
    out = pl.pallas_call(
        functools.partial(_resgcn_kernel, pool=pool),
        out_shape=jax.ShapeDtypeStruct(out_shape, jnp.float32),
        grid=(B,),
        in_specs=[
            pl.BlockSpec((1, P, Cin), lambda b: (b, 0, 0)),
            pl.BlockSpec((1, P, P, 1), lambda b: (b, 0, 0, 0)),
            pl.BlockSpec((1, P, P, 1), lambda b: (b, 0, 0, 0)),
            pl.BlockSpec((1, P, P, 1), lambda b: (b, 0, 0, 0)),
            pl.BlockSpec((Cin, C), lambda b: (0, 0)),
            pl.BlockSpec((1, C), lambda b: (0, 0)),
            pl.BlockSpec((L, C, C), lambda b: (0, 0, 0)),
            pl.BlockSpec((L, C, C), lambda b: (0, 0, 0)),
            pl.BlockSpec((L, 1, C), lambda b: (0, 0, 0)),
            pl.BlockSpec((C, Cout), lambda b: (0, 0)),
            pl.BlockSpec((1, Cout), lambda b: (0, 0)),
        ],
        out_specs=pl.BlockSpec((1, 1, Cout) if pool else (1, P, Cout),
                               lambda b: (b, 0, 0)),
        compiler_params=pltpu.CompilerParams(dimension_semantics=("parallel",)),
    )(feat.astype(jnp.float32), masks[0], masks[1], masks[2],
      params["w_in"], params["b_in"], params["wb"], params["wn"], params["be"],
      params["w_out"], params["b_out"])
    if pool:
        return out.reshape(B, Cout)
    return out


# --------------------------------------------------------------------------------------
# Plain fused linear (tiny: bottleneck projection and mu|sigma head)
# --------------------------------------------------------------------------------------
def _linear_kernel(x_ref, w_ref, b_ref, o_ref, *, relu):
    y = jnp.dot(x_ref[...].astype(jnp.bfloat16), w_ref[...],
                preferred_element_type=jnp.float32) + b_ref[...]
    if relu:
        y = jnp.maximum(y, 0.0)
    o_ref[...] = y.astype(o_ref.dtype)


def pallas_linear(x, w, b, relu=False):
    """x: [R, Cin], w: [Cin, Cout] (bf16 ok), b: [Cout] -> [R, Cout] f32."""
    R, Cin = x.shape
    Cout = w.shape[1]
    tile = min(512, _round_up(max(R, 8), 8))
    Rp = _round_up(R, tile)
    xp = _pad_rows(x.astype(jnp.float32), Rp)
    out = pl.pallas_call(
        functools.partial(_linear_kernel, relu=relu),
        out_shape=jax.ShapeDtypeStruct((Rp, Cout), jnp.float32),
        grid=(pl.cdiv(Rp, tile),),
        in_specs=[
            pl.BlockSpec((tile, Cin), lambda i: (i, 0)),
            pl.BlockSpec((Cin, Cout), lambda i: (0, 0)),
            pl.BlockSpec((1, Cout), lambda i: (0, 0)),
        ],
        out_specs=pl.BlockSpec((tile, Cout), lambda i: (i, 0)),
        compiler_params=pltpu.CompilerParams(dimension_semantics=("parallel",)),
    )(xp, w.astype(jnp.bfloat16), b.reshape(1, Cout).astype(jnp.float32))
    return out[:R] if Rp != R else out


# --------------------------------------------------------------------------------------
# Fused FoldingNet decoder: both folding stages per window in one kernel; feat/grid are
# combined in-kernel (split first-layer weights), so no replicated f_rep / concat in HBM.
# --------------------------------------------------------------------------------------
def _folding_kernel(f_ref, g_ref, w1f_ref, w1g_ref, b1_ref, w1b_ref, b1b_ref,
                    w2f_ref, w2p_ref, b2_ref, w2b_ref, b2b_ref, o_ref):
    f = f_ref[0]                                                          # [1, C]
    g = g_ref[...]                                                        # [K, 2]
    fb1 = jnp.dot(f, w1f_ref[...], preferred_element_type=jnp.float32) + b1_ref[...]
    h1 = jnp.maximum(jnp.dot(g, w1g_ref[...],
                             preferred_element_type=jnp.float32) + fb1, 0.0)   # [K, C1]
    p1 = jnp.dot(h1, w1b_ref[...], preferred_element_type=jnp.float32) + b1b_ref[...]  # [K,3]
    fb2 = jnp.dot(f, w2f_ref[...], preferred_element_type=jnp.float32) + b2_ref[...]
    h2 = jnp.maximum(jnp.dot(p1, w2p_ref[...],
                             preferred_element_type=jnp.float32) + fb2, 0.0)
    p2 = jnp.dot(h2, w2b_ref[...], preferred_element_type=jnp.float32) + b2b_ref[...]
    o_ref[0] = p2.astype(o_ref.dtype)


def apply_folding(params, feat, K):
    # TODO(synk): FoldingNetModule(fold_channel, R_max, r) internals not provided;
    #             standard 2-stage FoldingNet decoder with a 2D grid seed is used.
    M, C = feat.shape
    side = int(math.ceil(math.sqrt(K)))
    lin = jnp.linspace(-1.0, 1.0, side)
    gx, gy = jnp.meshgrid(lin, lin, indexing="ij")
    grid2d = jnp.stack([gx.ravel(), gy.ravel()], -1)[:K].astype(jnp.float32)   # [K, 2]
    C1 = params["w1f"].shape[1]
    return pl.pallas_call(
        _folding_kernel,
        out_shape=jax.ShapeDtypeStruct((M, K, 3), jnp.float32),
        grid=(M,),
        in_specs=[
            pl.BlockSpec((1, 1, C), lambda m: (m, 0, 0)),
            pl.BlockSpec((K, 2), lambda m: (0, 0)),
            pl.BlockSpec((C, C1), lambda m: (0, 0)),
            pl.BlockSpec((2, C1), lambda m: (0, 0)),
            pl.BlockSpec((1, C1), lambda m: (0, 0)),
            pl.BlockSpec((C1, 3), lambda m: (0, 0)),
            pl.BlockSpec((1, 3), lambda m: (0, 0)),
            pl.BlockSpec((C, C1), lambda m: (0, 0)),
            pl.BlockSpec((3, C1), lambda m: (0, 0)),
            pl.BlockSpec((1, C1), lambda m: (0, 0)),
            pl.BlockSpec((C1, 3), lambda m: (0, 0)),
            pl.BlockSpec((1, 3), lambda m: (0, 0)),
        ],
        out_specs=pl.BlockSpec((1, K, 3), lambda m: (m, 0, 0)),
        compiler_params=pltpu.CompilerParams(dimension_semantics=("parallel",)),
    )(feat.reshape(M, 1, C).astype(jnp.float32), grid2d,
      params["w1f"], params["w1g"], params["b1"], params["w1b"], params["b1b"],
      params["w2f"], params["w2p"], params["b2"], params["w2b"], params["b2b"])


# --------------------------------------------------------------------------------------
# op.* helpers (XLA glue)
# --------------------------------------------------------------------------------------
def sampling_and_query(batch_x, K):
    # TODO(synk): original uses farthest-point sampling; strided sampling here.
    x = batch_x[0]
    N = x.shape[0]
    M = N // K
    bones = x[::K][:M]                                                   # [M, 3]
    d2 = jnp.sum((bones[:, None, :] - x[None, :, :]) ** 2, -1)           # [M, N]
    _, nn_idx = jax.lax.top_k(-d2, 2 * K)                                # [M, 2K]
    local_windows = x[nn_idx]                                            # [M, 2K, 3]
    return bones, local_windows


def adaptive_aligning(local_windows, bones):
    # TODO(synk): original AdaptiveAligning may also rotate; translation-only here.
    return local_windows - bones[:, None, :]


def inverse_aligning(rec_windows, bones):
    return rec_windows + bones[:, None, :]


def _knn_idx(points, k, dilation):
    # points: [B, P, 3] -> [B, P, k]  (wraps if fewer than k*dilation points exist)
    B, P, _ = points.shape
    d2 = jnp.sum((points[:, :, None, :] - points[:, None, :, :]) ** 2, -1)   # [B,P,P]
    kk = min(k * dilation, P)
    _, nn = jax.lax.top_k(-d2, kk)
    dil = nn[:, :, ::dilation]
    sel = jnp.arange(k) % dil.shape[-1]
    return dil[:, :, sel]


def construct_knn_masks(points, k, dilated_list):
    """Additive neighbor masks (0 / -1e30), one per dilation: [B, P, P, 1] f32."""
    B, P, _ = points.shape
    masks = []
    for d in dilated_list:
        idx = _knn_idx(points, k, d)                                     # [B, P, k]
        member = (idx[..., None] == jnp.arange(P)).any(axis=2)           # [B, P, P]
        masks.append(jnp.where(member, 0.0, -1e30).astype(jnp.float32)[..., None])
    return masks


def feature_probs_based_mu_sigma(x, mu, sigma):
    def cdf(v):
        return 0.5 * (1.0 + jax.lax.erf(v / (sigma * jnp.sqrt(2.0))))
    probs = cdf(x - mu + 0.5) - cdf(x - mu - 0.5)
    probs = jnp.clip(probs, 1e-10, 1.0)
    bits = jnp.sum(-jnp.log(probs) / jnp.log(2.0))
    return bits, probs


# --------------------------------------------------------------------------------------
# Parameter init (deterministic); fused weight layouts precomputed here.
# --------------------------------------------------------------------------------------
def init_linear(key, cin, cout):
    w = jax.random.normal(key, (cin, cout), jnp.float32) / jnp.sqrt(float(cin))
    b = jnp.zeros((cout,), jnp.float32)
    return w, b


def init_resgcn(key, input_dim, n_layers, embed_dim, output_dim):
    # TODO(synk): exact ResGCNModule internals not provided; residual EdgeConv stack used.
    keys = jax.random.split(key, n_layers + 2)
    w_in, b_in = init_linear(keys[0], input_dim, embed_dim)
    wb, wn, be = [], [], []
    for i in range(n_layers):
        w, b = init_linear(keys[1 + i], 2 * embed_dim, embed_dim)        # as Linear(2C, C)
        w_nbr = w[embed_dim:]
        w_base = w[:embed_dim] - w_nbr       # fold concat([x_i, x_j - x_i])@W algebra in f32
        wb.append(w_base)
        wn.append(w_nbr)
        be.append(b.reshape(1, embed_dim))
    w_out, b_out = init_linear(keys[-1], embed_dim, output_dim)
    return {
        "w_in": w_in.astype(jnp.bfloat16), "b_in": b_in.reshape(1, embed_dim),
        "wb": jnp.stack(wb).astype(jnp.bfloat16),
        "wn": jnp.stack(wn).astype(jnp.bfloat16),
        "be": jnp.stack(be),
        "w_out": w_out.astype(jnp.bfloat16), "b_out": b_out.reshape(1, output_dim),
    }


def init_entropy(key, n_layers, embed_dim, bottleneck):
    k0, k1, k2 = jax.random.split(key, 3)
    w_mu, b_mu = init_linear(k1, embed_dim, bottleneck)
    w_si, b_si = init_linear(k2, embed_dim, bottleneck)
    return {
        "backbone": init_resgcn(k0, 3, n_layers, embed_dim, embed_dim),
        "w_ms": jnp.concatenate([w_mu, w_si], axis=1).astype(jnp.bfloat16),  # fused mu|sigma
        "b_ms": jnp.concatenate([b_mu, b_si], axis=0),
    }


def init_folding(key, channel, fold_channel):
    ks = jax.random.split(key, 4)
    w1a, b1a = init_linear(ks[0], channel + 2, channel)
    w1b, b1b = init_linear(ks[1], channel, 3)
    w2a, b2a = init_linear(ks[2], channel + 3, channel)
    w2b, b2b = init_linear(ks[3], channel, 3)
    return {
        # first-layer weights split so feat/grid never get concatenated per forward
        "w1f": w1a[:channel], "w1g": w1a[channel:], "b1": b1a.reshape(1, -1),
        "w1b": w1b, "b1b": b1b.reshape(1, -1),
        "w2f": w2a[:channel], "w2p": w2a[channel:], "b2": b2a.reshape(1, -1),
        "w2b": w2b, "b2b": b2b.reshape(1, -1),
    }


def init_point_model(key, channel, bottleneck_channel):
    keys = jax.random.split(key, 6)
    lw, lb = init_linear(keys[2], channel * 2, bottleneck_channel)
    return {
        "sq_in": init_resgcn(keys[0], 3, 3, channel, channel),
        "sq_out": init_resgcn(keys[1], 3, 3, channel, channel),
        "linear_w": lw.astype(jnp.bfloat16), "linear_b": lb,
        "entropy": init_entropy(keys[3], 3, channel, bottleneck_channel),
        "stretch": init_resgcn(keys[4], bottleneck_channel, 3, channel, channel),
        "folding": init_folding(keys[5], channel, 8),
    }


# --------------------------------------------------------------------------------------
# Sub-module apply + PointModel forward
# --------------------------------------------------------------------------------------
def apply_entropy(params, pts, masks):
    h = apply_resgcn(params["backbone"], pts, masks)                     # [1, M, C]
    B, M, C = h.shape
    bn = params["b_ms"].shape[0] // 2
    ms = pallas_linear(h.reshape(B * M, C), params["w_ms"], params["b_ms"])
    ms = ms.reshape(B, M, 2 * bn)
    mu, sig = ms[..., :bn], ms[..., bn:]
    sigma = jax.nn.softplus(sig) + 1e-6                                  # f32 entropy path
    return mu, sigma


def point_model_forward(params, batch_x, K, noise_key, dilated_list=(1, 2, 4)):
    N = batch_x.shape[1]
    bones, local_windows = sampling_and_query(batch_x, K)
    aligned = adaptive_aligning(local_windows, bones)
    a_in = aligned[:, 0:K:1, :]
    a_out = aligned[:, 0:2 * K:2, :]

    masks = construct_knn_masks(a_in, 16, dilated_list)
    pooled_in = apply_resgcn(params["sq_in"], a_in, masks, pool=True)            # [M, C]

    masks = construct_knn_masks(a_out, 16, dilated_list)
    pooled_out = apply_resgcn(params["sq_out"], a_out, masks, pool=True)         # [M, C]
    pooled = jnp.concatenate([pooled_in, pooled_out], axis=-1)                   # [M, 2C]

    feature = pallas_linear(pooled, params["linear_w"], params["linear_b"])      # [M, bn]
    noise = jax.random.uniform(noise_key, feature.shape, jnp.float32, -0.5, 0.5)
    quantized = feature + noise

    bones_b = bones[None]                                                        # [1, M, 3]
    masks_b = construct_knn_masks(bones_b, 8, [1, 2, 4])
    mu, sigma = apply_entropy(params["entropy"], bones_b, masks_b)
    bitrate, _ = feature_probs_based_mu_sigma(quantized, mu[0], sigma[0])
    bitrate = bitrate / N

    feature = apply_resgcn(params["stretch"], quantized[None], masks_b,
                           pool=False)[0]                                        # [M, C]
    rec_windows = apply_folding(params["folding"], feature, K)                   # [M, K, 3]
    rec_windows = inverse_aligning(rec_windows, bones)
    rec_batch_x = rec_windows.reshape(1, -1, 3)
    return rec_batch_x, bitrate


if __name__ == "__main__":
    key = jax.random.PRNGKey(0)
    pkey, xkey, nkey = jax.random.split(key, 3)

    channel, bottleneck = 32, 16
    N, K = 128, 32                       # small shapes: 4 windows of 32 points

    params = init_point_model(pkey, channel, bottleneck)
    batch_x = jax.random.uniform(xkey, (1, N, 3), jnp.float32)

    @jax.jit
    def run(p, bx, nk):
        return point_model_forward(p, bx, K, nk)

    rec_batch_x, bitrate = run(params, batch_x, nkey)
    jax.block_until_ready((rec_batch_x, bitrate))

    assert rec_batch_x.shape == (1, (N // K) * K, 3)
    assert bitrate.shape == ()
    print("KERNEL_OK")
</pallas_src>

<mosaic_0001>
module attributes {stable_mosaic.version = 11 : i64} {
  func.func @_resgcn_kernel(%arg0: i32, %arg1: memref<1x32x3xf32, #tpu.memory_space<vmem>>, %arg2: memref<1x32x32x1xf32, #tpu.memory_space<vmem>>, %arg3: memref<1x32x32x1xf32, #tpu.memory_space<vmem>>, %arg4: memref<1x32x32x1xf32, #tpu.memory_space<vmem>>, %arg5: memref<3x32xbf16, #tpu.memory_space<vmem>>, %arg6: memref<1x32xf32, #tpu.memory_space<vmem>>, %arg7: memref<3x32x32xbf16, #tpu.memory_space<vmem>>, %arg8: memref<3x32x32xbf16, #tpu.memory_space<vmem>>, %arg9: memref<3x1x32xf32, #tpu.memory_space<vmem>>, %arg10: memref<32x32xbf16, #tpu.memory_space<vmem>>, %arg11: memref<1x32xf32, #tpu.memory_space<vmem>>, %arg12: memref<1x1x32xf32, #tpu.memory_space<vmem>>) attributes {dimension_semantics = [#tpu.dimension_semantics<parallel>], iteration_bounds = array<i64: 4>, scalar_prefetch = 0 : i64, scratch_operands = 0 : i64, tpu.core_type = #tpu.core_type<tc>, window_params = [{transform_indices = @transform_0, window_bounds = array<i64: 1, 32, 3>}, {transform_indices = @transform_1, window_bounds = array<i64: 1, 32, 32, 1>}, {transform_indices = @transform_2, window_bounds = array<i64: 1, 32, 32, 1>}, {transform_indices = @transform_3, window_bounds = array<i64: 1, 32, 32, 1>}, {pipeline_mode = #tpu.pipeline_mode<synchronous>, transform_indices = @transform_4, window_bounds = array<i64: 3, 32>}, {pipeline_mode = #tpu.pipeline_mode<synchronous>, transform_indices = @transform_5, window_bounds = array<i64: 1, 32>}, {pipeline_mode = #tpu.pipeline_mode<synchronous>, transform_indices = @transform_6, window_bounds = array<i64: 3, 32, 32>}, {pipeline_mode = #tpu.pipeline_mode<synchronous>, transform_indices = @transform_7, window_bounds = array<i64: 3, 32, 32>}, {pipeline_mode = #tpu.pipeline_mode<synchronous>, transform_indices = @transform_8, window_bounds = array<i64: 3, 1, 32>}, {pipeline_mode = #tpu.pipeline_mode<synchronous>, transform_indices = @transform_9, window_bounds = array<i64: 32, 32>}, {pipeline_mode = #tpu.pipeline_mode<synchronous>, transform_indices = @transform_10, window_bounds = array<i64: 1, 32>}, {transform_indices = @transform_11, window_bounds = array<i64: 1, 1, 32>}]} {
    %c0 = arith.constant 0 : index
    %c0_0 = arith.constant 0 : index
    %c0_1 = arith.constant 0 : index
    %0 = vector.load %arg1[%c0, %c0_0, %c0_1] : memref<1x32x3xf32, #tpu.memory_space<vmem>>, vector<1x32x3xf32>
    %1 = vector.shape_cast %0 : vector<1x32x3xf32> to vector<32x3xf32>
    %2 = arith.truncf %1 : vector<32x3xf32> to vector<32x3xbf16>
    %c0_2 = arith.constant 0 : index
    %c0_3 = arith.constant 0 : index
    %3 = vector.load %arg5[%c0_2, %c0_3] : memref<3x32xbf16, #tpu.memory_space<vmem>>, vector<3x32xbf16>
    %cst = arith.constant dense<0.000000e+00> : vector<32x32xf32>
    %4 = tpu.matmul %2, %3, %cst {dimension_numbers = #tpu.dot_dimension_numbers<[1], [0], [0], [1], [0, 0, 1, 1], [], []>} : vector<32x3xbf16>, vector<3x32xbf16>, vector<32x32xf32> -> vector<32x32xf32>
    %c0_4 = arith.constant 0 : index
    %c0_5 = arith.constant 0 : index
    %5 = vector.load %arg6[%c0_4, %c0_5] : memref<1x32xf32, #tpu.memory_space<vmem>>, vector<1x32xf32>
    %6 = vector.broadcast %5 : vector<1x32xf32> to vector<32x32xf32>
    %7 = arith.addf %4, %6 : vector<32x32xf32>
    %cst_6 = arith.constant 0.000000e+00 : f32
    %8 = vector.broadcast %cst_6 : f32 to vector<32x32xf32>
    %9 = arith.maximumf %7, %8 : vector<32x32xf32>
    %10 = arith.truncf %9 : vector<32x32xf32> to vector<32x32xbf16>
    %c0_7 = arith.constant 0 : index
    %c0_8 = arith.constant 0 : index
    %c0_9 = arith.constant 0 : index
    %11 = vector.load %arg7[%c0_7, %c0_8, %c0_9] : memref<3x32x32xbf16, #tpu.memory_space<vmem>>, vector<1x32x32xbf16>
    %12 = vector.shape_cast %11 : vector<1x32x32xbf16> to vector<32x32xbf16>
    %cst_10 = arith.constant dense<0.000000e+00> : vector<32x32xf32>
    %13 = tpu.matmul %10, %12, %cst_10 {dimension_numbers = #tpu.dot_dimension_numbers<[1], [0], [0], [1], [0, 0, 1, 1], [], []>} : vector<32x32xbf16>, vector<32x32xbf16>, vector<32x32xf32> -> vector<32x32xf32>
    %c0_11 = arith.constant 0 : index
    %c0_12 = arith.constant 0 : index
    %c0_13 = arith.constant 0 : index
    %14 = vector.load %arg9[%c0_11, %c0_12, %c0_13] : memref<3x1x32xf32, #tpu.memory_space<vmem>>, vector<1x1x32xf32>
    %15 = vector.shape_cast %14 : vector<1x1x32xf32> to vector<1x32xf32>
    %16 = vector.broadcast %15 : vector<1x32xf32> to vector<32x32xf32>
    %17 = arith.addf %13, %16 : vector<32x32xf32>
    %c0_14 = arith.constant 0 : index
    %c0_15 = arith.constant 0 : index
    %c0_16 = arith.constant 0 : index
    %18 = vector.load %arg8[%c0_14, %c0_15, %c0_16] : memref<3x32x32xbf16, #tpu.memory_space<vmem>>, vector<1x32x32xbf16>
    %19 = vector.shape_cast %18 : vector<1x32x32xbf16> to vector<32x32xbf16>
    %cst_17 = arith.constant dense<0.000000e+00> : vector<32x32xf32>
    %20 = tpu.matmul %10, %19, %cst_17 {dimension_numbers = #tpu.dot_dimension_numbers<[1], [0], [0], [1], [0, 0, 1, 1], [], []>} : vector<32x32xbf16>, vector<32x32xbf16>, vector<32x32xf32> -> vector<32x32xf32>
    %c0_18 = arith.constant 0 : index
    %c0_19 = arith.constant 0 : index
    %c0_20 = arith.constant 0 : index
    %c0_21 = arith.constant 0 : index
    %21 = vector.load %arg2[%c0_18, %c0_19, %c0_20, %c0_21] : memref<1x32x32x1xf32, #tpu.memory_space<vmem>>, vector<1x32x32x1xf32>
    %22 = vector.shape_cast %21 : vector<1x32x32x1xf32> to vector<32x32x1xf32>
    %23 = vector.shape_cast %20 : vector<32x32xf32> to vector<1x32x32xf32>
    %24 = vector.broadcast %23 : vector<1x32x32xf32> to vector<32x32x32xf32>
    %25 = vector.broadcast %22 : vector<32x32x1xf32> to vector<32x32x32xf32>
    %26 = arith.addf %24, %25 : vector<32x32x32xf32>
    %cst_22 = arith.constant dense<0xFF800000> : vector<32x32xf32>
    %27 = vector.multi_reduction <maximumf>, %26, %cst_22 [1] : vector<32x32x32xf32> to vector<32x32xf32>
    %28 = arith.addf %17, %27 : vector<32x32xf32>
    %cst_23 = arith.constant 0.000000e+00 : f32
    %29 = vector.broadcast %cst_23 : f32 to vector<32x32xf32>
    %30 = arith.maximumf %28, %29 : vector<32x32xf32>
    %31 = arith.addf %9, %30 : vector<32x32xf32>
    %32 = arith.truncf %31 : vector<32x32xf32> to vector<32x32xbf16>
    %c1 = arith.constant 1 : index
    %c0_24 = arith.constant 0 : index
    %c0_25 = arith.constant 0 : index
    %33 = vector.load %arg7[%c1, %c0_24, %c0_25] : memref<3x32x32xbf16, #tpu.memory_space<vmem>>, vector<1x32x32xbf16>
    %34 = vector.shape_cast %33 : vector<1x32x32xbf16> to vector<32x32xbf16>
    %cst_26 = arith.constant dense<0.000000e+00> : vector<32x32xf32>
    %35 = tpu.matmul %32, %34, %cst_26 {dimension_numbers = #tpu.dot_dimension_numbers<[1], [0], [0], [1], [0, 0, 1, 1], [], []>} : vector<32x32xbf16>, vector<32x32xbf16>, vector<32x32xf32> -> vector<32x32xf32>
    %c1_27 = arith.constant 1 : index
    %c0_28 = arith.constant 0 : index
    %c0_29 = arith.constant 0 : index
    %36 = vector.load %arg9[%c1_27, %c0_28, %c0_29] : memref<3x1x32xf32, #tpu.memory_space<vmem>>, vector<1x1x32xf32>
    %37 = vector.shape_cast %36 : vector<1x1x32xf32> to vector<1x32xf32>
    %38 = vector.broadcast %37 : vector<1x32xf32> to vector<32x32xf32>
    %39 = arith.addf %35, %38 : vector<32x32xf32>
    %c1_30 = arith.constant 1 : index
    %c0_31 = arith.constant 0 : index
    %c0_32 = arith.constant 0 : index
    %40 = vector.load %arg8[%c1_30, %c0_31, %c0_32] : memref<3x32x32xbf16, #tpu.memory_space<vmem>>, vector<1x32x32xbf16>
    %41 = vector.shape_cast %40 : vector<1x32x32xbf16> to vector<32x32xbf16>
    %cst_33 = arith.constant dense<0.000000e+00> : vector<32x32xf32>
    %42 = tpu.matmul %32, %41, %cst_33 {dimension_numbers = #tpu.dot_dimension_numbers<[1], [0], [0], [1], [0, 0, 1, 1], [], []>} : vector<32x32xbf16>, vector<32x32xbf16>, vector<32x32xf32> -> vector<32x32xf32>
    %c0_34 = arith.constant 0 : index
    %c0_35 = arith.constant 0 : index
    %c0_36 = arith.constant 0 : index
    %c0_37 = arith.constant 0 : index
    %43 = vector.load %arg3[%c0_34, %c0_35, %c0_36, %c0_37] : memref<1x32x32x1xf32, #tpu.memory_space<vmem>>, vector<1x32x32x1xf32>
    %44 = vector.shape_cast %43 : vector<1x32x32x1xf32> to vector<32x32x1xf32>
    %45 = vector.shape_cast %42 : vector<32x32xf32> to vector<1x32x32xf32>
    %46 = vector.broadcast %45 : vector<1x32x32xf32> to vector<32x32x32xf32>
    %47 = vector.broadcast %44 : vector<32x32x1xf32> to vector<32x32x32xf32>
    %48 = arith.addf %46, %47 : vector<32x32x32xf32>
    %cst_38 = arith.constant dense<0xFF800000> : vector<32x32xf32>
    %49 = vector.multi_reduction <maximumf>, %48, %cst_38 [1] : vector<32x32x32xf32> to vector<32x32xf32>
    %50 = arith.addf %39, %49 : vector<32x32xf32>
    %cst_39 = arith.constant 0.000000e+00 : f32
    %51 = vector.broadcast %cst_39 : f32 to vector<32x32xf32>
    %52 = arith.maximumf %50, %51 : vector<32x32xf32>
    %53 = arith.addf %31, %52 : vector<32x32xf32>
    %54 = arith.truncf %53 : vector<32x32xf32> to vector<32x32xbf16>
    %c2 = arith.constant 2 : index
    %c0_40 = arith.constant 0 : index
    %c0_41 = arith.constant 0 : index
    %55 = vector.load %arg7[%c2, %c0_40, %c0_41] : memref<3x32x32xbf16, #tpu.memory_space<vmem>>, vector<1x32x32xbf16>
    %56 = vector.shape_cast %55 : vector<1x32x32xbf16> to vector<32x32xbf16>
    %cst_42 = arith.constant dense<0.000000e+00> : vector<32x32xf32>
    %57 = tpu.matmul %54, %56, %cst_42 {dimension_numbers = #tpu.dot_dimension_numbers<[1], [0], [0], [1], [0, 0, 1, 1], [], []>} : vector<32x32xbf16>, vector<32x32xbf16>, vector<32x32xf32> -> vector<32x32xf32>
    %c2_43 = arith.constant 2 : index
    %c0_44 = arith.constant 0 : index
    %c0_45 = arith.constant 0 : index
    %58 = vector.load %arg9[%c2_43, %c0_44, %c0_45] : memref<3x1x32xf32, #tpu.memory_space<vmem>>, vector<1x1x32xf32>
    %59 = vector.shape_cast %58 : vector<1x1x32xf32> to vector<1x32xf32>
    %60 = vector.broadcast %59 : vector<1x32xf32> to vector<32x32xf32>
    %61 = arith.addf %57, %60 : vector<32x32xf32>
    %c2_46 = arith.constant 2 : index
    %c0_47 = arith.constant 0 : index
    %c0_48 = arith.constant 0 : index
    %62 = vector.load %arg8[%c2_46, %c0_47, %c0_48] : memref<3x32x32xbf16, #tpu.memory_space<vmem>>, vector<1x32x32xbf16>
    %63 = vector.shape_cast %62 : vector<1x32x32xbf16> to vector<32x32xbf16>
    %cst_49 = arith.constant dense<0.000000e+00> : vector<32x32xf32>
    %64 = tpu.matmul %54, %63, %cst_49 {dimension_numbers = #tpu.dot_dimension_numbers<[1], [0], [0], [1], [0, 0, 1, 1], [], []>} : vector<32x32xbf16>, vector<32x32xbf16>, vector<32x32xf32> -> vector<32x32xf32>
    %c0_50 = arith.constant 0 : index
    %c0_51 = arith.constant 0 : index
    %c0_52 = arith.constant 0 : index
    %c0_53 = arith.constant 0 : index
    %65 = vector.load %arg4[%c0_50, %c0_51, %c0_52, %c0_53] : memref<1x32x32x1xf32, #tpu.memory_space<vmem>>, vector<1x32x32x1xf32>
    %66 = vector.shape_cast %65 : vector<1x32x32x1xf32> to vector<32x32x1xf32>
    %67 = vector.shape_cast %64 : vector<32x32xf32> to vector<1x32x32xf32>
    %68 = vector.broadcast %67 : vector<1x32x32xf32> to vector<32x32x32xf32>
    %69 = vector.broadcast %66 : vector<32x32x1xf32> to vector<32x32x32xf32>
    %70 = arith.addf %68, %69 : vector<32x32x32xf32>
    %cst_54 = arith.constant dense<0xFF800000> : vector<32x32xf32>
    %71 = vector.multi_reduction <maximumf>, %70, %cst_54 [1] : vector<32x32x32xf32> to vector<32x32xf32>
    %72 = arith.addf %61, %71 : vector<32x32xf32>
    %cst_55 = arith.constant 0.000000e+00 : f32
    %73 = vector.broadcast %cst_55 : f32 to vector<32x32xf32>
    %74 = arith.maximumf %72, %73 : vector<32x32xf32>
    %75 = arith.addf %53, %74 : vector<32x32xf32>
    %76 = arith.truncf %75 : vector<32x32xf32> to vector<32x32xbf16>
    %c0_56 = arith.constant 0 : index
    %c0_57 = arith.constant 0 : index
    %77 = vector.load %arg10[%c0_56, %c0_57] : memref<32x32xbf16, #tpu.memory_space<vmem>>, vector<32x32xbf16>
    %cst_58 = arith.constant dense<0.000000e+00> : vector<32x32xf32>
    %78 = tpu.matmul %76, %77, %cst_58 {dimension_numbers = #tpu.dot_dimension_numbers<[1], [0], [0], [1], [0, 0, 1, 1], [], []>} : vector<32x32xbf16>, vector<32x32xbf16>, vector<32x32xf32> -> vector<32x32xf32>
    %cst_59 = arith.constant dense<0xFF800000> : vector<32xf32>
    %79 = vector.multi_reduction <maximumf>, %78, %cst_59 [0] : vector<32x32xf32> to vector<32xf32>
    %80 = vector.shape_cast %79 : vector<32xf32> to vector<1x32xf32>
    %c0_60 = arith.constant 0 : index
    %c0_61 = arith.constant 0 : index
    %81 = vector.load %arg11[%c0_60, %c0_61] : memref<1x32xf32, #tpu.memory_space<vmem>>, vector<1x32xf32>
    %82 = arith.addf %80, %81 : vector<1x32xf32>
    %c0_62 = arith.constant 0 : index
    %c0_63 = arith.constant 0 : index
    %c0_64 = arith.constant 0 : index
    %83 = vector.load %arg12[%c0_62, %c0_63, %c0_64] : memref<1x1x32xf32, #tpu.memory_space<vmem>>, vector<1x1x32xf32>
    %84 = vector.shape_cast %83 : vector<1x1x32xf32> to vector<1x32xf32>
    %85 = vector.shape_cast %82 : vector<1x32xf32> to vector<1x1x32xf32>
    tpu.vector_store %arg12[%c0_62, %c0_63, %c0_64], %85 {strides = array<i32>} : memref<1x1x32xf32, #tpu.memory_space<vmem>>, vector<1x1x32xf32>,
    return
  }
  func.func @transform_0(%arg0: i32) -> (i32, i32, i32) {
    %c0_i32 = arith.constant 0 : i32
    %c0_i32_0 = arith.constant 0 : i32
    %c0_i32_1 = arith.constant 0 : i32
    return %arg0, %c0_i32, %c0_i32_0 : i32, i32, i32
  }
  func.func @transform_1(%arg0: i32) -> (i32, i32, i32, i32) {
    %c0_i32 = arith.constant 0 : i32
    %c0_i32_0 = arith.constant 0 : i32
    %c0_i32_1 = arith.constant 0 : i32
    %c0_i32_2 = arith.constant 0 : i32
    return %arg0, %c0_i32, %c0_i32_0, %c0_i32_1 : i32, i32, i32, i32
  }
  func.func @transform_2(%arg0: i32) -> (i32, i32, i32, i32) {
    %c0_i32 = arith.constant 0 : i32
    %c0_i32_0 = arith.constant 0 : i32
    %c0_i32_1 = arith.constant 0 : i32
    %c0_i32_2 = arith.constant 0 : i32
    return %arg0, %c0_i32, %c0_i32_0, %c0_i32_1 : i32, i32, i32, i32
  }
  func.func @transform_3(%arg0: i32) -> (i32, i32, i32, i32) {
    %c0_i32 = arith.constant 0 : i32
    %c0_i32_0 = arith.constant 0 : i32
    %c0_i32_1 = arith.constant 0 : i32
    %c0_i32_2 = arith.constant 0 : i32
    return %arg0, %c0_i32, %c0_i32_0, %c0_i32_1 : i32, i32, i32, i32
  }
  func.func @transform_4(%arg0: i32) -> (i32, i32) {
    %c0_i32 = arith.constant 0 : i32
    %c0_i32_0 = arith.constant 0 : i32
    %c0_i32_1 = arith.constant 0 : i32
    return %c0_i32, %c0_i32_0 : i32, i32
  }
  func.func @transform_5(%arg0: i32) -> (i32, i32) {
    %c0_i32 = arith.constant 0 : i32
    %c0_i32_0 = arith.constant 0 : i32
    %c0_i32_1 = arith.constant 0 : i32
    return %c0_i32, %c0_i32_0 : i32, i32
  }
  func.func @transform_6(%arg0: i32) -> (i32, i32, i32) {
    %c0_i32 = arith.constant 0 : i32
    %c0_i32_0 = arith.constant 0 : i32
    %c0_i32_1 = arith.constant 0 : i32
    %c0_i32_2 = arith.constant 0 : i32
    return %c0_i32, %c0_i32_0, %c0_i32_1 : i32, i32, i32
  }
  func.func @transform_7(%arg0: i32) -> (i32, i32, i32) {
    %c0_i32 = arith.constant 0 : i32
    %c0_i32_0 = arith.constant 0 : i32
    %c0_i32_1 = arith.constant 0 : i32
    %c0_i32_2 = arith.constant 0 : i32
    return %c0_i32, %c0_i32_0, %c0_i32_1 : i32, i32, i32
  }
  func.func @transform_8(%arg0: i32) -> (i32, i32, i32) {
    %c0_i32 = arith.constant 0 : i32
    %c0_i32_0 = arith.constant 0 : i32
    %c0_i32_1 = arith.constant 0 : i32
    %c0_i32_2 = arith.constant 0 : i32
    return %c0_i32, %c0_i32_0, %c0_i32_1 : i32, i32, i32
  }
  func.func @transform_9(%arg0: i32) -> (i32, i32) {
    %c0_i32 = arith.constant 0 : i32
    %c0_i32_0 = arith.constant 0 : i32
    %c0_i32_1 = arith.constant 0 : i32
    return %c0_i32, %c0_i32_0 : i32, i32
  }
  func.func @transform_10(%arg0: i32) -> (i32, i32) {
    %c0_i32 = arith.constant 0 : i32
    %c0_i32_0 = arith.constant 0 : i32
    %c0_i32_1 = arith.constant 0 : i32
    return %c0_i32, %c0_i32_0 : i32, i32
  }
  func.func @transform_11(%arg0: i32) -> (i32, i32, i32) {
    %c0_i32 = arith.constant 0 : i32
    %c0_i32_0 = arith.constant 0 : i32
    %c0_i32_1 = arith.constant 0 : i32
    return %arg0, %c0_i32, %c0_i32_0 : i32, i32, i32
  }
}

module attributes {stable_mosaic.version = 11 : i64} {
  func.func @_linear_kernel(%arg0: i32, %arg1: memref<8x64xf32, #tpu.memory_space<vmem>>, %arg2: memref<64x16xbf16, #tpu.memory_space<vmem>>, %arg3: memref<1x16xf32, #tpu.memory_space<vmem>>, %arg4: memref<8x16xf32, #tpu.memory_space<vmem>>) attributes {dimension_semantics = [#tpu.dimension_semantics<parallel>], iteration_bounds = array<i64: 1>, scalar_prefetch = 0 : i64, scratch_operands = 0 : i64, tpu.core_type = #tpu.core_type<tc>, window_params = [{transform_indices = @transform_0, window_bounds = array<i64: 8, 64>}, {pipeline_mode = #tpu.pipeline_mode<synchronous>, transform_indices = @transform_1, window_bounds = array<i64: 64, 16>}, {pipeline_mode = #tpu.pipeline_mode<synchronous>, transform_indices = @transform_2, window_bounds = array<i64: 1, 16>}, {transform_indices = @transform_3, window_bounds = array<i64: 8, 16>}]} {
    %c0 = arith.constant 0 : index
    %c0_0 = arith.constant 0 : index
    %0 = vector.load %arg1[%c0, %c0_0] : memref<8x64xf32, #tpu.memory_space<vmem>>, vector<8x64xf32>
    %1 = arith.truncf %0 : vector<8x64xf32> to vector<8x64xbf16>
    %c0_1 = arith.constant 0 : index
    %c0_2 = arith.constant 0 : index
    %2 = vector.load %arg2[%c0_1, %c0_2] : memref<64x16xbf16, #tpu.memory_space<vmem>>, vector<64x16xbf16>
    %cst = arith.constant dense<0.000000e+00> : vector<8x16xf32>
    %3 = tpu.matmul %1, %2, %cst {dimension_numbers = #tpu.dot_dimension_numbers<[1], [0], [0], [1], [0, 0, 1, 1], [], []>} : vector<8x64xbf16>, vector<64x16xbf16>, vector<8x16xf32> -> vector<8x16xf32>
    %c0_3 = arith.constant 0 : index
    %c0_4 = arith.constant 0 : index
    %4 = vector.load %arg3[%c0_3, %c0_4] : memref<1x16xf32, #tpu.memory_space<vmem>>, vector<1x16xf32>
    %5 = vector.broadcast %4 : vector<1x16xf32> to vector<8x16xf32>
    %6 = arith.addf %3, %5 : vector<8x16xf32>
    %c0_5 = arith.constant 0 : index
    %c0_6 = arith.constant 0 : index
    %7 = vector.load %arg4[%c0_5, %c0_6] : memref<8x16xf32, #tpu.memory_space<vmem>>, vector<8x16xf32>
    tpu.vector_store %arg4[%c0_5, %c0_6], %6 {strides = array<i32>} : memref<8x16xf32, #tpu.memory_space<vmem>>, vector<8x16xf32>,
    return
  }
  func.func @transform_0(%arg0: i32) -> (i32, i32) {
    %c0_i32 = arith.constant 0 : i32
    %c0_i32_0 = arith.constant 0 : i32
    return %arg0, %c0_i32 : i32, i32
  }
  func.func @transform_1(%arg0: i32) -> (i32, i32) {
    %c0_i32 = arith.constant 0 : i32
    %c0_i32_0 = arith.constant 0 : i32
    %c0_i32_1 = arith.constant 0 : i32
    return %c0_i32, %c0_i32_0 : i32, i32
  }
  func.func @transform_2(%arg0: i32) -> (i32, i32) {
    %c0_i32 = arith.constant 0 : i32
    %c0_i32_0 = arith.constant 0 : i32
    %c0_i32_1 = arith.constant 0 : i32
    return %c0_i32, %c0_i32_0 : i32, i32
  }
  func.func @transform_3(%arg0: i32) -> (i32, i32) {
    %c0_i32 = arith.constant 0 : i32
    %c0_i32_0 = arith.constant 0 : i32
    return %arg0, %c0_i32 : i32, i32
  }
}

module attributes {stable_mosaic.version = 11 : i64} {
  func.func @_resgcn_kernel(%arg0: i32, %arg1: memref<1x4x3xf32, #tpu.memory_space<vmem>>, %arg2: memref<1x4x4x1xf32, #tpu.memory_space<vmem>>, %arg3: memref<1x4x4x1xf32, #tpu.memory_space<vmem>>, %arg4: memref<1x4x4x1xf32, #tpu.memory_space<vmem>>, %arg5: memref<3x32xbf16, #tpu.memory_space<vmem>>, %arg6: memref<1x32xf32, #tpu.memory_space<vmem>>, %arg7: memref<3x32x32xbf16, #tpu.memory_space<vmem>>, %arg8: memref<3x32x32xbf16, #tpu.memory_space<vmem>>, %arg9: memref<3x1x32xf32, #tpu.memory_space<vmem>>, %arg10: memref<32x32xbf16, #tpu.memory_space<vmem>>, %arg11: memref<1x32xf32, #tpu.memory_space<vmem>>, %arg12: memref<1x4x32xf32, #tpu.memory_space<vmem>>) attributes {dimension_semantics = [#tpu.dimension_semantics<parallel>], iteration_bounds = array<i64: 1>, scalar_prefetch = 0 : i64, scratch_operands = 0 : i64, tpu.core_type = #tpu.core_type<tc>, window_params = [{transform_indices = @transform_0, window_bounds = array<i64: 1, 4, 3>}, {transform_indices = @transform_1, window_bounds = array<i64: 1, 4, 4, 1>}, {transform_indices = @transform_2, window_bounds = array<i64: 1, 4, 4, 1>}, {transform_indices = @transform_3, window_bounds = array<i64: 1, 4, 4, 1>}, {pipeline_mode = #tpu.pipeline_mode<synchronous>, transform_indices = @transform_4, window_bounds = array<i64: 3, 32>}, {pipeline_mode = #tpu.pipeline_mode<synchronous>, transform_indices = @transform_5, window_bounds = array<i64: 1, 32>}, {pipeline_mode = #tpu.pipeline_mode<synchronous>, transform_indices = @transform_6, window_bounds = array<i64: 3, 32, 32>}, {pipeline_mode = #tpu.pipeline_mode<synchronous>, transform_indices = @transform_7, window_bounds = array<i64: 3, 32, 32>}, {pipeline_mode = #tpu.pipeline_mode<synchronous>, transform_indices = @transform_8, window_bounds = array<i64: 3, 1, 32>}, {pipeline_mode = #tpu.pipeline_mode<synchronous>, transform_indices = @transform_9, window_bounds = array<i64: 32, 32>}, {pipeline_mode = #tpu.pipeline_mode<synchronous>, transform_indices = @transform_10, window_bounds = array<i64: 1, 32>}, {transform_indices = @transform_11, window_bounds = array<i64: 1, 4, 32>}]} {
    %c0 = arith.constant 0 : index
    %c0_0 = arith.constant 0 : index
    %c0_1 = arith.constant 0 : index
    %0 = vector.load %arg1[%c0, %c0_0, %c0_1] : memref<1x4x3xf32, #tpu.memory_space<vmem>>, vector<1x4x3xf32>
    %1 = vector.shape_cast %0 : vector<1x4x3xf32> to vector<4x3xf32>
    %2 = arith.truncf %1 : vector<4x3xf32> to vector<4x3xbf16>
    %c0_2 = arith.constant 0 : index
    %c0_3 = arith.constant 0 : index
    %3 = vector.load %arg5[%c0_2, %c0_3] : memref<3x32xbf16, #tpu.memory_space<vmem>>, vector<3x32xbf16>
    %cst = arith.constant dense<0.000000e+00> : vector<4x32xf32>
    %4 = tpu.matmul %2, %3, %cst {dimension_numbers = #tpu.dot_dimension_numbers<[1], [0], [0], [1], [0, 0, 1, 1], [], []>} : vector<4x3xbf16>, vector<3x32xbf16>, vector<4x32xf32> -> vector<4x32xf32>
    %c0_4 = arith.constant 0 : index
    %c0_5 = arith.constant 0 : index
    %5 = vector.load %arg6[%c0_4, %c0_5] : memref<1x32xf32, #tpu.memory_space<vmem>>, vector<1x32xf32>
    %6 = vector.broadcast %5 : vector<1x32xf32> to vector<4x32xf32>
    %7 = arith.addf %4, %6 : vector<4x32xf32>
    %cst_6 = arith.constant 0.000000e+00 : f32
    %8 = vector.broadcast %cst_6 : f32 to vector<4x32xf32>
    %9 = arith.maximumf %7, %8 : vector<4x32xf32>
    %10 = arith.truncf %9 : vector<4x32xf32> to vector<4x32xbf16>
    %c0_7 = arith.constant 0 : index
    %c0_8 = arith.constant 0 : index
    %c0_9 = arith.constant 0 : index
    %11 = vector.load %arg7[%c0_7, %c0_8, %c0_9] : memref<3x32x32xbf16, #tpu.memory_space<vmem>>, vector<1x32x32xbf16>
    %12 = vector.shape_cast %11 : vector<1x32x32xbf16> to vector<32x32xbf16>
    %cst_10 = arith.constant dense<0.000000e+00> : vector<4x32xf32>
    %13 = tpu.matmul %10, %12, %cst_10 {dimension_numbers = #tpu.dot_dimension_numbers<[1], [0], [0], [1], [0, 0, 1, 1], [], []>} : vector<4x32xbf16>, vector<32x32xbf16>, vector<4x32xf32> -> vector<4x32xf32>
    %c0_11 = arith.constant 0 : index
    %c0_12 = arith.constant 0 : index
    %c0_13 = arith.constant 0 : index
    %14 = vector.load %arg9[%c0_11, %c0_12, %c0_13] : memref<3x1x32xf32, #tpu.memory_space<vmem>>, vector<1x1x32xf32>
    %15 = vector.shape_cast %14 : vector<1x1x32xf32> to vector<1x32xf32>
    %16 = vector.broadcast %15 : vector<1x32xf32> to vector<4x32xf32>
    %17 = arith.addf %13, %16 : vector<4x32xf32>
    %c0_14 = arith.constant 0 : index
    %c0_15 = arith.constant 0 : index
    %c0_16 = arith.constant 0 : index
    %18 = vector.load %arg8[%c0_14, %c0_15, %c0_16] : memref<3x32x32xbf16, #tpu.memory_space<vmem>>, vector<1x32x32xbf16>
    %19 = vector.shape_cast %18 : vector<1x32x32xbf16> to vector<32x32xbf16>
    %cst_17 = arith.constant dense<0.000000e+00> : vector<4x32xf32>
    %20 = tpu.matmul %10, %19, %cst_17 {dimension_numbers = #tpu.dot_dimension_numbers<[1], [0], [0], [1], [0, 0, 1, 1], [], []>} : vector<4x32xbf16>, vector<32x32xbf16>, vector<4x32xf32> -> vector<4x32xf32>
    %c0_18 = arith.constant 0 : index
    %c0_19 = arith.constant 0 : index
    %c0_20 = arith.constant 0 : index
    %c0_21 = arith.constant 0 : index
    %21 = vector.load %arg2[%c0_18, %c0_19, %c0_20, %c0_21] : memref<1x4x4x1xf32, #tpu.memory_space<vmem>>, vector<1x4x4x1xf32>
    %22 = vector.shape_cast %21 : vector<1x4x4x1xf32> to vector<4x4x1xf32>
    %23 = vector.shape_cast %20 : vector<4x32xf32> to vector<1x4x32xf32>
    %24 = vector.broadcast %23 : vector<1x4x32xf32> to vector<4x4x32xf32>
    %25 = vector.broadcast %22 : vector<4x4x1xf32> to vector<4x4x32xf32>
    %26 = arith.addf %24, %25 : vector<4x4x32xf32>
    %cst_22 = arith.constant dense<0xFF800000> : vector<4x32xf32>
    %27 = vector.multi_reduction <maximumf>, %26, %cst_22 [1] : vector<4x4x32xf32> to vector<4x32xf32>
    %28 = arith.addf %17, %27 : vector<4x32xf32>
    %cst_23 = arith.constant 0.000000e+00 : f32
    %29 = vector.broadcast %cst_23 : f32 to vector<4x32xf32>
    %30 = arith.maximumf %28, %29 : vector<4x32xf32>
    %31 = arith.addf %9, %30 : vector<4x32xf32>
    %32 = arith.truncf %31 : vector<4x32xf32> to vector<4x32xbf16>
    %c1 = arith.constant 1 : index
    %c0_24 = arith.constant 0 : index
    %c0_25 = arith.constant 0 : index
    %33 = vector.load %arg7[%c1, %c0_24, %c0_25] : memref<3x32x32xbf16, #tpu.memory_space<vmem>>, vector<1x32x32xbf16>
    %34 = vector.shape_cast %33 : vector<1x32x32xbf16> to vector<32x32xbf16>
    %cst_26 = arith.constant dense<0.000000e+00> : vector<4x32xf32>
    %35 = tpu.matmul %32, %34, %cst_26 {dimension_numbers = #tpu.dot_dimension_numbers<[1], [0], [0], [1], [0, 0, 1, 1], [], []>} : vector<4x32xbf16>, vector<32x32xbf16>, vector<4x32xf32> -> vector<4x32xf32>
    %c1_27 = arith.constant 1 : index
    %c0_28 = arith.constant 0 : index
    %c0_29 = arith.constant 0 : index
    %36 = vector.load %arg9[%c1_27, %c0_28, %c0_29] : memref<3x1x32xf32, #tpu.memory_space<vmem>>, vector<1x1x32xf32>
    %37 = vector.shape_cast %36 : vector<1x1x32xf32> to vector<1x32xf32>
    %38 = vector.broadcast %37 : vector<1x32xf32> to vector<4x32xf32>
    %39 = arith.addf %35, %38 : vector<4x32xf32>
    %c1_30 = arith.constant 1 : index
    %c0_31 = arith.constant 0 : index
    %c0_32 = arith.constant 0 : index
    %40 = vector.load %arg8[%c1_30, %c0_31, %c0_32] : memref<3x32x32xbf16, #tpu.memory_space<vmem>>, vector<1x32x32xbf16>
    %41 = vector.shape_cast %40 : vector<1x32x32xbf16> to vector<32x32xbf16>
    %cst_33 = arith.constant dense<0.000000e+00> : vector<4x32xf32>
    %42 = tpu.matmul %32, %41, %cst_33 {dimension_numbers = #tpu.dot_dimension_numbers<[1], [0], [0], [1], [0, 0, 1, 1], [], []>} : vector<4x32xbf16>, vector<32x32xbf16>, vector<4x32xf32> -> vector<4x32xf32>
    %c0_34 = arith.constant 0 : index
    %c0_35 = arith.constant 0 : index
    %c0_36 = arith.constant 0 : index
    %c0_37 = arith.constant 0 : index
    %43 = vector.load %arg3[%c0_34, %c0_35, %c0_36, %c0_37] : memref<1x4x4x1xf32, #tpu.memory_space<vmem>>, vector<1x4x4x1xf32>
    %44 = vector.shape_cast %43 : vector<1x4x4x1xf32> to vector<4x4x1xf32>
    %45 = vector.shape_cast %42 : vector<4x32xf32> to vector<1x4x32xf32>
    %46 = vector.broadcast %45 : vector<1x4x32xf32> to vector<4x4x32xf32>
    %47 = vector.broadcast %44 : vector<4x4x1xf32> to vector<4x4x32xf32>
    %48 = arith.addf %46, %47 : vector<4x4x32xf32>
    %cst_38 = arith.constant dense<0xFF800000> : vector<4x32xf32>
    %49 = vector.multi_reduction <maximumf>, %48, %cst_38 [1] : vector<4x4x32xf32> to vector<4x32xf32>
    %50 = arith.addf %39, %49 : vector<4x32xf32>
    %cst_39 = arith.constant 0.000000e+00 : f32
    %51 = vector.broadcast %cst_39 : f32 to vector<4x32xf32>
    %52 = arith.maximumf %50, %51 : vector<4x32xf32>
    %53 = arith.addf %31, %52 : vector<4x32xf32>
    %54 = arith.truncf %53 : vector<4x32xf32> to vector<4x32xbf16>
    %c2 = arith.constant 2 : index
    %c0_40 = arith.constant 0 : index
    %c0_41 = arith.constant 0 : index
    %55 = vector.load %arg7[%c2, %c0_40, %c0_41] : memref<3x32x32xbf16, #tpu.memory_space<vmem>>, vector<1x32x32xbf16>
    %56 = vector.shape_cast %55 : vector<1x32x32xbf16> to vector<32x32xbf16>
    %cst_42 = arith.constant dense<0.000000e+00> : vector<4x32xf32>
    %57 = tpu.matmul %54, %56, %cst_42 {dimension_numbers = #tpu.dot_dimension_numbers<[1], [0], [0], [1], [0, 0, 1, 1], [], []>} : vector<4x32xbf16>, vector<32x32xbf16>, vector<4x32xf32> -> vector<4x32xf32>
    %c2_43 = arith.constant 2 : index
    %c0_44 = arith.constant 0 : index
    %c0_45 = arith.constant 0 : index
    %58 = vector.load %arg9[%c2_43, %c0_44, %c0_45] : memref<3x1x32xf32, #tpu.memory_space<vmem>>, vector<1x1x32xf32>
    %59 = vector.shape_cast %58 : vector<1x1x32xf32> to vector<1x32xf32>
    %60 = vector.broadcast %59 : vector<1x32xf32> to vector<4x32xf32>
    %61 = arith.addf %57, %60 : vector<4x32xf32>
    %c2_46 = arith.constant 2 : index
    %c0_47 = arith.constant 0 : index
    %c0_48 = arith.constant 0 : index
    %62 = vector.load %arg8[%c2_46, %c0_47, %c0_48] : memref<3x32x32xbf16, #tpu.memory_space<vmem>>, vector<1x32x32xbf16>
    %63 = vector.shape_cast %62 : vector<1x32x32xbf16> to vector<32x32xbf16>
    %cst_49 = arith.constant dense<0.000000e+00> : vector<4x32xf32>
    %64 = tpu.matmul %54, %63, %cst_49 {dimension_numbers = #tpu.dot_dimension_numbers<[1], [0], [0], [1], [0, 0, 1, 1], [], []>} : vector<4x32xbf16>, vector<32x32xbf16>, vector<4x32xf32> -> vector<4x32xf32>
    %c0_50 = arith.constant 0 : index
    %c0_51 = arith.constant 0 : index
    %c0_52 = arith.constant 0 : index
    %c0_53 = arith.constant 0 : index
    %65 = vector.load %arg4[%c0_50, %c0_51, %c0_52, %c0_53] : memref<1x4x4x1xf32, #tpu.memory_space<vmem>>, vector<1x4x4x1xf32>
    %66 = vector.shape_cast %65 : vector<1x4x4x1xf32> to vector<4x4x1xf32>
    %67 = vector.shape_cast %64 : vector<4x32xf32> to vector<1x4x32xf32>
    %68 = vector.broadcast %67 : vector<1x4x32xf32> to vector<4x4x32xf32>
    %69 = vector.broadcast %66 : vector<4x4x1xf32> to vector<4x4x32xf32>
    %70 = arith.addf %68, %69 : vector<4x4x32xf32>
    %cst_54 = arith.constant dense<0xFF800000> : vector<4x32xf32>
    %71 = vector.multi_reduction <maximumf>, %70, %cst_54 [1] : vector<4x4x32xf32> to vector<4x32xf32>
    %72 = arith.addf %61, %71 : vector<4x32xf32>
    %cst_55 = arith.constant 0.000000e+00 : f32
    %73 = vector.broadcast %cst_55 : f32 to vector<4x32xf32>
    %74 = arith.maximumf %72, %73 : vector<4x32xf32>
    %75 = arith.addf %53, %74 : vector<4x32xf32>
    %76 = arith.truncf %75 : vector<4x32xf32> to vector<4x32xbf16>
    %c0_56 = arith.constant 0 : index
    %c0_57 = arith.constant 0 : index
    %77 = vector.load %arg10[%c0_56, %c0_57] : memref<32x32xbf16, #tpu.memory_space<vmem>>, vector<32x32xbf16>
    %cst_58 = arith.constant dense<0.000000e+00> : vector<4x32xf32>
    %78 = tpu.matmul %76, %77, %cst_58 {dimension_numbers = #tpu.dot_dimension_numbers<[1], [0], [0], [1], [0, 0, 1, 1], [], []>} : vector<4x32xbf16>, vector<32x32xbf16>, vector<4x32xf32> -> vector<4x32xf32>
    %c0_59 = arith.constant 0 : index
    %c0_60 = arith.constant 0 : index
    %79 = vector.load %arg11[%c0_59, %c0_60] : memref<1x32xf32, #tpu.memory_space<vmem>>, vector<1x32xf32>
    %80 = vector.broadcast %79 : vector<1x32xf32> to vector<4x32xf32>
    %81 = arith.addf %78, %80 : vector<4x32xf32>
    %c0_61 = arith.constant 0 : index
    %c0_62 = arith.constant 0 : index
    %c0_63 = arith.constant 0 : index
    %82 = vector.load %arg12[%c0_61, %c0_62, %c0_63] : memref<1x4x32xf32, #tpu.memory_space<vmem>>, vector<1x4x32xf32>
    %83 = vector.shape_cast %82 : vector<1x4x32xf32> to vector<4x32xf32>
    %84 = vector.shape_cast %81 : vector<4x32xf32> to vector<1x4x32xf32>
    tpu.vector_store %arg12[%c0_61, %c0_62, %c0_63], %84 {strides = array<i32>} : memref<1x4x32xf32, #tpu.memory_space<vmem>>, vector<1x4x32xf32>,
    return
  }
  func.func @transform_0(%arg0: i32) -> (i32, i32, i32) {
    %c0_i32 = arith.constant 0 : i32
    %c0_i32_0 = arith.constant 0 : i32
    %c0_i32_1 = arith.constant 0 : i32
    return %arg0, %c0_i32, %c0_i32_0 : i32, i32, i32
  }
  func.func @transform_1(%arg0: i32) -> (i32, i32, i32, i32) {
    %c0_i32 = arith.constant 0 : i32
    %c0_i32_0 = arith.constant 0 : i32
    %c0_i32_1 = arith.constant 0 : i32
    %c0_i32_2 = arith.constant 0 : i32
    return %arg0, %c0_i32, %c0_i32_0, %c0_i32_1 : i32, i32, i32, i32
  }
  func.func @transform_2(%arg0: i32) -> (i32, i32, i32, i32) {
    %c0_i32 = arith.constant 0 : i32
    %c0_i32_0 = arith.constant 0 : i32
    %c0_i32_1 = arith.constant 0 : i32
    %c0_i32_2 = arith.constant 0 : i32
    return %arg0, %c0_i32, %c0_i32_0, %c0_i32_1 : i32, i32, i32, i32
  }
  func.func @transform_3(%arg0: i32) -> (i32, i32, i32, i32) {
    %c0_i32 = arith.constant 0 : i32
    %c0_i32_0 = arith.constant 0 : i32
    %c0_i32_1 = arith.constant 0 : i32
    %c0_i32_2 = arith.constant 0 : i32
    return %arg0, %c0_i32, %c0_i32_0, %c0_i32_1 : i32, i32, i32, i32
  }
  func.func @transform_4(%arg0: i32) -> (i32, i32) {
    %c0_i32 = arith.constant 0 : i32
    %c0_i32_0 = arith.constant 0 : i32
    %c0_i32_1 = arith.constant 0 : i32
    return %c0_i32, %c0_i32_0 : i32, i32
  }
  func.func @transform_5(%arg0: i32) -> (i32, i32) {
    %c0_i32 = arith.constant 0 : i32
    %c0_i32_0 = arith.constant 0 : i32
    %c0_i32_1 = arith.constant 0 : i32
    return %c0_i32, %c0_i32_0 : i32, i32
  }
  func.func @transform_6(%arg0: i32) -> (i32, i32, i32) {
    %c0_i32 = arith.constant 0 : i32
    %c0_i32_0 = arith.constant 0 : i32
    %c0_i32_1 = arith.constant 0 : i32
    %c0_i32_2 = arith.constant 0 : i32
    return %c0_i32, %c0_i32_0, %c0_i32_1 : i32, i32, i32
  }
  func.func @transform_7(%arg0: i32) -> (i32, i32, i32) {
    %c0_i32 = arith.constant 0 : i32
    %c0_i32_0 = arith.constant 0 : i32
    %c0_i32_1 = arith.constant 0 : i32
    %c0_i32_2 = arith.constant 0 : i32
    return %c0_i32, %c0_i32_0, %c0_i32_1 : i32, i32, i32
  }
  func.func @transform_8(%arg0: i32) -> (i32, i32, i32) {
    %c0_i32 = arith.constant 0 : i32
    %c0_i32_0 = arith.constant 0 : i32
    %c0_i32_1 = arith.constant 0 : i32
    %c0_i32_2 = arith.constant 0 : i32
    return %c0_i32, %c0_i32_0, %c0_i32_1 : i32, i32, i32
  }
  func.func @transform_9(%arg0: i32) -> (i32, i32) {
    %c0_i32 = arith.constant 0 : i32
    %c0_i32_0 = arith.constant 0 : i32
    %c0_i32_1 = arith.constant 0 : i32
    return %c0_i32, %c0_i32_0 : i32, i32
  }
  func.func @transform_10(%arg0: i32) -> (i32, i32) {
    %c0_i32 = arith.constant 0 : i32
    %c0_i32_0 = arith.constant 0 : i32
    %c0_i32_1 = arith.constant 0 : i32
    return %c0_i32, %c0_i32_0 : i32, i32
  }
  func.func @transform_11(%arg0: i32) -> (i32, i32, i32) {
    %c0_i32 = arith.constant 0 : i32
    %c0_i32_0 = arith.constant 0 : i32
    %c0_i32_1 = arith.constant 0 : i32
    return %arg0, %c0_i32, %c0_i32_0 : i32, i32, i32
  }
}

module attributes {stable_mosaic.version = 11 : i64} {
  func.func @_linear_kernel(%arg0: i32, %arg1: memref<8x32xf32, #tpu.memory_space<vmem>>, %arg2: memref<32x32xbf16, #tpu.memory_space<vmem>>, %arg3: memref<1x32xf32, #tpu.memory_space<vmem>>, %arg4: memref<8x32xf32, #tpu.memory_space<vmem>>) attributes {dimension_semantics = [#tpu.dimension_semantics<parallel>], iteration_bounds = array<i64: 1>, scalar_prefetch = 0 : i64, scratch_operands = 0 : i64, tpu.core_type = #tpu.core_type<tc>, window_params = [{transform_indices = @transform_0, window_bounds = array<i64: 8, 32>}, {pipeline_mode = #tpu.pipeline_mode<synchronous>, transform_indices = @transform_1, window_bounds = array<i64: 32, 32>}, {pipeline_mode = #tpu.pipeline_mode<synchronous>, transform_indices = @transform_2, window_bounds = array<i64: 1, 32>}, {transform_indices = @transform_3, window_bounds = array<i64: 8, 32>}]} {
    %c0 = arith.constant 0 : index
    %c0_0 = arith.constant 0 : index
    %0 = vector.load %arg1[%c0, %c0_0] : memref<8x32xf32, #tpu.memory_space<vmem>>, vector<8x32xf32>
    %1 = arith.truncf %0 : vector<8x32xf32> to vector<8x32xbf16>
    %c0_1 = arith.constant 0 : index
    %c0_2 = arith.constant 0 : index
    %2 = vector.load %arg2[%c0_1, %c0_2] : memref<32x32xbf16, #tpu.memory_space<vmem>>, vector<32x32xbf16>
    %cst = arith.constant dense<0.000000e+00> : vector<8x32xf32>
    %3 = tpu.matmul %1, %2, %cst {dimension_numbers = #tpu.dot_dimension_numbers<[1], [0], [0], [1], [0, 0, 1, 1], [], []>} : vector<8x32xbf16>, vector<32x32xbf16>, vector<8x32xf32> -> vector<8x32xf32>
    %c0_3 = arith.constant 0 : index
    %c0_4 = arith.constant 0 : index
    %4 = vector.load %arg3[%c0_3, %c0_4] : memref<1x32xf32, #tpu.memory_space<vmem>>, vector<1x32xf32>
    %5 = vector.broadcast %4 : vector<1x32xf32> to vector<8x32xf32>
    %6 = arith.addf %3, %5 : vector<8x32xf32>
    %c0_5 = arith.constant 0 : index
    %c0_6 = arith.constant 0 : index
    %7 = vector.load %arg4[%c0_5, %c0_6] : memref<8x32xf32, #tpu.memory_space<vmem>>, vector<8x32xf32>
    tpu.vector_store %arg4[%c0_5, %c0_6], %6 {strides = array<i32>} : memref<8x32xf32, #tpu.memory_space<vmem>>, vector<8x32xf32>,
    return
  }
  func.func @transform_0(%arg0: i32) -> (i32, i32) {
    %c0_i32 = arith.constant 0 : i32
    %c0_i32_0 = arith.constant 0 : i32
    return %arg0, %c0_i32 : i32, i32
  }
  func.func @transform_1(%arg0: i32) -> (i32, i32) {
    %c0_i32 = arith.constant 0 : i32
    %c0_i32_0 = arith.constant 0 : i32
    %c0_i32_1 = arith.constant 0 : i32
    return %c0_i32, %c0_i32_0 : i32, i32
  }
  func.func @transform_2(%arg0: i32) -> (i32, i32) {
    %c0_i32 = arith.constant 0 : i32
    %c0_i32_0 = arith.constant 0 : i32
    %c0_i32_1 = arith.constant 0 : i32
    return %c0_i32, %c0_i32_0 : i32, i32
  }
  func.func @transform_3(%arg0: i32) -> (i32, i32) {
    %c0_i32 = arith.constant 0 : i32
    %c0_i32_0 = arith.constant 0 : i32
    return %arg0, %c0_i32 : i32, i32
  }
}

module attributes {stable_mosaic.version = 11 : i64} {
  func.func @_resgcn_kernel(%arg0: i32, %arg1: memref<1x4x16xf32, #tpu.memory_space<vmem>>, %arg2: memref<1x4x4x1xf32, #tpu.memory_space<vmem>>, %arg3: memref<1x4x4x1xf32, #tpu.memory_space<vmem>>, %arg4: memref<1x4x4x1xf32, #tpu.memory_space<vmem>>, %arg5: memref<16x32xbf16, #tpu.memory_space<vmem>>, %arg6: memref<1x32xf32, #tpu.memory_space<vmem>>, %arg7: memref<3x32x32xbf16, #tpu.memory_space<vmem>>, %arg8: memref<3x32x32xbf16, #tpu.memory_space<vmem>>, %arg9: memref<3x1x32xf32, #tpu.memory_space<vmem>>, %arg10: memref<32x32xbf16, #tpu.memory_space<vmem>>, %arg11: memref<1x32xf32, #tpu.memory_space<vmem>>, %arg12: memref<1x4x32xf32, #tpu.memory_space<vmem>>) attributes {dimension_semantics = [#tpu.dimension_semantics<parallel>], iteration_bounds = array<i64: 1>, scalar_prefetch = 0 : i64, scratch_operands = 0 : i64, tpu.core_type = #tpu.core_type<tc>, window_params = [{transform_indices = @transform_0, window_bounds = array<i64: 1, 4, 16>}, {transform_indices = @transform_1, window_bounds = array<i64: 1, 4, 4, 1>}, {transform_indices = @transform_2, window_bounds = array<i64: 1, 4, 4, 1>}, {transform_indices = @transform_3, window_bounds = array<i64: 1, 4, 4, 1>}, {pipeline_mode = #tpu.pipeline_mode<synchronous>, transform_indices = @transform_4, window_bounds = array<i64: 16, 32>}, {pipeline_mode = #tpu.pipeline_mode<synchronous>, transform_indices = @transform_5, window_bounds = array<i64: 1, 32>}, {pipeline_mode = #tpu.pipeline_mode<synchronous>, transform_indices = @transform_6, window_bounds = array<i64: 3, 32, 32>}, {pipeline_mode = #tpu.pipeline_mode<synchronous>, transform_indices = @transform_7, window_bounds = array<i64: 3, 32, 32>}, {pipeline_mode = #tpu.pipeline_mode<synchronous>, transform_indices = @transform_8, window_bounds = array<i64: 3, 1, 32>}, {pipeline_mode = #tpu.pipeline_mode<synchronous>, transform_indices = @transform_9, window_bounds = array<i64: 32, 32>}, {pipeline_mode = #tpu.pipeline_mode<synchronous>, transform_indices = @transform_10, window_bounds = array<i64: 1, 32>}, {transform_indices = @transform_11, window_bounds = array<i64: 1, 4, 32>}]} {
    %c0 = arith.constant 0 : index
    %c0_0 = arith.constant 0 : index
    %c0_1 = arith.constant 0 : index
    %0 = vector.load %arg1[%c0, %c0_0, %c0_1] : memref<1x4x16xf32, #tpu.memory_space<vmem>>, vector<1x4x16xf32>
    %1 = vector.shape_cast %0 : vector<1x4x16xf32> to vector<4x16xf32>
    %2 = arith.truncf %1 : vector<4x16xf32> to vector<4x16xbf16>
    %c0_2 = arith.constant 0 : index
    %c0_3 = arith.constant 0 : index
    %3 = vector.load %arg5[%c0_2, %c0_3] : memref<16x32xbf16, #tpu.memory_space<vmem>>, vector<16x32xbf16>
    %cst = arith.constant dense<0.000000e+00> : vector<4x32xf32>
    %4 = tpu.matmul %2, %3, %cst {dimension_numbers = #tpu.dot_dimension_numbers<[1], [0], [0], [1], [0, 0, 1, 1], [], []>} : vector<4x16xbf16>, vector<16x32xbf16>, vector<4x32xf32> -> vector<4x32xf32>
    %c0_4 = arith.constant 0 : index
    %c0_5 = arith.constant 0 : index
    %5 = vector.load %arg6[%c0_4, %c0_5] : memref<1x32xf32, #tpu.memory_space<vmem>>, vector<1x32xf32>
    %6 = vector.broadcast %5 : vector<1x32xf32> to vector<4x32xf32>
    %7 = arith.addf %4, %6 : vector<4x32xf32>
    %cst_6 = arith.constant 0.000000e+00 : f32
    %8 = vector.broadcast %cst_6 : f32 to vector<4x32xf32>
    %9 = arith.maximumf %7, %8 : vector<4x32xf32>
    %10 = arith.truncf %9 : vector<4x32xf32> to vector<4x32xbf16>
    %c0_7 = arith.constant 0 : index
    %c0_8 = arith.constant 0 : index
    %c0_9 = arith.constant 0 : index
    %11 = vector.load %arg7[%c0_7, %c0_8, %c0_9] : memref<3x32x32xbf16, #tpu.memory_space<vmem>>, vector<1x32x32xbf16>
    %12 = vector.shape_cast %11 : vector<1x32x32xbf16> to vector<32x32xbf16>
    %cst_10 = arith.constant dense<0.000000e+00> : vector<4x32xf32>
    %13 = tpu.matmul %10, %12, %cst_10 {dimension_numbers = #tpu.dot_dimension_numbers<[1], [0], [0], [1], [0, 0, 1, 1], [], []>} : vector<4x32xbf16>, vector<32x32xbf16>, vector<4x32xf32> -> vector<4x32xf32>
    %c0_11 = arith.constant 0 : index
    %c0_12 = arith.constant 0 : index
    %c0_13 = arith.constant 0 : index
    %14 = vector.load %arg9[%c0_11, %c0_12, %c0_13] : memref<3x1x32xf32, #tpu.memory_space<vmem>>, vector<1x1x32xf32>
    %15 = vector.shape_cast %14 : vector<1x1x32xf32> to vector<1x32xf32>
    %16 = vector.broadcast %15 : vector<1x32xf32> to vector<4x32xf32>
    %17 = arith.addf %13, %16 : vector<4x32xf32>
    %c0_14 = arith.constant 0 : index
    %c0_15 = arith.constant 0 : index
    %c0_16 = arith.constant 0 : index
    %18 = vector.load %arg8[%c0_14, %c0_15, %c0_16] : memref<3x32x32xbf16, #tpu.memory_space<vmem>>, vector<1x32x32xbf16>
    %19 = vector.shape_cast %18 : vector<1x32x32xbf16> to vector<32x32xbf16>
    %cst_17 = arith.constant dense<0.000000e+00> : vector<4x32xf32>
    %20 = tpu.matmul %10, %19, %cst_17 {dimension_numbers = #tpu.dot_dimension_numbers<[1], [0], [0], [1], [0, 0, 1, 1], [], []>} : vector<4x32xbf16>, vector<32x32xbf16>, vector<4x32xf32> -> vector<4x32xf32>
    %c0_18 = arith.constant 0 : index
    %c0_19 = arith.constant 0 : index
    %c0_20 = arith.constant 0 : index
    %c0_21 = arith.constant 0 : index
    %21 = vector.load %arg2[%c0_18, %c0_19, %c0_20, %c0_21] : memref<1x4x4x1xf32, #tpu.memory_space<vmem>>, vector<1x4x4x1xf32>
    %22 = vector.shape_cast %21 : vector<1x4x4x1xf32> to vector<4x4x1xf32>
    %23 = vector.shape_cast %20 : vector<4x32xf32> to vector<1x4x32xf32>
    %24 = vector.broadcast %23 : vector<1x4x32xf32> to vector<4x4x32xf32>
    %25 = vector.broadcast %22 : vector<4x4x1xf32> to vector<4x4x32xf32>
    %26 = arith.addf %24, %25 : vector<4x4x32xf32>
    %cst_22 = arith.constant dense<0xFF800000> : vector<4x32xf32>
    %27 = vector.multi_reduction <maximumf>, %26, %cst_22 [1] : vector<4x4x32xf32> to vector<4x32xf32>
    %28 = arith.addf %17, %27 : vector<4x32xf32>
    %cst_23 = arith.constant 0.000000e+00 : f32
    %29 = vector.broadcast %cst_23 : f32 to vector<4x32xf32>
    %30 = arith.maximumf %28, %29 : vector<4x32xf32>
    %31 = arith.addf %9, %30 : vector<4x32xf32>
    %32 = arith.truncf %31 : vector<4x32xf32> to vector<4x32xbf16>
    %c1 = arith.constant 1 : index
    %c0_24 = arith.constant 0 : index
    %c0_25 = arith.constant 0 : index
    %33 = vector.load %arg7[%c1, %c0_24, %c0_25] : memref<3x32x32xbf16, #tpu.memory_space<vmem>>, vector<1x32x32xbf16>
    %34 = vector.shape_cast %33 : vector<1x32x32xbf16> to vector<32x32xbf16>
    %cst_26 = arith.constant dense<0.000000e+00> : vector<4x32xf32>
    %35 = tpu.matmul %32, %34, %cst_26 {dimension_numbers = #tpu.dot_dimension_numbers<[1], [0], [0], [1], [0, 0, 1, 1], [], []>} : vector<4x32xbf16>, vector<32x32xbf16>, vector<4x32xf32> -> vector<4x32xf32>
    %c1_27 = arith.constant 1 : index
    %c0_28 = arith.constant 0 : index
    %c0_29 = arith.constant 0 : index
    %36 = vector.load %arg9[%c1_27, %c0_28, %c0_29] : memref<3x1x32xf32, #tpu.memory_space<vmem>>, vector<1x1x32xf32>
    %37 = vector.shape_cast %36 : vector<1x1x32xf32> to vector<1x32xf32>
    %38 = vector.broadcast %37 : vector<1x32xf32> to vector<4x32xf32>
    %39 = arith.addf %35, %38 : vector<4x32xf32>
    %c1_30 = arith.constant 1 : index
    %c0_31 = arith.constant 0 : index
    %c0_32 = arith.constant 0 : index
    %40 = vector.load %arg8[%c1_30, %c0_31, %c0_32] : memref<3x32x32xbf16, #tpu.memory_space<vmem>>, vector<1x32x32xbf16>
    %41 = vector.shape_cast %40 : vector<1x32x32xbf16> to vector<32x32xbf16>
    %cst_33 = arith.constant dense<0.000000e+00> : vector<4x32xf32>
    %42 = tpu.matmul %32, %41, %cst_33 {dimension_numbers = #tpu.dot_dimension_numbers<[1], [0], [0], [1], [0, 0, 1, 1], [], []>} : vector<4x32xbf16>, vector<32x32xbf16>, vector<4x32xf32> -> vector<4x32xf32>
    %c0_34 = arith.constant 0 : index
    %c0_35 = arith.constant 0 : index
    %c0_36 = arith.constant 0 : index
    %c0_37 = arith.constant 0 : index
    %43 = vector.load %arg3[%c0_34, %c0_35, %c0_36, %c0_37] : memref<1x4x4x1xf32, #tpu.memory_space<vmem>>, vector<1x4x4x1xf32>
    %44 = vector.shape_cast %43 : vector<1x4x4x1xf32> to vector<4x4x1xf32>
    %45 = vector.shape_cast %42 : vector<4x32xf32> to vector<1x4x32xf32>
    %46 = vector.broadcast %45 : vector<1x4x32xf32> to vector<4x4x32xf32>
    %47 = vector.broadcast %44 : vector<4x4x1xf32> to vector<4x4x32xf32>
    %48 = arith.addf %46, %47 : vector<4x4x32xf32>
    %cst_38 = arith.constant dense<0xFF800000> : vector<4x32xf32>
    %49 = vector.multi_reduction <maximumf>, %48, %cst_38 [1] : vector<4x4x32xf32> to vector<4x32xf32>
    %50 = arith.addf %39, %49 : vector<4x32xf32>
    %cst_39 = arith.constant 0.000000e+00 : f32
    %51 = vector.broadcast %cst_39 : f32 to vector<4x32xf32>
    %52 = arith.maximumf %50, %51 : vector<4x32xf32>
    %53 = arith.addf %31, %52 : vector<4x32xf32>
    %54 = arith.truncf %53 : vector<4x32xf32> to vector<4x32xbf16>
    %c2 = arith.constant 2 : index
    %c0_40 = arith.constant 0 : index
    %c0_41 = arith.constant 0 : index
    %55 = vector.load %arg7[%c2, %c0_40, %c0_41] : memref<3x32x32xbf16, #tpu.memory_space<vmem>>, vector<1x32x32xbf16>
    %56 = vector.shape_cast %55 : vector<1x32x32xbf16> to vector<32x32xbf16>
    %cst_42 = arith.constant dense<0.000000e+00> : vector<4x32xf32>
    %57 = tpu.matmul %54, %56, %cst_42 {dimension_numbers = #tpu.dot_dimension_numbers<[1], [0], [0], [1], [0, 0, 1, 1], [], []>} : vector<4x32xbf16>, vector<32x32xbf16>, vector<4x32xf32> -> vector<4x32xf32>
    %c2_43 = arith.constant 2 : index
    %c0_44 = arith.constant 0 : index
    %c0_45 = arith.constant 0 : index
    %58 = vector.load %arg9[%c2_43, %c0_44, %c0_45] : memref<3x1x32xf32, #tpu.memory_space<vmem>>, vector<1x1x32xf32>
    %59 = vector.shape_cast %58 : vector<1x1x32xf32> to vector<1x32xf32>
    %60 = vector.broadcast %59 : vector<1x32xf32> to vector<4x32xf32>
    %61 = arith.addf %57, %60 : vector<4x32xf32>
    %c2_46 = arith.constant 2 : index
    %c0_47 = arith.constant 0 : index
    %c0_48 = arith.constant 0 : index
    %62 = vector.load %arg8[%c2_46, %c0_47, %c0_48] : memref<3x32x32xbf16, #tpu.memory_space<vmem>>, vector<1x32x32xbf16>
    %63 = vector.shape_cast %62 : vector<1x32x32xbf16> to vector<32x32xbf16>
    %cst_49 = arith.constant dense<0.000000e+00> : vector<4x32xf32>
    %64 = tpu.matmul %54, %63, %cst_49 {dimension_numbers = #tpu.dot_dimension_numbers<[1], [0], [0], [1], [0, 0, 1, 1], [], []>} : vector<4x32xbf16>, vector<32x32xbf16>, vector<4x32xf32> -> vector<4x32xf32>
    %c0_50 = arith.constant 0 : index
    %c0_51 = arith.constant 0 : index
    %c0_52 = arith.constant 0 : index
    %c0_53 = arith.constant 0 : index
    %65 = vector.load %arg4[%c0_50, %c0_51, %c0_52, %c0_53] : memref<1x4x4x1xf32, #tpu.memory_space<vmem>>, vector<1x4x4x1xf32>
    %66 = vector.shape_cast %65 : vector<1x4x4x1xf32> to vector<4x4x1xf32>
    %67 = vector.shape_cast %64 : vector<4x32xf32> to vector<1x4x32xf32>
    %68 = vector.broadcast %67 : vector<1x4x32xf32> to vector<4x4x32xf32>
    %69 = vector.broadcast %66 : vector<4x4x1xf32> to vector<4x4x32xf32>
    %70 = arith.addf %68, %69 : vector<4x4x32xf32>
    %cst_54 = arith.constant dense<0xFF800000> : vector<4x32xf32>
    %71 = vector.multi_reduction <maximumf>, %70, %cst_54 [1] : vector<4x4x32xf32> to vector<4x32xf32>
    %72 = arith.addf %61, %71 : vector<4x32xf32>
    %cst_55 = arith.constant 0.000000e+00 : f32
    %73 = vector.broadcast %cst_55 : f32 to vector<4x32xf32>
    %74 = arith.maximumf %72, %73 : vector<4x32xf32>
    %75 = arith.addf %53, %74 : vector<4x32xf32>
    %76 = arith.truncf %75 : vector<4x32xf32> to vector<4x32xbf16>
    %c0_56 = arith.constant 0 : index
    %c0_57 = arith.constant 0 : index
    %77 = vector.load %arg10[%c0_56, %c0_57] : memref<32x32xbf16, #tpu.memory_space<vmem>>, vector<32x32xbf16>
    %cst_58 = arith.constant dense<0.000000e+00> : vector<4x32xf32>
    %78 = tpu.matmul %76, %77, %cst_58 {dimension_numbers = #tpu.dot_dimension_numbers<[1], [0], [0], [1], [0, 0, 1, 1], [], []>} : vector<4x32xbf16>, vector<32x32xbf16>, vector<4x32xf32> -> vector<4x32xf32>
    %c0_59 = arith.constant 0 : index
    %c0_60 = arith.constant 0 : index
    %79 = vector.load %arg11[%c0_59, %c0_60] : memref<1x32xf32, #tpu.memory_space<vmem>>, vector<1x32xf32>
    %80 = vector.broadcast %79 : vector<1x32xf32> to vector<4x32xf32>
    %81 = arith.addf %78, %80 : vector<4x32xf32>
    %c0_61 = arith.constant 0 : index
    %c0_62 = arith.constant 0 : index
    %c0_63 = arith.constant 0 : index
    %82 = vector.load %arg12[%c0_61, %c0_62, %c0_63] : memref<1x4x32xf32, #tpu.memory_space<vmem>>, vector<1x4x32xf32>
    %83 = vector.shape_cast %82 : vector<1x4x32xf32> to vector<4x32xf32>
    %84 = vector.shape_cast %81 : vector<4x32xf32> to vector<1x4x32xf32>
    tpu.vector_store %arg12[%c0_61, %c0_62, %c0_63], %84 {strides = array<i32>} : memref<1x4x32xf32, #tpu.memory_space<vmem>>, vector<1x4x32xf32>,
    return
  }
  func.func @transform_0(%arg0: i32) -> (i32, i32, i32) {
    %c0_i32 = arith.constant 0 : i32
    %c0_i32_0 = arith.constant 0 : i32
    %c0_i32_1 = arith.constant 0 : i32
    return %arg0, %c0_i32, %c0_i32_0 : i32, i32, i32
  }
  func.func @transform_1(%arg0: i32) -> (i32, i32, i32, i32) {
    %c0_i32 = arith.constant 0 : i32
    %c0_i32_0 = arith.constant 0 : i32
    %c0_i32_1 = arith.constant 0 : i32
    %c0_i32_2 = arith.constant 0 : i32
    return %arg0, %c0_i32, %c0_i32_0, %c0_i32_1 : i32, i32, i32, i32
  }
  func.func @transform_2(%arg0: i32) -> (i32, i32, i32, i32) {
    %c0_i32 = arith.constant 0 : i32
    %c0_i32_0 = arith.constant 0 : i32
    %c0_i32_1 = arith.constant 0 : i32
    %c0_i32_2 = arith.constant 0 : i32
    return %arg0, %c0_i32, %c0_i32_0, %c0_i32_1 : i32, i32, i32, i32
  }
  func.func @transform_3(%arg0: i32) -> (i32, i32, i32, i32) {
    %c0_i32 = arith.constant 0 : i32
    %c0_i32_0 = arith.constant 0 : i32
    %c0_i32_1 = arith.constant 0 : i32
    %c0_i32_2 = arith.constant 0 : i32
    return %arg0, %c0_i32, %c0_i32_0, %c0_i32_1 : i32, i32, i32, i32
  }
  func.func @transform_4(%arg0: i32) -> (i32, i32) {
    %c0_i32 = arith.constant 0 : i32
    %c0_i32_0 = arith.constant 0 : i32
    %c0_i32_1 = arith.constant 0 : i32
    return %c0_i32, %c0_i32_0 : i32, i32
  }
  func.func @transform_5(%arg0: i32) -> (i32, i32) {
    %c0_i32 = arith.constant 0 : i32
    %c0_i32_0 = arith.constant 0 : i32
    %c0_i32_1 = arith.constant 0 : i32
    return %c0_i32, %c0_i32_0 : i32, i32
  }
  func.func @transform_6(%arg0: i32) -> (i32, i32, i32) {
    %c0_i32 = arith.constant 0 : i32
    %c0_i32_0 = arith.constant 0 : i32
    %c0_i32_1 = arith.constant 0 : i32
    %c0_i32_2 = arith.constant 0 : i32
    return %c0_i32, %c0_i32_0, %c0_i32_1 : i32, i32, i32
  }
  func.func @transform_7(%arg0: i32) -> (i32, i32, i32) {
    %c0_i32 = arith.constant 0 : i32
    %c0_i32_0 = arith.constant 0 : i32
    %c0_i32_1 = arith.constant 0 : i32
    %c0_i32_2 = arith.constant 0 : i32
    return %c0_i32, %c0_i32_0, %c0_i32_1 : i32, i32, i32
  }
  func.func @transform_8(%arg0: i32) -> (i32, i32, i32) {
    %c0_i32 = arith.constant 0 : i32
    %c0_i32_0 = arith.constant 0 : i32
    %c0_i32_1 = arith.constant 0 : i32
    %c0_i32_2 = arith.constant 0 : i32
    return %c0_i32, %c0_i32_0, %c0_i32_1 : i32, i32, i32
  }
  func.func @transform_9(%arg0: i32) -> (i32, i32) {
    %c0_i32 = arith.constant 0 : i32
    %c0_i32_0 = arith.constant 0 : i32
    %c0_i32_1 = arith.constant 0 : i32
    return %c0_i32, %c0_i32_0 : i32, i32
  }
  func.func @transform_10(%arg0: i32) -> (i32, i32) {
    %c0_i32 = arith.constant 0 : i32
    %c0_i32_0 = arith.constant 0 : i32
    %c0_i32_1 = arith.constant 0 : i32
    return %c0_i32, %c0_i32_0 : i32, i32
  }
  func.func @transform_11(%arg0: i32) -> (i32, i32, i32) {
    %c0_i32 = arith.constant 0 : i32
    %c0_i32_0 = arith.constant 0 : i32
    %c0_i32_1 = arith.constant 0 : i32
    return %arg0, %c0_i32, %c0_i32_0 : i32, i32, i32
  }
}

module attributes {stable_mosaic.version = 11 : i64} {
  func.func @_folding_kernel(%arg0: i32, %arg1: memref<1x1x32xf32, #tpu.memory_space<vmem>>, %arg2: memref<32x2xf32, #tpu.memory_space<vmem>>, %arg3: memref<32x32xf32, #tpu.memory_space<vmem>>, %arg4: memref<2x32xf32, #tpu.memory_space<vmem>>, %arg5: memref<1x32xf32, #tpu.memory_space<vmem>>, %arg6: memref<32x3xf32, #tpu.memory_space<vmem>>, %arg7: memref<1x3xf32, #tpu.memory_space<vmem>>, %arg8: memref<32x32xf32, #tpu.memory_space<vmem>>, %arg9: memref<3x32xf32, #tpu.memory_space<vmem>>, %arg10: memref<1x32xf32, #tpu.memory_space<vmem>>, %arg11: memref<32x3xf32, #tpu.memory_space<vmem>>, %arg12: memref<1x3xf32, #tpu.memory_space<vmem>>, %arg13: memref<1x32x3xf32, #tpu.memory_space<vmem>>) attributes {dimension_semantics = [#tpu.dimension_semantics<parallel>], iteration_bounds = array<i64: 4>, scalar_prefetch = 0 : i64, scratch_operands = 0 : i64, tpu.core_type = #tpu.core_type<tc>, window_params = [{transform_indices = @transform_0, window_bounds = array<i64: 1, 1, 32>}, {pipeline_mode = #tpu.pipeline_mode<synchronous>, transform_indices = @transform_1, window_bounds = array<i64: 32, 2>}, {pipeline_mode = #tpu.pipeline_mode<synchronous>, transform_indices = @transform_2, window_bounds = array<i64: 32, 32>}, {pipeline_mode = #tpu.pipeline_mode<synchronous>, transform_indices = @transform_3, window_bounds = array<i64: 2, 32>}, {pipeline_mode = #tpu.pipeline_mode<synchronous>, transform_indices = @transform_4, window_bounds = array<i64: 1, 32>}, {pipeline_mode = #tpu.pipeline_mode<synchronous>, transform_indices = @transform_5, window_bounds = array<i64: 32, 3>}, {pipeline_mode = #tpu.pipeline_mode<synchronous>, transform_indices = @transform_6, window_bounds = array<i64: 1, 3>}, {pipeline_mode = #tpu.pipeline_mode<synchronous>, transform_indices = @transform_7, window_bounds = array<i64: 32, 32>}, {pipeline_mode = #tpu.pipeline_mode<synchronous>, transform_indices = @transform_8, window_bounds = array<i64: 3, 32>}, {pipeline_mode = #tpu.pipeline_mode<synchronous>, transform_indices = @transform_9, window_bounds = array<i64: 1, 32>}, {pipeline_mode = #tpu.pipeline_mode<synchronous>, transform_indices = @transform_10, window_bounds = array<i64: 32, 3>}, {pipeline_mode = #tpu.pipeline_mode<synchronous>, transform_indices = @transform_11, window_bounds = array<i64: 1, 3>}, {transform_indices = @transform_12, window_bounds = array<i64: 1, 32, 3>}]} {
    %c0 = arith.constant 0 : index
    %c0_0 = arith.constant 0 : index
    %c0_1 = arith.constant 0 : index
    %0 = vector.load %arg1[%c0, %c0_0, %c0_1] : memref<1x1x32xf32, #tpu.memory_space<vmem>>, vector<1x1x32xf32>
    %1 = vector.shape_cast %0 : vector<1x1x32xf32> to vector<1x32xf32>
    %c0_2 = arith.constant 0 : index
    %c0_3 = arith.constant 0 : index
    %2 = vector.load %arg2[%c0_2, %c0_3] : memref<32x2xf32, #tpu.memory_space<vmem>>, vector<32x2xf32>
    %c0_4 = arith.constant 0 : index
    %c0_5 = arith.constant 0 : index
    %3 = vector.load %arg3[%c0_4, %c0_5] : memref<32x32xf32, #tpu.memory_space<vmem>>, vector<32x32xf32>
    %cst = arith.constant dense<0.000000e+00> : vector<1x32xf32>
    %4 = tpu.matmul %1, %3, %cst {dimension_numbers = #tpu.dot_dimension_numbers<[1], [0], [0], [1], [0, 0, 1, 1], [], []>} : vector<1x32xf32>, vector<32x32xf32>, vector<1x32xf32> -> vector<1x32xf32>
    %c0_6 = arith.constant 0 : index
    %c0_7 = arith.constant 0 : index
    %5 = vector.load %arg5[%c0_6, %c0_7] : memref<1x32xf32, #tpu.memory_space<vmem>>, vector<1x32xf32>
    %6 = arith.addf %4, %5 : vector<1x32xf32>
    %c0_8 = arith.constant 0 : index
    %c0_9 = arith.constant 0 : index
    %7 = vector.load %arg4[%c0_8, %c0_9] : memref<2x32xf32, #tpu.memory_space<vmem>>, vector<2x32xf32>
    %cst_10 = arith.constant dense<0.000000e+00> : vector<32x32xf32>
    %8 = tpu.matmul %2, %7, %cst_10 {dimension_numbers = #tpu.dot_dimension_numbers<[1], [0], [0], [1], [0, 0, 1, 1], [], []>} : vector<32x2xf32>, vector<2x32xf32>, vector<32x32xf32> -> vector<32x32xf32>
    %9 = vector.broadcast %6 : vector<1x32xf32> to vector<32x32xf32>
    %10 = arith.addf %8, %9 : vector<32x32xf32>
    %cst_11 = arith.constant 0.000000e+00 : f32
    %11 = vector.broadcast %cst_11 : f32 to vector<32x32xf32>
    %12 = arith.maximumf %10, %11 : vector<32x32xf32>
    %c0_12 = arith.constant 0 : index
    %c0_13 = arith.constant 0 : index
    %13 = vector.load %arg6[%c0_12, %c0_13] : memref<32x3xf32, #tpu.memory_space<vmem>>, vector<32x3xf32>
    %cst_14 = arith.constant dense<0.000000e+00> : vector<32x3xf32>
    %14 = tpu.matmul %12, %13, %cst_14 {dimension_numbers = #tpu.dot_dimension_numbers<[1], [0], [0], [1], [0, 0, 1, 1], [], []>} : vector<32x32xf32>, vector<32x3xf32>, vector<32x3xf32> -> vector<32x3xf32>
    %c0_15 = arith.constant 0 : index
    %c0_16 = arith.constant 0 : index
    %15 = vector.load %arg7[%c0_15, %c0_16] : memref<1x3xf32, #tpu.memory_space<vmem>>, vector<1x3xf32>
    %16 = vector.broadcast %15 : vector<1x3xf32> to vector<32x3xf32>
    %17 = arith.addf %14, %16 : vector<32x3xf32>
    %c0_17 = arith.constant 0 : index
    %c0_18 = arith.constant 0 : index
    %18 = vector.load %arg8[%c0_17, %c0_18] : memref<32x32xf32, #tpu.memory_space<vmem>>, vector<32x32xf32>
    %cst_19 = arith.constant dense<0.000000e+00> : vector<1x32xf32>
    %19 = tpu.matmul %1, %18, %cst_19 {dimension_numbers = #tpu.dot_dimension_numbers<[1], [0], [0], [1], [0, 0, 1, 1], [], []>} : vector<1x32xf32>, vector<32x32xf32>, vector<1x32xf32> -> vector<1x32xf32>
    %c0_20 = arith.constant 0 : index
    %c0_21 = arith.constant 0 : index
    %20 = vector.load %arg10[%c0_20, %c0_21] : memref<1x32xf32, #tpu.memory_space<vmem>>, vector<1x32xf32>
    %21 = arith.addf %19, %20 : vector<1x32xf32>
    %c0_22 = arith.constant 0 : index
    %c0_23 = arith.constant 0 : index
    %22 = vector.load %arg9[%c0_22, %c0_23] : memref<3x32xf32, #tpu.memory_space<vmem>>, vector<3x32xf32>
    %cst_24 = arith.constant dense<0.000000e+00> : vector<32x32xf32>
    %23 = tpu.matmul %17, %22, %cst_24 {dimension_numbers = #tpu.dot_dimension_numbers<[1], [0], [0], [1], [0, 0, 1, 1], [], []>} : vector<32x3xf32>, vector<3x32xf32>, vector<32x32xf32> -> vector<32x32xf32>
    %24 = vector.broadcast %21 : vector<1x32xf32> to vector<32x32xf32>
    %25 = arith.addf %23, %24 : vector<32x32xf32>
    %cst_25 = arith.constant 0.000000e+00 : f32
    %26 = vector.broadcast %cst_25 : f32 to vector<32x32xf32>
    %27 = arith.maximumf %25, %26 : vector<32x32xf32>
    %c0_26 = arith.constant 0 : index
    %c0_27 = arith.constant 0 : index
    %28 = vector.load %arg11[%c0_26, %c0_27] : memref<32x3xf32, #tpu.memory_space<vmem>>, vector<32x3xf32>
    %cst_28 = arith.constant dense<0.000000e+00> : vector<32x3xf32>
    %29 = tpu.matmul %27, %28, %cst_28 {dimension_numbers = #tpu.dot_dimension_numbers<[1], [0], [0], [1], [0, 0, 1, 1], [], []>} : vector<32x32xf32>, vector<32x3xf32>, vector<32x3xf32> -> vector<32x3xf32>
    %c0_29 = arith.constant 0 : index
    %c0_30 = arith.constant 0 : index
    %30 = vector.load %arg12[%c0_29, %c0_30] : memref<1x3xf32, #tpu.memory_space<vmem>>, vector<1x3xf32>
    %31 = vector.broadcast %30 : vector<1x3xf32> to vector<32x3xf32>
    %32 = arith.addf %29, %31 : vector<32x3xf32>
    %c0_31 = arith.constant 0 : index
    %c0_32 = arith.constant 0 : index
    %c0_33 = arith.constant 0 : index
    %33 = vector.load %arg13[%c0_31, %c0_32, %c0_33] : memref<1x32x3xf32, #tpu.memory_space<vmem>>, vector<1x32x3xf32>
    %34 = vector.shape_cast %33 : vector<1x32x3xf32> to vector<32x3xf32>
    %35 = vector.shape_cast %32 : vector<32x3xf32> to vector<1x32x3xf32>
    tpu.vector_store %arg13[%c0_31, %c0_32, %c0_33], %35 {strides = array<i32>} : memref<1x32x3xf32, #tpu.memory_space<vmem>>, vector<1x32x3xf32>,
    return
  }
  func.func @transform_0(%arg0: i32) -> (i32, i32, i32) {
    %c0_i32 = arith.constant 0 : i32
    %c0_i32_0 = arith.constant 0 : i32
    %c0_i32_1 = arith.constant 0 : i32
    return %arg0, %c0_i32, %c0_i32_0 : i32, i32, i32
  }
  func.func @transform_1(%arg0: i32) -> (i32, i32) {
    %c0_i32 = arith.constant 0 : i32
    %c0_i32_0 = arith.constant 0 : i32
    %c0_i32_1 = arith.constant 0 : i32
    return %c0_i32, %c0_i32_0 : i32, i32
  }
  func.func @transform_2(%arg0: i32) -> (i32, i32) {
    %c0_i32 = arith.constant 0 : i32
    %c0_i32_0 = arith.constant 0 : i32
    %c0_i32_1 = arith.constant 0 : i32
    return %c0_i32, %c0_i32_0 : i32, i32
  }
  func.func @transform_3(%arg0: i32) -> (i32, i32) {
    %c0_i32 = arith.constant 0 : i32
    %c0_i32_0 = arith.constant 0 : i32
    %c0_i32_1 = arith.constant 0 : i32
    return %c0_i32, %c0_i32_0 : i32, i32
  }
  func.func @transform_4(%arg0: i32) -> (i32, i32) {
    %c0_i32 = arith.constant 0 : i32
    %c0_i32_0 = arith.constant 0 : i32
    %c0_i32_1 = arith.constant 0 : i32
    return %c0_i32, %c0_i32_0 : i32, i32
  }
  func.func @transform_5(%arg0: i32) -> (i32, i32) {
    %c0_i32 = arith.constant 0 : i32
    %c0_i32_0 = arith.constant 0 : i32
    %c0_i32_1 = arith.constant 0 : i32
    return %c0_i32, %c0_i32_0 : i32, i32
  }
  func.func @transform_6(%arg0: i32) -> (i32, i32) {
    %c0_i32 = arith.constant 0 : i32
    %c0_i32_0 = arith.constant 0 : i32
    %c0_i32_1 = arith.constant 0 : i32
    return %c0_i32, %c0_i32_0 : i32, i32
  }
  func.func @transform_7(%arg0: i32) -> (i32, i32) {
    %c0_i32 = arith.constant 0 : i32
    %c0_i32_0 = arith.constant 0 : i32
    %c0_i32_1 = arith.constant 0 : i32
    return %c0_i32, %c0_i32_0 : i32, i32
  }
  func.func @transform_8(%arg0: i32) -> (i32, i32) {
    %c0_i32 = arith.constant 0 : i32
    %c0_i32_0 = arith.constant 0 : i32
    %c0_i32_1 = arith.constant 0 : i32
    return %c0_i32, %c0_i32_0 : i32, i32
  }
  func.func @transform_9(%arg0: i32) -> (i32, i32) {
    %c0_i32 = arith.constant 0 : i32
    %c0_i32_0 = arith.constant 0 : i32
    %c0_i32_1 = arith.constant 0 : i32
    return %c0_i32, %c0_i32_0 : i32, i32
  }
  func.func @transform_10(%arg0: i32) -> (i32, i32) {
    %c0_i32 = arith.constant 0 : i32
    %c0_i32_0 = arith.constant 0 : i32
    %c0_i32_1 = arith.constant 0 : i32
    return %c0_i32, %c0_i32_0 : i32, i32
  }
  func.func @transform_11(%arg0: i32) -> (i32, i32) {
    %c0_i32 = arith.constant 0 : i32
    %c0_i32_0 = arith.constant 0 : i32
    %c0_i32_1 = arith.constant 0 : i32
    return %c0_i32, %c0_i32_0 : i32, i32
  }
  func.func @transform_12(%arg0: i32) -> (i32, i32, i32) {
    %c0_i32 = arith.constant 0 : i32
    %c0_i32_0 = arith.constant 0 : i32
    %c0_i32_1 = arith.constant 0 : i32
    return %arg0, %c0_i32, %c0_i32_0 : i32, i32, i32
  }
}

</mosaic_0001>

<bundles_post_ra>
// kernel: neg.13
= control target key start
LH: loop header
LB: loop body
LE: loop exit
PB: predicated region body
PF: predicated region fallthrough
CT: control target
= control target key end

     0   :  { %s24_s0 = inlined_call_operand.vmem [shape: f32[4,128], index: 0, kind: input, shape index: {}]   ;;  %s25_s1 = inlined_call_operand.vmem [shape: f32[4,128], index: 1, kind: output, shape index: {}]  }
   0x1   :  { %v2_v0 = vld [vmem:[%s24_s0] sm:$0xf] }
   0x2   :  { %v5_v1 = vxor.u32 2147483648, %v2_v0 }
   0x4   :  { %7 = vst [vmem:[%s25_s1] sm:$0xf] %v5_v1 }

// kernel: neg.14
= control target key start
LH: loop header
LB: loop body
LE: loop exit
PB: predicated region body
PF: predicated region fallthrough
CT: control target
= control target key end

     0   :  { %s264_s0 = inlined_call_operand.vmem [shape: f32[4,32,32], index: 0, kind: input, shape index: {}]   ;;  %s265_s1 = inlined_call_operand.vmem [shape: f32[4,32,32], index: 1, kind: output, shape index: {}]  }
   0x1   :  { %v2_v0 = vld [vmem:[%s264_s0] sm:$0xff]  ;;  %v134_v7 = vld [vmem:[%s264_s0 + $0x8] sm:$0xff]  ;;  %v142_v14 = vld [vmem:[%s264_s0 + $0x10] sm:$0xff] }
   0x2   :  { %v128_v1 = vld [vmem:[%s264_s0 + $0x20] sm:$0xff]  ;;  %v5_v3 = vxor.u32 2147483648, %v2_v0  ;;  %v136_v8 = vld [vmem:[%s264_s0 + $0x28] sm:$0xff]  ;;  %v36_v10 = vxor.u32 2147483648, %v134_v7  ;;  %v68_v17 = vxor.u32 2147483648, %v142_v14  ;;  %v144_v18 = vld [vmem:[%s264_s0 + $0x30] sm:$0xff] }
   0x3   :  { %v130_v2 = vld [vmem:[%s264_s0 + $0x40] sm:$0xff]  ;;  %v12_v4 = vxor.u32 2147483648, %v128_v1  ;;  %v44_v11 = vxor.u32 2147483648, %v136_v8  ;;  %v138_v12 = vld [vmem:[%s264_s0 + $0x48] sm:$0xff]  ;;  %v146_v19 = vld [vmem:[%s264_s0 + $0x50] sm:$0xff]  ;;  %v76_v21 = vxor.u32 2147483648, %v144_v18 }
   0x4   :  { %v20_v5 = vxor.u32 2147483648, %v130_v2  ;;  %v132_v6 = vld [vmem:[%s264_s0 + $0x60] sm:$0xff]  ;;  %v140_v13 = vld [vmem:[%s264_s0 + $0x68] sm:$0xff]  ;;  %7 = vst [vmem:[%s265_s1] sm:$0xff] %v5_v3  ;;  %v52_v15 = vxor.u32 2147483648, %v138_v12  ;;  %v148_v20 = vld [vmem:[%s264_s0 + $0x70] sm:$0xff]  ;;  %v84_v22 = vxor.u32 2147483648, %v146_v19 }
   0x5   :  { %v28_v9 = vxor.u32 2147483648, %v132_v6  ;;  %129 = vst [vmem:[%s265_s1 + $0x20] sm:$0xff] %v12_v4  ;;  %v60_v16 = vxor.u32 2147483648, %v140_v13  ;;  %135 = vst [vmem:[%s265_s1 + $0x8] sm:$0xff] %v36_v10  ;;  %v92_v23 = vxor.u32 2147483648, %v148_v20  ;;  %v150_v24 = vld [vmem:[%s264_s0 + $0x18] sm:$0xff] }
   0x6   :  { %131 = vst [vmem:[%s265_s1 + $0x40] sm:$0xff] %v20_v5  ;;  %137 = vst [vmem:[%s265_s1 + $0x28] sm:$0xff] %v44_v11  ;;  %v152_v25 = vld [vmem:[%s264_s0 + $0x38] sm:$0xff]  ;;  %v100_v27 = vxor.u32 2147483648, %v150_v24 }
   0x7   :  { %133 = vst [vmem:[%s265_s1 + $0x60] sm:$0xff] %v28_v9  ;;  %v154_v26 = vld [vmem:[%s264_s0 + $0x58] sm:$0xff]  ;;  %139 = vst [vmem:[%s265_s1 + $0x48] sm:$0xff] %v52_v15  ;;  %v108_v28 = vxor.u32 2147483648, %v152_v25 }
   0x8   :  { %141 = vst [vmem:[%s265_s1 + $0x68] sm:$0xff] %v60_v16  ;;  %143 = vst [vmem:[%s265_s1 + $0x10] sm:$0xff] %v68_v17  ;;  %v116_v29 = vxor.u32 2147483648, %v154_v26  ;;  %v156_v30 = vld [vmem:[%s264_s0 + $0x78] sm:$0xff] }
   0x9   :  { %145 = vst [vmem:[%s265_s1 + $0x30] sm:$0xff] %v76_v21  ;;  %147 = vst [vmem:[%s265_s1 + $0x50] sm:$0xff] %v84_v22  ;;  %v124_v31 = vxor.u32 2147483648, %v156_v30 }
   0xa   :  { %149 = vst [vmem:[%s265_s1 + $0x70] sm:$0xff] %v92_v23  ;;  %151 = vst [vmem:[%s265_s1 + $0x18] sm:$0xff] %v100_v27 }
   0xb   :  { %153 = vst [vmem:[%s265_s1 + $0x38] sm:$0xff] %v108_v28  ;;  %155 = vst [vmem:[%s265_s1 + $0x58] sm:$0xff] %v116_v29 }
   0xc   :  { %157 = vst [vmem:[%s265_s1 + $0x78] sm:$0xff] %v124_v31 }

// kernel: run.9
= control target key start
LH: loop header
LB: loop body
LE: loop exit
PB: predicated region body
PF: predicated region fallthrough
CT: control target
= control target key end

     0   :  { %v135_v0 = vmov 0.0   ;;  %vm136_vm0 = vmmov 0   ;;  %vm56_vm1 = vcmask 523264   ;;  %vm100_vm2 = vcmask 130048   ;;  %s178_s1 = inlined_call_operand.vmem [shape: bf16[64,16], index: 1, kind: input, shape index: {}]   ;;  %s179_s0 = inlined_call_operand.vmem [shape: f32[8,64], index: 0, kind: input, shape index: {}]   ;;  %s180_s2 = inlined_call_operand.vmem [shape: f32[1,16], index: 2, kind: input, shape index: {}]   ;;  %s181_s3 = inlined_call_operand.vmem [shape: f32[8,16], index: 3, kind: output, shape index: {}]  }
   0x1   :  { %117 = vmatprep.subr.bf16.mxu0 %v135_v0  ;;  %v131_v1 = vld [vmem:[%s178_s1] sm:$0xff]   ;;  %125 = vmatprep.mubr.msk.bf16.mxu0 %vm136_vm0, %v135_v0  ;;  %v132_v2 = vld [vmem:[%s178_s1 + $0x8] sm:$0xff]   ;;  %v133_v3 = vld [vmem:[%s178_s1 + $0x10] sm:$0xff]  }
   0x2   :  { %118 = vmatpush3.bf16.msra.mxu0 %v131_v1  ;;  %v134_v4 = vld [vmem:[%s178_s1 + $0x18] sm:$0xff]   ;;  %v15_v5 = vld [vmem:[%s179_s0] sm:$0xff] }
   0x3   :  { %119 = vmatprep.subr.bf16.mxu0 %v135_v0  ;;  %v16_v6 = vpack.c.bf16 %v15_v5, %v15_v5  ;;  %v106_v7 = vld [vmem:[%s180_s2] ss:$0 sm:$0xff] }
   0x6   :  { %120 = vmatpush3.bf16.msra.mxu0 %v132_v2 }
   0x7   :  { %121 = vmatprep.subr.bf16.mxu0 %v135_v0 }
   0xa   :  { %122 = vmatpush3.bf16.msra.mxu0 %v133_v3 }
   0xb   :  { %123 = vmatprep.subr.bf16.mxu0 %v135_v0 }
   0xe   :  { %124 = vmatpush3.bf16.msra.mxu0 %v134_v4 }
  0x11   :  { %126 = vmatmul.mubr.msk.bf16.vlgmr.msra.gmra.mrb[0].mxu0 %vm56_vm1, %v16_v6 }
  0xe4   :  { %v94_v8 = vpop.f32.mrb[0].mxu0 }
  0xe5   :  { %v95_v9 = vadd.f32 %v106_v7, %v94_v8  ;;  %v127_v10 = vpop.f32.mrb[1].mxu0 }
  0xe6   :  { %v97_v11 = vpop.f32.mrb[2].mxu0 }
  0xe7   :  { %101 = vst.msk [vmem:[%s181_s3] sm:$0xff] %vm100_vm2, %v95_v9  ;;  %v128_v12 = vpop.f32.mrb[3].mxu0 }

// kernel: run.13
= control target key start
LH: loop header
LB: loop body
LE: loop exit
PB: predicated region body
PF: predicated region fallthrough
CT: control target
= control target key end

     0   :  { %v108_v0 = vmov 0.0   ;;  %vm109_vm0 = vmmov 0   ;;  %vm40_vm1 = vcmask 261120   ;;  %s145_s1 = inlined_call_operand.vmem [shape: bf16[32,32], index: 1, kind: input, shape index: {}]   ;;  %s146_s0 = inlined_call_operand.vmem [shape: f32[8,32], index: 0, kind: input, shape index: {}]   ;;  %s147_s2 = inlined_call_operand.vmem [shape: f32[1,32], index: 2, kind: input, shape index: {}]   ;;  %s148_s3 = inlined_call_operand.vmem [shape: f32[8,32], index: 3, kind: output, shape index: {}]  }
   0x1   :  { %96 = vmatprep.subr.bf16.mxu0 %v108_v0  ;;  %v106_v1 = vld [vmem:[%s145_s1] sm:$0xff]   ;;  %100 = vmatprep.mubr.msk.bf16.mxu0 %vm109_vm0, %v108_v0  ;;  %v107_v2 = vld [vmem:[%s145_s1 + $0x8] sm:$0xff]  }
   0x2   :  { %97 = vmatpush3.bf16.msra.mxu0 %v106_v1  ;;  %v15_v3 = vld [vmem:[%s146_s0] sm:$0xff] }
   0x3   :  { %98 = vmatprep.subr.bf16.mxu0 %v108_v0  ;;  %v16_v4 = vpack.c.bf16 %v15_v3, %v15_v3  ;;  %v89_v5 = vld [vmem:[%s147_s2] ss:$0 sm:$0xff] }
   0x6   :  { %99 = vmatpush3.bf16.msra.mxu0 %v107_v2 }
   0x9   :  { %101 = vmatmul.mubr.msk.bf16.vlgmr.msra.gmra.mrb[0].mxu0 %vm40_vm1, %v16_v4 }
  0xdc   :  { %v78_v6 = vpop.f32.mrb[0].mxu0 }
  0xdd   :  { %v79_v7 = vadd.f32 %v89_v5, %v78_v6  ;;  %v102_v8 = vpop.f32.mrb[1].mxu0 }
  0xde   :  { %v81_v9 = vpop.f32.mrb[2].mxu0 }
  0xdf   :  { %84 = vst.msk [vmem:[%s148_s3] sm:$0xff] %vm40_vm1, %v79_v7  ;;  %v103_v10 = vpop.f32.mrb[3].mxu0 }

// kernel: run.12
= control target key start
LH: loop header
LB: loop body
LE: loop exit
PB: predicated region body
PF: predicated region fallthrough
CT: control target
= control target key end

     0   :  { %vm53_vm0 = vcmask 1040384   ;;  %vm54_vm1 = vcmask 1041408   ;;  %v904_v0 = vmov 0.0   ;;  %v905_v2 = vmov 65535   ;;  %s1140_s4 = inlined_call_operand.vmem [shape: bf16[3,32], index: 4, kind: input, shape index: {}]   ;;  %s1141_s0 = inlined_call_operand.vmem [shape: f32[1,4,3], index: 0, kind: input, shape index: {}]   ;;  %s1142_s7 = inlined_call_operand.vmem [shape: bf16[3,32,32], index: 7, kind: input, shape index: {}]   ;;  %s1143_s6 = inlined_call_operand.vmem [shape: bf16[3,32,32], index: 6, kind: input, shape index: {}]   ;;  %s1144_s1 = inlined_call_operand.vmem [shape: f32[1,4,4,1], index: 1, kind: input, shape index: {}]   ;;  %s1145_s2 = inlined_call_operand.vmem [shape: f32[1,4,4,1], index: 2, kind: input, shape index: {}]   ;;  %s1146_s3 = inlined_call_operand.vmem [shape: f32[1,4,4,1], index: 3, kind: input, shape index: {}]   ;;  %s1147_s5 = inlined_call_operand.vmem [shape: f32[1,32], index: 5, kind: input, shape index: {}]   ;;  %s1148_s8 = inlined_call_operand.vmem [shape: f32[3,1,32], index: 8, kind: input, shape index: {}]   ;;  %s1149_s9 = inlined_call_operand.vmem [shape: bf16[32,32], index: 9, kind: input, shape index: {}]   ;;  %s1150_s10 = inlined_call_operand.vmem [shape: f32[1,32], index: 10, kind: input, shape index: {}]   ;;  %s1151_s11 = inlined_call_operand.vmem [shape: f32[1,4,32], index: 11, kind: output, shape index: {}]  }
   0x1   :  { %822 = vmatprep.subr.bf16.mxu0 %v904_v0  ;;  %v41_v1 = vld [vmem:[%s1140_s4] sm:$0x3]  ;;  %v55_v3 = vsel %vm53_vm0, 4294967295, %v905_v2  ;;  %828 = vmatprep.subr.bf16.mxu1 %v904_v0  ;;  %vm906_vm2 = vmmov 0   ;;  %vm49_vm3 = vcmask 23552   ;;  %v892_v10 = vld [vmem:[%s1142_s7 + $0x8] sm:$0xff]  }
   0x2   :  { %v39_v4 = vld [vmem:[%s1141_s0] sm:$0xf]  ;;  %v56_v5 = vsel %vm54_vm1, %v55_v3, 0  ;;  %824 = vmatprep.mubr.msk.bf16.mxu0 %vm906_vm2, %v904_v0  ;;  %832 = vmatprep.mubr.msk.bf16.mxu1 %vm906_vm2, %v904_v0  ;;  %v893_v11 = vld [vmem:[%s1143_s6 + $0x8] sm:$0xff]   ;;  %v907_v12 = vmov 0   ;;  %vm125_vm4 = vcmask 261120  }
   0x3   :  { %v58_v6 = vand.u32 %v56_v5, %v41_v1  ;;  %v890_v7 = vld [vmem:[%s1142_s7] sm:$0xff]   ;;  %v40_v8 = vpack.c.bf16 %v39_v4, %v39_v4  ;;  %888 = vset.pattern.permute.xlu0 %v907_v12  ;;  %889 = vset.pattern.permute.xlu1 %v907_v12  ;;  %v227_v14 = vld [vmem:[%s1144_s1 + $0x8] sm:$0xf]  ;;  %v228_v16 = vld [vmem:[%s1144_s1 + $0xc] sm:$0xf]  ;;  %vm253_vm5 = vcmask 257024  }
   0x4   :  { %v891_v9 = vld [vmem:[%s1143_s6] sm:$0xff]   ;;  %241 = vperm.xlu1 %889, %v227_v14   ;;  %v424_v19 = vld [vmem:[%s1145_s2 + $0x8] sm:$0xf]  ;;  %v425_v20 = vld [vmem:[%s1145_s2 + $0xc] sm:$0xf]  ;;  %vm286_vm6 = vcmask 1041409  }
   0x5   :  { %823 = vmatpush3.bf16.msra.mxu0 %v58_v6  ;;  %829 = vmatpush3.bf16.msra.mxu1 %v891_v9  ;;  %v225_v13 = vld [vmem:[%s1144_s1] sm:$0xf]  ;;  %v226_v15 = vld [vmem:[%s1144_s1 + $0x4] sm:$0xf]  ;;  %v617_v23 = vld [vmem:[%s1146_s3 + $0x8] sm:$0xf] }
   0x6   :  { %836 = vmatprep.subr.bf16.mxu0 %v904_v0  ;;  %830 = vmatprep.subr.bf16.mxu1 %v904_v0  ;;  %v422_v17 = vld [vmem:[%s1145_s2] sm:$0xf]  ;;  %v423_v18 = vld [vmem:[%s1145_s2 + $0x4] sm:$0xf]  ;;  %v618_v24 = vld [vmem:[%s1146_s3 + $0xc] sm:$0xf] }
   0x7   :  { %231 = vperm.xlu0 %888, %v225_v13   ;;  %v615_v21 = vld [vmem:[%s1146_s3] sm:$0xf]  ;;  %v616_v22 = vld [vmem:[%s1146_s3 + $0x4] sm:$0xf]  ;;  %v894_v33 = vld [vmem:[%s1142_s7 + $0x10] sm:$0xff]   ;;  %vm288_vm7 = vcmask 1042434  }
   0x8   :  { %825 = vmatmul.mubr.msk.bf16.vlgmr.msra.gmra.mrb[0].mxu0 %vm49_vm3, %v40_v8  ;;  %246 = vperm.xlu1 %889, %v228_v16   ;;  %v754_v25 = vld [vmem:[%s1147_s5] ss:$0 sm:$0xff]  ;;  %v895_v34 = vld [vmem:[%s1143_s6 + $0x10] sm:$0xff]   ;;  %v896_v35 = vld [vmem:[%s1142_s7 + $0x18] sm:$0xff]   ;;  %vm290_vm8 = vcmask 1043459  }
   0x9   :  { %837 = vmatpush3.bf16.msra.mxu0 %v890_v7  ;;  %840 = vmatprep.mubr.msk.bf16.mxu0 %vm906_vm2, %v904_v0  ;;  %v897_v36 = vld [vmem:[%s1143_s6 + $0x18] sm:$0xff]   ;;  %v756_v14 = vld [vmem:[%s1148_s8] ss:$0 sm:$0xff] }
   0xa   :  { %838 = vmatprep.subr.bf16.mxu0 %v904_v0  ;;  %831 = vmatpush3.bf16.msra.mxu1 %v893_v11 }
   0xb   :  { %844 = vmatprep.subr.bf16.mxu1 %v904_v0  ;;  %236 = vperm.xlu0 %888, %v226_v15  }
   0xc   :  { %433 = vperm.xlu1 %889, %v423_v18  }
   0xd   :  { %839 = vmatpush3.bf16.msra.mxu0 %v892_v10 }
   0xe   :  { %852 = vmatprep.subr.bf16.mxu0 %v904_v0 }
   0xf   :  { %428 = vperm.xlu0 %888, %v422_v17  }
  0x10   :  { %443 = vperm.xlu1 %889, %v425_v20  }
  0x13   :  { %438 = vperm.xlu0 %888, %v424_v19  }
  0x14   :  { %626 = vperm.xlu1 %889, %v616_v22  }
  0x17   :  { %621 = vperm.xlu0 %888, %v615_v21  }
  0x18   :  { %636 = vperm.xlu1 %889, %v618_v24  }
  0x1b   :  { %631 = vperm.xlu0 %888, %v617_v23  }
  0x83   :  { %v242_v38 = vpop.permute.xlu1 %241 }
  0x86   :  { %v232_v37 = vpop.permute.xlu0 %231 }
  0x87   :  { %v247_v40 = vpop.permute.xlu1 %246 }
  0x8a   :  { %v237_v39 = vpop.permute.xlu0 %236 }
  0xdb   :  { %v94_v26 = vpop.f32.mrb[0].mxu0 }
  0xdc   :  { %v95_v27 = vadd.f32 %v754_v25, %v94_v26  ;;  %v826_v28 = vpop.f32.mrb[1].mxu0 }
  0xdd   :  { %v97_v29 = vpop.f32.mrb[2].mxu0  ;;  %v899_v28 = vld [vmem:[%s1143_s6 + $0x20] sm:$0xff]  }
  0xde   :  { %v1038_v30 = vmax.f32 %v95_v27, 0.0  ;;  %v827_v31 = vpop.f32.mrb[3].mxu0  ;;  %v898_v27 = vld [vmem:[%s1142_s7 + $0x20] sm:$0xff]   ;;  %v900_v29 = vld [vmem:[%s1142_s7 + $0x28] sm:$0xff]  }
  0xdf   :  { %v429_v31 = vpop.permute.xlu0 %428 }
  0xe0   :  { %v101_v32 = vpack.c.bf16 %v1038_v30, %v1038_v30 }
  0xe2   :  { %833 = vmatmul.mubr.msk.bf16.vlgmr.msra.gmra.mrb[0].mxu1 %vm125_vm4, %v101_v32  ;;  %841 = vmatmul.mubr.msk.bf16.vlgmr.msra.gmra.mrb[4].mxu0 %vm125_vm4, %v101_v32  ;;  %v434_v32 = vpop.permute.xlu1 %433 }
  0xe3   :  { %848 = vmatprep.mubr.msk.bf16.mxu1 %vm906_vm2, %v904_v0  ;;  %856 = vmatprep.mubr.msk.bf16.mxu0 %vm906_vm2, %v904_v0 }
  0xe4   :  { %853 = vmatpush3.bf16.msra.mxu0 %v894_v33  ;;  %845 = vmatpush3.bf16.msra.mxu1 %v895_v34  ;;  %v439_v33 = vpop.permute.xlu0 %438 }
  0xe5   :  { %854 = vmatprep.subr.bf16.mxu0 %v904_v0  ;;  %846 = vmatprep.subr.bf16.mxu1 %v904_v0 }
  0xe6   :  { %v444_v34 = vpop.permute.xlu1 %443 }
  0xe8   :  { %855 = vmatpush3.bf16.msra.mxu0 %v896_v35  ;;  %847 = vmatpush3.bf16.msra.mxu1 %v897_v36 }
  0xe9   :  { %868 = vmatprep.subr.bf16.mxu0 %v904_v0  ;;  %860 = vmatprep.subr.bf16.mxu1 %v904_v0 }
 0x1b5   :  { %v163_v41 = vpop.f32.mrb[0].mxu1  ;;  %v219_v42 = vpop.f32.mrb[4].mxu0 }
 0x1b6   :  { %v249_v43 = vadd.f32 %v232_v37, %v219_v42  ;;  %v250_v44 = vadd.f32 %v237_v39, %v219_v42  ;;  %v251_v45 = vadd.f32 %v242_v38, %v219_v42  ;;  %v834_v46 = vpop.f32.mrb[1].mxu1  ;;  %v842_v47 = vpop.f32.mrb[5].mxu0  ;;  %v252_v48 = vadd.f32 %v247_v40, %v219_v42 }
 0x1b7   :  { %v166_v49 = vpop.f32.mrb[2].mxu1  ;;  %v222_v50 = vpop.f32.mrb[6].mxu0  ;;  %v164_v20 = vadd.f32 %v756_v14, %v163_v41 }
 0x1b8   :  { %v254_v51 = vsel %vm253_vm5, %v249_v43, -inf  ;;  %v261_v52 = vsel %vm253_vm5, %v250_v44, -inf  ;;  %v268_v53 = vsel %vm253_vm5, %v251_v45, -inf  ;;  %v835_v54 = vpop.f32.mrb[3].mxu1  ;;  %v843_v55 = vpop.f32.mrb[7].mxu0  ;;  %v275_v59 = vsel %vm253_vm5, %v252_v48, -inf }
 0x1b9   :  { %v255_v56 = vrot.slane %v254_v51, 4  ;;  %v262_v57 = vrot.slane %v261_v52, 4  ;;  %v269_v58 = vrot.slane %v268_v53, 4  ;;  %v276_v60 = vrot.slane %v275_v59, 4 }
 0x1bb   :  { %v256_v61 = vmax.f32 %v254_v51, %v255_v56  ;;  %v263_v62 = vmax.f32 %v261_v52, %v262_v57  ;;  %v270_v63 = vmax.f32 %v268_v53, %v269_v58  ;;  %v277_v1 = vmax.f32 %v275_v59, %v276_v60 }
 0x1bd   :  { %v257_v2 = vrot.slane %v256_v61, 2  ;;  %v264_v3 = vrot.slane %v263_v62, 2  ;;  %v271_v4 = vrot.slane %v270_v63, 2  ;;  %v278_v5 = vrot.slane %v277_v1, 2 }
 0x1bf   :  { %v258_v6 = vmax.f32 %v256_v61, %v257_v2  ;;  %v265_v7 = vmax.f32 %v263_v62, %v264_v3  ;;  %v272_v8 = vmax.f32 %v270_v63, %v271_v4  ;;  %v279_v9 = vmax.f32 %v277_v1, %v278_v5 }
 0x1c1   :  { %v259_v10 = vrot.slane %v258_v6, 1  ;;  %v266_v11 = vrot.slane %v265_v7, 1  ;;  %v273_v12 = vrot.slane %v272_v8, 1  ;;  %v280_v13 = vrot.slane %v279_v9, 1 }
 0x1c3   :  { %v260_v15 = vmax.f32 %v258_v6, %v259_v10  ;;  %v267_v16 = vmax.f32 %v265_v7, %v266_v11  ;;  %v274_v17 = vmax.f32 %v272_v8, %v273_v12  ;;  %v281_v18 = vmax.f32 %v279_v9, %v280_v13  ;;  %v768_v8 = vld [vmem:[%s1148_s8 + $0x1] ss:$0 sm:$0xff] }
 0x1c5   :  { %v287_v19 = vsel %vm286_vm6, %v267_v16, %v260_v15 }
 0x1c6   :  { %v289_v21 = vsel %vm288_vm7, %v274_v17, %v287_v19 }
 0x1c7   :  { %v291_v22 = vsel %vm290_vm8, %v281_v18, %v289_v21  ;;  %v902_v21 = vld [vmem:[%s1149_s9] sm:$0xff]  }
 0x1c8   :  { %v293_v23 = vadd.f32 %v291_v22, %v164_v20  ;;  %v903_v22 = vld [vmem:[%s1149_s9 + $0x8] sm:$0xff]  }
 0x1ca   :  { %v294_v24 = vmax.f32 %v293_v23, 0.0  ;;  %v622_v23 = vpop.permute.xlu0 %621 }
 0x1cc   :  { %v1075_v25 = vadd.f32 %v294_v24, %v1038_v30  ;;  %v901_v30 = vld [vmem:[%s1143_s6 + $0x28] sm:$0xff]   ;;  %v627_v24 = vpop.permute.xlu1 %626 }
 0x1ce   :  { %v296_v26 = vpack.c.bf16 %v1075_v25, %v1075_v25 }
 0x1d0   :  { %849 = vmatmul.mubr.msk.bf16.vlgmr.msra.gmra.mrb[4].mxu1 %vm125_vm4, %v296_v26  ;;  %857 = vmatmul.mubr.msk.bf16.vlgmr.msra.gmra.mrb[8].mxu0 %vm125_vm4, %v296_v26  ;;  %v637_v26 = vpop.permute.xlu1 %636 }
 0x1d1   :  { %864 = vmatprep.mubr.msk.bf16.mxu1 %vm906_vm2, %v904_v0  ;;  %872 = vmatprep.mubr.msk.bf16.mxu0 %vm906_vm2, %v904_v0 }
 0x1d2   :  { %869 = vmatpush3.bf16.msra.mxu0 %v898_v27  ;;  %861 = vmatpush3.bf16.msra.mxu1 %v899_v28 }
 0x1d3   :  { %870 = vmatprep.subr.bf16.mxu0 %v904_v0  ;;  %862 = vmatprep.subr.bf16.mxu1 %v904_v0 }
 0x1d6   :  { %871 = vmatpush3.bf16.msra.mxu0 %v900_v29  ;;  %863 = vmatpush3.bf16.msra.mxu1 %v901_v30 }
 0x1d7   :  { %876 = vmatprep.subr.bf16.mxu1 %v904_v0 }
 0x2a3   :  { %v359_v35 = vpop.f32.mrb[4].mxu1  ;;  %v416_v36 = vpop.f32.mrb[8].mxu0 }
 0x2a4   :  { %v446_v37 = vadd.f32 %v429_v31, %v416_v36  ;;  %v447_v38 = vadd.f32 %v434_v32, %v416_v36  ;;  %v448_v39 = vadd.f32 %v439_v33, %v416_v36  ;;  %v850_v40 = vpop.f32.mrb[5].mxu1  ;;  %v858_v41 = vpop.f32.mrb[9].mxu0  ;;  %v449_v42 = vadd.f32 %v444_v34, %v416_v36 }
 0x2a5   :  { %v362_v43 = vpop.f32.mrb[6].mxu1  ;;  %v419_v44 = vpop.f32.mrb[10].mxu0  ;;  %v360_v14 = vadd.f32 %v768_v8, %v359_v35 }
 0x2a6   :  { %v450_v45 = vsel %vm253_vm5, %v446_v37, -inf  ;;  %v457_v46 = vsel %vm253_vm5, %v447_v38, -inf  ;;  %v464_v47 = vsel %vm253_vm5, %v448_v39, -inf  ;;  %v851_v48 = vpop.f32.mrb[7].mxu1  ;;  %v859_v49 = vpop.f32.mrb[11].mxu0  ;;  %v471_v53 = vsel %vm253_vm5, %v449_v42, -inf }
 0x2a7   :  { %v451_v50 = vrot.slane %v450_v45, 4  ;;  %v458_v51 = vrot.slane %v457_v46, 4  ;;  %v465_v52 = vrot.slane %v464_v47, 4  ;;  %v472_v54 = vrot.slane %v471_v53, 4 }
 0x2a9   :  { %v452_v55 = vmax.f32 %v450_v45, %v451_v50  ;;  %v459_v56 = vmax.f32 %v457_v46, %v458_v51  ;;  %v466_v57 = vmax.f32 %v464_v47, %v465_v52  ;;  %v473_v58 = vmax.f32 %v471_v53, %v472_v54 }
 0x2ab   :  { %v453_v59 = vrot.slane %v452_v55, 2  ;;  %v460_v60 = vrot.slane %v459_v56, 2  ;;  %v467_v61 = vrot.slane %v466_v57, 2  ;;  %v474_v62 = vrot.slane %v473_v58, 2 }
 0x2ad   :  { %v454_v63 = vmax.f32 %v452_v55, %v453_v59  ;;  %v461_v1 = vmax.f32 %v459_v56, %v460_v60  ;;  %v468_v2 = vmax.f32 %v466_v57, %v467_v61  ;;  %v475_v3 = vmax.f32 %v473_v58, %v474_v62  ;;  %v784_v62 = vld [vmem:[%s1148_s8 + $0x2] ss:$0 sm:$0xff] }
 0x2af   :  { %v455_v4 = vrot.slane %v454_v63, 1  ;;  %v462_v5 = vrot.slane %v461_v1, 1  ;;  %v469_v6 = vrot.slane %v468_v2, 1  ;;  %v476_v7 = vrot.slane %v475_v3, 1 }
 0x2b1   :  { %v456_v9 = vmax.f32 %v454_v63, %v455_v4  ;;  %v463_v10 = vmax.f32 %v461_v1, %v462_v5  ;;  %v470_v11 = vmax.f32 %v468_v2, %v469_v6  ;;  %v477_v12 = vmax.f32 %v475_v3, %v476_v7 }
 0x2b3   :  { %v482_v13 = vsel %vm286_vm6, %v463_v10, %v456_v9 }
 0x2b4   :  { %v483_v15 = vsel %vm288_vm7, %v470_v11, %v482_v13 }
 0x2b5   :  { %v484_v16 = vsel %vm290_vm8, %v477_v12, %v483_v15  ;;  %v795_v12 = vld [vmem:[%s1150_s10] ss:$0 sm:$0xff] }
 0x2b6   :  { %v486_v17 = vadd.f32 %v484_v16, %v360_v14 }
 0x2b8   :  { %v487_v18 = vmax.f32 %v486_v17, 0.0 }
 0x2ba   :  { %v488_v19 = vadd.f32 %v487_v18, %v1075_v25  ;;  %v632_v25 = vpop.permute.xlu0 %631 }
 0x2bc   :  { %v489_v20 = vpack.c.bf16 %v488_v19, %v488_v19 }
 0x2be   :  { %865 = vmatmul.mubr.msk.bf16.vlgmr.msra.gmra.mrb[8].mxu1 %vm125_vm4, %v489_v20  ;;  %873 = vmatmul.mubr.msk.bf16.vlgmr.msra.gmra.mrb[12].mxu0 %vm125_vm4, %v489_v20 }
 0x2bf   :  { %880 = vmatprep.mubr.msk.bf16.mxu1 %vm906_vm2, %v904_v0  ;;  %877 = vmatpush3.bf16.msra.mxu1 %v902_v21 }
 0x2c0   :  { %878 = vmatprep.subr.bf16.mxu1 %v904_v0 }
 0x2c3   :  { %879 = vmatpush3.bf16.msra.mxu1 %v903_v22 }
 0x391   :  { %v552_v27 = vpop.f32.mrb[8].mxu1  ;;  %v609_v28 = vpop.f32.mrb[12].mxu0 }
 0x392   :  { %v639_v29 = vadd.f32 %v622_v23, %v609_v28  ;;  %v640_v30 = vadd.f32 %v627_v24, %v609_v28  ;;  %v641_v31 = vadd.f32 %v632_v25, %v609_v28  ;;  %v866_v32 = vpop.f32.mrb[9].mxu1  ;;  %v874_v33 = vpop.f32.mrb[13].mxu0  ;;  %v642_v34 = vadd.f32 %v637_v26, %v609_v28 }
 0x393   :  { %v555_v35 = vpop.f32.mrb[10].mxu1  ;;  %v612_v36 = vpop.f32.mrb[14].mxu0  ;;  %v553_v5 = vadd.f32 %v784_v62, %v552_v27 }
 0x394   :  { %v643_v37 = vsel %vm253_vm5, %v639_v29, -inf  ;;  %v650_v38 = vsel %vm253_vm5, %v640_v30, -inf  ;;  %v657_v0 = vsel %vm253_vm5, %v641_v31, -inf  ;;  %v867_v39 = vpop.f32.mrb[11].mxu1  ;;  %v875_v40 = vpop.f32.mrb[15].mxu0  ;;  %v664_v44 = vsel %vm253_vm5, %v642_v34, -inf }
 0x395   :  { %v644_v41 = vrot.slane %v643_v37, 4  ;;  %v651_v42 = vrot.slane %v650_v38, 4  ;;  %v658_v43 = vrot.slane %v657_v0, 4  ;;  %v665_v45 = vrot.slane %v664_v44, 4 }
 0x397   :  { %v645_v46 = vmax.f32 %v643_v37, %v644_v41  ;;  %v652_v47 = vmax.f32 %v650_v38, %v651_v42  ;;  %v659_v48 = vmax.f32 %v657_v0, %v658_v43  ;;  %v666_v49 = vmax.f32 %v664_v44, %v665_v45 }
 0x399   :  { %v646_v50 = vrot.slane %v645_v46, 2  ;;  %v653_v51 = vrot.slane %v652_v47, 2  ;;  %v660_v52 = vrot.slane %v659_v48, 2  ;;  %v667_v53 = vrot.slane %v666_v49, 2 }
 0x39b   :  { %v647_v54 = vmax.f32 %v645_v46, %v646_v50  ;;  %v654_v55 = vmax.f32 %v652_v47, %v653_v51  ;;  %v661_v56 = vmax.f32 %v659_v48, %v660_v52  ;;  %v668_v57 = vmax.f32 %v666_v49, %v667_v53 }
 0x39d   :  { %v648_v58 = vrot.slane %v647_v54, 1  ;;  %v655_v59 = vrot.slane %v654_v55, 1  ;;  %v662_v60 = vrot.slane %v661_v56, 1  ;;  %v669_v61 = vrot.slane %v668_v57, 1 }
 0x39f   :  { %v649_v63 = vmax.f32 %v647_v54, %v648_v58  ;;  %v656_v1 = vmax.f32 %v654_v55, %v655_v59  ;;  %v663_v2 = vmax.f32 %v661_v56, %v662_v60  ;;  %v670_v3 = vmax.f32 %v668_v57, %v669_v61 }
 0x3a1   :  { %v675_v4 = vsel %vm286_vm6, %v656_v1, %v649_v63 }
 0x3a2   :  { %v676_v6 = vsel %vm288_vm7, %v663_v2, %v675_v4 }
 0x3a3   :  { %v677_v7 = vsel %vm290_vm8, %v670_v3, %v676_v6 }
 0x3a4   :  { %v679_v8 = vadd.f32 %v677_v7, %v553_v5 }
 0x3a6   :  { %v680_v9 = vmax.f32 %v679_v8, 0.0 }
 0x3a8   :  { %v681_v10 = vadd.f32 %v680_v9, %v488_v19 }
 0x3aa   :  { %v682_v11 = vpack.c.bf16 %v681_v10, %v681_v10 }
 0x3ac   :  { %881 = vmatmul.mubr.msk.bf16.vlgmr.msra.gmra.mrb[12].mxu1 %vm125_vm4, %v682_v11 }
 0x47f   :  { %v743_v13 = vpop.f32.mrb[12].mxu1 }
 0x480   :  { %v744_v14 = vadd.f32 %v795_v12, %v743_v13  ;;  %v882_v15 = vpop.f32.mrb[13].mxu1 }
 0x481   :  { %v746_v16 = vpop.f32.mrb[14].mxu1 }
 0x482   :  { %749 = vst.msk [vmem:[%s1151_s11] sm:$0xf] %vm253_vm5, %v744_v14  ;;  %v883_v17 = vpop.f32.mrb[15].mxu1 }

// kernel: run.7
= control target key start
LH: loop header
LB: loop body
LE: loop exit
PB: predicated region body
PF: predicated region fallthrough
CT: control target
= control target key end

     0   :  { %s5571_s17 = smov 0   ;;  %s9487_s0 = inlined_call_operand.vmem [shape: f32[4,32,3], index: 0, kind: input, shape index: {}]   ;;  %s9488_s1 = inlined_call_operand.vmem [shape: f32[4,32,32,1], index: 1, kind: input, shape index: {}]   ;;  %s9489_s2 = inlined_call_operand.vmem [shape: f32[4,32,32,1], index: 2, kind: input, shape index: {}]   ;;  %s9490_s3 = inlined_call_operand.vmem [shape: f32[4,32,32,1], index: 3, kind: input, shape index: {}]   ;;  %s9491_s4 = inlined_call_operand.vmem [shape: bf16[3,32], index: 4, kind: input, shape index: {}]   ;;  %s9492_s5 = inlined_call_operand.vmem [shape: f32[1,32], index: 5, kind: input, shape index: {}]   ;;  %s9493_s6 = inlined_call_operand.vmem [shape: bf16[3,32,32], index: 6, kind: input, shape index: {}]   ;;  %s9494_s7 = inlined_call_operand.vmem [shape: bf16[3,32,32], index: 7, kind: input, shape index: {}]   ;;  %s9495_s8 = inlined_call_operand.vmem [shape: f32[3,1,32], index: 8, kind: input, shape index: {}]   ;;  %s9496_s9 = inlined_call_operand.vmem [shape: bf16[32,32], index: 9, kind: input, shape index: {}]   ;;  %s9497_s10 = inlined_call_operand.vmem [shape: f32[1,32], index: 10, kind: input, shape index: {}]   ;;  %s9498_s11 = inlined_call_operand.vmem [shape: f32[4,1,32], index: 11, kind: output, shape index: {}]  }
   0x1 LB: > { %s5311_s18 = sadd.s32 4294967295, %s5507_s17   ;;  %p5315_p0 = scmp.ge.s32.totalorder %s5507_s17, 1  ;;  %s5507_s17 = sphi %s5571_s17, %s21_s17  }
   0x2   : > { %p367_p1 = scmp.lt.s32.totalorder %s5507_s17, 5 }
   0x4   : > { %p368_p2 = pnand %p5315_p0, %p367_p1 }
   0x6   : > { %371 = sbr.rel (%p368_p2) target bundleno = 1617 (0x651), region = 64 }
   0xd   : > { %v450_v0 = vld [vmem:[%s9491_s4] sm:$0x3]  ;;  %vm465_vm0 = vcmask 1040384   ;;  %vm466_vm1 = vcmask 1041408   ;;  %v5509_v1 = vmov 0   ;;  %v5510_v2 = vmov 65535  }
   0xe   : > { %5486 = vset.pattern.permute.xlu1 %v5509_v1  ;;  %5485 = vset.pattern.permute.xlu0 %v5509_v1  ;;  %v467_v3 = vsel %vm465_vm0, 4294967295, %v5510_v2  ;;  %p420_p3 = scmp.lt.s32.totalorder %s5311_s18, 3  ;;  %vm458_vm2 = vcmask 23552   ;;  %v5487_v58 = vld [vmem:[%s9494_s7] sm:$0xff]   ;;  %v5489_v62 = vld [vmem:[%s9494_s7 + $0x8] sm:$0xff]   ;;  %vm550_vm3 = vcmask 261120  }
   0xf   : > { %v468_v4 = vsel %vm466_vm1, %v467_v3, 0  ;;  %v5488_v60 = vld [vmem:[%s9493_s6] sm:$0xff]   ;;  %vm2015_vm4 = vcmask 1041409   ;;  %vm2017_vm5 = vcmask 1042434   ;;  %vm2019_vm6 = vcmask 1043459  }
  0x10   : > { %v470_v5 = vand.u32 %v468_v4, %v450_v0  ;;  %s10312_s18 = smov (!%p420_p3, %s5311_s18), 3  ;;  %5419 = vmatprep.subr.bf16.mxu1 %v5488_v60  ;;  %v5490_v0 = vld [vmem:[%s9493_s6 + $0x8] sm:$0xff]   ;;  %vm2021_vm7 = vcmask 1044484   ;;  %vm2023_vm8 = vcmask 1045509   ;;  %vm2025_vm9 = vcmask 1046534  }
  0x11   : > { %s5585_s21 = sshll.u32 %s10312_s18, 10  ;;  %s5378_s22 = sshll.u32 %s10312_s18, 5  ;;  %5420 = vmatpush3.bf16.msra.mxu1 %v5488_v60  ;;  %vm2027_vm10 = vcmask 1047559   ;;  %vm5226_vm11 = vcmask 253952  }
  0x12   : > { %5413 = vmatprep.subr.bf16.mxu0 %v470_v5  ;;  %s5592_s25 = scalar_lea.vmem %s9488_s1, %s5585_s21  ;;  %s424_s28 = scalar_lea.vmem %s9487_s0, %s5378_s22  ;;  %5421 = vmatprep.subr.bf16.mxu1 %v5490_v0 }
  0x13   : > { %5414 = vmatpush3.bf16.msra.mxu0 %v470_v5  ;;  %v673_v6 = vld [vmem:[%s5592_s25 + $0x10] sm:$0xff]  ;;  %v671_v7 = vld [vmem:[%s5592_s25] sm:$0xff]  ;;  %v445_v9 = vld [vmem:[%s424_s28 + $0x8] sm:$0xff]  ;;  %s5892_s26 = scalar_lea.vmem %s9489_s2, %s5585_s21  ;;  %s6733_s22 = scalar_lea.vmem %s9490_s3, %s5585_s21 }
  0x14   : > { %v444_v8 = vld [vmem:[%s424_s28] sm:$0xff]  ;;  %811 = vperm.xlu1 %5486, %v673_v6   ;;  %801 = vperm.xlu0 %5485, %v671_v7   ;;  %v446_v10 = vld [vmem:[%s424_s28 + $0x10] sm:$0xff]  ;;  %v447_v11 = vld [vmem:[%s424_s28 + $0x18] sm:$0xff] }
  0x15   : > { %v448_v12 = vpack.c.bf16 %v445_v9, %v444_v8  ;;  %v449_v13 = vpack.c.bf16 %v447_v11, %v446_v10  ;;  %v674_v14 = vld [vmem:[%s5592_s25 + $0x18] sm:$0xff]  ;;  %v672_v15 = vld [vmem:[%s5592_s25 + $0x8] sm:$0xff]  ;;  %v675_v17 = vld [vmem:[%s5592_s25 + $0x20] sm:$0xff]  ;;  %5427 = vmatprep.subr.bf16.mxu0 %v5487_v58  ;;  %5422 = vmatpush3.bf16.msra.mxu1 %v5490_v0 }
  0x16   : > { %v676_v16 = vld [vmem:[%s5592_s25 + $0x28] sm:$0xff]  ;;  %v678_v18 = vld [vmem:[%s5592_s25 + $0x38] sm:$0xff]  ;;  %v677_v19 = vld [vmem:[%s5592_s25 + $0x30] sm:$0xff] }
  0x17   : > { %5415 = vmatprep.mubr.msk.bf16.mxu0 %vm458_vm2, %v448_v12  ;;  %v680_v20 = vld [vmem:[%s5592_s25 + $0x48] sm:$0xff]  ;;  %v679_v21 = vld [vmem:[%s5592_s25 + $0x40] sm:$0xff]  ;;  %v682_v22 = vld [vmem:[%s5592_s25 + $0x58] sm:$0xff] }
  0x18   : > { %5416 = vmatmul.mubr.msk.bf16.vlgmr.msra.gmra.mrb[0].mxu0 %vm458_vm2, %v449_v13  ;;  %816 = vperm.xlu1 %5486, %v674_v14   ;;  %v681_v23 = vld [vmem:[%s5592_s25 + $0x50] sm:$0xff]  ;;  %v684_v24 = vld [vmem:[%s5592_s25 + $0x68] sm:$0xff]  ;;  %v683_v25 = vld [vmem:[%s5592_s25 + $0x60] sm:$0xff] }
  0x19   : > { %806 = vperm.xlu0 %5485, %v672_v15   ;;  %v686_v26 = vld [vmem:[%s5592_s25 + $0x78] sm:$0xff]  ;;  %v685_v27 = vld [vmem:[%s5592_s25 + $0x70] sm:$0xff]  ;;  %v688_v28 = vld [vmem:[%s5592_s25 + $0x88] sm:$0xff]  ;;  %5428 = vmatpush3.bf16.msra.mxu0 %v5487_v58 }
  0x1a   : > { %v687_v29 = vld [vmem:[%s5592_s25 + $0x80] sm:$0xff]  ;;  %v690_v30 = vld [vmem:[%s5592_s25 + $0x98] sm:$0xff]  ;;  %v689_v31 = vld [vmem:[%s5592_s25 + $0x90] sm:$0xff]  ;;  %5429 = vmatprep.subr.bf16.mxu0 %v5489_v62 }
  0x1b   : > { %v692_v32 = vld [vmem:[%s5592_s25 + $0xa8] sm:$0xff]  ;;  %v691_v33 = vld [vmem:[%s5592_s25 + $0xa0] sm:$0xff]  ;;  %v694_v34 = vld [vmem:[%s5592_s25 + $0xb8] sm:$0xff] }
  0x1c   : > { %826 = vperm.xlu1 %5486, %v676_v16   ;;  %v693_v35 = vld [vmem:[%s5592_s25 + $0xb0] sm:$0xff]  ;;  %v696_v36 = vld [vmem:[%s5592_s25 + $0xc8] sm:$0xff]  ;;  %v695_v37 = vld [vmem:[%s5592_s25 + $0xc0] sm:$0xff] }
  0x1d   : > { %821 = vperm.xlu0 %5485, %v675_v17   ;;  %v698_v38 = vld [vmem:[%s5592_s25 + $0xd8] sm:$0xff]  ;;  %v697_v39 = vld [vmem:[%s5592_s25 + $0xd0] sm:$0xff]  ;;  %v700_v40 = vld [vmem:[%s5592_s25 + $0xe8] sm:$0xff]  ;;  %5430 = vmatpush3.bf16.msra.mxu0 %v5489_v62 }
  0x1e   : > { %v699_v41 = vld [vmem:[%s5592_s25 + $0xe0] sm:$0xff]  ;;  %v702_v42 = vld [vmem:[%s5592_s25 + $0xf8] sm:$0xff]  ;;  %v701_v43 = vld [vmem:[%s5592_s25 + $0xf0] sm:$0xff] }
  0x1f   : > { %v704_v44 = vld [vmem:[%s5592_s25 + $0x108] sm:$0xff]  ;;  %v703_v45 = vld [vmem:[%s5592_s25 + $0x100] sm:$0xff]  ;;  %v706_v46 = vld [vmem:[%s5592_s25 + $0x118] sm:$0xff] }
  0x20   : > { %836 = vperm.xlu1 %5486, %v678_v18   ;;  %v705_v47 = vld [vmem:[%s5592_s25 + $0x110] sm:$0xff]  ;;  %v708_v48 = vld [vmem:[%s5592_s25 + $0x128] sm:$0xff]  ;;  %v707_v49 = vld [vmem:[%s5592_s25 + $0x120] sm:$0xff] }
  0x21   : > { %831 = vperm.xlu0 %5485, %v677_v19   ;;  %v710_v50 = vld [vmem:[%s5592_s25 + $0x138] sm:$0xff]  ;;  %v709_v51 = vld [vmem:[%s5592_s25 + $0x130] sm:$0xff]  ;;  %v712_v52 = vld [vmem:[%s5592_s25 + $0x148] sm:$0xff] }
  0x22   : > { %v711_v53 = vld [vmem:[%s5592_s25 + $0x140] sm:$0xff]  ;;  %v714_v54 = vld [vmem:[%s5592_s25 + $0x158] sm:$0xff]  ;;  %v713_v55 = vld [vmem:[%s5592_s25 + $0x150] sm:$0xff] }
  0x23   : > { %v716_v56 = vld [vmem:[%s5592_s25 + $0x168] sm:$0xff]  ;;  %v715_v57 = vld [vmem:[%s5592_s25 + $0x160] sm:$0xff]  ;;  %v718_v59 = vld [vmem:[%s5592_s25 + $0x178] sm:$0xff] }
  0x24   : > { %846 = vperm.xlu1 %5486, %v680_v20   ;;  %v717_v61 = vld [vmem:[%s5592_s25 + $0x170] sm:$0xff]  ;;  %v720_v63 = vld [vmem:[%s5592_s25 + $0x188] sm:$0xff]  ;;  %v719_v1 = vld [vmem:[%s5592_s25 + $0x180] sm:$0xff] }
  0x25   : > { %841 = vperm.xlu0 %5485, %v679_v21   ;;  %v722_v2 = vld [vmem:[%s5592_s25 + $0x198] sm:$0xff]  ;;  %v721_v3 = vld [vmem:[%s5592_s25 + $0x190] sm:$0xff]  ;;  %v724_v4 = vld [vmem:[%s5592_s25 + $0x1a8] sm:$0xff] }
  0x26   : > { %v723_v5 = vld [vmem:[%s5592_s25 + $0x1a0] sm:$0xff]  ;;  %v726_v6 = vld [vmem:[%s5592_s25 + $0x1b8] sm:$0xff]  ;;  %v725_v7 = vld [vmem:[%s5592_s25 + $0x1b0] sm:$0xff] }
  0x27   : > { %v728_v8 = vld [vmem:[%s5592_s25 + $0x1c8] sm:$0xff]  ;;  %v727_v9 = vld [vmem:[%s5592_s25 + $0x1c0] sm:$0xff]  ;;  %v730_v10 = vld [vmem:[%s5592_s25 + $0x1d8] sm:$0xff] }
  0x28   : > { %856 = vperm.xlu1 %5486, %v682_v22   ;;  %v729_v11 = vld [vmem:[%s5592_s25 + $0x1d0] sm:$0xff]  ;;  %v732_v12 = vld [vmem:[%s5592_s25 + $0x1e8] sm:$0xff]  ;;  %v731_v13 = vld [vmem:[%s5592_s25 + $0x1e0] sm:$0xff] }
  0x29   : > { %851 = vperm.xlu0 %5485, %v681_v23   ;;  %v734_v14 = vld [vmem:[%s5592_s25 + $0x1f8] sm:$0xff]  ;;  %v733_v15 = vld [vmem:[%s5592_s25 + $0x1f0] sm:$0xff]  ;;  %v736_v16 = vld [vmem:[%s5592_s25 + $0x208] sm:$0xff] }
  0x2a   : > { %v735_v17 = vld [vmem:[%s5592_s25 + $0x200] sm:$0xff]  ;;  %v738_v20 = vld [vmem:[%s5592_s25 + $0x218] sm:$0xff]  ;;  %v737_v21 = vld [vmem:[%s5592_s25 + $0x210] sm:$0xff] }
  0x2b   : > { %v758_v60 = vld [vmem:[%s5592_s25 + $0x2b8] sm:$0xff]  ;;  %v760_v0 = vld [vmem:[%s5592_s25 + $0x2c8] sm:$0xff] }
  0x2c   : > { %866 = vperm.xlu1 %5486, %v684_v24   ;;  %v740_v24 = vld [vmem:[%s5592_s25 + $0x228] sm:$0xff] }
  0x2d   : > { %861 = vperm.xlu0 %5485, %v683_v25   ;;  %v739_v25 = vld [vmem:[%s5592_s25 + $0x220] sm:$0xff] }
  0x30   : > { %876 = vperm.xlu1 %5486, %v686_v26  }
  0x31   : > { %871 = vperm.xlu0 %5485, %v685_v27  }
  0x34   : > { %886 = vperm.xlu1 %5486, %v688_v28   ;;  %v742_v28 = vld [vmem:[%s5592_s25 + $0x238] sm:$0xff] }
  0x35   : > { %881 = vperm.xlu0 %5485, %v687_v29   ;;  %v741_v29 = vld [vmem:[%s5592_s25 + $0x230] sm:$0xff] }
  0x38   : > { %896 = vperm.xlu1 %5486, %v690_v30  }
  0x39   : > { %891 = vperm.xlu0 %5485, %v689_v31  }
  0x3c   : > { %906 = vperm.xlu1 %5486, %v692_v32   ;;  %v744_v32 = vld [vmem:[%s5592_s25 + $0x248] sm:$0xff] }
  0x3d   : > { %901 = vperm.xlu0 %5485, %v691_v33   ;;  %v743_v33 = vld [vmem:[%s5592_s25 + $0x240] sm:$0xff] }
  0x40   : > { %916 = vperm.xlu1 %5486, %v694_v34  }
  0x41   : > { %911 = vperm.xlu0 %5485, %v693_v35  }
  0x44   : > { %926 = vperm.xlu1 %5486, %v696_v36   ;;  %v746_v36 = vld [vmem:[%s5592_s25 + $0x258] sm:$0xff] }
  0x45   : > { %921 = vperm.xlu0 %5485, %v695_v37   ;;  %v745_v37 = vld [vmem:[%s5592_s25 + $0x250] sm:$0xff] }
  0x48   : > { %936 = vperm.xlu1 %5486, %v698_v38  }
  0x49   : > { %931 = vperm.xlu0 %5485, %v697_v39  }
  0x4c   : > { %946 = vperm.xlu1 %5486, %v700_v40   ;;  %v748_v40 = vld [vmem:[%s5592_s25 + $0x268] sm:$0xff] }
  0x4d   : > { %941 = vperm.xlu0 %5485, %v699_v41   ;;  %v747_v41 = vld [vmem:[%s5592_s25 + $0x260] sm:$0xff] }
  0x50   : > { %956 = vperm.xlu1 %5486, %v702_v42  }
  0x51   : > { %951 = vperm.xlu0 %5485, %v701_v43  }
  0x54   : > { %966 = vperm.xlu1 %5486, %v704_v44   ;;  %v750_v44 = vld [vmem:[%s5592_s25 + $0x278] sm:$0xff] }
  0x55   : > { %961 = vperm.xlu0 %5485, %v703_v45   ;;  %v749_v45 = vld [vmem:[%s5592_s25 + $0x270] sm:$0xff] }
  0x58   : > { %976 = vperm.xlu1 %5486, %v706_v46  }
  0x59   : > { %971 = vperm.xlu0 %5485, %v705_v47  }
  0x5c   : > { %986 = vperm.xlu1 %5486, %v708_v48   ;;  %v752_v48 = vld [vmem:[%s5592_s25 + $0x288] sm:$0xff] }
  0x5d   : > { %981 = vperm.xlu0 %5485, %v707_v49   ;;  %v751_v49 = vld [vmem:[%s5592_s25 + $0x280] sm:$0xff] }
  0x60   : > { %996 = vperm.xlu1 %5486, %v710_v50  }
  0x61   : > { %991 = vperm.xlu0 %5485, %v709_v51  }
  0x64   : > { %1006 = vperm.xlu1 %5486, %v712_v52   ;;  %v754_v52 = vld [vmem:[%s5592_s25 + $0x298] sm:$0xff] }
  0x65   : > { %1001 = vperm.xlu0 %5485, %v711_v53   ;;  %v753_v53 = vld [vmem:[%s5592_s25 + $0x290] sm:$0xff] }
  0x68   : > { %1016 = vperm.xlu1 %5486, %v714_v54  }
  0x69   : > { %1011 = vperm.xlu0 %5485, %v713_v55  }
  0x6c   : > { %1026 = vperm.xlu1 %5486, %v716_v56   ;;  %v756_v56 = vld [vmem:[%s5592_s25 + $0x2a8] sm:$0xff] }
  0x6d   : > { %1021 = vperm.xlu0 %5485, %v715_v57   ;;  %v755_v57 = vld [vmem:[%s5592_s25 + $0x2a0] sm:$0xff] }
  0x70   : > { %1036 = vperm.xlu1 %5486, %v718_v59  }
  0x71   : > { %1031 = vperm.xlu0 %5485, %v717_v61   ;;  %v757_v61 = vld [vmem:[%s5592_s25 + $0x2b0] sm:$0xff] }
  0x74   : > { %1046 = vperm.xlu1 %5486, %v720_v63  }
  0x75   : > { %1041 = vperm.xlu0 %5485, %v719_v1   ;;  %v759_v1 = vld [vmem:[%s5592_s25 + $0x2c0] sm:$0xff] }
  0x78   : > { %1056 = vperm.xlu1 %5486, %v722_v2  }
  0x79   : > { %1051 = vperm.xlu0 %5485, %v721_v3  }
  0x7c   : > { %1066 = vperm.xlu1 %5486, %v724_v4   ;;  %v762_v4 = vld [vmem:[%s5592_s25 + $0x2d8] sm:$0xff] }
  0x7d   : > { %1061 = vperm.xlu0 %5485, %v723_v5   ;;  %v761_v5 = vld [vmem:[%s5592_s25 + $0x2d0] sm:$0xff] }
  0x80   : > { %1076 = vperm.xlu1 %5486, %v726_v6  }
  0x81   : > { %1071 = vperm.xlu0 %5485, %v725_v7  }
  0x84   : > { %1086 = vperm.xlu1 %5486, %v728_v8   ;;  %v764_v8 = vld [vmem:[%s5592_s25 + $0x2e8] sm:$0xff] }
  0x85   : > { %1081 = vperm.xlu0 %5485, %v727_v9   ;;  %v763_v9 = vld [vmem:[%s5592_s25 + $0x2e0] sm:$0xff] }
  0x88   : > { %1096 = vperm.xlu1 %5486, %v730_v10  }
  0x89   : > { %1091 = vperm.xlu0 %5485, %v729_v11  }
  0x8c   : > { %1106 = vperm.xlu1 %5486, %v732_v12   ;;  %v766_v12 = vld [vmem:[%s5592_s25 + $0x2f8] sm:$0xff] }
  0x8d   : > { %1101 = vperm.xlu0 %5485, %v731_v13   ;;  %v765_v13 = vld [vmem:[%s5592_s25 + $0x2f0] sm:$0xff] }
  0x90   : > { %1116 = vperm.xlu1 %5486, %v734_v14  }
  0x91   : > { %1111 = vperm.xlu0 %5485, %v733_v15  }
  0x93   : > { %v5675_v18 = vpop.permute.xlu1 %811  ;;  %v5677_v19 = vpop.permute.xlu0 %801 }
  0x94   : > { %1126 = vperm.xlu1 %5486, %v736_v16   ;;  %v768_v16 = vld [vmem:[%s5592_s25 + $0x308] sm:$0xff] }
  0x95   : > { %1121 = vperm.xlu0 %5485, %v735_v17   ;;  %v767_v17 = vld [vmem:[%s5592_s25 + $0x300] sm:$0xff] }
  0x97   : > { %v5681_v22 = vpop.permute.xlu1 %816 }
  0x98   : > { %v5683_v23 = vpop.permute.xlu0 %806  ;;  %1136 = vperm.xlu1 %5486, %v738_v20  }
  0x99   : > { %1131 = vperm.xlu0 %5485, %v737_v21  }
  0x9b   : > { %v5687_v26 = vpop.permute.xlu1 %826 }
  0x9c   : > { %v5689_v27 = vpop.permute.xlu0 %821  ;;  %1146 = vperm.xlu1 %5486, %v740_v24   ;;  %v770_v24 = vld [vmem:[%s5592_s25 + $0x318] sm:$0xff] }
  0x9d   : > { %1141 = vperm.xlu0 %5485, %v739_v25   ;;  %v769_v25 = vld [vmem:[%s5592_s25 + $0x310] sm:$0xff] }
  0x9f   : > { %v5693_v30 = vpop.permute.xlu1 %836 }
  0xa0   : > { %v5695_v31 = vpop.permute.xlu0 %831  ;;  %1156 = vperm.xlu1 %5486, %v742_v28  }
  0xa1   : > { %1151 = vperm.xlu0 %5485, %v741_v29  }
  0xa3   : > { %v5699_v34 = vpop.permute.xlu1 %846 }
  0xa4   : > { %v5701_v35 = vpop.permute.xlu0 %841  ;;  %1166 = vperm.xlu1 %5486, %v744_v32   ;;  %v772_v32 = vld [vmem:[%s5592_s25 + $0x328] sm:$0xff] }
  0xa5   : > { %1161 = vperm.xlu0 %5485, %v743_v33   ;;  %v771_v33 = vld [vmem:[%s5592_s25 + $0x320] sm:$0xff] }
  0xa7   : > { %v5705_v38 = vpop.permute.xlu1 %856 }
  0xa8   : > { %v5707_v39 = vpop.permute.xlu0 %851  ;;  %1176 = vperm.xlu1 %5486, %v746_v36  }
  0xa9   : > { %1171 = vperm.xlu0 %5485, %v745_v37  }
  0xab   : > { %v5711_v42 = vpop.permute.xlu1 %866 }
  0xac   : > { %v5713_v43 = vpop.permute.xlu0 %861  ;;  %1186 = vperm.xlu1 %5486, %v748_v40   ;;  %v774_v40 = vld [vmem:[%s5592_s25 + $0x338] sm:$0xff] }
  0xad   : > { %1181 = vperm.xlu0 %5485, %v747_v41   ;;  %v773_v41 = vld [vmem:[%s5592_s25 + $0x330] sm:$0xff] }
  0xaf   : > { %v5717_v46 = vpop.permute.xlu1 %876 }
  0xb0   : > { %v5719_v47 = vpop.permute.xlu0 %871  ;;  %1196 = vperm.xlu1 %5486, %v750_v44  }
  0xb1   : > { %1191 = vperm.xlu0 %5485, %v749_v45  }
  0xb3   : > { %v5723_v50 = vpop.permute.xlu1 %886 }
  0xb4   : > { %v5725_v51 = vpop.permute.xlu0 %881  ;;  %1206 = vperm.xlu1 %5486, %v752_v48   ;;  %v776_v48 = vld [vmem:[%s5592_s25 + $0x348] sm:$0xff] }
  0xb5   : > { %1201 = vperm.xlu0 %5485, %v751_v49   ;;  %v775_v49 = vld [vmem:[%s5592_s25 + $0x340] sm:$0xff] }
  0xb7   : > { %v5729_v54 = vpop.permute.xlu1 %896 }
  0xb8   : > { %v5731_v55 = vpop.permute.xlu0 %891  ;;  %1216 = vperm.xlu1 %5486, %v754_v52  }
  0xb9   : > { %1211 = vperm.xlu0 %5485, %v753_v53  }
  0xbb   : > { %v5735_v58 = vpop.permute.xlu1 %906 }
  0xbc   : > { %v5737_v59 = vpop.permute.xlu0 %901  ;;  %1226 = vperm.xlu1 %5486, %v756_v56   ;;  %v778_v56 = vld [vmem:[%s5592_s25 + $0x358] sm:$0xff] }
  0xbd   : > { %1221 = vperm.xlu0 %5485, %v755_v57   ;;  %v777_v57 = vld [vmem:[%s5592_s25 + $0x350] sm:$0xff] }
  0xbf   : > { %v5741_v62 = vpop.permute.xlu1 %916 }
  0xc0   : > { %v5743_v63 = vpop.permute.xlu0 %911  ;;  %1236 = vperm.xlu1 %5486, %v758_v60  }
  0xc1   : > { %1231 = vperm.xlu0 %5485, %v757_v61  }
  0xc3   : > { %v5747_v2 = vpop.permute.xlu1 %926 }
  0xc4   : > { %v5749_v3 = vpop.permute.xlu0 %921  ;;  %1246 = vperm.xlu1 %5486, %v760_v0   ;;  %v780_v0 = vld [vmem:[%s5592_s25 + $0x368] sm:$0xff] }
  0xc5   : > { %1241 = vperm.xlu0 %5485, %v759_v1   ;;  %v5324_v1 = vld [vmem:[%s9492_s5] ss:$0 sm:$0xff] }
  0xc7   : > { %v5753_v6 = vpop.permute.xlu1 %936 }
  0xc8   : > { %v5755_v7 = vpop.permute.xlu0 %931  ;;  %1256 = vperm.xlu1 %5486, %v762_v4   ;;  %v779_v4 = vld [vmem:[%s5592_s25 + $0x360] sm:$0xff] }
  0xc9   : > { %1251 = vperm.xlu0 %5485, %v761_v5  }
  0xcb   : > { %v5759_v10 = vpop.permute.xlu1 %946 }
  0xcc   : > { %v5761_v11 = vpop.permute.xlu0 %941  ;;  %1266 = vperm.xlu1 %5486, %v764_v8  }
  0xcd   : > { %1261 = vperm.xlu0 %5485, %v763_v9  }
  0xcf   : > { %v5765_v14 = vpop.permute.xlu1 %956 }
  0xd0   : > { %v5767_v15 = vpop.permute.xlu0 %951  ;;  %1276 = vperm.xlu1 %5486, %v766_v12  }
  0xd1   : > { %1271 = vperm.xlu0 %5485, %v765_v13  }
  0xd3   : > { %v5771_v20 = vpop.permute.xlu1 %966 }
  0xd4   : > { %v5773_v21 = vpop.permute.xlu0 %961  ;;  %1286 = vperm.xlu1 %5486, %v768_v16  }
  0xd5   : > { %1281 = vperm.xlu0 %5485, %v767_v17   ;;  %v782_v17 = vld [vmem:[%s5592_s25 + $0x378] sm:$0xff] }
  0xd7   : > { %v5777_v28 = vpop.permute.xlu1 %976 }
  0xd8   : > { %v5779_v29 = vpop.permute.xlu0 %971  ;;  %1296 = vperm.xlu1 %5486, %v770_v24  }
  0xd9   : > { %1291 = vperm.xlu0 %5485, %v769_v25  }
  0xdb   : > { %v5783_v36 = vpop.permute.xlu1 %986 }
  0xdc   : > { %v5785_v37 = vpop.permute.xlu0 %981  ;;  %1306 = vperm.xlu1 %5486, %v772_v32  }
  0xdd   : > { %1301 = vperm.xlu0 %5485, %v771_v33   ;;  %v781_v33 = vld [vmem:[%s5592_s25 + $0x370] sm:$0xff] }
  0xdf   : > { %v5789_v44 = vpop.permute.xlu1 %996 }
  0xe0   : > { %v5791_v45 = vpop.permute.xlu0 %991  ;;  %1316 = vperm.xlu1 %5486, %v774_v40  }
  0xe1   : > { %1311 = vperm.xlu0 %5485, %v773_v41  }
  0xe3   : > { %v5795_v52 = vpop.permute.xlu1 %1006 }
  0xe4   : > { %v5797_v53 = vpop.permute.xlu0 %1001  ;;  %1326 = vperm.xlu1 %5486, %v776_v48  }
  0xe5   : > { %1321 = vperm.xlu0 %5485, %v775_v49  }
  0xe7   : > { %v5801_v60 = vpop.permute.xlu1 %1016 }
  0xe8   : > { %v5803_v61 = vpop.permute.xlu0 %1011  ;;  %1336 = vperm.xlu1 %5486, %v778_v56  }
  0xe9   : > { %1331 = vperm.xlu0 %5485, %v777_v57  }
  0xeb   : > { %v5417_v5 = vpop.f32.mrb[0].mxu0  ;;  %v5810_v8 = vpop.permute.xlu1 %1026 }
  0xec   : > { %v5812_v9 = vpop.permute.xlu0 %1021  ;;  %v506_v12 = vpop.f32.mrb[1].mxu0  ;;  %1346 = vperm.xlu1 %5486, %v780_v0   ;;  %v5817_v24 = vadd.f32 %v5417_v5, %v5324_v1  ;;  %v784_v0 = vld [vmem:[%s5592_s25 + $0x388] sm:$0xff]  ;;  %v783_v5 = vld [vmem:[%s5592_s25 + $0x380] sm:$0xff] }
  0xed   : > { %v5814_v13 = vadd.f32 %v5324_v1, %v506_v12  ;;  %1341 = vperm.xlu0 %5485, %v779_v4   ;;  %v5418_v16 = vpop.f32.mrb[2].mxu0 }
  0xee   : > { %9536 = vst [vmem:[#allocation3_spill] sm:$0xff] %v5817_v24  ;;  %v5819_v25 = vadd.f32 %v5418_v16, %v5324_v1  ;;  %v509_v32 = vpop.f32.mrb[3].mxu0  ;;  %v9501_v4 = vmax.f32 %v5817_v24, 0.0 }
  0xef   : > { %9535 = vst [vmem:[#allocation2_spill] sm:$0xff] %v5814_v13  ;;  %v5822_v40 = vadd.f32 %v5324_v1, %v509_v32  ;;  %v5824_v41 = vpop.permute.xlu1 %1036  ;;  %v9502_v56 = vmax.f32 %v5814_v13, 0.0  ;;  %v786_v32 = vld [vmem:[%s5592_s25 + $0x398] sm:$0xff] }
  0xf0   : > { %9537 = vst [vmem:[#allocation4_spill] sm:$0xff] %v5819_v25  ;;  %v9500_v48 = vmax.f32 %v5819_v25, 0.0  ;;  %v5827_v49 = vpop.permute.xlu0 %1031  ;;  %1356 = vperm.xlu1 %5486, %v782_v17  }
  0xf1   : > { %9538 = vst [vmem:[#allocation5_spill] sm:$0xff] %v5822_v40  ;;  %v9499_v57 = vmax.f32 %v5822_v40, 0.0  ;;  %1351 = vperm.xlu0 %5485, %v781_v33   ;;  %v785_v33 = vld [vmem:[%s5592_s25 + $0x390] sm:$0xff] }
  0xf2   : > { %v526_v16 = vpack.c.bf16 %v9500_v48, %v9501_v4 }
  0xf3   : > { %v5834_v1 = vpop.permute.xlu1 %1046  ;;  %v525_v12 = vpack.c.bf16 %v9499_v57, %v9502_v56 }
  0xf4   : > { %v5844_v17 = vpop.permute.xlu0 %1041  ;;  %1366 = vperm.xlu1 %5486, %v784_v0   ;;  %v788_v0 = vld [vmem:[%s5592_s25 + $0x3a8] sm:$0xff] }
  0xf5   : > { %1361 = vperm.xlu0 %5485, %v783_v5   ;;  %5423 = vmatprep.mubr.msk.bf16.mxu1 %vm550_vm3, %v525_v12  ;;  %v787_v5 = vld [vmem:[%s5592_s25 + $0x3a0] sm:$0xff] }
  0xf6   : > { %5431 = vmatprep.mubr.msk.bf16.mxu0 %vm550_vm3, %v525_v12  ;;  %5424 = vmatmul.mubr.msk.bf16.vlgmr.msra.gmra.mrb[0].mxu1 %vm550_vm3, %v526_v16  ;;  %v790_v12 = vld [vmem:[%s5592_s25 + $0x3b8] sm:$0xff] }
  0xf7   : > { %5432 = vmatmul.mubr.msk.bf16.vlgmr.msra.gmra.mrb[4].mxu0 %vm550_vm3, %v526_v16  ;;  %v5852_v57 = vpop.permute.xlu1 %1056  ;;  %v789_v16 = vld [vmem:[%s5592_s25 + $0x3b0] sm:$0xff] }
  0xf8   : > { %9539 = vst [vmem:[#allocation6_spill] sm:$0xff] %v5852_v57  ;;  %v5854_v48 = vpop.permute.xlu0 %1051  ;;  %1376 = vperm.xlu1 %5486, %v786_v32   ;;  %v792_v32 = vld [vmem:[%s5592_s25 + $0x3c8] sm:$0xff] }
  0xf9   : > { %9540 = vst [vmem:[#allocation7_spill] sm:$0xff] %v5854_v48  ;;  %1371 = vperm.xlu0 %5485, %v785_v33   ;;  %v791_v33 = vld [vmem:[%s5592_s25 + $0x3c0] sm:$0xff] }
  0xfb   : > { %v5858_v4 = vpop.permute.xlu1 %1066 }
  0xfc   : > { %9541 = vst [vmem:[#allocation8_spill] sm:$0xff] %v5858_v4  ;;  %v5860_v56 = vpop.permute.xlu0 %1061  ;;  %1386 = vperm.xlu1 %5486, %v788_v0   ;;  %v794_v0 = vld [vmem:[%s5592_s25 + $0x3d8] sm:$0xff] }
  0xfd   : > { %9542 = vst [vmem:[#allocation9_spill] sm:$0xff] %v5860_v56  ;;  %1381 = vperm.xlu0 %5485, %v787_v5   ;;  %v793_v5 = vld [vmem:[%s5592_s25 + $0x3d0] sm:$0xff] }
  0xff   : > { %v5864_v25 = vpop.permute.xlu1 %1076 }
 0x100   : > { %9543 = vst [vmem:[#allocation10_spill] sm:$0xff] %v5864_v25  ;;  %v5866_v24 = vpop.permute.xlu0 %1071  ;;  %1396 = vperm.xlu1 %5486, %v790_v12   ;;  %v796_v12 = vld [vmem:[%s5592_s25 + $0x3e8] sm:$0xff] }
 0x101   : > { %9544 = vst [vmem:[#allocation11_spill] sm:$0xff] %v5866_v24  ;;  %1391 = vperm.xlu0 %5485, %v789_v16   ;;  %v795_v16 = vld [vmem:[%s5592_s25 + $0x3e0] sm:$0xff] }
 0x103   : > { %v5870_v40 = vpop.permute.xlu1 %1086 }
 0x104   : > { %9545 = vst [vmem:[#allocation12_spill] sm:$0xff] %v5870_v40  ;;  %v5872_v13 = vpop.permute.xlu0 %1081  ;;  %1406 = vperm.xlu1 %5486, %v792_v32   ;;  %v797_v32 = vld [vmem:[%s5592_s25 + $0x3f0] sm:$0xff] }
 0x105   : > { %9546 = vst [vmem:[#allocation13_spill] sm:$0xff] %v5872_v13  ;;  %1401 = vperm.xlu0 %5485, %v791_v33   ;;  %v798_v13 = vld [vmem:[%s5592_s25 + $0x3f8] sm:$0xff] }
 0x107   : > { %v5876_v25 = vpop.permute.xlu1 %1096 }
 0x108   : > { %9547 = vst [vmem:[#allocation14_spill] sm:$0xff] %v5876_v25  ;;  %v5878_v4 = vpop.permute.xlu0 %1091  ;;  %1416 = vperm.xlu1 %5486, %v794_v0   ;;  %v2216_v25 = vld [vmem:[%s5892_s26 + $0x10] sm:$0xff] }
 0x109   : > { %9548 = vst [vmem:[#allocation15_spill] sm:$0xff] %v5878_v4  ;;  %1411 = vperm.xlu0 %5485, %v793_v5   ;;  %v2215_v5 = vld [vmem:[%s5892_s26 + $0x8] sm:$0xff] }
 0x10b   : > { %v5882_v24 = vpop.permute.xlu1 %1106 }
 0x10c   : > { %9549 = vst [vmem:[#allocation16_spill] sm:$0xff] %v5882_v24  ;;  %v5884_v40 = vpop.permute.xlu0 %1101  ;;  %1426 = vperm.xlu1 %5486, %v796_v12   ;;  %v2214_v12 = vld [vmem:[%s5892_s26] sm:$0xff] }
 0x10d   : > { %9550 = vst [vmem:[#allocation17_spill] sm:$0xff] %v5884_v40  ;;  %1421 = vperm.xlu0 %5485, %v795_v16   ;;  %v2217_v40 = vld [vmem:[%s5892_s26 + $0x18] sm:$0xff] }
 0x10f   : > { %v5894_v33 = vpop.permute.xlu1 %1116 }
 0x110   : > { %9551 = vst [vmem:[#allocation18_spill] sm:$0xff] %v5894_v33  ;;  %v5896_v0 = vpop.permute.xlu0 %1111  ;;  %1436 = vperm.xlu1 %5486, %v798_v13   ;;  %v2219_v13 = vld [vmem:[%s5892_s26 + $0x28] sm:$0xff] }
 0x111   : > { %9552 = vst [vmem:[#allocation19_spill] sm:$0xff] %v5896_v0  ;;  %1431 = vperm.xlu0 %5485, %v797_v32   ;;  %v2218_v32 = vld [vmem:[%s5892_s26 + $0x20] sm:$0xff] }
 0x113   : > { %v5900_v16 = vpop.permute.xlu1 %1126 }
 0x114   : > { %9553 = vst [vmem:[#allocation20_spill] sm:$0xff] %v5900_v16  ;;  %v5902_v24 = vpop.permute.xlu0 %1121  ;;  %2349 = vperm.xlu1 %5486, %v2215_v5   ;;  %v2221_v5 = vld [vmem:[%s5892_s26 + $0x38] sm:$0xff] }
 0x115   : > { %9554 = vst [vmem:[#allocation21_spill] sm:$0xff] %v5902_v24  ;;  %2344 = vperm.xlu0 %5485, %v2214_v12   ;;  %v2220_v12 = vld [vmem:[%s5892_s26 + $0x30] sm:$0xff] }
 0x117   : > { %v5906_v4 = vpop.permute.xlu1 %1136 }
 0x118   : > { %9555 = vst [vmem:[#allocation22_spill] sm:$0xff] %v5906_v4  ;;  %v5908_v33 = vpop.permute.xlu0 %1131  ;;  %2359 = vperm.xlu1 %5486, %v2217_v40   ;;  %v2222_v40 = vld [vmem:[%s5892_s26 + $0x40] sm:$0xff] }
 0x119   : > { %9556 = vst [vmem:[#allocation23_spill] sm:$0xff] %v5908_v33  ;;  %2354 = vperm.xlu0 %5485, %v2216_v25   ;;  %v2223_v25 = vld [vmem:[%s5892_s26 + $0x48] sm:$0xff] }
 0x11b   : > { %v5912_v0 = vpop.permute.xlu1 %1146 }
 0x11c   : > { %9557 = vst [vmem:[#allocation24_spill] sm:$0xff] %v5912_v0  ;;  %v5914_v16 = vpop.permute.xlu0 %1141  ;;  %2369 = vperm.xlu1 %5486, %v2219_v13   ;;  %v2225_v13 = vld [vmem:[%s5892_s26 + $0x58] sm:$0xff] }
 0x11d   : > { %9558 = vst [vmem:[#allocation25_spill] sm:$0xff] %v5914_v16  ;;  %2364 = vperm.xlu0 %5485, %v2218_v32   ;;  %v2224_v32 = vld [vmem:[%s5892_s26 + $0x50] sm:$0xff] }
 0x11f   : > { %v5918_v24 = vpop.permute.xlu1 %1156 }
 0x120   : > { %9559 = vst [vmem:[#allocation26_spill] sm:$0xff] %v5918_v24  ;;  %v5920_v4 = vpop.permute.xlu0 %1151  ;;  %2379 = vperm.xlu1 %5486, %v2221_v5   ;;  %v2227_v5 = vld [vmem:[%s5892_s26 + $0x68] sm:$0xff] }
 0x121   : > { %9560 = vst [vmem:[#allocation27_spill] sm:$0xff] %v5920_v4  ;;  %2374 = vperm.xlu0 %5485, %v2220_v12   ;;  %v2226_v12 = vld [vmem:[%s5892_s26 + $0x60] sm:$0xff] }
 0x123   : > { %v5924_v33 = vpop.permute.xlu1 %1166 }
 0x124   : > { %9561 = vst [vmem:[#allocation28_spill] sm:$0xff] %v5924_v33  ;;  %v5926_v0 = vpop.permute.xlu0 %1161  ;;  %2389 = vperm.xlu1 %5486, %v2223_v25   ;;  %v2229_v25 = vld [vmem:[%s5892_s26 + $0x78] sm:$0xff] }
 0x125   : > { %9562 = vst [vmem:[#allocation29_spill] sm:$0xff] %v5926_v0  ;;  %2384 = vperm.xlu0 %5485, %v2222_v40   ;;  %v2228_v40 = vld [vmem:[%s5892_s26 + $0x70] sm:$0xff] }
 0x127   : > { %v5930_v16 = vpop.permute.xlu1 %1176 }
 0x128   : > { %9563 = vst [vmem:[#allocation30_spill] sm:$0xff] %v5930_v16  ;;  %v5932_v24 = vpop.permute.xlu0 %1171  ;;  %2399 = vperm.xlu1 %5486, %v2225_v13   ;;  %v2231_v13 = vld [vmem:[%s5892_s26 + $0x88] sm:$0xff] }
 0x129   : > { %9564 = vst [vmem:[#allocation31_spill] sm:$0xff] %v5932_v24  ;;  %2394 = vperm.xlu0 %5485, %v2224_v32   ;;  %v2230_v32 = vld [vmem:[%s5892_s26 + $0x80] sm:$0xff] }
 0x12b   : > { %v5936_v4 = vpop.permute.xlu1 %1186 }
 0x12c   : > { %9565 = vst [vmem:[#allocation32_spill] sm:$0xff] %v5936_v4  ;;  %v5938_v33 = vpop.permute.xlu0 %1181  ;;  %2409 = vperm.xlu1 %5486, %v2227_v5   ;;  %v2233_v5 = vld [vmem:[%s5892_s26 + $0x98] sm:$0xff] }
 0x12d   : > { %9566 = vst [vmem:[#allocation33_spill] sm:$0xff] %v5938_v33  ;;  %2404 = vperm.xlu0 %5485, %v2226_v12   ;;  %v2232_v12 = vld [vmem:[%s5892_s26 + $0x90] sm:$0xff] }
 0x12f   : > { %v5942_v0 = vpop.permute.xlu1 %1196 }
 0x130   : > { %9567 = vst [vmem:[#allocation34_spill] sm:$0xff] %v5942_v0  ;;  %v5944_v16 = vpop.permute.xlu0 %1191  ;;  %2419 = vperm.xlu1 %5486, %v2229_v25   ;;  %v2235_v25 = vld [vmem:[%s5892_s26 + $0xa8] sm:$0xff] }
 0x131   : > { %9568 = vst [vmem:[#allocation35_spill] sm:$0xff] %v5944_v16  ;;  %2414 = vperm.xlu0 %5485, %v2228_v40   ;;  %v2234_v40 = vld [vmem:[%s5892_s26 + $0xa0] sm:$0xff] }
 0x133   : > { %v5948_v24 = vpop.permute.xlu1 %1206 }
 0x134   : > { %9569 = vst [vmem:[#allocation36_spill] sm:$0xff] %v5948_v24  ;;  %v5950_v4 = vpop.permute.xlu0 %1201  ;;  %2429 = vperm.xlu1 %5486, %v2231_v13   ;;  %v2237_v13 = vld [vmem:[%s5892_s26 + $0xb8] sm:$0xff] }
 0x135   : > { %9570 = vst [vmem:[#allocation37_spill] sm:$0xff] %v5950_v4  ;;  %2424 = vperm.xlu0 %5485, %v2230_v32   ;;  %v2236_v32 = vld [vmem:[%s5892_s26 + $0xb0] sm:$0xff] }
 0x137   : > { %v5954_v33 = vpop.permute.xlu1 %1216 }
 0x138   : > { %9571 = vst [vmem:[#allocation38_spill] sm:$0xff] %v5954_v33  ;;  %v5956_v0 = vpop.permute.xlu0 %1211  ;;  %2439 = vperm.xlu1 %5486, %v2233_v5   ;;  %v2239_v5 = vld [vmem:[%s5892_s26 + $0xc8] sm:$0xff] }
 0x139   : > { %9572 = vst [vmem:[#allocation39_spill] sm:$0xff] %v5956_v0  ;;  %2434 = vperm.xlu0 %5485, %v2232_v12   ;;  %v2238_v12 = vld [vmem:[%s5892_s26 + $0xc0] sm:$0xff] }
 0x13b   : > { %v5960_v16 = vpop.permute.xlu1 %1226 }
 0x13c   : > { %9573 = vst [vmem:[#allocation40_spill] sm:$0xff] %v5960_v16  ;;  %v5962_v24 = vpop.permute.xlu0 %1221  ;;  %2449 = vperm.xlu1 %5486, %v2235_v25   ;;  %v2241_v25 = vld [vmem:[%s5892_s26 + $0xd8] sm:$0xff] }
 0x13d   : > { %9574 = vst [vmem:[#allocation41_spill] sm:$0xff] %v5962_v24  ;;  %2444 = vperm.xlu0 %5485, %v2234_v40   ;;  %v2240_v40 = vld [vmem:[%s5892_s26 + $0xd0] sm:$0xff] }
 0x13f   : > { %v5966_v4 = vpop.permute.xlu1 %1236 }
 0x140   : > { %9575 = vst [vmem:[#allocation42_spill] sm:$0xff] %v5966_v4  ;;  %v5968_v33 = vpop.permute.xlu0 %1231  ;;  %2459 = vperm.xlu1 %5486, %v2237_v13   ;;  %v2243_v13 = vld [vmem:[%s5892_s26 + $0xe8] sm:$0xff] }
 0x141   : > { %9576 = vst [vmem:[#allocation43_spill] sm:$0xff] %v5968_v33  ;;  %2454 = vperm.xlu0 %5485, %v2236_v32   ;;  %v2242_v32 = vld [vmem:[%s5892_s26 + $0xe0] sm:$0xff] }
 0x143   : > { %v5972_v0 = vpop.permute.xlu1 %1246 }
 0x144   : > { %9577 = vst [vmem:[#allocation44_spill] sm:$0xff] %v5972_v0  ;;  %v5974_v16 = vpop.permute.xlu0 %1241  ;;  %2469 = vperm.xlu1 %5486, %v2239_v5   ;;  %v2245_v5 = vld [vmem:[%s5892_s26 + $0xf8] sm:$0xff] }
 0x145   : > { %9578 = vst [vmem:[#allocation45_spill] sm:$0xff] %v5974_v16  ;;  %2464 = vperm.xlu0 %5485, %v2238_v12   ;;  %v2244_v12 = vld [vmem:[%s5892_s26 + $0xf0] sm:$0xff] }
 0x147   : > { %v5978_v24 = vpop.permute.xlu1 %1256 }
 0x148   : > { %9579 = vst [vmem:[#allocation46_spill] sm:$0xff] %v5978_v24  ;;  %v5980_v4 = vpop.permute.xlu0 %1251  ;;  %2479 = vperm.xlu1 %5486, %v2241_v25   ;;  %v2247_v25 = vld [vmem:[%s5892_s26 + $0x108] sm:$0xff] }
 0x149   : > { %9580 = vst [vmem:[#allocation47_spill] sm:$0xff] %v5980_v4  ;;  %2474 = vperm.xlu0 %5485, %v2240_v40   ;;  %v2246_v40 = vld [vmem:[%s5892_s26 + $0x100] sm:$0xff] }
 0x14b   : > { %v5984_v33 = vpop.permute.xlu1 %1266 }
 0x14c   : > { %9581 = vst [vmem:[#allocation48_spill] sm:$0xff] %v5984_v33  ;;  %v5986_v0 = vpop.permute.xlu0 %1261  ;;  %2489 = vperm.xlu1 %5486, %v2243_v13   ;;  %v2249_v13 = vld [vmem:[%s5892_s26 + $0x118] sm:$0xff] }
 0x14d   : > { %9582 = vst [vmem:[#allocation49_spill] sm:$0xff] %v5986_v0  ;;  %2484 = vperm.xlu0 %5485, %v2242_v32   ;;  %v2248_v32 = vld [vmem:[%s5892_s26 + $0x110] sm:$0xff] }
 0x14f   : > { %v5990_v16 = vpop.permute.xlu1 %1276 }
 0x150   : > { %9583 = vst [vmem:[#allocation50_spill] sm:$0xff] %v5990_v16  ;;  %v5992_v24 = vpop.permute.xlu0 %1271  ;;  %2499 = vperm.xlu1 %5486, %v2245_v5   ;;  %v2251_v5 = vld [vmem:[%s5892_s26 + $0x128] sm:$0xff] }
 0x151   : > { %9584 = vst [vmem:[#allocation51_spill] sm:$0xff] %v5992_v24  ;;  %2494 = vperm.xlu0 %5485, %v2244_v12   ;;  %v2250_v12 = vld [vmem:[%s5892_s26 + $0x120] sm:$0xff] }
 0x153   : > { %v5996_v4 = vpop.permute.xlu1 %1286 }
 0x154   : > { %9585 = vst [vmem:[#allocation52_spill] sm:$0xff] %v5996_v4  ;;  %v5998_v33 = vpop.permute.xlu0 %1281  ;;  %2509 = vperm.xlu1 %5486, %v2247_v25   ;;  %v2253_v25 = vld [vmem:[%s5892_s26 + $0x138] sm:$0xff] }
 0x155   : > { %9586 = vst [vmem:[#allocation53_spill] sm:$0xff] %v5998_v33  ;;  %2504 = vperm.xlu0 %5485, %v2246_v40   ;;  %v2252_v40 = vld [vmem:[%s5892_s26 + $0x130] sm:$0xff] }
 0x157   : > { %v6002_v0 = vpop.permute.xlu1 %1296 }
 0x158   : > { %9587 = vst [vmem:[#allocation54_spill] sm:$0xff] %v6002_v0  ;;  %v6004_v16 = vpop.permute.xlu0 %1291  ;;  %2519 = vperm.xlu1 %5486, %v2249_v13   ;;  %v2255_v13 = vld [vmem:[%s5892_s26 + $0x148] sm:$0xff] }
 0x159   : > { %9588 = vst [vmem:[#allocation55_spill] sm:$0xff] %v6004_v16  ;;  %2514 = vperm.xlu0 %5485, %v2248_v32   ;;  %v2254_v32 = vld [vmem:[%s5892_s26 + $0x140] sm:$0xff] }
 0x15b   : > { %v6008_v24 = vpop.permute.xlu1 %1306 }
 0x15c   : > { %9589 = vst [vmem:[#allocation56_spill] sm:$0xff] %v6008_v24  ;;  %v6010_v4 = vpop.permute.xlu0 %1301  ;;  %2529 = vperm.xlu1 %5486, %v2251_v5   ;;  %v2257_v5 = vld [vmem:[%s5892_s26 + $0x158] sm:$0xff] }
 0x15d   : > { %9590 = vst [vmem:[#allocation57_spill] sm:$0xff] %v6010_v4  ;;  %2524 = vperm.xlu0 %5485, %v2250_v12   ;;  %v2256_v12 = vld [vmem:[%s5892_s26 + $0x150] sm:$0xff] }
 0x15f   : > { %v6014_v33 = vpop.permute.xlu1 %1316 }
 0x160   : > { %9591 = vst [vmem:[#allocation58_spill] sm:$0xff] %v6014_v33  ;;  %v6016_v0 = vpop.permute.xlu0 %1311  ;;  %2539 = vperm.xlu1 %5486, %v2253_v25   ;;  %v2259_v25 = vld [vmem:[%s5892_s26 + $0x168] sm:$0xff] }
 0x161   : > { %9592 = vst [vmem:[#allocation59_spill] sm:$0xff] %v6016_v0  ;;  %2534 = vperm.xlu0 %5485, %v2252_v40   ;;  %v5491_v40 = vld [vmem:[%s9494_s7 + $0x10] sm:$0xff]  }
 0x162   : > { %5443 = vmatprep.subr.bf16.mxu0 %v5491_v40  ;;  %v2264_v0 = vld [vmem:[%s5892_s26 + $0x190] sm:$0xff] }
 0x163   : > { %v6020_v16 = vpop.permute.xlu1 %1326  ;;  %5444 = vmatpush3.bf16.msra.mxu0 %v5491_v40  ;;  %v2262_v40 = vld [vmem:[%s5892_s26 + $0x180] sm:$0xff] }
 0x164   : > { %9593 = vst [vmem:[#allocation60_spill] sm:$0xff] %v6020_v16  ;;  %v6022_v24 = vpop.permute.xlu0 %1321  ;;  %2549 = vperm.xlu1 %5486, %v2255_v13   ;;  %v2258_v16 = vld [vmem:[%s5892_s26 + $0x160] sm:$0xff]  ;;  %v5492_v13 = vld [vmem:[%s9493_s6 + $0x10] sm:$0xff]  }
 0x165   : > { %9594 = vst [vmem:[#allocation61_spill] sm:$0xff] %v6022_v24  ;;  %2544 = vperm.xlu0 %5485, %v2254_v32   ;;  %5435 = vmatprep.subr.bf16.mxu1 %v5492_v13 }
 0x166   : > { %5436 = vmatpush3.bf16.msra.mxu1 %v5492_v13 }
 0x167   : > { %v6026_v4 = vpop.permute.xlu1 %1336 }
 0x168   : > { %9595 = vst [vmem:[#allocation62_spill] sm:$0xff] %v6026_v4  ;;  %v6028_v33 = vpop.permute.xlu0 %1331  ;;  %2559 = vperm.xlu1 %5486, %v2257_v5   ;;  %v2261_v5 = vld [vmem:[%s5892_s26 + $0x178] sm:$0xff]  ;;  %v2260_v4 = vld [vmem:[%s5892_s26 + $0x170] sm:$0xff] }
 0x169   : > { %9596 = vst [vmem:[#allocation63_spill] sm:$0xff] %v6028_v33  ;;  %2554 = vperm.xlu0 %5485, %v2256_v12   ;;  %v5493_v12 = vld [vmem:[%s9494_s7 + $0x18] sm:$0xff]  }
 0x16a   : > { %5445 = vmatprep.subr.bf16.mxu0 %v5493_v12 }
 0x16b   : > { %v6038_v32 = vpop.permute.xlu1 %1346  ;;  %5446 = vmatpush3.bf16.msra.mxu0 %v5493_v12 }
 0x16c   : > { %9597 = vst [vmem:[#allocation64_spill] sm:$0xff] %v6038_v32  ;;  %v6040_v24 = vpop.permute.xlu0 %1341  ;;  %2569 = vperm.xlu1 %5486, %v2259_v25   ;;  %v5494_v32 = vld [vmem:[%s9493_s6 + $0x18] sm:$0xff]  }
 0x16d   : > { %9598 = vst [vmem:[#allocation65_spill] sm:$0xff] %v6040_v24  ;;  %2564 = vperm.xlu0 %5485, %v2258_v16   ;;  %5437 = vmatprep.subr.bf16.mxu1 %v5494_v32  ;;  %v2263_v16 = vld [vmem:[%s5892_s26 + $0x188] sm:$0xff] }
 0x16e   : > { %5438 = vmatpush3.bf16.msra.mxu1 %v5494_v32  ;;  %v2266_v32 = vld [vmem:[%s5892_s26 + $0x1a0] sm:$0xff] }
 0x16f   : > { %v6050_v24 = vpop.permute.xlu1 %1356 }
 0x170   : > { %9599 = vst [vmem:[#allocation66_spill] sm:$0xff] %v6050_v24  ;;  %v6052_v25 = vpop.permute.xlu0 %1351  ;;  %2579 = vperm.xlu1 %5486, %v2261_v5   ;;  %v2265_v24 = vld [vmem:[%s5892_s26 + $0x198] sm:$0xff] }
 0x171   : > { %9600 = vst [vmem:[#allocation67_spill] sm:$0xff] %v6052_v25  ;;  %2574 = vperm.xlu0 %5485, %v2260_v4   ;;  %v2267_v4 = vld [vmem:[%s5892_s26 + $0x1a8] sm:$0xff] }
 0x173   : > { %v6056_v13 = vpop.permute.xlu1 %1366 }
 0x174   : > { %9601 = vst [vmem:[#allocation68_spill] sm:$0xff] %v6056_v13  ;;  %v6058_v33 = vpop.permute.xlu0 %1361  ;;  %2589 = vperm.xlu1 %5486, %v2263_v16   ;;  %v2269_v16 = vld [vmem:[%s5892_s26 + $0x1b8] sm:$0xff] }
 0x175   : > { %9602 = vst [vmem:[#allocation69_spill] sm:$0xff] %v6058_v33  ;;  %2584 = vperm.xlu0 %5485, %v2262_v40   ;;  %v2268_v40 = vld [vmem:[%s5892_s26 + $0x1b0] sm:$0xff] }
 0x177   : > { %v6062_v25 = vpop.permute.xlu1 %1376 }
 0x178   : > { %9603 = vst [vmem:[#allocation70_spill] sm:$0xff] %v6062_v25  ;;  %v6064_v5 = vpop.permute.xlu0 %1371  ;;  %2599 = vperm.xlu1 %5486, %v2265_v24   ;;  %v2271_v24 = vld [vmem:[%s5892_s26 + $0x1c8] sm:$0xff] }
 0x179   : > { %9604 = vst [vmem:[#allocation71_spill] sm:$0xff] %v6064_v5  ;;  %2594 = vperm.xlu0 %5485, %v2264_v0   ;;  %v2270_v0 = vld [vmem:[%s5892_s26 + $0x1c0] sm:$0xff] }
 0x17b   : > { %v6068_v12 = vpop.permute.xlu1 %1386 }
 0x17c   : > { %9605 = vst [vmem:[#allocation72_spill] sm:$0xff] %v6068_v12  ;;  %v6070_v13 = vpop.permute.xlu0 %1381  ;;  %2609 = vperm.xlu1 %5486, %v2267_v4   ;;  %v2273_v4 = vld [vmem:[%s5892_s26 + $0x1d8] sm:$0xff] }
 0x17d   : > { %9606 = vst [vmem:[#allocation73_spill] sm:$0xff] %v6070_v13  ;;  %2604 = vperm.xlu0 %5485, %v2266_v32   ;;  %v2272_v32 = vld [vmem:[%s5892_s26 + $0x1d0] sm:$0xff] }
 0x17f   : > { %v6074_v33 = vpop.permute.xlu1 %1396 }
 0x180   : > { %9607 = vst [vmem:[#allocation74_spill] sm:$0xff] %v6074_v33  ;;  %v6076_v25 = vpop.permute.xlu0 %1391  ;;  %2619 = vperm.xlu1 %5486, %v2269_v16   ;;  %v2275_v16 = vld [vmem:[%s5892_s26 + $0x1e8] sm:$0xff] }
 0x181   : > { %9608 = vst [vmem:[#allocation75_spill] sm:$0xff] %v6076_v25  ;;  %2614 = vperm.xlu0 %5485, %v2268_v40   ;;  %v2274_v40 = vld [vmem:[%s5892_s26 + $0x1e0] sm:$0xff] }
 0x183   : > { %v6080_v5 = vpop.permute.xlu1 %1406 }
 0x184   : > { %9609 = vst [vmem:[#allocation76_spill] sm:$0xff] %v6080_v5  ;;  %v6082_v12 = vpop.permute.xlu0 %1401  ;;  %2629 = vperm.xlu1 %5486, %v2271_v24   ;;  %v2277_v24 = vld [vmem:[%s5892_s26 + $0x1f8] sm:$0xff] }
 0x185   : > { %9610 = vst [vmem:[#allocation77_spill] sm:$0xff] %v6082_v12  ;;  %2624 = vperm.xlu0 %5485, %v2270_v0   ;;  %v2276_v0 = vld [vmem:[%s5892_s26 + $0x1f0] sm:$0xff] }
 0x187   : > { %v6086_v13 = vpop.permute.xlu1 %1416 }
 0x188   : > { %9611 = vst [vmem:[#allocation78_spill] sm:$0xff] %v6086_v13  ;;  %v6088_v33 = vpop.permute.xlu0 %1411  ;;  %2639 = vperm.xlu1 %5486, %v2273_v4   ;;  %v2279_v4 = vld [vmem:[%s5892_s26 + $0x208] sm:$0xff] }
 0x189   : > { %9612 = vst [vmem:[#allocation79_spill] sm:$0xff] %v6088_v33  ;;  %2634 = vperm.xlu0 %5485, %v2272_v32   ;;  %v2278_v32 = vld [vmem:[%s5892_s26 + $0x200] sm:$0xff] }
 0x18b   : > { %v6092_v25 = vpop.permute.xlu1 %1426 }
 0x18c   : > { %9613 = vst [vmem:[#allocation80_spill] sm:$0xff] %v6092_v25  ;;  %v6094_v5 = vpop.permute.xlu0 %1421  ;;  %2649 = vperm.xlu1 %5486, %v2275_v16   ;;  %v2281_v16 = vld [vmem:[%s5892_s26 + $0x218] sm:$0xff] }
 0x18d   : > { %9614 = vst [vmem:[#allocation81_spill] sm:$0xff] %v6094_v5  ;;  %2644 = vperm.xlu0 %5485, %v2274_v40   ;;  %v2280_v40 = vld [vmem:[%s5892_s26 + $0x210] sm:$0xff] }
 0x18f   : > { %v6098_v12 = vpop.permute.xlu1 %1436 }
 0x190   : > { %9615 = vst [vmem:[#allocation82_spill] sm:$0xff] %v6098_v12  ;;  %v6100_v13 = vpop.permute.xlu0 %1431  ;;  %2659 = vperm.xlu1 %5486, %v2277_v24   ;;  %v2283_v24 = vld [vmem:[%s5892_s26 + $0x228] sm:$0xff] }
 0x191   : > { %9616 = vst [vmem:[#allocation83_spill] sm:$0xff] %v6100_v13  ;;  %2654 = vperm.xlu0 %5485, %v2276_v0   ;;  %v2282_v0 = vld [vmem:[%s5892_s26 + $0x220] sm:$0xff] }
 0x193   : > { %v6104_v33 = vpop.permute.xlu1 %2349 }
 0x194   : > { %9617 = vst [vmem:[#allocation84_spill] sm:$0xff] %v6104_v33  ;;  %v6106_v25 = vpop.permute.xlu0 %2344  ;;  %2669 = vperm.xlu1 %5486, %v2279_v4   ;;  %v2285_v4 = vld [vmem:[%s5892_s26 + $0x238] sm:$0xff] }
 0x195   : > { %9618 = vst [vmem:[#allocation85_spill] sm:$0xff] %v6106_v25  ;;  %2664 = vperm.xlu0 %5485, %v2278_v32   ;;  %v2284_v32 = vld [vmem:[%s5892_s26 + $0x230] sm:$0xff] }
 0x197   : > { %v6110_v5 = vpop.permute.xlu1 %2359 }
 0x198   : > { %9619 = vst [vmem:[#allocation86_spill] sm:$0xff] %v6110_v5  ;;  %v6112_v12 = vpop.permute.xlu0 %2354  ;;  %2679 = vperm.xlu1 %5486, %v2281_v16   ;;  %v2287_v16 = vld [vmem:[%s5892_s26 + $0x248] sm:$0xff] }
 0x199   : > { %9620 = vst [vmem:[#allocation87_spill] sm:$0xff] %v6112_v12  ;;  %2674 = vperm.xlu0 %5485, %v2280_v40   ;;  %v2286_v40 = vld [vmem:[%s5892_s26 + $0x240] sm:$0xff] }
 0x19b   : > { %v6116_v13 = vpop.permute.xlu1 %2369 }
 0x19c   : > { %9621 = vst [vmem:[#allocation88_spill] sm:$0xff] %v6116_v13  ;;  %v6118_v33 = vpop.permute.xlu0 %2364  ;;  %2689 = vperm.xlu1 %5486, %v2283_v24   ;;  %v2289_v24 = vld [vmem:[%s5892_s26 + $0x258] sm:$0xff] }
 0x19d   : > { %9622 = vst [vmem:[#allocation89_spill] sm:$0xff] %v6118_v33  ;;  %2684 = vperm.xlu0 %5485, %v2282_v0   ;;  %v2288_v0 = vld [vmem:[%s5892_s26 + $0x250] sm:$0xff] }
 0x19f   : > { %v6122_v25 = vpop.permute.xlu1 %2379 }
 0x1a0   : > { %9623 = vst [vmem:[#allocation90_spill] sm:$0xff] %v6122_v25  ;;  %v6124_v5 = vpop.permute.xlu0 %2374  ;;  %2699 = vperm.xlu1 %5486, %v2285_v4   ;;  %v2291_v4 = vld [vmem:[%s5892_s26 + $0x268] sm:$0xff] }
 0x1a1   : > { %9624 = vst [vmem:[#allocation91_spill] sm:$0xff] %v6124_v5  ;;  %2694 = vperm.xlu0 %5485, %v2284_v32   ;;  %v2290_v32 = vld [vmem:[%s5892_s26 + $0x260] sm:$0xff] }
 0x1a3   : > { %v6128_v12 = vpop.permute.xlu1 %2389 }
 0x1a4   : > { %9625 = vst [vmem:[#allocation92_spill] sm:$0xff] %v6128_v12  ;;  %v6130_v13 = vpop.permute.xlu0 %2384  ;;  %2709 = vperm.xlu1 %5486, %v2287_v16   ;;  %v2293_v16 = vld [vmem:[%s5892_s26 + $0x278] sm:$0xff] }
 0x1a5   : > { %9626 = vst [vmem:[#allocation93_spill] sm:$0xff] %v6130_v13  ;;  %2704 = vperm.xlu0 %5485, %v2286_v40   ;;  %v2292_v40 = vld [vmem:[%s5892_s26 + $0x270] sm:$0xff] }
 0x1a7   : > { %v6134_v33 = vpop.permute.xlu1 %2399 }
 0x1a8   : > { %9627 = vst [vmem:[#allocation94_spill] sm:$0xff] %v6134_v33  ;;  %v6136_v25 = vpop.permute.xlu0 %2394  ;;  %2719 = vperm.xlu1 %5486, %v2289_v24   ;;  %v2295_v24 = vld [vmem:[%s5892_s26 + $0x288] sm:$0xff] }
 0x1a9   : > { %9628 = vst [vmem:[#allocation95_spill] sm:$0xff] %v6136_v25  ;;  %2714 = vperm.xlu0 %5485, %v2288_v0   ;;  %v2294_v0 = vld [vmem:[%s5892_s26 + $0x280] sm:$0xff] }
 0x1ab   : > { %v6140_v5 = vpop.permute.xlu1 %2409 }
 0x1ac   : > { %9629 = vst [vmem:[#allocation96_spill] sm:$0xff] %v6140_v5  ;;  %v6142_v12 = vpop.permute.xlu0 %2404  ;;  %2729 = vperm.xlu1 %5486, %v2291_v4   ;;  %v2297_v4 = vld [vmem:[%s5892_s26 + $0x298] sm:$0xff] }
 0x1ad   : > { %9630 = vst [vmem:[#allocation97_spill] sm:$0xff] %v6142_v12  ;;  %2724 = vperm.xlu0 %5485, %v2290_v32   ;;  %v2296_v32 = vld [vmem:[%s5892_s26 + $0x290] sm:$0xff] }
 0x1af   : > { %v6146_v13 = vpop.permute.xlu1 %2419 }
 0x1b0   : > { %9631 = vst [vmem:[#allocation98_spill] sm:$0xff] %v6146_v13  ;;  %v6148_v33 = vpop.permute.xlu0 %2414  ;;  %2739 = vperm.xlu1 %5486, %v2293_v16   ;;  %v2299_v16 = vld [vmem:[%s5892_s26 + $0x2a8] sm:$0xff] }
 0x1b1   : > { %9632 = vst [vmem:[#allocation99_spill] sm:$0xff] %v6148_v33  ;;  %2734 = vperm.xlu0 %5485, %v2292_v40   ;;  %v2298_v40 = vld [vmem:[%s5892_s26 + $0x2a0] sm:$0xff] }
 0x1b3   : > { %v6152_v25 = vpop.permute.xlu1 %2429 }
 0x1b4   : > { %9633 = vst [vmem:[#allocation100_spill] sm:$0xff] %v6152_v25  ;;  %v6154_v5 = vpop.permute.xlu0 %2424  ;;  %2749 = vperm.xlu1 %5486, %v2295_v24   ;;  %v2301_v24 = vld [vmem:[%s5892_s26 + $0x2b8] sm:$0xff] }
 0x1b5   : > { %9634 = vst [vmem:[#allocation101_spill] sm:$0xff] %v6154_v5  ;;  %2744 = vperm.xlu0 %5485, %v2294_v0   ;;  %v2300_v0 = vld [vmem:[%s5892_s26 + $0x2b0] sm:$0xff] }
 0x1b7   : > { %v6158_v12 = vpop.permute.xlu1 %2439 }
 0x1b8   : > { %9635 = vst [vmem:[#allocation102_spill] sm:$0xff] %v6158_v12  ;;  %v6160_v13 = vpop.permute.xlu0 %2434  ;;  %2759 = vperm.xlu1 %5486, %v2297_v4   ;;  %v2303_v4 = vld [vmem:[%s5892_s26 + $0x2c8] sm:$0xff] }
 0x1b9   : > { %9636 = vst [vmem:[#allocation103_spill] sm:$0xff] %v6160_v13  ;;  %2754 = vperm.xlu0 %5485, %v2296_v32   ;;  %v2302_v32 = vld [vmem:[%s5892_s26 + $0x2c0] sm:$0xff] }
 0x1bb   : > { %v6164_v33 = vpop.permute.xlu1 %2449 }
 0x1bc   : > { %9637 = vst [vmem:[#allocation104_spill] sm:$0xff] %v6164_v33  ;;  %v6166_v25 = vpop.permute.xlu0 %2444  ;;  %2769 = vperm.xlu1 %5486, %v2299_v16   ;;  %v2305_v16 = vld [vmem:[%s5892_s26 + $0x2d8] sm:$0xff] }
 0x1bd   : > { %9638 = vst [vmem:[#allocation105_spill] sm:$0xff] %v6166_v25  ;;  %2764 = vperm.xlu0 %5485, %v2298_v40   ;;  %v2304_v40 = vld [vmem:[%s5892_s26 + $0x2d0] sm:$0xff] }
 0x1bf   : > { %v6170_v5 = vpop.permute.xlu1 %2459 }
 0x1c0   : > { %9639 = vst [vmem:[#allocation106_spill] sm:$0xff] %v6170_v5  ;;  %v6172_v12 = vpop.permute.xlu0 %2454  ;;  %2779 = vperm.xlu1 %5486, %v2301_v24   ;;  %v5327_v5 = vld [vmem:[%s9495_s8] ss:$0 sm:$0xff] }
 0x1c1   : > { %9640 = vst [vmem:[#allocation107_spill] sm:$0xff] %v6172_v12  ;;  %2774 = vperm.xlu0 %5485, %v2300_v0   ;;  %v2307_v12 = vld [vmem:[%s5892_s26 + $0x2e8] sm:$0xff] }
 0x1c3   : > { %v6176_v13 = vpop.permute.xlu1 %2469 }
 0x1c4   : > { %9641 = vst [vmem:[#allocation108_spill] sm:$0xff] %v6176_v13  ;;  %v6178_v33 = vpop.permute.xlu0 %2464  ;;  %2789 = vperm.xlu1 %5486, %v2303_v4  }
 0x1c5   : > { %9642 = vst [vmem:[#allocation109_spill] sm:$0xff] %v6178_v33  ;;  %2784 = vperm.xlu0 %5485, %v2302_v32   ;;  %v2306_v32 = vld [vmem:[%s5892_s26 + $0x2e0] sm:$0xff] }
 0x1c7   : > { %v6182_v25 = vpop.permute.xlu1 %2479 }
 0x1c8   : > { %9643 = vst [vmem:[#allocation110_spill] sm:$0xff] %v6182_v25  ;;  %v6187_v24 = vpop.permute.xlu0 %2474  ;;  %2799 = vperm.xlu1 %5486, %v2305_v16  }
 0x1c9   : > { %9644 = vst [vmem:[#allocation111_spill] sm:$0xff] %v6187_v24  ;;  %2794 = vperm.xlu0 %5485, %v2304_v40   ;;  %v5425_v0 = vpop.f32.mrb[0].mxu1 }
 0x1ca   : > { %v6190_v13 = vadd.f32 %v5425_v0, %v5327_v5  ;;  %v6192_v56 = vpop.f32.mrb[4].mxu0  ;;  %v591_v4 = vpop.f32.mrb[1].mxu1 }
 0x1cb   : > { %9646 = vst [vmem:[#allocation113_spill] sm:$0xff] %v6192_v56  ;;  %v6195_v33 = vadd.f32 %v5327_v5, %v591_v4  ;;  %v6197_v25 = vpop.f32.mrb[5].mxu0  ;;  %v5426_v57 = vpop.f32.mrb[2].mxu1  ;;  %v6201_v48 = vadd.f32 %v6192_v56, %v5675_v18  ;;  %v6205_v16 = vadd.f32 %v6192_v56, %v5695_v31  ;;  %v6209_v40 = vadd.f32 %v6192_v56, %v5707_v39 }
 0x1cc   : > { %9645 = vst [vmem:[#allocation112_spill] sm:$0xff] %v6190_v13  ;;  %v6211_v0 = vadd.f32 %v5426_v57, %v5327_v5  ;;  %v6213_v4 = vpop.f32.mrb[6].mxu0  ;;  %v6215_v24 = vpop.permute.xlu1 %2489  ;;  %2809 = vperm.xlu1 %5486, %v2307_v12   ;;  %v6219_v18 = vadd.f32 %v5677_v19, %v6197_v25  ;;  %v6223_v31 = vadd.f32 %v5689_v27, %v6197_v25  ;;  %v2309_v13 = vld [vmem:[%s5892_s26 + $0x2f8] sm:$0xff] }
 0x1cd   : > { %9647 = vst [vmem:[#allocation114_spill] sm:$0xff] %v6195_v33  ;;  %9649 = vst [vmem:[#allocation116_spill] sm:$0xff] %v6213_v4  ;;  %v6227_v39 = vadd.f32 %v5701_v35, %v6197_v25  ;;  %v6229_v57 = vpop.permute.xlu0 %2484  ;;  %2804 = vperm.xlu0 %5485, %v2306_v32   ;;  %v6234_v12 = vadd.f32 %v6213_v4, %v5681_v22  ;;  %v6238_v19 = vadd.f32 %v6213_v4, %v5693_v30  ;;  %v6250_v32 = vpop.f32.mrb[7].mxu0 }
 0x1ce   : > { %9648 = vst [vmem:[#allocation115_spill] sm:$0xff] %v6211_v0  ;;  %9650 = vst [vmem:[#allocation117_spill] sm:$0xff] %v6215_v24  ;;  %v594_v0 = vpop.f32.mrb[3].mxu1  ;;  %v6242_v27 = vadd.f32 %v6213_v4, %v5705_v38  ;;  %v6246_v35 = vadd.f32 %v5713_v43, %v6197_v25  ;;  %v6255_v22 = vadd.f32 %v6192_v56, %v5719_v47 }
 0x1cf   : > { %9651 = vst [vmem:[#allocation118_spill] sm:$0xff] %v6229_v57  ;;  %v6248_v24 = vadd.f32 %v5327_v5, %v594_v0  ;;  %9653 = vst [vmem:[#allocation120_spill] sm:$0xff] %v6250_v32  ;;  %v2308_v57 = vld [vmem:[%s5892_s26 + $0x2f0] sm:$0xff]  ;;  %v6259_v30 = vadd.f32 %v6213_v4, %v5717_v46  ;;  %v6263_v38 = vadd.f32 %v5725_v51, %v6197_v25 }
 0x1d0   : > { %v6267_v43 = vadd.f32 %v5683_v23, %v6250_v32  ;;  %v6271_v5 = vadd.f32 %v5687_v26, %v6250_v32  ;;  %v6275_v47 = vadd.f32 %v5699_v34, %v6250_v32  ;;  %v6279_v46 = vadd.f32 %v5711_v42, %v6250_v32  ;;  %v6281_v0 = vpop.permute.xlu1 %2499  ;;  %2819 = vperm.xlu1 %5486, %v2309_v13   ;;  %v2311_v13 = vld [vmem:[%s5892_s26 + $0x308] sm:$0xff] }
 0x1d1   : > { %9652 = vst [vmem:[#allocation119_spill] sm:$0xff] %v6248_v24  ;;  %9654 = vst [vmem:[#allocation121_spill] sm:$0xff] %v6281_v0  ;;  %v6285_v23 = vadd.f32 %v5723_v50, %v6250_v32  ;;  %v6289_v26 = vadd.f32 %v6192_v56, %v5731_v55  ;;  %v6293_v51 = vadd.f32 %v6213_v4, %v5729_v54  ;;  %v6299_v42 = vpop.permute.xlu0 %2494  ;;  %2814 = vperm.xlu0 %5485, %v2308_v57   ;;  %v2310_v0 = vld [vmem:[%s5892_s26 + $0x300] sm:$0xff] }
 0x1d2   : > { %v6297_v34 = vadd.f32 %v5737_v59, %v6197_v25  ;;  %9655 = vst [vmem:[#allocation122_spill] sm:$0xff] %v6299_v42  ;;  %v6304_v50 = vadd.f32 %v5735_v58, %v6250_v32  ;;  %v6308_v55 = vadd.f32 %v6192_v56, %v5743_v63  ;;  %v6312_v54 = vadd.f32 %v6213_v4, %v5741_v62  ;;  %v9664_v24 = vld [vmem:[#allocation6_spill] sm:$0xff] }
 0x1d3   : > { %v6316_v59 = vadd.f32 %v5749_v3, %v6197_v25  ;;  %v6321_v57 = vadd.f32 %v5747_v2, %v6250_v32  ;;  %v6325_v58 = vadd.f32 %v6192_v56, %v5755_v7  ;;  %v6329_v63 = vadd.f32 %v6213_v4, %v5753_v6 }
 0x1d4   : > { %v6333_v62 = vadd.f32 %v5761_v11, %v6197_v25  ;;  %v6337_v3 = vadd.f32 %v5759_v10, %v6250_v32  ;;  %v6341_v2 = vadd.f32 %v6192_v56, %v5767_v15  ;;  %v6345_v7 = vadd.f32 %v6213_v4, %v5765_v14  ;;  %v6351_v42 = vpop.permute.xlu1 %2509  ;;  %2829 = vperm.xlu1 %5486, %v2311_v13   ;;  %v2313_v13 = vld [vmem:[%s5892_s26 + $0x318] sm:$0xff] }
 0x1d5   : > { %v6349_v6 = vadd.f32 %v5773_v21, %v6197_v25  ;;  %9656 = vst [vmem:[#allocation123_spill] sm:$0xff] %v6351_v42  ;;  %v6355_v10 = vadd.f32 %v5771_v20, %v6250_v32  ;;  %v6359_v11 = vadd.f32 %v6192_v56, %v5779_v29  ;;  %v6363_v15 = vadd.f32 %v6213_v4, %v5777_v28  ;;  %v6369_v21 = vpop.permute.xlu0 %2504  ;;  %v2312_v42 = vld [vmem:[%s5892_s26 + $0x310] sm:$0xff] }
 0x1d6   : > { %v6367_v14 = vadd.f32 %v5785_v37, %v6197_v25  ;;  %9657 = vst [vmem:[#allocation124_spill] sm:$0xff] %v6369_v21  ;;  %2824 = vperm.xlu0 %5485, %v2310_v0   ;;  %v6374_v20 = vadd.f32 %v5783_v36, %v6250_v32  ;;  %v6378_v29 = vadd.f32 %v6192_v56, %v5791_v45 }
 0x1d7   : > { %v6382_v28 = vadd.f32 %v6213_v4, %v5789_v44  ;;  %v6386_v37 = vadd.f32 %v5797_v53, %v6197_v25  ;;  %v6391_v0 = vadd.f32 %v5795_v52, %v6250_v32  ;;  %v6395_v36 = vadd.f32 %v6192_v56, %v5803_v61 }
 0x1d8   : > { %v6399_v45 = vadd.f32 %v6213_v4, %v5801_v60  ;;  %v6403_v44 = vadd.f32 %v5812_v9, %v6197_v25  ;;  %v6407_v53 = vadd.f32 %v5810_v8, %v6250_v32  ;;  %v6411_v52 = vadd.f32 %v6192_v56, %v5827_v49  ;;  %v6421_v21 = vpop.permute.xlu1 %2519  ;;  %2839 = vperm.xlu1 %5486, %v2313_v13   ;;  %v9662_v9 = vld [vmem:[#allocation7_spill] sm:$0xff] }
 0x1d9   : > { %v6415_v61 = vadd.f32 %v6213_v4, %v5824_v41  ;;  %v6419_v60 = vadd.f32 %v5844_v17, %v6197_v25  ;;  %9660 = vst [vmem:[#allocation127_spill] sm:$0xff] %v6421_v21  ;;  %v6425_v8 = vadd.f32 %v5834_v1, %v6250_v32  ;;  %v6429_v49 = vadd.f32 %v6192_v56, %v9662_v9  ;;  %v9666_v41 = vld [vmem:[#allocation9_spill] sm:$0xff]  ;;  %v6439_v17 = vpop.permute.xlu0 %2514  ;;  %v2315_v13 = vld [vmem:[%s5892_s26 + $0x328] sm:$0xff]  ;;  %v9669_v21 = vld [vmem:[#allocation8_spill] sm:$0xff] }
 0x1da   : > { %v6433_v33 = vadd.f32 %v6213_v4, %v9664_v24  ;;  %9668 = vst [vmem:[#allocation129_spill] sm:$0xff] %v6439_v17  ;;  %2834 = vperm.xlu0 %5485, %v2312_v42   ;;  %v6444_v1 = vadd.f32 %v9669_v21, %v6250_v32  ;;  %v9677_v42 = vld [vmem:[#allocation12_spill] sm:$0xff] }
 0x1db   : > { %9658 = vst [vmem:[#allocation125_spill] sm:$0xff] %v6415_v61  ;;  %9659 = vst [vmem:[#allocation126_spill] sm:$0xff] %v6419_v60  ;;  %v6437_v61 = vadd.f32 %v9666_v41, %v6197_v25  ;;  %v6461_v17 = vadd.f32 %v9677_v42, %v6250_v32  ;;  %v9679_v60 = vld [vmem:[#allocation15_spill] sm:$0xff] }
 0x1dc   : > { %9661 = vst [vmem:[#allocation128_spill] sm:$0xff] %v6425_v8  ;;  %9663 = vst [vmem:[#allocation7_spill] sm:$0xff] %v6429_v49  ;;  %v9671_v8 = vld [vmem:[#allocation11_spill] sm:$0xff]  ;;  %v9673_v49 = vld [vmem:[#allocation10_spill] sm:$0xff]  ;;  %v6465_v21 = vadd.f32 %v6192_v56, %v9679_v60  ;;  %2849 = vperm.xlu1 %5486, %v2315_v13   ;;  %v1581_v13 = vsel %vm550_vm3, %v6271_v5, -inf }
 0x1dd   : > { %9665 = vst [vmem:[#allocation6_spill] sm:$0xff] %v6433_v33  ;;  %9667 = vst [vmem:[#allocation9_spill] sm:$0xff] %v6437_v61  ;;  %v6448_v9 = vadd.f32 %v6192_v56, %v9671_v8  ;;  %v6452_v24 = vadd.f32 %v6213_v4, %v9673_v49  ;;  %v9675_v33 = vld [vmem:[#allocation13_spill] sm:$0xff]  ;;  %v2314_v61 = vld [vmem:[%s5892_s26 + $0x320] sm:$0xff] }
 0x1de   : > { %9670 = vst [vmem:[#allocation8_spill] sm:$0xff] %v6444_v1  ;;  %v6456_v41 = vadd.f32 %v9675_v33, %v6197_v25  ;;  %9678 = vst [vmem:[#allocation12_spill] sm:$0xff] %v6461_v17  ;;  %v9680_v8 = vld [vmem:[#allocation14_spill] sm:$0xff]  ;;  %v9682_v49 = vld [vmem:[#allocation17_spill] sm:$0xff]  ;;  %2844 = vperm.xlu0 %5485, %v2314_v61   ;;  %v1596_v61 = vsel %vm550_vm3, %v6209_v40, -inf  ;;  %v1611_v40 = vsel %vm550_vm3, %v6259_v30, -inf }
 0x1df   : > { %9672 = vst [vmem:[#allocation11_spill] sm:$0xff] %v6448_v9  ;;  %9674 = vst [vmem:[#allocation10_spill] sm:$0xff] %v6452_v24  ;;  %v6469_v9 = vadd.f32 %v6213_v4, %v9680_v8  ;;  %v6473_v24 = vadd.f32 %v9682_v49, %v6197_v25  ;;  %v9683_v33 = vld [vmem:[#allocation16_spill] sm:$0xff]  ;;  %v9684_v1 = vld [vmem:[#allocation19_spill] sm:$0xff]  ;;  %v1567_v8 = vsel %vm550_vm3, %v6219_v18, -inf  ;;  %v1568_v49 = vsel %vm550_vm3, %v6267_v43, -inf }
 0x1e0   : > { %9676 = vst [vmem:[#allocation13_spill] sm:$0xff] %v6456_v41  ;;  %v6477_v41 = vadd.f32 %v9683_v33, %v6250_v32  ;;  %v6481_v42 = vadd.f32 %v6192_v56, %v9684_v1  ;;  %v9685_v17 = vld [vmem:[#allocation18_spill] sm:$0xff]  ;;  %v1570_v33 = vsel %vm550_vm3, %v6201_v48, -inf  ;;  %v1572_v1 = vsel %vm550_vm3, %v6234_v12, -inf }
 0x1e1   : > { %9681 = vst [vmem:[#allocation15_spill] sm:$0xff] %v6469_v9  ;;  %v6485_v60 = vadd.f32 %v6213_v4, %v9685_v17  ;;  %v6489_v9 = vpop.permute.xlu1 %2529  ;;  %v1580_v56 = vsel %vm550_vm3, %v6223_v31, -inf  ;;  %v6499_v17 = vpop.permute.xlu0 %2524  ;;  %v2317_v4 = vld [vmem:[%s5892_s26 + $0x338] sm:$0xff]  ;;  %v1569_v18 = vmax.f32 %v1567_v8, %v1568_v49  ;;  %v1583_v43 = vsel %vm550_vm3, %v6205_v16, -inf }
 0x1e2   : > { %9686 = vst [vmem:[#allocation14_spill] sm:$0xff] %v6489_v9  ;;  %9687 = vst [vmem:[#allocation17_spill] sm:$0xff] %v6499_v17  ;;  %v1585_v48 = vsel %vm550_vm3, %v6238_v19, -inf  ;;  %v2316_v9 = vld [vmem:[%s5892_s26 + $0x330] sm:$0xff]  ;;  %v1582_v32 = vmax.f32 %v1580_v56, %v1581_v13  ;;  %v1593_v31 = vsel %vm550_vm3, %v6227_v39, -inf  ;;  %v1594_v12 = vsel %vm550_vm3, %v6275_v47, -inf  ;;  %2859 = vperm.xlu1 %5486, %v2317_v4  }
 0x1e3   : > { %v1571_v8 = vmax.f32 %v1569_v18, %v1570_v33  ;;  %v1595_v5 = vmax.f32 %v1593_v31, %v1594_v12  ;;  %v1598_v16 = vsel %vm550_vm3, %v6242_v27, -inf  ;;  %v1606_v19 = vsel %vm550_vm3, %v6246_v35, -inf  ;;  %2854 = vperm.xlu0 %5485, %v2316_v9   ;;  %v2319_v27 = vld [vmem:[%s5892_s26 + $0x348] sm:$0xff] }
 0x1e4   : > { %v1584_v49 = vmax.f32 %v1582_v32, %v1583_v43  ;;  %v1607_v39 = vsel %vm550_vm3, %v6279_v46, -inf  ;;  %v1609_v47 = vsel %vm550_vm3, %v6255_v22, -inf  ;;  %v1619_v4 = vsel %vm550_vm3, %v6263_v38, -inf  ;;  %v2318_v32 = vld [vmem:[%s5892_s26 + $0x340] sm:$0xff] }
 0x1e5   : > { %v6519_v56 = vpop.permute.xlu1 %2539  ;;  %v6527_v33 = vpop.permute.xlu0 %2534  ;;  %v1573_v18 = vmax.f32 %v1571_v8, %v1572_v1  ;;  %v1597_v13 = vmax.f32 %v1595_v5, %v1596_v61  ;;  %v1608_v35 = vmax.f32 %v1606_v19, %v1607_v39  ;;  %v1620_v46 = vsel %vm550_vm3, %v6285_v23, -inf  ;;  %v2320_v39 = vld [vmem:[%s5892_s26 + $0x350] sm:$0xff] }
 0x1e6   : > { %9688 = vst [vmem:[#allocation16_spill] sm:$0xff] %v6519_v56  ;;  %9689 = vst [vmem:[#allocation19_spill] sm:$0xff] %v6527_v33  ;;  %v1586_v43 = vmax.f32 %v1584_v49, %v1585_v48  ;;  %v1622_v22 = vsel %vm550_vm3, %v6289_v26, -inf  ;;  %v1624_v30 = vsel %vm550_vm3, %v6293_v51, -inf  ;;  %v1621_v12 = vmax.f32 %v1619_v4, %v1620_v46  ;;  %2869 = vperm.xlu1 %5486, %v2319_v27   ;;  %v2321_v51 = vld [vmem:[%s5892_s26 + $0x358] sm:$0xff]  ;;  %v9790_v56 = vld [vmem:[#allocation67_spill] sm:$0xff] }
 0x1e7   : > { %v1574_v9 = vrot.slane %v1573_v18, 4  ;;  %v1599_v31 = vmax.f32 %v1597_v13, %v1598_v16  ;;  %v1610_v1 = vmax.f32 %v1608_v35, %v1609_v47  ;;  %v1632_v48 = vsel %vm550_vm3, %v6297_v34, -inf  ;;  %2864 = vperm.xlu0 %5485, %v2318_v32   ;;  %v9792_v33 = vld [vmem:[#allocation66_spill] sm:$0xff] }
 0x1e8   : > { %v1587_v38 = vrot.slane %v1586_v43, 4  ;;  %v1633_v23 = vsel %vm550_vm3, %v6304_v50, -inf  ;;  %v1635_v26 = vsel %vm550_vm3, %v6308_v55, -inf  ;;  %v1623_v49 = vmax.f32 %v1621_v12, %v1622_v22 }
 0x1e9   : > { %v6539_v61 = vpop.permute.xlu1 %2549  ;;  %v6547_v8 = vpop.permute.xlu0 %2544  ;;  %v1575_v5 = vmax.f32 %v1573_v18, %v1574_v9  ;;  %v1600_v16 = vrot.slane %v1599_v31, 4  ;;  %v1612_v19 = vmax.f32 %v1610_v1, %v1611_v40  ;;  %v1634_v27 = vmax.f32 %v1632_v48, %v1633_v23 }
 0x1ea   : > { %9690 = vst [vmem:[#allocation18_spill] sm:$0xff] %v6539_v61  ;;  %9691 = vst [vmem:[#allocation130_spill] sm:$0xff] %v6547_v8  ;;  %v1588_v47 = vmax.f32 %v1586_v43, %v1587_v38  ;;  %v1637_v34 = vsel %vm550_vm3, %v6312_v54, -inf  ;;  %v1645_v50 = vsel %vm550_vm3, %v6316_v59, -inf  ;;  %v1625_v4 = vmax.f32 %v1623_v49, %v1624_v30  ;;  %2879 = vperm.xlu1 %5486, %v2321_v51   ;;  %v2323_v59 = vld [vmem:[%s5892_s26 + $0x368] sm:$0xff]  ;;  %v2322_v30 = vld [vmem:[%s5892_s26 + $0x360] sm:$0xff] }
 0x1eb   : > { %v1576_v13 = vrot.slane %v1575_v5, 2  ;;  %v1601_v55 = vmax.f32 %v1599_v31, %v1600_v16  ;;  %v1613_v35 = vrot.slane %v1612_v19, 4  ;;  %v1636_v18 = vmax.f32 %v1634_v27, %v1635_v26  ;;  %2874 = vperm.xlu0 %5485, %v2320_v39   ;;  %v2327_v27 = vld [vmem:[%s5892_s26 + $0x388] sm:$0xff]  ;;  %v9787_v61 = vld [vmem:[#allocation5_spill] sm:$0xff] }
 0x1ec   : > { %v1589_v40 = vrot.slane %v1588_v47, 2  ;;  %v1646_v43 = vsel %vm550_vm3, %v6321_v57, -inf  ;;  %v1648_v46 = vsel %vm550_vm3, %v6325_v58, -inf  ;;  %v1626_v1 = vrot.slane %v1625_v4, 4 }
 0x1ed   : > { %v6555_v32 = vpop.permute.xlu1 %2559  ;;  %v6561_v54 = vpop.permute.xlu0 %2554  ;;  %v1577_v22 = vmax.f32 %v1575_v5, %v1576_v13  ;;  %v1602_v9 = vrot.slane %v1601_v55, 2  ;;  %v1614_v31 = vmax.f32 %v1612_v19, %v1613_v35  ;;  %v1638_v38 = vmax.f32 %v1636_v18, %v1637_v34 }
 0x1ee   : > { %9692 = vst [vmem:[#allocation131_spill] sm:$0xff] %v6555_v32  ;;  %9693 = vst [vmem:[#allocation132_spill] sm:$0xff] %v6561_v54  ;;  %v1590_v12 = vmax.f32 %v1588_v47, %v1589_v40  ;;  %v1647_v48 = vmax.f32 %v1645_v50, %v1646_v43  ;;  %v1650_v23 = vsel %vm550_vm3, %v6329_v63, -inf  ;;  %v1627_v51 = vmax.f32 %v1625_v4, %v1626_v1 }
 0x1ef   : > { %v1578_v57 = vrot.slane %v1577_v22, 1  ;;  %v1603_v26 = vmax.f32 %v1601_v55, %v1602_v9  ;;  %v1615_v58 = vrot.slane %v1614_v31, 2  ;;  %2889 = vperm.xlu1 %5486, %v2323_v59   ;;  %v1639_v49 = vrot.slane %v1638_v38, 4  ;;  %2884 = vperm.xlu0 %5485, %v2322_v30   ;;  %v2326_v55 = vld [vmem:[%s5892_s26 + $0x380] sm:$0xff] }
 0x1f0   : > { %v1591_v5 = vrot.slane %v1590_v12, 1  ;;  %v1649_v19 = vmax.f32 %v1647_v48, %v1648_v46  ;;  %v1658_v39 = vsel %vm550_vm3, %v6333_v62, -inf  ;;  %v1628_v13 = vrot.slane %v1627_v51, 2 }
 0x1f1   : > { %v6567_v16 = vpop.permute.xlu1 %2569  ;;  %v6571_v47 = vpop.permute.xlu0 %2564  ;;  %v6574_v34 = vmax.f32 %v1577_v22, %v1578_v57  ;;  %v1604_v63 = vrot.slane %v1603_v26, 1  ;;  %v1616_v50 = vmax.f32 %v1614_v31, %v1615_v58  ;;  %v1640_v4 = vmax.f32 %v1638_v38, %v1639_v49  ;;  %v2330_v57 = vld [vmem:[%s5892_s26 + $0x3a0] sm:$0xff] }
 0x1f2   : > { %9694 = vst [vmem:[#allocation133_spill] sm:$0xff] %v6567_v16  ;;  %9695 = vst [vmem:[#allocation134_spill] sm:$0xff] %v6571_v47  ;;  %v6577_v35 = vmax.f32 %v1590_v12, %v1591_v5  ;;  %v1651_v40 = vmax.f32 %v1649_v19, %v1650_v23  ;;  %v1659_v18 = vsel %vm550_vm3, %v6337_v3, -inf  ;;  %v1629_v46 = vmax.f32 %v1627_v51, %v1628_v13  ;;  %v3756_v47 = vld [vmem:[%s6733_s22 + $0x30] sm:$0xff] }
 0x1f3   : > { %v6581_v43 = vmax.f32 %v1603_v26, %v1604_v63  ;;  %v1617_v62 = vrot.slane %v1616_v50, 1  ;;  %v1660_v59 = vmax.f32 %v1658_v39, %v1659_v18  ;;  %2909 = vperm.xlu1 %5486, %v2327_v27   ;;  %v1641_v22 = vrot.slane %v1640_v4, 2  ;;  %2904 = vperm.xlu0 %5485, %v2326_v55  }
 0x1f4   : > { %v1652_v31 = vrot.slane %v1651_v40, 4  ;;  %v1661_v1 = vsel %vm550_vm3, %v6341_v2, -inf  ;;  %v1663_v30 = vsel %vm550_vm3, %v6345_v7, -inf  ;;  %v1630_v38 = vrot.slane %v1629_v46, 1  ;;  %v2324_v7 = vld [vmem:[%s5892_s26 + $0x370] sm:$0xff] }
 0x1f5   : > { %v6583_v9 = vpop.permute.xlu1 %2579  ;;  %v6589_v12 = vpop.permute.xlu0 %2574  ;;  %v6591_v3 = vmax.f32 %v1616_v50, %v1617_v62  ;;  %v1662_v48 = vmax.f32 %v1660_v59, %v1661_v1  ;;  %v1671_v23 = vsel %vm550_vm3, %v6349_v6, -inf  ;;  %v1642_v26 = vmax.f32 %v1640_v4, %v1641_v22 }
 0x1f6   : > { %9696 = vst [vmem:[#allocation135_spill] sm:$0xff] %v6583_v9  ;;  %9697 = vst [vmem:[#allocation136_spill] sm:$0xff] %v6589_v12  ;;  %v1653_v58 = vmax.f32 %v1651_v40, %v1652_v31  ;;  %v1672_v51 = vsel %vm550_vm3, %v6355_v10, -inf  ;;  %v1674_v2 = vsel %vm550_vm3, %v6359_v11, -inf  ;;  %v6601_v5 = vmax.f32 %v1629_v46, %v1630_v38  ;;  %v2331_v46 = vld [vmem:[%s5892_s26 + $0x3a8] sm:$0xff]  ;;  %v9779_v9 = vld [vmem:[#allocation58_spill] sm:$0xff] }
 0x1f7   : > { %v1664_v49 = vmax.f32 %v1662_v48, %v1663_v30  ;;  %v1673_v19 = vmax.f32 %v1671_v23, %v1672_v51  ;;  %v1676_v39 = vsel %vm550_vm3, %v6363_v15, -inf  ;;  %v1643_v27 = vrot.slane %v1642_v26, 1  ;;  %2924 = vperm.xlu1 %5486, %v2330_v57   ;;  %2894 = vperm.xlu0 %5485, %v2324_v7   ;;  %v2328_v15 = vld [vmem:[%s5892_s26 + $0x390] sm:$0xff]  ;;  %v2334_v7 = vld [vmem:[%s5892_s26 + $0x3c0] sm:$0xff] }
 0x1f8   : > { %v1654_v6 = vrot.slane %v1653_v58, 2  ;;  %v1684_v63 = vsel %vm550_vm3, %v6367_v14, -inf  ;;  %v1685_v10 = vsel %vm550_vm3, %v6374_v20, -inf  ;;  %v1687_v4 = vsel %vm550_vm3, %v6378_v29, -inf }
 0x1f9   : > { %v6609_v50 = vpop.permute.xlu1 %2589  ;;  %v1665_v11 = vrot.slane %v1664_v49, 4  ;;  %v1675_v13 = vmax.f32 %v1673_v19, %v1674_v2  ;;  %v1686_v55 = vmax.f32 %v1684_v63, %v1685_v10  ;;  %v6613_v40 = vpop.permute.xlu0 %2584  ;;  %v6616_v18 = vmax.f32 %v1642_v26, %v1643_v27  ;;  %v9703_v10 = vld [vmem:[#allocation126_spill] sm:$0xff] }
 0x1fa   : > { %9698 = vst [vmem:[#allocation137_spill] sm:$0xff] %v6609_v50  ;;  %9699 = vst [vmem:[#allocation138_spill] sm:$0xff] %v6613_v40  ;;  %v1655_v62 = vmax.f32 %v1653_v58, %v1654_v6  ;;  %v1689_v14 = vsel %vm550_vm3, %v6382_v28, -inf  ;;  %v1697_v20 = vsel %vm550_vm3, %v6386_v37, -inf  ;;  %v1698_v29 = vsel %vm550_vm3, %v6391_v0, -inf  ;;  %v2335_v0 = vld [vmem:[%s5892_s26 + $0x3c8] sm:$0xff] }
 0x1fb   : > { %v1666_v59 = vmax.f32 %v1664_v49, %v1665_v11  ;;  %v1677_v22 = vmax.f32 %v1675_v13, %v1676_v39  ;;  %v1688_v31 = vmax.f32 %v1686_v55, %v1687_v4  ;;  %v1699_v30 = vmax.f32 %v1697_v20, %v1698_v29  ;;  %2914 = vperm.xlu1 %5486, %v2328_v15   ;;  %v9702_v6 = vld [vmem:[#allocation125_spill] sm:$0xff]  ;;  %v9704_v13 = vld [vmem:[#allocation128_spill] sm:$0xff]  ;;  %v9708_v29 = vld [vmem:[#allocation6_spill] sm:$0xff] }
 0x1fc   : > { %v1656_v1 = vrot.slane %v1655_v62, 1  ;;  %v1700_v38 = vsel %vm550_vm3, %v6395_v36, -inf  ;;  %v1702_v28 = vsel %vm550_vm3, %v6399_v45, -inf  ;;  %v1710_v26 = vsel %vm550_vm3, %v6403_v44, -inf  ;;  %2929 = vperm.xlu0 %5485, %v2331_v46   ;;  %v2332_v20 = vld [vmem:[%s5892_s26 + $0x3b0] sm:$0xff] }
 0x1fd   : > { %v6629_v48 = vpop.permute.xlu1 %2599  ;;  %v1667_v37 = vrot.slane %v1666_v59, 2  ;;  %v1678_v23 = vrot.slane %v1677_v22, 4  ;;  %v1690_v57 = vmax.f32 %v1688_v31, %v1689_v14  ;;  %v6633_v58 = vpop.permute.xlu0 %2594  ;;  %v1701_v2 = vmax.f32 %v1699_v30, %v1700_v38  ;;  %v2325_v30 = vld [vmem:[%s5892_s26 + $0x378] sm:$0xff] }
 0x1fe   : > { %9700 = vst [vmem:[#allocation139_spill] sm:$0xff] %v6629_v48  ;;  %9701 = vst [vmem:[#allocation140_spill] sm:$0xff] %v6633_v58  ;;  %v6636_v51 = vmax.f32 %v1655_v62, %v1656_v1  ;;  %v1711_v36 = vsel %vm550_vm3, %v6407_v53, -inf  ;;  %v1713_v45 = vsel %vm550_vm3, %v6411_v52, -inf  ;;  %v1715_v63 = vsel %vm550_vm3, %v9702_v6, -inf }
 0x1ff   : > { %v1668_v49 = vmax.f32 %v1666_v59, %v1667_v37  ;;  %v1679_v19 = vmax.f32 %v1677_v22, %v1678_v23  ;;  %v1691_v39 = vrot.slane %v1690_v57, 4  ;;  %v1712_v27 = vmax.f32 %v1710_v26, %v1711_v36  ;;  %2949 = vperm.xlu1 %5486, %v2335_v0   ;;  %v9707_v22 = vld [vmem:[#allocation7_spill] sm:$0xff]  ;;  %v9709_v0 = vld [vmem:[#allocation9_spill] sm:$0xff]  ;;  %v9710_v36 = vld [vmem:[#allocation8_spill] sm:$0xff] }
 0x200   : > { %v1703_v44 = vmax.f32 %v1701_v2, %v1702_v28  ;;  %v1723_v11 = vsel %vm550_vm3, %v9703_v10, -inf  ;;  %v1724_v53 = vsel %vm550_vm3, %v9704_v13, -inf  ;;  %2944 = vperm.xlu0 %5485, %v2334_v7   ;;  %v1726_v31 = vsel %vm550_vm3, %v9707_v22, -inf }
 0x201   : > { %v6649_v55 = vpop.permute.xlu1 %2609  ;;  %v1669_v52 = vrot.slane %v1668_v49, 1  ;;  %v1680_v4 = vrot.slane %v1679_v19, 2  ;;  %v1692_v15 = vmax.f32 %v1690_v57, %v1691_v39  ;;  %v1714_v62 = vmax.f32 %v1712_v27, %v1713_v45  ;;  %v6651_v14 = vpop.permute.xlu0 %2604 }
 0x202   : > { %9705 = vst [vmem:[#allocation125_spill] sm:$0xff] %v6649_v55  ;;  %9706 = vst [vmem:[#allocation126_spill] sm:$0xff] %v6651_v14  ;;  %v1704_v46 = vrot.slane %v1703_v44, 4  ;;  %v1725_v59 = vmax.f32 %v1723_v11, %v1724_v53  ;;  %v1728_v1 = vsel %vm550_vm3, %v9708_v29, -inf  ;;  %v1736_v2 = vsel %vm550_vm3, %v9709_v0, -inf  ;;  %v9713_v11 = vld [vmem:[#allocation11_spill] sm:$0xff] }
 0x203   : > { %v6659_v38 = vmax.f32 %v1668_v49, %v1669_v52  ;;  %v1681_v28 = vmax.f32 %v1679_v19, %v1680_v4  ;;  %v1693_v37 = vrot.slane %v1692_v15, 2  ;;  %v1716_v23 = vmax.f32 %v1714_v62, %v1715_v63  ;;  %2934 = vperm.xlu1 %5486, %v2332_v20   ;;  %v9714_v53 = vld [vmem:[#allocation10_spill] sm:$0xff] }
 0x204   : > { %v1705_v57 = vmax.f32 %v1703_v44, %v1704_v46  ;;  %v1727_v26 = vmax.f32 %v1725_v59, %v1726_v31  ;;  %v1737_v45 = vsel %vm550_vm3, %v9710_v36, -inf  ;;  %2899 = vperm.xlu0 %5485, %v2325_v30   ;;  %v2339_v44 = vld [vmem:[%s5892_s26 + $0x3e8] sm:$0xff]  ;;  %v1739_v13 = vsel %vm550_vm3, %v9713_v11, -inf  ;;  %v2338_v4 = vld [vmem:[%s5892_s26 + $0x3e0] sm:$0xff]  ;;  %v9715_v31 = vld [vmem:[#allocation13_spill] sm:$0xff] }
 0x205   : > { %v6665_v7 = vpop.permute.xlu1 %2619  ;;  %v1682_v39 = vrot.slane %v1681_v28, 1  ;;  %v1694_v49 = vmax.f32 %v1692_v15, %v1693_v37  ;;  %v1717_v27 = vrot.slane %v1716_v23, 4  ;;  %v1738_v19 = vmax.f32 %v1736_v2, %v1737_v45  ;;  %v6667_v6 = vpop.permute.xlu0 %2614 }
 0x206   : > { %9711 = vst [vmem:[#allocation128_spill] sm:$0xff] %v6665_v7  ;;  %9712 = vst [vmem:[#allocation7_spill] sm:$0xff] %v6667_v6  ;;  %v1706_v63 = vrot.slane %v1705_v57, 2  ;;  %v1729_v10 = vmax.f32 %v1727_v26, %v1728_v1  ;;  %v1741_v52 = vsel %vm550_vm3, %v9714_v53, -inf  ;;  %v1749_v29 = vsel %vm550_vm3, %v9715_v31, -inf  ;;  %v9716_v1 = vld [vmem:[#allocation12_spill] sm:$0xff] }
 0x207   : > { %v1683_v62 = vmax.f32 %v1681_v28, %v1682_v39  ;;  %v1695_v20 = vrot.slane %v1694_v49, 1  ;;  %v1718_v15 = vmax.f32 %v1716_v23, %v1717_v27  ;;  %v1740_v46 = vmax.f32 %v1738_v19, %v1739_v13  ;;  %2969 = vperm.xlu1 %5486, %v2339_v44   ;;  %v9719_v27 = vld [vmem:[#allocation15_spill] sm:$0xff]  ;;  %v9768_v7 = vld [vmem:[#allocation50_spill] sm:$0xff] }
 0x208   : > { %v1707_v59 = vmax.f32 %v1705_v57, %v1706_v63  ;;  %v1730_v22 = vrot.slane %v1729_v10, 4  ;;  %v1750_v30 = vsel %vm550_vm3, %v9716_v1, -inf  ;;  %2964 = vperm.xlu0 %5485, %v2338_v4   ;;  %v2336_v57 = vld [vmem:[%s5892_s26 + $0x3d0] sm:$0xff]  ;;  %v1752_v39 = vsel %vm550_vm3, %v6465_v21, -inf  ;;  %v2329_v63 = vld [vmem:[%s5892_s26 + $0x398] sm:$0xff]  ;;  %v9769_v6 = vld [vmem:[#allocation119_spill] sm:$0xff] }
 0x209   : > { %v6679_v37 = vpop.permute.xlu1 %2629  ;;  %v1696_v26 = vmax.f32 %v1694_v49, %v1695_v20  ;;  %v1719_v28 = vrot.slane %v1718_v15, 2  ;;  %v1742_v0 = vmax.f32 %v1740_v46, %v1741_v52  ;;  %v1751_v23 = vmax.f32 %v1749_v29, %v1750_v30  ;;  %v6681_v2 = vpop.permute.xlu0 %2624  ;;  %v2333_v1 = vld [vmem:[%s5892_s26 + $0x3b8] sm:$0xff] }
 0x20a   : > { %9717 = vst [vmem:[#allocation6_spill] sm:$0xff] %v6679_v37  ;;  %9718 = vst [vmem:[#allocation9_spill] sm:$0xff] %v6681_v2  ;;  %v1708_v36 = vrot.slane %v1707_v59, 1  ;;  %v1731_v45 = vmax.f32 %v1729_v10, %v1730_v22  ;;  %v1754_v19 = vsel %vm550_vm3, %v9719_v27, -inf  ;;  %v1762_v13 = vsel %vm550_vm3, %v6473_v24, -inf  ;;  %v2340_v24 = vld [vmem:[%s5892_s26 + $0x3f0] sm:$0xff] }
 0x20b   : > { %v1720_v44 = vmax.f32 %v1718_v15, %v1719_v28  ;;  %v1743_v49 = vrot.slane %v1742_v0, 4  ;;  %v1753_v11 = vmax.f32 %v1751_v23, %v1752_v39  ;;  %v1763_v10 = vsel %vm550_vm3, %v6477_v41, -inf  ;;  %2954 = vperm.xlu1 %5486, %v2336_v57   ;;  %v3754_v37 = vld [vmem:[%s6733_s22 + $0x20] sm:$0xff]  ;;  %v9767_v2 = vld [vmem:[#allocation51_spill] sm:$0xff] }
 0x20c   : > { %v1709_v53 = vmax.f32 %v1707_v59, %v1708_v36  ;;  %v1732_v52 = vrot.slane %v1731_v45, 2  ;;  %v1765_v21 = vsel %vm550_vm3, %v6481_v42, -inf  ;;  %v1764_v22 = vmax.f32 %v1762_v13, %v1763_v10  ;;  %2919 = vperm.xlu0 %5485, %v2329_v63   ;;  %v9726_v13 = vld [vmem:[#allocation20_spill] sm:$0xff] }
 0x20d   : > { %v6695_v4 = vpop.permute.xlu1 %2639  ;;  %v1721_v20 = vrot.slane %v1720_v44, 1  ;;  %v1744_v15 = vmax.f32 %v1742_v0, %v1743_v49  ;;  %v1755_v46 = vmax.f32 %v1753_v11, %v1754_v19  ;;  %v6697_v31 = vpop.permute.xlu0 %2634  ;;  %v1767_v29 = vsel %vm550_vm3, %v6485_v60, -inf  ;;  %v9722_v60 = vld [vmem:[#allocation21_spill] sm:$0xff]  ;;  %v9725_v11 = vld [vmem:[#allocation120_spill] sm:$0xff] }
 0x20e   : > { %9720 = vst [vmem:[#allocation8_spill] sm:$0xff] %v6695_v4  ;;  %9721 = vst [vmem:[#allocation11_spill] sm:$0xff] %v6697_v31  ;;  %v1733_v59 = vmax.f32 %v1731_v45, %v1732_v52  ;;  %v2016_v41 = vsel %vm2015_vm4, %v6577_v35, %v6574_v34  ;;  %v2029_v42 = vsel %vm2015_vm4, %v1696_v26, %v1683_v62  ;;  %v2337_v52 = vld [vmem:[%s5892_s26 + $0x3d8] sm:$0xff] }
 0x20f   : > { %v1722_v30 = vmax.f32 %v1720_v44, %v1721_v20  ;;  %v1745_v28 = vrot.slane %v1744_v15, 2  ;;  %v1756_v0 = vrot.slane %v1755_v46, 4  ;;  %v1766_v23 = vmax.f32 %v1764_v22, %v1765_v21  ;;  %2974 = vperm.xlu1 %5486, %v2340_v24   ;;  %v9728_v22 = vld [vmem:[#allocation113_spill] sm:$0xff] }
 0x210   : > { %v1734_v57 = vrot.slane %v1733_v59, 1  ;;  %v2018_v36 = vsel %vm2017_vm5, %v6581_v43, %v2016_v41  ;;  %v2030_v45 = vsel %vm2017_vm5, %v1709_v53, %v2029_v42  ;;  %v6712_v39 = vadd.f32 %v9722_v60, %v6197_v25  ;;  %2939 = vperm.xlu0 %5485, %v2333_v1   ;;  %v2341_v43 = vld [vmem:[%s5892_s26 + $0x3f8] sm:$0xff]  ;;  %v9735_v60 = vld [vmem:[#allocation24_spill] sm:$0xff]  ;;  %s442_s26 = scalar_lea.vmem %s9498_s11, %s10312_s18 }
 0x211   : > { %v6714_v34 = vpop.permute.xlu1 %2649  ;;  %v1746_v35 = vmax.f32 %v1744_v15, %v1745_v28  ;;  %v1757_v62 = vmax.f32 %v1755_v46, %v1756_v0  ;;  %v1768_v26 = vmax.f32 %v1766_v23, %v1767_v29  ;;  %v2020_v27 = vsel %vm2019_vm6, %v6591_v3, %v2018_v36  ;;  %v6718_v19 = vpop.permute.xlu0 %2644  ;;  %v9727_v46 = vld [vmem:[#allocation23_spill] sm:$0xff]  ;;  %v9730_v29 = vld [vmem:[#allocation116_spill] sm:$0xff]  ;;  %v9733_v23 = vld [vmem:[#allocation114_spill] sm:$0xff] }
 0x212   : > { %9723 = vst [vmem:[#allocation10_spill] sm:$0xff] %v6714_v34  ;;  %9724 = vst [vmem:[#allocation13_spill] sm:$0xff] %v6718_v19  ;;  %v1735_v63 = vmax.f32 %v1733_v59, %v1734_v57  ;;  %v2022_v44 = vsel %vm2021_vm7, %v6601_v5, %v2020_v27  ;;  %v2031_v49 = vsel %vm2019_vm6, %v1722_v30, %v2030_v45  ;;  %v9729_v59 = vld [vmem:[#allocation22_spill] sm:$0xff]  ;;  %v3751_v0 = vld [vmem:[%s6733_s22 + $0x8] sm:$0xff] }
 0x213   : > { %v6726_v53 = vadd.f32 %v9726_v13, %v9725_v11  ;;  %v1747_v3 = vrot.slane %v1746_v35, 1  ;;  %v1758_v10 = vrot.slane %v1757_v62, 2  ;;  %v1769_v21 = vrot.slane %v1768_v26, 4  ;;  %2979 = vperm.xlu1 %5486, %v2341_v43   ;;  %v9734_v36 = vld [vmem:[#allocation25_spill] sm:$0xff]  ;;  %v9759_v34 = vld [vmem:[#allocation42_spill] sm:$0xff] }
 0x214   : > { %v2024_v20 = vsel %vm2023_vm8, %v6616_v18, %v2022_v44  ;;  %v2032_v15 = vsel %vm2021_vm7, %v1735_v63, %v2031_v49  ;;  %v6742_v24 = vadd.f32 %v9728_v22, %v9727_v46  ;;  %v6746_v41 = vadd.f32 %v9730_v29, %v9729_v59  ;;  %2959 = vperm.xlu0 %5485, %v2337_v52   ;;  %v9737_v44 = vld [vmem:[#allocation26_spill] sm:$0xff]  ;;  %v9738_v52 = vld [vmem:[#allocation29_spill] sm:$0xff] }
 0x215   : > { %v2026_v5 = vsel %vm2025_vm9, %v6636_v51, %v2024_v20  ;;  %v6748_v42 = vpop.permute.xlu1 %2659  ;;  %v1748_v1 = vmax.f32 %v1746_v35, %v1747_v3  ;;  %v1759_v30 = vmax.f32 %v1757_v62, %v1758_v10  ;;  %v1770_v18 = vmax.f32 %v1768_v26, %v1769_v21  ;;  %v6752_v28 = vpop.permute.xlu0 %2654  ;;  %v9736_v35 = vld [vmem:[#allocation27_spill] sm:$0xff]  ;;  %v3750_v26 = vld [vmem:[%s6733_s22] sm:$0xff]  ;;  %v9739_v10 = vld [vmem:[#allocation28_spill] sm:$0xff] }
 0x216   : > { %9731 = vst [vmem:[#allocation12_spill] sm:$0xff] %v6748_v42  ;;  %v2028_v51 = vsel %vm2027_vm10, %v6659_v38, %v2026_v5  ;;  %9732 = vst [vmem:[#allocation15_spill] sm:$0xff] %v6752_v28  ;;  %v6758_v45 = vadd.f32 %v9734_v36, %v6197_v25  ;;  %v6762_v27 = vadd.f32 %v9735_v60, %v9725_v11  ;;  %v9740_v20 = vld [vmem:[#allocation31_spill] sm:$0xff]  ;;  %v3753_v60 = vld [vmem:[%s6733_s22 + $0x18] sm:$0xff] }
 0x217   : > { %v2054_v57 = vadd.f32 %v2028_v51, %v9733_v23  ;;  %v6766_v62 = vadd.f32 %v9728_v22, %v9736_v35  ;;  %v1760_v38 = vrot.slane %v1759_v30, 1  ;;  %v1771_v43 = vrot.slane %v1770_v18, 2  ;;  %3885 = vperm.xlu1 %5486, %v3751_v0   ;;  %v9743_v23 = vld [vmem:[#allocation33_spill] sm:$0xff]  ;;  %v9745_v35 = vld [vmem:[#allocation2_spill] sm:$0xff]  ;;  %v9748_v0 = vld [vmem:[#allocation32_spill] sm:$0xff] }
 0x218   : > { %v2033_v63 = vsel %vm2023_vm8, %v1748_v1, %v2032_v15  ;;  %v6772_v49 = vadd.f32 %v9730_v29, %v9737_v44  ;;  %v6776_v3 = vadd.f32 %v9738_v52, %v6197_v25  ;;  %v6780_v21 = vadd.f32 %v9739_v10, %v9725_v11  ;;  %v9742_v1 = vld [vmem:[#allocation30_spill] sm:$0xff]  ;;  %3880 = vperm.xlu0 %5485, %v3750_v26   ;;  %v9758_v28 = vld [vmem:[#allocation43_spill] sm:$0xff]  ;;  %v9760_v19 = vld [vmem:[#allocation45_spill] sm:$0xff] }
 0x219   : > { %v2058_v13 = vmax.f32 %v2054_v57, 0.0  ;;  %v6784_v5 = vadd.f32 %v9728_v22, %v9740_v20  ;;  %v6786_v46 = vpop.permute.xlu1 %2669  ;;  %v1761_v15 = vmax.f32 %v1759_v30, %v1760_v38  ;;  %v1772_v59 = vmax.f32 %v1770_v18, %v1771_v43  ;;  %v6796_v36 = vpop.permute.xlu0 %2664  ;;  %v9749_v18 = vld [vmem:[#allocation35_spill] sm:$0xff]  ;;  %v9750_v43 = vld [vmem:[#allocation34_spill] sm:$0xff]  ;;  %v3752_v20 = vld [vmem:[%s6733_s22 + $0x10] sm:$0xff] }
 0x21a   : > { %9741 = vst [vmem:[#allocation21_spill] sm:$0xff] %v6786_v46  ;;  %v6790_v51 = vadd.f32 %v9730_v29, %v9742_v1  ;;  %v6794_v57 = vadd.f32 %v9743_v23, %v6197_v25  ;;  %9744 = vst [vmem:[#allocation120_spill] sm:$0xff] %v6796_v36  ;;  %v9746_v44 = vmax.f32 %v9745_v35, 0.0  ;;  %v6805_v30 = vadd.f32 %v9748_v0, %v9725_v11  ;;  %v9752_v35 = vld [vmem:[#allocation36_spill] sm:$0xff]  ;;  %v9753_v0 = vld [vmem:[#allocation39_spill] sm:$0xff] }
 0x21b   : > { %v6809_v38 = vadd.f32 %v9728_v22, %v9749_v18  ;;  %v6813_v10 = vadd.f32 %v9730_v29, %v9750_v43  ;;  %v1773_v1 = vrot.slane %v1772_v59, 1  ;;  %v2034_v26 = vsel %vm2025_vm9, %v1761_v15, %v2033_v63  ;;  %v9754_v46 = vld [vmem:[#allocation38_spill] sm:$0xff]  ;;  %v9755_v36 = vld [vmem:[#allocation41_spill] sm:$0xff]  ;;  %v9756_v15 = vld [vmem:[#allocation40_spill] sm:$0xff]  ;;  %3895 = vperm.xlu1 %5486, %v3753_v60  }
 0x21c   : > { %v6801_v52 = vadd.f32 %v2058_v13, %v9746_v44  ;;  %v9751_v13 = vld [vmem:[#allocation37_spill] sm:$0xff]  ;;  %v6823_v44 = vadd.f32 %v9752_v35, %v9725_v11  ;;  %v6827_v18 = vadd.f32 %v9728_v22, %v9753_v0  ;;  %v6831_v43 = vadd.f32 %v9730_v29, %v9754_v46  ;;  %3890 = vperm.xlu0 %5485, %v3752_v20  }
 0x21d   : > { %v6819_v23 = vadd.f32 %v9751_v13, %v6197_v25  ;;  %v6835_v63 = vadd.f32 %v9755_v36, %v6197_v25  ;;  %v6839_v13 = vadd.f32 %v9756_v15, %v9725_v11  ;;  %v6841_v42 = vpop.permute.xlu1 %2679  ;;  %v1774_v35 = vmax.f32 %v1772_v59, %v1773_v1  ;;  %v6855_v4 = vpop.permute.xlu0 %2674  ;;  %v3755_v15 = vld [vmem:[%s6733_s22 + $0x28] sm:$0xff]  ;;  %v9764_v1 = vld [vmem:[#allocation46_spill] sm:$0xff]  ;;  %v9765_v31 = vld [vmem:[#allocation49_spill] sm:$0xff] }
 0x21e   : > { %9747 = vst [vmem:[#allocation20_spill] sm:$0xff] %v6801_v52  ;;  %9757 = vst [vmem:[#allocation23_spill] sm:$0xff] %v6841_v42  ;;  %v6845_v0 = vadd.f32 %v9728_v22, %v9758_v28  ;;  %v6849_v46 = vadd.f32 %v9730_v29, %v9759_v34  ;;  %v6853_v36 = vadd.f32 %v9760_v19, %v6197_v25  ;;  %v9762_v42 = vld [vmem:[#allocation44_spill] sm:$0xff]  ;;  %v9763_v59 = vld [vmem:[#allocation47_spill] sm:$0xff] }
 0x21f   : > { %9761 = vst [vmem:[#allocation113_spill] sm:$0xff] %v6855_v4  ;;  %v6860_v60 = vadd.f32 %v9762_v42, %v9725_v11  ;;  %v6864_v28 = vadd.f32 %v9728_v22, %v9763_v59  ;;  %v6868_v34 = vadd.f32 %v9730_v29, %v9764_v1  ;;  %v6872_v19 = vadd.f32 %v9765_v31, %v6197_v25  ;;  %v9766_v4 = vld [vmem:[#allocation48_spill] sm:$0xff]  ;;  %v9770_v31 = vld [vmem:[#allocation53_spill] sm:$0xff] }
 0x220   : > { %v2035_v20 = vsel %vm2027_vm10, %v1774_v35, %v2034_v26  ;;  %v6878_v42 = vadd.f32 %v9766_v4, %v9725_v11  ;;  %v6882_v59 = vadd.f32 %v9728_v22, %v9767_v2  ;;  %v6886_v1 = vadd.f32 %v9730_v29, %v9768_v7  ;;  %v9771_v26 = vld [vmem:[#allocation52_spill] sm:$0xff]  ;;  %v9772_v4 = vld [vmem:[#allocation55_spill] sm:$0xff]  ;;  %3905 = vperm.xlu1 %5486, %v3755_v15   ;;  %v9774_v7 = vld [vmem:[#allocation54_spill] sm:$0xff] }
 0x221   : > { %v2055_v55 = vadd.f32 %v2035_v20, %v9769_v6  ;;  %v6891_v14 = vadd.f32 %v9770_v31, %v6197_v25  ;;  %v6895_v35 = vadd.f32 %v9771_v26, %v9725_v11  ;;  %v6899_v48 = vadd.f32 %v9728_v22, %v9772_v4  ;;  %v6901_v2 = vpop.permute.xlu1 %2689  ;;  %v9775_v6 = vld [vmem:[#allocation57_spill] sm:$0xff]  ;;  %v9776_v31 = vld [vmem:[#allocation56_spill] sm:$0xff]  ;;  %v9777_v26 = vld [vmem:[#allocation59_spill] sm:$0xff]  ;;  %v6919_v4 = vpop.permute.xlu0 %2684  ;;  %3900 = vperm.xlu0 %5485, %v3754_v37  }
 0x222   : > { %9773 = vst [vmem:[#allocation22_spill] sm:$0xff] %v6901_v2  ;;  %v6905_v58 = vadd.f32 %v9730_v29, %v9774_v7  ;;  %v6909_v20 = vadd.f32 %v9775_v6, %v6197_v25  ;;  %v6913_v50 = vadd.f32 %v9776_v31, %v9725_v11  ;;  %v6917_v40 = vadd.f32 %v9728_v22, %v9777_v26  ;;  %v3757_v15 = vld [vmem:[%s6733_s22 + $0x38] sm:$0xff]  ;;  %v9781_v31 = vld [vmem:[#allocation60_spill] sm:$0xff]  ;;  %v9782_v26 = vld [vmem:[#allocation63_spill] sm:$0xff] }
 0x223   : > { %9778 = vst [vmem:[#allocation116_spill] sm:$0xff] %v6919_v4  ;;  %v2059_v2 = vmax.f32 %v2055_v55, 0.0  ;;  %v6924_v7 = vadd.f32 %v9730_v29, %v9779_v9  ;;  %v9780_v6 = vld [vmem:[#allocation61_spill] sm:$0xff]  ;;  %v6932_v16 = vadd.f32 %v9781_v31, %v9725_v11  ;;  %v6937_v32 = vadd.f32 %v9728_v22, %v9782_v26  ;;  %v9783_v37 = vld [vmem:[#allocation62_spill] sm:$0xff] }
 0x224   : > { %v6928_v12 = vadd.f32 %v9780_v6, %v6197_v25  ;;  %v6941_v55 = vadd.f32 %v9730_v29, %v9783_v37  ;;  %v9784_v9 = vld [vmem:[#allocation65_spill] sm:$0xff]  ;;  %v9786_v6 = vld [vmem:[#allocation64_spill] sm:$0xff]  ;;  %v9788_v31 = vmax.f32 %v9787_v61, 0.0  ;;  %v6957_v26 = vadd.f32 %v9728_v22, %v9790_v56  ;;  %3915 = vperm.xlu1 %5486, %v3757_v15   ;;  %v9798_v56 = vld [vmem:[#allocation70_spill] sm:$0xff] }
 0x225   : > { %v6945_v4 = vadd.f32 %v9784_v9, %v6197_v25  ;;  %v6949_v54 = vadd.f32 %v9786_v6, %v9725_v11  ;;  %v6961_v37 = vadd.f32 %v9730_v29, %v9792_v33  ;;  %v9794_v9 = vld [vmem:[#allocation69_spill] sm:$0xff]  ;;  %v9795_v6 = vld [vmem:[#allocation68_spill] sm:$0xff]  ;;  %3910 = vperm.xlu0 %5485, %v3756_v47  }
 0x226   : > { %v6953_v8 = vadd.f32 %v2059_v2, %v9788_v31  ;;  %9791 = vst [vmem:[#allocation24_spill] sm:$0xff] %v6957_v26  ;;  %v6965_v17 = vadd.f32 %v9794_v9, %v6197_v25  ;;  %v6969_v61 = vadd.f32 %v9795_v6, %v9725_v11  ;;  %v9796_v2 = vld [vmem:[#allocation71_spill] sm:$0xff]  ;;  %v6977_v26 = vadd.f32 %v9730_v29, %v9798_v56  ;;  %v9800_v33 = vld [vmem:[#allocation73_spill] sm:$0xff]  ;;  %v6985_v9 = vpop.permute.xlu0 %2694  ;;  %v9804_v6 = vld [vmem:[#allocation72_spill] sm:$0xff] }
 0x227   : > { %9785 = vst [vmem:[#allocation114_spill] sm:$0xff] %v6945_v4  ;;  %9793 = vst [vmem:[#allocation27_spill] sm:$0xff] %v6961_v37  ;;  %v6973_v31 = vadd.f32 %v9728_v22, %v9796_v2  ;;  %v6981_v37 = vadd.f32 %v9800_v33, %v6197_v25  ;;  %v6983_v4 = vpop.permute.xlu1 %2699  ;;  %v6991_v2 = vadd.f32 %v9804_v6, %v9725_v11  ;;  %v9812_v6 = vld [vmem:[#allocation79_spill] sm:$0xff] }
 0x228   : > { %9789 = vst [vmem:[#allocation25_spill] sm:$0xff] %v6953_v8  ;;  %9799 = vst [vmem:[#allocation29_spill] sm:$0xff] %v6977_v26  ;;  %v2066_v15 = vpack.c.bf16 %v6953_v8, %v6801_v52  ;;  %v9808_v26 = vld [vmem:[#allocation74_spill] sm:$0xff]  ;;  %v9810_v8 = vld [vmem:[#allocation76_spill] sm:$0xff] }
 0x229   : > { %9797 = vst [vmem:[#allocation26_spill] sm:$0xff] %v6973_v31  ;;  %9801 = vst [vmem:[#allocation28_spill] sm:$0xff] %v6981_v37  ;;  %v9806_v31 = vld [vmem:[#allocation75_spill] sm:$0xff]  ;;  %v6999_v33 = vadd.f32 %v9730_v29, %v9808_v26  ;;  %v7009_v52 = vadd.f32 %v9810_v8, %v9725_v11  ;;  %v9816_v26 = vld [vmem:[#allocation81_spill] sm:$0xff] }
 0x22a   : > { %9802 = vst [vmem:[#allocation31_spill] sm:$0xff] %v6983_v4  ;;  %9803 = vst [vmem:[#allocation30_spill] sm:$0xff] %v6985_v9  ;;  %v6995_v56 = vadd.f32 %v9728_v22, %v9806_v31  ;;  %v3759_v37 = vld [vmem:[%s6733_s22 + $0x48] sm:$0xff]  ;;  %v3758_v4 = vld [vmem:[%s6733_s22 + $0x40] sm:$0xff]  ;;  %5439 = vmatprep.mubr.msk.bf16.mxu1 %vm550_vm3, %v2066_v15  ;;  %5447 = vmatprep.mubr.msk.bf16.mxu0 %vm550_vm3, %v2066_v15  ;;  %v1778_v15 = vsel %vm550_vm3, %v6742_v24, -inf  ;;  %v1793_v24 = vsel %vm550_vm3, %v6772_v49, -inf }
 0x22b   : > { %9805 = vst [vmem:[#allocation33_spill] sm:$0xff] %v6991_v2  ;;  %v9809_v9 = vld [vmem:[#allocation77_spill] sm:$0xff]  ;;  %9811 = vst [vmem:[#allocation32_spill] sm:$0xff] %v7009_v52  ;;  %v7013_v2 = vadd.f32 %v9728_v22, %v9812_v6  ;;  %v9814_v31 = vld [vmem:[#allocation78_spill] sm:$0xff]  ;;  %3925 = vperm.xlu1 %5486, %v3759_v37   ;;  %3920 = vperm.xlu0 %5485, %v3758_v4   ;;  %v1802_v4 = vsel %vm550_vm3, %v6780_v21, -inf  ;;  %v7055_v37 = vpop.permute.xlu1 %2709  ;;  %v1806_v49 = vsel %vm550_vm3, %v6790_v51, -inf }
 0x22c   : > { %9807 = vst [vmem:[#allocation2_spill] sm:$0xff] %v6995_v56  ;;  %v7005_v47 = vadd.f32 %v9809_v9, %v6197_v25  ;;  %v7017_v56 = vadd.f32 %v9730_v29, %v9814_v31  ;;  %v7023_v9 = vadd.f32 %v9816_v26, %v6197_v25  ;;  %v9817_v8 = vld [vmem:[#allocation80_spill] sm:$0xff]  ;;  %v9818_v6 = vld [vmem:[#allocation83_spill] sm:$0xff]  ;;  %v1775_v31 = vsel %vm550_vm3, %v6712_v39, -inf  ;;  %9819 = vst [vmem:[#allocation37_spill] sm:$0xff] %v7055_v37 }
 0x22d   : > { %9813 = vst [vmem:[#allocation35_spill] sm:$0xff] %v7013_v2  ;;  %v7027_v52 = vadd.f32 %v9817_v8, %v9725_v11  ;;  %v7031_v2 = vadd.f32 %v9728_v22, %v9818_v6  ;;  %v1780_v25 = vsel %vm550_vm3, %v6746_v41, -inf  ;;  %v1788_v26 = vsel %vm550_vm3, %v6758_v45, -inf  ;;  %v3761_v8 = vld [vmem:[%s6733_s22 + $0x58] sm:$0xff]  ;;  %v7057_v45 = vpop.permute.xlu0 %2704  ;;  %v3762_v51 = vld [vmem:[%s6733_s22 + $0x60] sm:$0xff]  ;;  %v9965_v37 = vld [vmem:[#allocation140_spill] sm:$0xff] }
 0x22e   : > { %9815 = vst [vmem:[#allocation34_spill] sm:$0xff] %v7017_v56  ;;  %v1776_v56 = vsel %vm550_vm3, %v6726_v53, -inf  ;;  %v1789_v22 = vsel %vm550_vm3, %v6762_v27, -inf  ;;  %v1791_v39 = vsel %vm550_vm3, %v6766_v62, -inf  ;;  %v3760_v53 = vld [vmem:[%s6733_s22 + $0x50] sm:$0xff]  ;;  %v1801_v41 = vsel %vm550_vm3, %v6776_v3, -inf }
 0x22f   : > { %v1777_v11 = vmax.f32 %v1775_v31, %v1776_v56  ;;  %v1790_v6 = vmax.f32 %v1788_v26, %v1789_v22  ;;  %9820 = vst [vmem:[#allocation36_spill] sm:$0xff] %v7057_v45  ;;  %v1803_v62 = vmax.f32 %v1801_v41, %v1802_v4  ;;  %v1804_v56 = vsel %vm550_vm3, %v6784_v5, -inf  ;;  %3935 = vperm.xlu1 %5486, %v3761_v8   ;;  %v3763_v41 = vld [vmem:[%s6733_s22 + $0x68] sm:$0xff] }
 0x230   : > { %v1814_v3 = vsel %vm550_vm3, %v6794_v57, -inf  ;;  %v1815_v21 = vsel %vm550_vm3, %v6805_v30, -inf  ;;  %v1817_v26 = vsel %vm550_vm3, %v6809_v38, -inf  ;;  %3930 = vperm.xlu0 %5485, %v3760_v53   ;;  %v1819_v5 = vsel %vm550_vm3, %v6813_v10, -inf  ;;  %v9967_v45 = vld [vmem:[#allocation139_spill] sm:$0xff] }
 0x231   : > { %v1779_v27 = vmax.f32 %v1777_v11, %v1778_v15  ;;  %v1792_v31 = vmax.f32 %v1790_v6, %v1791_v39  ;;  %v1805_v11 = vmax.f32 %v1803_v62, %v1804_v56  ;;  %v1816_v22 = vmax.f32 %v1814_v3, %v1815_v21  ;;  %v3764_v3 = vld [vmem:[%s6733_s22 + $0x70] sm:$0xff] }
 0x232   : > { %v1827_v57 = vsel %vm550_vm3, %v6819_v23, -inf  ;;  %v1828_v30 = vsel %vm550_vm3, %v6823_v44, -inf  ;;  %v1830_v38 = vsel %vm550_vm3, %v6827_v18, -inf  ;;  %v1832_v10 = vsel %vm550_vm3, %v6831_v43, -inf  ;;  %v7085_v44 = vpop.permute.xlu1 %2719 }
 0x233   : > { %v1781_v15 = vmax.f32 %v1779_v27, %v1780_v25  ;;  %v1794_v39 = vmax.f32 %v1792_v31, %v1793_v24  ;;  %v1807_v25 = vmax.f32 %v1805_v11, %v1806_v49  ;;  %v1818_v53 = vmax.f32 %v1816_v22, %v1817_v26  ;;  %9821 = vst [vmem:[#allocation39_spill] sm:$0xff] %v7085_v44  ;;  %v7087_v27 = vpop.permute.xlu0 %2714  ;;  %v3765_v31 = vld [vmem:[%s6733_s22 + $0x78] sm:$0xff]  ;;  %v9962_v44 = vld [vmem:[#allocation138_spill] sm:$0xff] }
 0x234   : > { %v1829_v6 = vmax.f32 %v1827_v57, %v1828_v30  ;;  %v1840_v24 = vsel %vm550_vm3, %v6835_v63, -inf  ;;  %v1841_v23 = vsel %vm550_vm3, %v6839_v13, -inf  ;;  %9822 = vst [vmem:[#allocation38_spill] sm:$0xff] %v7087_v27  ;;  %3945 = vperm.xlu1 %5486, %v3763_v41   ;;  %3940 = vperm.xlu0 %5485, %v3762_v51   ;;  %v1843_v63 = vsel %vm550_vm3, %v6845_v0, -inf  ;;  %v9963_v27 = vld [vmem:[#allocation137_spill] sm:$0xff] }
 0x235   : > { %v1782_v8 = vrot.slane %v1781_v15, 4  ;;  %v1795_v4 = vrot.slane %v1794_v39, 4  ;;  %v1808_v62 = vrot.slane %v1807_v25, 4  ;;  %v1820_v56 = vmax.f32 %v1818_v53, %v1819_v5 }
 0x236   : > { %v1831_v49 = vmax.f32 %v1829_v6, %v1830_v38  ;;  %v1842_v43 = vmax.f32 %v1840_v24, %v1841_v23  ;;  %v1845_v13 = vsel %vm550_vm3, %v6849_v46, -inf  ;;  %v1853_v5 = vsel %vm550_vm3, %v6853_v36, -inf  ;;  %v3767_v46 = vld [vmem:[%s6733_s22 + $0x88] sm:$0xff] }
 0x237   : > { %v1783_v18 = vmax.f32 %v1781_v15, %v1782_v8  ;;  %v1796_v21 = vmax.f32 %v1794_v39, %v1795_v4  ;;  %v1809_v11 = vmax.f32 %v1807_v25, %v1808_v62  ;;  %v1821_v22 = vrot.slane %v1820_v56, 4  ;;  %v3766_v8 = vld [vmem:[%s6733_s22 + $0x80] sm:$0xff]  ;;  %v7105_v36 = vpop.permute.xlu0 %2724 }
 0x238   : > { %v1833_v41 = vmax.f32 %v1831_v49, %v1832_v10  ;;  %v1844_v51 = vmax.f32 %v1842_v43, %v1843_v63  ;;  %v1854_v39 = vsel %vm550_vm3, %v6860_v60, -inf  ;;  %3955 = vperm.xlu1 %5486, %v3765_v31   ;;  %3950 = vperm.xlu0 %5485, %v3764_v3   ;;  %v1856_v4 = vsel %vm550_vm3, %v6864_v28, -inf  ;;  %v7103_v10 = vpop.permute.xlu1 %2729  ;;  %9824 = vst [vmem:[#allocation40_spill] sm:$0xff] %v7105_v36  ;;  %v9825_v62 = vld [vmem:[#allocation82_spill] sm:$0xff]  ;;  %v9961_v36 = vld [vmem:[#allocation135_spill] sm:$0xff] }
 0x239   : > { %v1784_v26 = vrot.slane %v1783_v18, 2  ;;  %v1797_v15 = vrot.slane %v1796_v21, 2  ;;  %v1810_v57 = vrot.slane %v1809_v11, 2  ;;  %v1822_v30 = vmax.f32 %v1820_v56, %v1821_v22  ;;  %9823 = vst [vmem:[#allocation41_spill] sm:$0xff] %v7103_v10  ;;  %v9960_v10 = vld [vmem:[#allocation136_spill] sm:$0xff] }
 0x23a   : > { %v1834_v38 = vrot.slane %v1833_v41, 4  ;;  %v1846_v25 = vmax.f32 %v1844_v51, %v1845_v13  ;;  %v1855_v6 = vmax.f32 %v1853_v5, %v1854_v39  ;;  %v7109_v56 = vadd.f32 %v9730_v29, %v9825_v62  ;;  %v3769_v13 = vld [vmem:[%s6733_s22 + $0x98] sm:$0xff] }
 0x23b   : > { %v1785_v0 = vmax.f32 %v1783_v18, %v1784_v26  ;;  %v1798_v53 = vmax.f32 %v1796_v21, %v1797_v15  ;;  %v1811_v24 = vmax.f32 %v1809_v11, %v1810_v57  ;;  %v1823_v23 = vrot.slane %v1822_v30, 2  ;;  %v3768_v26 = vld [vmem:[%s6733_s22 + $0x90] sm:$0xff] }
 0x23c   : > { %v1835_v18 = vmax.f32 %v1833_v41, %v1834_v38  ;;  %v1847_v31 = vrot.slane %v1846_v25, 4  ;;  %v1857_v3 = vmax.f32 %v1855_v6, %v1856_v4  ;;  %3965 = vperm.xlu1 %5486, %v3767_v46   ;;  %3960 = vperm.xlu0 %5485, %v3766_v8   ;;  %v1858_v63 = vsel %vm550_vm3, %v6868_v34, -inf  ;;  %v7125_v38 = vpop.permute.xlu1 %2739  ;;  %v7127_v46 = vpop.permute.xlu0 %2734  ;;  %v3770_v6 = vld [vmem:[%s6733_s22 + $0xa0] sm:$0xff] }
 0x23d   : > { %v1786_v60 = vrot.slane %v1785_v0, 1  ;;  %v1799_v49 = vrot.slane %v1798_v53, 1  ;;  %v1812_v28 = vrot.slane %v1811_v24, 1  ;;  %v1824_v21 = vmax.f32 %v1822_v30, %v1823_v23  ;;  %9826 = vst [vmem:[#allocation43_spill] sm:$0xff] %v7125_v38  ;;  %9827 = vst [vmem:[#allocation42_spill] sm:$0xff] %v7127_v46  ;;  %v9958_v38 = vld [vmem:[#allocation134_spill] sm:$0xff] }
 0x23e   : > { %v1836_v43 = vrot.slane %v1835_v18, 2  ;;  %v1848_v41 = vmax.f32 %v1846_v25, %v1847_v31  ;;  %v1859_v29 = vmax.f32 %v1857_v3, %v1858_v63  ;;  %v1866_v5 = vsel %vm550_vm3, %v6872_v19, -inf  ;;  %v3771_v25 = vld [vmem:[%s6733_s22 + $0xa8] sm:$0xff]  ;;  %v3773_v63 = vld [vmem:[%s6733_s22 + $0xb8] sm:$0xff] }
 0x23f   : > { %v7115_v11 = vmax.f32 %v1785_v0, %v1786_v60  ;;  %v7117_v22 = vmax.f32 %v1798_v53, %v1799_v49  ;;  %v1825_v15 = vrot.slane %v1824_v21, 1  ;;  %v1867_v39 = vsel %vm550_vm3, %v6878_v42, -inf  ;;  %v9959_v46 = vld [vmem:[#allocation133_spill] sm:$0xff] }
 0x240   : > { %v1837_v51 = vmax.f32 %v1835_v18, %v1836_v43  ;;  %v7123_v57 = vmax.f32 %v1811_v24, %v1812_v28  ;;  %v1849_v34 = vrot.slane %v1848_v41, 2  ;;  %v1860_v30 = vrot.slane %v1859_v29, 4  ;;  %3975 = vperm.xlu1 %5486, %v3769_v13   ;;  %3970 = vperm.xlu0 %5485, %v3768_v26  }
 0x241   : > { %v1868_v0 = vmax.f32 %v1866_v5, %v1867_v39  ;;  %v7129_v8 = vmax.f32 %v1824_v21, %v1825_v15  ;;  %v1869_v19 = vsel %vm550_vm3, %v6882_v59, -inf  ;;  %v1879_v42 = vsel %vm550_vm3, %v6891_v14, -inf  ;;  %v7159_v15 = vpop.permute.xlu0 %2744 }
 0x242   : > { %v1838_v53 = vrot.slane %v1837_v51, 1  ;;  %v1850_v4 = vmax.f32 %v1848_v41, %v1849_v34  ;;  %v1861_v60 = vmax.f32 %v1859_v29, %v1860_v30  ;;  %v1880_v23 = vsel %vm550_vm3, %v6895_v35, -inf  ;;  %v7157_v29 = vpop.permute.xlu1 %2749  ;;  %9829 = vst [vmem:[#allocation44_spill] sm:$0xff] %v7159_v15  ;;  %v9957_v15 = vld [vmem:[#allocation131_spill] sm:$0xff] }
 0x243   : > { %v1870_v24 = vmax.f32 %v1868_v0, %v1869_v19  ;;  %v1871_v62 = vsel %vm550_vm3, %v6886_v1, -inf  ;;  %v1881_v49 = vmax.f32 %v1879_v42, %v1880_v23  ;;  %v1882_v59 = vsel %vm550_vm3, %v6899_v48, -inf  ;;  %v3772_v48 = vld [vmem:[%s6733_s22 + $0xb0] sm:$0xff]  ;;  %9828 = vst [vmem:[#allocation45_spill] sm:$0xff] %v7157_v29  ;;  %v3774_v42 = vld [vmem:[%s6733_s22 + $0xc0] sm:$0xff] }
 0x244   : > { %v7139_v18 = vmax.f32 %v1837_v51, %v1838_v53  ;;  %v1851_v14 = vrot.slane %v1850_v4, 1  ;;  %v1862_v31 = vrot.slane %v1861_v60, 2  ;;  %v1884_v28 = vsel %vm550_vm3, %v6905_v58, -inf  ;;  %3985 = vperm.xlu1 %5486, %v3771_v25   ;;  %3980 = vperm.xlu0 %5485, %v3770_v6   ;;  %v9956_v29 = vld [vmem:[#allocation132_spill] sm:$0xff] }
 0x245   : > { %v1872_v3 = vmax.f32 %v1870_v24, %v1871_v62  ;;  %v1883_v21 = vmax.f32 %v1881_v49, %v1882_v59  ;;  %v1892_v35 = vsel %vm550_vm3, %v6909_v20, -inf  ;;  %v1893_v43 = vsel %vm550_vm3, %v6913_v50, -inf  ;;  %v9831_v62 = vld [vmem:[#allocation24_spill] sm:$0xff] }
 0x246   : > { %v1895_v1 = vsel %vm550_vm3, %v6917_v40, -inf  ;;  %v1863_v13 = vmax.f32 %v1861_v60, %v1862_v31  ;;  %v1894_v41 = vmax.f32 %v1892_v35, %v1893_v43  ;;  %v1897_v58 = vsel %vm550_vm3, %v6924_v7, -inf }
 0x247   : > { %v1873_v26 = vrot.slane %v1872_v3, 4  ;;  %v7161_v20 = vmax.f32 %v1850_v4, %v1851_v14  ;;  %v1885_v50 = vmax.f32 %v1883_v21, %v1884_v28  ;;  %v1905_v40 = vsel %vm550_vm3, %v6928_v12, -inf  ;;  %v3775_v12 = vld [vmem:[%s6733_s22 + $0xc8] sm:$0xff]  ;;  %v9830_v4 = vld [vmem:[#allocation114_spill] sm:$0xff]  ;;  %v7185_v28 = vpop.permute.xlu0 %2754 }
 0x248   : > { %v1906_v51 = vsel %vm550_vm3, %v6932_v16, -inf  ;;  %v1864_v5 = vrot.slane %v1863_v13, 1  ;;  %v1896_v34 = vmax.f32 %v1894_v41, %v1895_v1  ;;  %3995 = vperm.xlu1 %5486, %v3773_v63   ;;  %3990 = vperm.xlu0 %5485, %v3772_v48   ;;  %v1908_v0 = vsel %vm550_vm3, %v6937_v32, -inf  ;;  %v9832_v14 = vld [vmem:[#allocation27_spill] sm:$0xff]  ;;  %9834 = vst [vmem:[#allocation46_spill] sm:$0xff] %v7185_v28  ;;  %v3777_v63 = vld [vmem:[%s6733_s22 + $0xd8] sm:$0xff] }
 0x249   : > { %v1874_v39 = vmax.f32 %v1872_v3, %v1873_v26  ;;  %v1907_v30 = vmax.f32 %v1905_v40, %v1906_v51  ;;  %v1886_v7 = vrot.slane %v1885_v50, 4  ;;  %v1910_v53 = vsel %vm550_vm3, %v6941_v55, -inf  ;;  %v7183_v3 = vpop.permute.xlu1 %2759  ;;  %v3776_v48 = vld [vmem:[%s6733_s22 + $0xd0] sm:$0xff]  ;;  %v9835_v51 = vld [vmem:[#allocation26_spill] sm:$0xff] }
 0x24a   : > { %v1919_v19 = vsel %vm550_vm3, %v6949_v54, -inf  ;;  %v1898_v16 = vmax.f32 %v1896_v34, %v1897_v58  ;;  %v1918_v60 = vsel %vm550_vm3, %v9830_v4, -inf  ;;  %v7177_v24 = vmax.f32 %v1863_v13, %v1864_v5  ;;  %9833 = vst [vmem:[#allocation47_spill] sm:$0xff] %v7183_v3  ;;  %v9954_v3 = vld [vmem:[#allocation130_spill] sm:$0xff] }
 0x24b   : > { %v1875_v25 = vrot.slane %v1874_v39, 2  ;;  %v1909_v6 = vmax.f32 %v1907_v30, %v1908_v0  ;;  %v1887_v23 = vmax.f32 %v1885_v50, %v1886_v7  ;;  %v1920_v32 = vmax.f32 %v1918_v60, %v1919_v19  ;;  %v9955_v28 = vld [vmem:[#allocation18_spill] sm:$0xff] }
 0x24c   : > { %v1921_v55 = vsel %vm550_vm3, %v9831_v62, -inf  ;;  %v1899_v59 = vrot.slane %v1898_v16, 4  ;;  %v1923_v31 = vsel %vm550_vm3, %v9832_v14, -inf  ;;  %4005 = vperm.xlu1 %5486, %v3775_v12   ;;  %4000 = vperm.xlu0 %5485, %v3774_v42   ;;  %v1931_v43 = vsel %vm550_vm3, %v6965_v17, -inf  ;;  %v9838_v42 = vld [vmem:[#allocation33_spill] sm:$0xff] }
 0x24d   : > { %v1876_v49 = vmax.f32 %v1874_v39, %v1875_v25  ;;  %v1911_v54 = vmax.f32 %v1909_v6, %v1910_v53  ;;  %v1888_v21 = vrot.slane %v1887_v23, 2  ;;  %v1922_v35 = vmax.f32 %v1920_v32, %v1921_v55  ;;  %v9836_v39 = vld [vmem:[#allocation29_spill] sm:$0xff]  ;;  %v3778_v6 = vld [vmem:[%s6733_s22 + $0xe0] sm:$0xff]  ;;  %v7205_v62 = vpop.permute.xlu1 %2769  ;;  %v7207_v55 = vpop.permute.xlu0 %2764 }
 0x24e   : > { %v1932_v1 = vsel %vm550_vm3, %v6969_v61, -inf  ;;  %v1900_v26 = vmax.f32 %v1898_v16, %v1899_v59  ;;  %v1934_v5 = vsel %vm550_vm3, %v9835_v51, -inf  ;;  %v1936_v34 = vsel %vm550_vm3, %v9836_v39, -inf  ;;  %v9837_v61 = vld [vmem:[#allocation28_spill] sm:$0xff]  ;;  %v3779_v16 = vld [vmem:[%s6733_s22 + $0xe8] sm:$0xff]  ;;  %9839 = vst [vmem:[#allocation49_spill] sm:$0xff] %v7205_v62 }
 0x24f   : > { %v1877_v13 = vrot.slane %v1876_v49, 1  ;;  %v1912_v41 = vrot.slane %v1911_v54, 4  ;;  %v1933_v58 = vmax.f32 %v1931_v43, %v1932_v1  ;;  %v1889_v50 = vmax.f32 %v1887_v23, %v1888_v21  ;;  %9840 = vst [vmem:[#allocation48_spill] sm:$0xff] %v7207_v55  ;;  %v9952_v62 = vld [vmem:[#allocation19_spill] sm:$0xff]  ;;  %v9953_v55 = vld [vmem:[#allocation16_spill] sm:$0xff] }
 0x250   : > { %v1924_v40 = vmax.f32 %v1922_v35, %v1923_v31  ;;  %v1901_v17 = vrot.slane %v1900_v26, 2  ;;  %v1944_v0 = vsel %vm550_vm3, %v9837_v61, -inf  ;;  %4015 = vperm.xlu1 %5486, %v3777_v63   ;;  %4010 = vperm.xlu0 %5485, %v3776_v48   ;;  %v1945_v25 = vsel %vm550_vm3, %v9838_v42, -inf }
 0x251   : > { %v1913_v30 = vmax.f32 %v1911_v54, %v1912_v41  ;;  %v1935_v7 = vmax.f32 %v1933_v58, %v1934_v5  ;;  %v7199_v53 = vmax.f32 %v1876_v49, %v1877_v13  ;;  %v1890_v19 = vrot.slane %v1889_v50, 1  ;;  %v9841_v54 = vld [vmem:[#allocation2_spill] sm:$0xff]  ;;  %v9842_v13 = vld [vmem:[#allocation32_spill] sm:$0xff]  ;;  %v9843_v41 = vld [vmem:[#allocation35_spill] sm:$0xff]  ;;  %v7227_v42 = vpop.permute.xlu1 %2779 }
 0x252   : > { %v1925_v12 = vrot.slane %v1924_v40, 4  ;;  %v1902_v4 = vmax.f32 %v1900_v26, %v1901_v17  ;;  %v1946_v32 = vmax.f32 %v1944_v0, %v1945_v25  ;;  %v1947_v14 = vsel %vm550_vm3, %v9841_v54, -inf  ;;  %v9844_v0 = vld [vmem:[#allocation34_spill] sm:$0xff]  ;;  %9845 = vst [vmem:[#allocation51_spill] sm:$0xff] %v7227_v42  ;;  %v7229_v25 = vpop.permute.xlu0 %2774  ;;  %v9950_v42 = vld [vmem:[#allocation17_spill] sm:$0xff] }
 0x253   : > { %v1914_v60 = vrot.slane %v1913_v30, 2  ;;  %v1937_v23 = vmax.f32 %v1935_v7, %v1936_v34  ;;  %v1891_v59 = vmax.f32 %v1889_v50, %v1890_v19  ;;  %v1949_v31 = vsel %vm550_vm3, %v6999_v33, -inf  ;;  %v3781_v50 = vld [vmem:[%s6733_s22 + $0xf8] sm:$0xff]  ;;  %9846 = vst [vmem:[#allocation50_spill] sm:$0xff] %v7229_v25  ;;  %v9951_v25 = vld [vmem:[#allocation14_spill] sm:$0xff] }
 0x254   : > { %v1926_v49 = vmax.f32 %v1924_v40, %v1925_v12  ;;  %v1903_v21 = vrot.slane %v1902_v4, 1  ;;  %v1948_v1 = vmax.f32 %v1946_v32, %v1947_v14  ;;  %4025 = vperm.xlu1 %5486, %v3779_v16   ;;  %4020 = vperm.xlu0 %5485, %v3778_v6   ;;  %v1957_v48 = vsel %vm550_vm3, %v7005_v47, -inf  ;;  %v3780_v40 = vld [vmem:[%s6733_s22 + $0xf0] sm:$0xff] }
 0x255   : > { %v1915_v35 = vmax.f32 %v1913_v30, %v1914_v60  ;;  %v1938_v43 = vrot.slane %v1937_v23, 4  ;;  %v1958_v26 = vsel %vm550_vm3, %v9842_v13, -inf  ;;  %v1960_v58 = vsel %vm550_vm3, %v9843_v41, -inf  ;;  %v3783_v60 = vld [vmem:[%s6733_s22 + $0x108] sm:$0xff]  ;;  %v3785_v13 = vld [vmem:[%s6733_s22 + $0x118] sm:$0xff] }
 0x256   : > { %v1927_v63 = vrot.slane %v1926_v49, 2  ;;  %v1904_v51 = vmax.f32 %v1902_v4, %v1903_v21  ;;  %v1950_v39 = vmax.f32 %v1948_v1, %v1949_v31  ;;  %v1959_v17 = vmax.f32 %v1957_v48, %v1958_v26  ;;  %v3784_v26 = vld [vmem:[%s6733_s22 + $0x110] sm:$0xff] }
 0x257   : > { %v1916_v33 = vrot.slane %v1915_v35, 1  ;;  %v1939_v5 = vmax.f32 %v1937_v23, %v1938_v43  ;;  %v1970_v30 = vsel %vm550_vm3, %v7023_v9, -inf  ;;  %v1971_v47 = vsel %vm550_vm3, %v7027_v52, -inf  ;;  %v3782_v52 = vld [vmem:[%s6733_s22 + $0x100] sm:$0xff] }
 0x258   : > { %v1928_v34 = vmax.f32 %v1926_v49, %v1927_v63  ;;  %v1951_v61 = vrot.slane %v1950_v39, 4  ;;  %v1962_v19 = vsel %vm550_vm3, %v9844_v0, -inf  ;;  %v1972_v12 = vmax.f32 %v1970_v30, %v1971_v47  ;;  %4035 = vperm.xlu1 %5486, %v3781_v50   ;;  %4030 = vperm.xlu0 %5485, %v3780_v40   ;;  %v7254_v50 = vpop.permute.xlu0 %2784  ;;  %v3787_v47 = vld [vmem:[%s6733_s22 + $0x128] sm:$0xff] }
 0x259   : > { %v1940_v7 = vrot.slane %v1939_v5, 2  ;;  %v1917_v16 = vmax.f32 %v1915_v35, %v1916_v33  ;;  %v1961_v4 = vmax.f32 %v1959_v17, %v1960_v58  ;;  %v1973_v9 = vsel %vm550_vm3, %v7031_v2, -inf  ;;  %9848 = vst [vmem:[#allocation53_spill] sm:$0xff] %v7254_v50  ;;  %v9849_v17 = vld [vmem:[#allocation112_spill] sm:$0xff]  ;;  %v9949_v50 = vld [vmem:[#allocation127_spill] sm:$0xff] }
 0x25a   : > { %v1929_v6 = vrot.slane %v1928_v34, 1  ;;  %v1952_v32 = vmax.f32 %v1950_v39, %v1951_v61  ;;  %v1974_v49 = vmax.f32 %v1972_v12, %v1973_v9  ;;  %v2036_v54 = vsel %vm2015_vm4, %v7117_v22, %v7115_v11  ;;  %v3788_v9 = vld [vmem:[%s6733_s22 + $0x130] sm:$0xff] }
 0x25b   : > { %v1941_v23 = vmax.f32 %v1939_v5, %v1940_v7  ;;  %v1963_v14 = vmax.f32 %v1961_v4, %v1962_v19  ;;  %v1975_v31 = vsel %vm550_vm3, %v7109_v56, -inf  ;;  %v2037_v21 = vsel %vm2017_vm5, %v7123_v57, %v2036_v54  ;;  %v3786_v7 = vld [vmem:[%s6733_s22 + $0x120] sm:$0xff]  ;;  %v3789_v4 = vld [vmem:[%s6733_s22 + $0x138] sm:$0xff]  ;;  %v3791_v54 = vld [vmem:[%s6733_s22 + $0x148] sm:$0xff] }
 0x25c   : > { %v2043_v2 = vsel %vm2015_vm4, %v1904_v51, %v1891_v59  ;;  %v1953_v43 = vrot.slane %v1952_v32, 2  ;;  %v1976_v1 = vmax.f32 %v1974_v49, %v1975_v31  ;;  %v2038_v63 = vsel %vm2019_vm6, %v7129_v8, %v2037_v21  ;;  %4045 = vperm.xlu1 %5486, %v3783_v60   ;;  %4040 = vperm.xlu0 %5485, %v3782_v52   ;;  %v7252_v8 = vpop.permute.xlu1 %2789 }
 0x25d   : > { %v1942_v35 = vrot.slane %v1941_v23, 1  ;;  %v1930_v48 = vmax.f32 %v1928_v34, %v1929_v6  ;;  %v1964_v11 = vrot.slane %v1963_v14, 4  ;;  %v2039_v22 = vsel %vm2021_vm7, %v7139_v18, %v2038_v63  ;;  %9847 = vst [vmem:[#allocation119_spill] sm:$0xff] %v7252_v8  ;;  %v9855_v63 = vld [vmem:[#allocation3_spill] sm:$0xff]  ;;  %v9948_v8 = vld [vmem:[#allocation129_spill] sm:$0xff] }
 0x25e   : > { %v2044_v56 = vsel %vm2017_vm5, %v1917_v16, %v2043_v2  ;;  %v1954_v41 = vmax.f32 %v1952_v32, %v1953_v43  ;;  %v1977_v59 = vrot.slane %v1976_v1, 4  ;;  %v2040_v58 = vsel %vm2023_vm8, %v7161_v20, %v2039_v22  ;;  %v7268_v16 = vpop.permute.xlu0 %2794  ;;  %v3793_v22 = vld [vmem:[%s6733_s22 + $0x158] sm:$0xff] }
 0x25f   : > { %v1943_v57 = vmax.f32 %v1941_v23, %v1942_v35  ;;  %v1965_v40 = vmax.f32 %v1963_v14, %v1964_v11  ;;  %v2041_v18 = vsel %vm2025_vm9, %v7177_v24, %v2040_v58  ;;  %v2045_v51 = vsel %vm2019_vm6, %v1930_v48, %v2044_v56  ;;  %9851 = vst [vmem:[#allocation55_spill] sm:$0xff] %v7268_v16  ;;  %v3790_v14 = vld [vmem:[%s6733_s22 + $0x140] sm:$0xff]  ;;  %v9854_v35 = vld [vmem:[#allocation115_spill] sm:$0xff]  ;;  %v3792_v56 = vld [vmem:[%s6733_s22 + $0x150] sm:$0xff] }
 0x260   : > { %v1955_v33 = vrot.slane %v1954_v41, 1  ;;  %v1978_v5 = vmax.f32 %v1976_v1, %v1977_v59  ;;  %v2042_v39 = vsel %vm2027_vm10, %v7199_v53, %v2041_v18  ;;  %4055 = vperm.xlu1 %5486, %v3785_v13   ;;  %4050 = vperm.xlu0 %5485, %v3784_v26   ;;  %v7266_v53 = vpop.permute.xlu1 %2799  ;;  %v9856_v48 = vmax.f32 %v9855_v63, 0.0  ;;  %v9858_v13 = vld [vmem:[#allocation4_spill] sm:$0xff]  ;;  %v3794_v18 = vld [vmem:[%s6733_s22 + $0x160] sm:$0xff]  ;;  %v9947_v16 = vld [vmem:[#allocation123_spill] sm:$0xff] }
 0x261   : > { %v2046_v34 = vsel %vm2021_vm7, %v1943_v57, %v2045_v51  ;;  %v1966_v20 = vrot.slane %v1965_v40, 2  ;;  %v2056_v30 = vadd.f32 %v2042_v39, %v9849_v17  ;;  %9850 = vst [vmem:[#allocation52_spill] sm:$0xff] %v7266_v53  ;;  %v9859_v26 = vmax.f32 %v9858_v13, 0.0  ;;  %v3818_v51 = vld [vmem:[%s6733_s22 + $0x220] sm:$0xff]  ;;  %v9946_v53 = vld [vmem:[#allocation124_spill] sm:$0xff] }
 0x262   : > { %v1956_v61 = vmax.f32 %v1954_v41, %v1955_v33  ;;  %v1979_v24 = vrot.slane %v1978_v5, 2  ;;  %v7278_v2 = vpop.permute.xlu0 %2804  ;;  %v3815_v33 = vld [vmem:[%s6733_s22 + $0x208] sm:$0xff]  ;;  %v3826_v63 = vld [vmem:[%s6733_s22 + $0x260] sm:$0xff] }
 0x263   : > { %v1967_v0 = vmax.f32 %v1965_v40, %v1966_v20  ;;  %v2060_v49 = vmax.f32 %v2056_v30, 0.0  ;;  %9853 = vst [vmem:[#allocation57_spill] sm:$0xff] %v7278_v2  ;;  %v3814_v40 = vld [vmem:[%s6733_s22 + $0x200] sm:$0xff]  ;;  %v3819_v20 = vld [vmem:[%s6733_s22 + $0x228] sm:$0xff]  ;;  %v9945_v2 = vld [vmem:[#allocation121_spill] sm:$0xff] }
 0x264   : > { %v1980_v19 = vmax.f32 %v1978_v5, %v1979_v24  ;;  %v2047_v12 = vsel %vm2023_vm8, %v1956_v61, %v2046_v34  ;;  %4065 = vperm.xlu1 %5486, %v3787_v47   ;;  %4060 = vperm.xlu0 %5485, %v3786_v7   ;;  %v7276_v21 = vpop.permute.xlu1 %2809  ;;  %v3846_v34 = vld [vmem:[%s6733_s22 + $0x300] sm:$0xff]  ;;  %v3847_v7 = vld [vmem:[%s6733_s22 + $0x308] sm:$0xff] }
 0x265   : > { %v1968_v6 = vrot.slane %v1967_v0, 1  ;;  %9852 = vst [vmem:[#allocation54_spill] sm:$0xff] %v7276_v21  ;;  %v7283_v11 = vadd.f32 %v2060_v49, %v9856_v48  ;;  %v3850_v47 = vld [vmem:[%s6733_s22 + $0x320] sm:$0xff]  ;;  %v3795_v61 = vld [vmem:[%s6733_s22 + $0x168] sm:$0xff]  ;;  %v3852_v48 = vld [vmem:[%s6733_s22 + $0x330] sm:$0xff] }
 0x266   : > { %v1981_v60 = vrot.slane %v1980_v19, 1  ;;  %v7293_v59 = vpop.permute.xlu0 %2814  ;;  %v3851_v24 = vld [vmem:[%s6733_s22 + $0x328] sm:$0xff]  ;;  %v9944_v21 = vld [vmem:[#allocation122_spill] sm:$0xff] }
 0x267   : > { %v1969_v52 = vmax.f32 %v1967_v0, %v1968_v6  ;;  %9857 = vst [vmem:[#allocation56_spill] sm:$0xff] %v7283_v11  ;;  %9862 = vst [vmem:[#allocation61_spill] sm:$0xff] %v7293_v59  ;;  %v3822_v6 = vld [vmem:[%s6733_s22 + $0x240] sm:$0xff]  ;;  %v9943_v59 = vld [vmem:[#allocation117_spill] sm:$0xff] }
 0x268   : > { %v1982_v23 = vmax.f32 %v1980_v19, %v1981_v60  ;;  %4075 = vperm.xlu1 %5486, %v3789_v4   ;;  %4070 = vperm.xlu0 %5485, %v3788_v9   ;;  %v7291_v41 = vpop.permute.xlu1 %2819  ;;  %v3855_v60 = vld [vmem:[%s6733_s22 + $0x348] sm:$0xff] }
 0x269   : > { %v2048_v32 = vsel %vm2025_vm9, %v1969_v52, %v2047_v12  ;;  %9861 = vst [vmem:[#allocation58_spill] sm:$0xff] %v7291_v41  ;;  %v3823_v12 = vld [vmem:[%s6733_s22 + $0x248] sm:$0xff]  ;;  %v3854_v52 = vld [vmem:[%s6733_s22 + $0x340] sm:$0xff] }
 0x26a   : > { %v2049_v31 = vsel %vm2027_vm10, %v1982_v23, %v2048_v32  ;;  %v7305_v39 = vpop.permute.xlu0 %2824  ;;  %v3799_v23 = vld [vmem:[%s6733_s22 + $0x188] sm:$0xff]  ;;  %v3798_v32 = vld [vmem:[%s6733_s22 + $0x180] sm:$0xff] }
 0x26b   : > { %v2057_v43 = vadd.f32 %v2049_v31, %v9854_v35  ;;  %9864 = vst [vmem:[#allocation63_spill] sm:$0xff] %v7305_v39  ;;  %v3816_v31 = vld [vmem:[%s6733_s22 + $0x210] sm:$0xff]  ;;  %v9941_v39 = vld [vmem:[#allocation110_spill] sm:$0xff] }
 0x26c   : > { %4085 = vperm.xlu1 %5486, %v3791_v54   ;;  %4080 = vperm.xlu0 %5485, %v3790_v14   ;;  %v7303_v5 = vpop.permute.xlu1 %2829  ;;  %v3820_v14 = vld [vmem:[%s6733_s22 + $0x230] sm:$0xff]  ;;  %v9942_v41 = vld [vmem:[#allocation118_spill] sm:$0xff] }
 0x26d   : > { %v2061_v1 = vmax.f32 %v2057_v43, 0.0  ;;  %9863 = vst [vmem:[#allocation60_spill] sm:$0xff] %v7303_v5  ;;  %v9940_v5 = vld [vmem:[#allocation111_spill] sm:$0xff] }
 0x26e   : > { %v7311_v30 = vpop.permute.xlu0 %2834 }
 0x26f   : > { %v7289_v57 = vadd.f32 %v2061_v1, %v9859_v26  ;;  %9866 = vst [vmem:[#allocation65_spill] sm:$0xff] %v7311_v30  ;;  %v3827_v1 = vld [vmem:[%s6733_s22 + $0x268] sm:$0xff]  ;;  %v9939_v30 = vld [vmem:[#allocation108_spill] sm:$0xff] }
 0x270   : > { %4095 = vperm.xlu1 %5486, %v3793_v22   ;;  %4090 = vperm.xlu0 %5485, %v3792_v56   ;;  %v7309_v17 = vpop.permute.xlu1 %2839  ;;  %v3848_v22 = vld [vmem:[%s6733_s22 + $0x310] sm:$0xff]  ;;  %v3859_v26 = vld [vmem:[%s6733_s22 + $0x368] sm:$0xff] }
 0x271   : > { %9860 = vst [vmem:[#allocation59_spill] sm:$0xff] %v7289_v57  ;;  %v2067_v58 = vpack.c.bf16 %v7289_v57, %v7283_v11  ;;  %9865 = vst [vmem:[#allocation62_spill] sm:$0xff] %v7309_v17  ;;  %v3810_v57 = vld [vmem:[%s6733_s22 + $0x1e0] sm:$0xff]  ;;  %v5498_v11 = vld [vmem:[%s9493_s6 + $0x28] sm:$0xff]  }
 0x272   : > { %v7319_v19 = vpop.permute.xlu0 %2844  ;;  %v9938_v17 = vld [vmem:[#allocation109_spill] sm:$0xff] }
 0x273   : > { %5440 = vmatmul.mubr.msk.bf16.vlgmr.msra.gmra.mrb[4].mxu1 %vm550_vm3, %v2067_v58  ;;  %5448 = vmatmul.mubr.msk.bf16.vlgmr.msra.gmra.mrb[8].mxu0 %vm550_vm3, %v2067_v58  ;;  %9868 = vst [vmem:[#allocation5_spill] sm:$0xff] %v7319_v19  ;;  %v3858_v58 = vld [vmem:[%s6733_s22 + $0x360] sm:$0xff] }
 0x274   : > { %4200 = vperm.xlu1 %5486, %v3814_v40   ;;  %4100 = vperm.xlu0 %5485, %v3794_v18   ;;  %v7317_v0 = vpop.permute.xlu1 %2849  ;;  %v9937_v19 = vld [vmem:[#allocation106_spill] sm:$0xff] }
 0x275   : > { %9867 = vst [vmem:[#allocation64_spill] sm:$0xff] %v7317_v0  ;;  %v9936_v0 = vld [vmem:[#allocation107_spill] sm:$0xff] }
 0x276   : > { %v7325_v9 = vpop.permute.xlu0 %2854 }
 0x277   : > { %9870 = vst [vmem:[#allocation66_spill] sm:$0xff] %v7325_v9  ;;  %v9935_v9 = vld [vmem:[#allocation104_spill] sm:$0xff] }
 0x278   : > { %4220 = vperm.xlu1 %5486, %v3818_v51   ;;  %4205 = vperm.xlu0 %5485, %v3815_v33   ;;  %v7323_v4 = vpop.permute.xlu1 %2859  ;;  %v3802_v51 = vld [vmem:[%s6733_s22 + $0x1a0] sm:$0xff]  ;;  %v3796_v33 = vld [vmem:[%s6733_s22 + $0x170] sm:$0xff] }
 0x279   : > { %9869 = vst [vmem:[#allocation67_spill] sm:$0xff] %v7323_v4  ;;  %v9934_v4 = vld [vmem:[#allocation105_spill] sm:$0xff] }
 0x27a   : > { %v7333_v54 = vpop.permute.xlu0 %2864 }
 0x27b   : > { %9872 = vst [vmem:[#allocation68_spill] sm:$0xff] %v7333_v54  ;;  %v9933_v54 = vld [vmem:[#allocation102_spill] sm:$0xff] }
 0x27c   : > { %4360 = vperm.xlu1 %5486, %v3846_v34   ;;  %4225 = vperm.xlu0 %5485, %v3819_v20   ;;  %v7331_v49 = vpop.permute.xlu1 %2869  ;;  %v3824_v34 = vld [vmem:[%s6733_s22 + $0x250] sm:$0xff]  ;;  %v3803_v20 = vld [vmem:[%s6733_s22 + $0x1a8] sm:$0xff] }
 0x27d   : > { %9871 = vst [vmem:[#allocation69_spill] sm:$0xff] %v7331_v49  ;;  %v9932_v49 = vld [vmem:[#allocation103_spill] sm:$0xff] }
 0x27e   : > { %v7339_v43 = vpop.permute.xlu0 %2874 }
 0x27f   : > { %9874 = vst [vmem:[#allocation70_spill] sm:$0xff] %v7339_v43  ;;  %v9931_v43 = vld [vmem:[#allocation100_spill] sm:$0xff] }
 0x280   : > { %4380 = vperm.xlu1 %5486, %v3850_v47   ;;  %4365 = vperm.xlu0 %5485, %v3847_v7   ;;  %v7337_v35 = vpop.permute.xlu1 %2879 }
 0x281   : > { %9873 = vst [vmem:[#allocation71_spill] sm:$0xff] %v7337_v35  ;;  %v9930_v35 = vld [vmem:[#allocation101_spill] sm:$0xff] }
 0x282   : > { %v7347_v13 = vpop.permute.xlu0 %2884 }
 0x283   : > { %9876 = vst [vmem:[#allocation72_spill] sm:$0xff] %v7347_v13  ;;  %v9929_v13 = vld [vmem:[#allocation98_spill] sm:$0xff] }
 0x284   : > { %4105 = vperm.xlu1 %5486, %v3795_v61   ;;  %4385 = vperm.xlu0 %5485, %v3851_v24   ;;  %v7345_v56 = vpop.permute.xlu1 %2889  ;;  %v3831_v61 = vld [vmem:[%s6733_s22 + $0x288] sm:$0xff]  ;;  %v3830_v24 = vld [vmem:[%s6733_s22 + $0x280] sm:$0xff] }
 0x285   : > { %9875 = vst [vmem:[#allocation73_spill] sm:$0xff] %v7345_v56 }
 0x286   : > { %v7353_v18 = vpop.permute.xlu0 %2904 }
 0x287   : > { %9878 = vst [vmem:[#allocation74_spill] sm:$0xff] %v7353_v18  ;;  %v9924_v18 = vld [vmem:[#allocation94_spill] sm:$0xff] }
 0x288   : > { %4245 = vperm.xlu1 %5486, %v3823_v12   ;;  %4240 = vperm.xlu0 %5485, %v3822_v6   ;;  %v7351_v40 = vpop.permute.xlu1 %2909 }
 0x289   : > { %9877 = vst [vmem:[#allocation75_spill] sm:$0xff] %v7351_v40 }
 0x28a   : > { %v7361_v7 = vpop.permute.xlu0 %2894 }
 0x28b   : > { %9880 = vst [vmem:[#allocation76_spill] sm:$0xff] %v7361_v7 }
 0x28c   : > { %4405 = vperm.xlu1 %5486, %v3855_v60   ;;  %4400 = vperm.xlu0 %5485, %v3854_v52   ;;  %v7359_v47 = vpop.permute.xlu1 %2924  ;;  %v3862_v60 = vld [vmem:[%s6733_s22 + $0x380] sm:$0xff]  ;;  %v3856_v52 = vld [vmem:[%s6733_s22 + $0x350] sm:$0xff] }
 0x28d   : > { %9879 = vst [vmem:[#allocation77_spill] sm:$0xff] %v7359_v47 }
 0x28e   : > { %v7367_v6 = vpop.permute.xlu0 %2929 }
 0x28f   : > { %9882 = vst [vmem:[#allocation78_spill] sm:$0xff] %v7367_v6 }
 0x290   : > { %4125 = vperm.xlu1 %5486, %v3799_v23   ;;  %4120 = vperm.xlu0 %5485, %v3798_v32   ;;  %v7365_v12 = vpop.permute.xlu1 %2914  ;;  %v3800_v23 = vld [vmem:[%s6733_s22 + $0x190] sm:$0xff]  ;;  %v3863_v32 = vld [vmem:[%s6733_s22 + $0x388] sm:$0xff] }
 0x291   : > { %9881 = vst [vmem:[#allocation79_spill] sm:$0xff] %v7365_v12  ;;  %v9923_v12 = vld [vmem:[#allocation90_spill] sm:$0xff] }
 0x294   : > { %4230 = vperm.xlu1 %5486, %v3820_v14   ;;  %4210 = vperm.xlu0 %5485, %v3816_v31   ;;  %v7373_v14 = vpop.permute.xlu1 %2949  ;;  %v7375_v31 = vpop.permute.xlu0 %2944 }
 0x295   : > { %9883 = vst [vmem:[#allocation81_spill] sm:$0xff] %v7373_v14  ;;  %9884 = vst [vmem:[#allocation80_spill] sm:$0xff] %v7375_v31 }
 0x298   : > { %4265 = vperm.xlu1 %5486, %v3827_v1   ;;  %4260 = vperm.xlu0 %5485, %v3826_v63   ;;  %v3807_v1 = vld [vmem:[%s6733_s22 + $0x1c8] sm:$0xff]  ;;  %v3806_v63 = vld [vmem:[%s6733_s22 + $0x1c0] sm:$0xff] }
 0x29c   : > { %4390 = vperm.xlu1 %5486, %v3852_v48   ;;  %4370 = vperm.xlu0 %5485, %v3848_v22   ;;  %v7379_v48 = vpop.permute.xlu1 %2934  ;;  %v7381_v22 = vpop.permute.xlu0 %2899 }
 0x29d   : > { %9885 = vst [vmem:[#allocation83_spill] sm:$0xff] %v7379_v48  ;;  %9886 = vst [vmem:[#allocation82_spill] sm:$0xff] %v7381_v22 }
 0x2a0   : > { %4425 = vperm.xlu1 %5486, %v3859_v26   ;;  %4420 = vperm.xlu0 %5485, %v3858_v58   ;;  %v3821_v26 = vld [vmem:[%s6733_s22 + $0x238] sm:$0xff] }
 0x2a1   : > { %v3817_v58 = vld [vmem:[%s6733_s22 + $0x218] sm:$0xff] }
 0x2a4   : > { %4140 = vperm.xlu1 %5486, %v3802_v51   ;;  %4110 = vperm.xlu0 %5485, %v3796_v33   ;;  %v3834_v51 = vld [vmem:[%s6733_s22 + $0x2a0] sm:$0xff]  ;;  %v3828_v33 = vld [vmem:[%s6733_s22 + $0x270] sm:$0xff] }
 0x2a8   : > { %4250 = vperm.xlu1 %5486, %v3824_v34   ;;  %4145 = vperm.xlu0 %5485, %v3803_v20   ;;  %v7387_v34 = vpop.permute.xlu1 %2969  ;;  %v7389_v20 = vpop.permute.xlu0 %2964 }
 0x2a9   : > { %9887 = vst [vmem:[#allocation114_spill] sm:$0xff] %v7387_v34  ;;  %9888 = vst [vmem:[#allocation24_spill] sm:$0xff] %v7389_v20  ;;  %v3864_v34 = vld [vmem:[%s6733_s22 + $0x390] sm:$0xff] }
 0x2ac   : > { %4285 = vperm.xlu1 %5486, %v3831_v61   ;;  %4280 = vperm.xlu0 %5485, %v3830_v24   ;;  %v3849_v61 = vld [vmem:[%s6733_s22 + $0x318] sm:$0xff]  ;;  %v3835_v24 = vld [vmem:[%s6733_s22 + $0x2a8] sm:$0xff] }
 0x2b0   : > { %4440 = vperm.xlu1 %5486, %v3862_v60   ;;  %4410 = vperm.xlu0 %5485, %v3856_v52   ;;  %v7393_v60 = vpop.permute.xlu1 %2954  ;;  %v7395_v52 = vpop.permute.xlu0 %2919 }
 0x2b1   : > { %9889 = vst [vmem:[#allocation27_spill] sm:$0xff] %v7393_v60  ;;  %9890 = vst [vmem:[#allocation26_spill] sm:$0xff] %v7395_v52 }
 0x2b4   : > { %4130 = vperm.xlu1 %5486, %v3800_v23   ;;  %4445 = vperm.xlu0 %5485, %v3863_v32   ;;  %v3860_v23 = vld [vmem:[%s6733_s22 + $0x370] sm:$0xff]  ;;  %v3853_v32 = vld [vmem:[%s6733_s22 + $0x338] sm:$0xff] }
 0x2b8   : > { %4165 = vperm.xlu1 %5486, %v3807_v1   ;;  %4160 = vperm.xlu0 %5485, %v3806_v63   ;;  %v3867_v1 = vld [vmem:[%s6733_s22 + $0x3a8] sm:$0xff]  ;;  %v3866_v63 = vld [vmem:[%s6733_s22 + $0x3a0] sm:$0xff] }
 0x2bc   : > { %4235 = vperm.xlu1 %5486, %v3821_v26   ;;  %4215 = vperm.xlu0 %5485, %v3817_v58   ;;  %v7401_v26 = vpop.permute.xlu1 %2974  ;;  %v7403_v58 = vpop.permute.xlu0 %2939 }
 0x2bd   : > { %9891 = vst [vmem:[#allocation29_spill] sm:$0xff] %v7401_v26  ;;  %9892 = vst [vmem:[#allocation28_spill] sm:$0xff] %v7403_v58 }
 0x2c0   : > { %4300 = vperm.xlu1 %5486, %v3834_v51   ;;  %4270 = vperm.xlu0 %5485, %v3828_v33   ;;  %v3804_v51 = vld [vmem:[%s6733_s22 + $0x1b0] sm:$0xff]  ;;  %v3797_v33 = vld [vmem:[%s6733_s22 + $0x178] sm:$0xff] }
 0x2c4   : > { %4375 = vperm.xlu1 %5486, %v3849_v61   ;;  %4305 = vperm.xlu0 %5485, %v3835_v24   ;;  %v5495_v61 = vld [vmem:[%s9494_s7 + $0x20] sm:$0xff]  }
 0x2c5   : > { %v5496_v24 = vld [vmem:[%s9493_s6 + $0x20] sm:$0xff]   ;;  %5459 = vmatprep.subr.bf16.mxu0 %v5495_v61 }
 0x2c6   : > { %5451 = vmatprep.subr.bf16.mxu1 %v5496_v24  ;;  %5460 = vmatpush3.bf16.msra.mxu0 %v5495_v61  ;;  %v3839_v61 = vld [vmem:[%s6733_s22 + $0x2c8] sm:$0xff] }
 0x2c7   : > { %5452 = vmatpush3.bf16.msra.mxu1 %v5496_v24  ;;  %v3838_v24 = vld [vmem:[%s6733_s22 + $0x2c0] sm:$0xff] }
 0x2c8   : > { %4430 = vperm.xlu1 %5486, %v3860_v23   ;;  %4395 = vperm.xlu0 %5485, %v3853_v32   ;;  %v7413_v23 = vpop.permute.xlu1 %2979  ;;  %v7415_v32 = vpop.permute.xlu0 %2959 }
 0x2c9   : > { %9893 = vst [vmem:[#allocation33_spill] sm:$0xff] %v7413_v23  ;;  %9894 = vst [vmem:[#allocation2_spill] sm:$0xff] %v7415_v32  ;;  %5453 = vmatprep.subr.bf16.mxu1 %v5498_v11 }
 0x2cb   : > { %5454 = vmatpush3.bf16.msra.mxu1 %v5498_v11  ;;  %v3870_v11 = vld [vmem:[%s6733_s22 + $0x3c0] sm:$0xff] }
 0x2cc   : > { %4465 = vperm.xlu1 %5486, %v3867_v1   ;;  %4460 = vperm.xlu0 %5485, %v3866_v63   ;;  %v5497_v1 = vld [vmem:[%s9494_s7 + $0x28] sm:$0xff]   ;;  %v7427_v23 = vpop.permute.xlu1 %3885  ;;  %v7429_v26 = vpop.permute.xlu0 %3880 }
 0x2cd   : > { %v3811_v63 = vld [vmem:[%s6733_s22 + $0x1e8] sm:$0xff]  ;;  %5461 = vmatprep.subr.bf16.mxu0 %v5497_v1  ;;  %9895 = vst [vmem:[#allocation32_spill] sm:$0xff] %v7427_v23  ;;  %9896 = vst [vmem:[#allocation35_spill] sm:$0xff] %v7429_v26  ;;  %v3857_v23 = vld [vmem:[%s6733_s22 + $0x358] sm:$0xff] }
 0x2ce   : > { %5462 = vmatpush3.bf16.msra.mxu0 %v5497_v1  ;;  %v3871_v1 = vld [vmem:[%s6733_s22 + $0x3c8] sm:$0xff] }
 0x2cf   : > { %v3843_v26 = vld [vmem:[%s6733_s22 + $0x2e8] sm:$0xff] }
 0x2d0   : > { %4150 = vperm.xlu1 %5486, %v3804_v51   ;;  %4115 = vperm.xlu0 %5485, %v3797_v33   ;;  %v3832_v51 = vld [vmem:[%s6733_s22 + $0x290] sm:$0xff]  ;;  %v3825_v33 = vld [vmem:[%s6733_s22 + $0x258] sm:$0xff] }
 0x2d4   : > { %4185 = vperm.xlu1 %5486, %v3811_v63   ;;  %4180 = vperm.xlu0 %5485, %v3810_v57   ;;  %v7433_v63 = vpop.permute.xlu1 %3895  ;;  %v7435_v57 = vpop.permute.xlu0 %3890 }
 0x2d5   : > { %9897 = vst [vmem:[#allocation34_spill] sm:$0xff] %v7433_v63  ;;  %9898 = vst [vmem:[#allocation112_spill] sm:$0xff] %v7435_v57  ;;  %v3808_v63 = vld [vmem:[%s6733_s22 + $0x1d0] sm:$0xff] }
 0x2d8   : > { %4290 = vperm.xlu1 %5486, %v3832_v51   ;;  %4255 = vperm.xlu0 %5485, %v3825_v33   ;;  %v7441_v51 = vpop.permute.xlu1 %3905  ;;  %v7443_v33 = vpop.permute.xlu0 %3900 }
 0x2d9   : > { %9899 = vst [vmem:[#allocation115_spill] sm:$0xff] %v7441_v51  ;;  %9900 = vst [vmem:[#allocation3_spill] sm:$0xff] %v7443_v33  ;;  %v3842_v51 = vld [vmem:[%s6733_s22 + $0x2e0] sm:$0xff]  ;;  %v3861_v33 = vld [vmem:[%s6733_s22 + $0x378] sm:$0xff] }
 0x2dc   : > { %4325 = vperm.xlu1 %5486, %v3839_v61   ;;  %4320 = vperm.xlu0 %5485, %v3838_v24   ;;  %v3801_v61 = vld [vmem:[%s6733_s22 + $0x198] sm:$0xff]  ;;  %v7447_v24 = vpop.permute.xlu1 %3915  ;;  %v7449_v57 = vpop.permute.xlu0 %3910 }
 0x2dd   : > { %9901 = vst [vmem:[#allocation4_spill] sm:$0xff] %v7447_v24  ;;  %9902 = vst [vmem:[#allocation141_spill] sm:$0xff] %v7449_v57  ;;  %v9914_v57 = vld [vmem:[#allocation91_spill] sm:$0xff] }
 0x2e0   : > { %4450 = vperm.xlu1 %5486, %v3864_v34   ;;  %4415 = vperm.xlu0 %5485, %v3857_v23   ;;  %v3836_v34 = vld [vmem:[%s6733_s22 + $0x2b0] sm:$0xff]  ;;  %v3829_v23 = vld [vmem:[%s6733_s22 + $0x278] sm:$0xff]  ;;  %v7455_v20 = vpop.permute.xlu1 %3925 }
 0x2e1   : > { %9903 = vst [vmem:[#allocation142_spill] sm:$0xff] %v7455_v20 }
 0x2e4   : > { %4485 = vperm.xlu1 %5486, %v3871_v1   ;;  %4480 = vperm.xlu0 %5485, %v3870_v11   ;;  %v7457_v1 = vpop.permute.xlu0 %3920  ;;  %v3868_v11 = vld [vmem:[%s6733_s22 + $0x3b0] sm:$0xff]  ;;  %v7461_v32 = vpop.permute.xlu1 %3935 }
 0x2e5   : > { %9904 = vst [vmem:[#allocation143_spill] sm:$0xff] %v7457_v1  ;;  %9905 = vst [vmem:[#allocation144_spill] sm:$0xff] %v7461_v32  ;;  %v9913_v1 = vld [vmem:[#allocation87_spill] sm:$0xff] }
 0x2e8   : > { %4170 = vperm.xlu1 %5486, %v3808_v63   ;;  %4135 = vperm.xlu0 %5485, %v3801_v61   ;;  %v7463_v24 = vpop.permute.xlu0 %3930  ;;  %v7468_v63 = vld [vmem:[%s9495_s8 + $0x1] ss:$0 sm:$0xff] }
 0x2e9   : > { %9906 = vst [vmem:[#allocation145_spill] sm:$0xff] %v7463_v24  ;;  %9907 = vst [vmem:[#allocation146_spill] sm:$0xff] %v7468_v63 }
 0x2ec   : > { %4310 = vperm.xlu1 %5486, %v3836_v34   ;;  %4275 = vperm.xlu0 %5485, %v3829_v23  }
 0x2f0   : > { %4345 = vperm.xlu1 %5486, %v3843_v26   ;;  %4340 = vperm.xlu0 %5485, %v3842_v51  }
 0x2f4   : > { %4470 = vperm.xlu1 %5486, %v3868_v11   ;;  %4435 = vperm.xlu0 %5485, %v3861_v33   ;;  %v9912_v33 = vld [vmem:[#allocation85_spill] sm:$0xff] }
 0x346   : > { %v5441_v61 = vpop.f32.mrb[4].mxu1  ;;  %v7470_v34 = vpop.f32.mrb[8].mxu0 }
 0x347   : > { %9908 = vst [vmem:[#allocation147_spill] sm:$0xff] %v7470_v34  ;;  %v7473_v23 = vadd.f32 %v5441_v61, %v7468_v63  ;;  %v7475_v26 = vpop.f32.mrb[5].mxu1  ;;  %v7477_v51 = vpop.f32.mrb[9].mxu0  ;;  %v7487_v24 = vadd.f32 %v7470_v34, %v9913_v1  ;;  %v7491_v60 = vadd.f32 %v7470_v34, %v9914_v57  ;;  %v9915_v61 = vld [vmem:[#allocation95_spill] sm:$0xff]  ;;  %v9919_v1 = vld [vmem:[#allocation89_spill] sm:$0xff] }
 0x348   : > { %9910 = vst [vmem:[#allocation149_spill] sm:$0xff] %v7475_v26  ;;  %9911 = vst [vmem:[#allocation150_spill] sm:$0xff] %v7477_v51  ;;  %v5442_v20 = vpop.f32.mrb[6].mxu1  ;;  %v7479_v32 = vpop.f32.mrb[10].mxu0  ;;  %v7483_v11 = vadd.f32 %v9912_v33, %v7477_v51  ;;  %v9918_v33 = vld [vmem:[#allocation86_spill] sm:$0xff]  ;;  %v7508_v6 = vadd.f32 %v9919_v1, %v7477_v51  ;;  %v9920_v57 = vld [vmem:[#allocation93_spill] sm:$0xff] }
 0x349   : > { %9909 = vst [vmem:[#allocation148_spill] sm:$0xff] %v7473_v23  ;;  %v7495_v23 = vadd.f32 %v7470_v34, %v9915_v61  ;;  %v7498_v14 = vadd.f32 %v5442_v20, %v7468_v63  ;;  %v7500_v31 = vpop.f32.mrb[7].mxu1  ;;  %v7502_v58 = vpop.f32.mrb[11].mxu0  ;;  %v2985_v48 = vadd.f32 %v7479_v32, %v9918_v33  ;;  %v7512_v47 = vadd.f32 %v9920_v57, %v7477_v51  ;;  %v9921_v61 = vld [vmem:[#allocation84_spill] sm:$0xff]  ;;  %v9926_v57 = vld [vmem:[#allocation97_spill] sm:$0xff]  ;;  %v9973_v26 = vld [vmem:[#allocation7_spill] sm:$0xff] }
 0x34a   : > { %9917 = vst [vmem:[#allocation87_spill] sm:$0xff] %v7500_v31  ;;  %v2983_v52 = vadd.f32 %v9921_v61, %v7502_v58  ;;  %v9922_v20 = vld [vmem:[#allocation88_spill] sm:$0xff]  ;;  %v7520_v40 = vadd.f32 %v7479_v32, %v9923_v12  ;;  %v7524_v33 = vadd.f32 %v7479_v32, %v9924_v18  ;;  %v7532_v7 = vadd.f32 %v9926_v57, %v7477_v51  ;;  %v9969_v31 = vld [vmem:[#allocation126_spill] sm:$0xff]  ;;  %v9971_v63 = vld [vmem:[#allocation125_spill] sm:$0xff] }
 0x34b   : > { %9916 = vst [vmem:[#allocation85_spill] sm:$0xff] %v7498_v14  ;;  %v2987_v14 = vadd.f32 %v9922_v20, %v7502_v58  ;;  %v9925_v1 = vld [vmem:[#allocation92_spill] sm:$0xff]  ;;  %v9928_v20 = vld [vmem:[#allocation99_spill] sm:$0xff]  ;;  %v7544_v18 = vadd.f32 %v7479_v32, %v9929_v13  ;;  %v7552_v57 = vadd.f32 %v9931_v43, %v7502_v58  ;;  %v7564_v13 = vadd.f32 %v9934_v4, %v7477_v51 }
 0x34c   : > { %v7528_v22 = vadd.f32 %v9925_v1, %v7502_v58  ;;  %v9927_v61 = vld [vmem:[#allocation96_spill] sm:$0xff]  ;;  %v7540_v12 = vadd.f32 %v7470_v34, %v9928_v20  ;;  %v7548_v1 = vadd.f32 %v9930_v35, %v7477_v51  ;;  %v7560_v20 = vadd.f32 %v7479_v32, %v9933_v54 }
 0x34d   : > { %v7536_v56 = vadd.f32 %v9927_v61, %v7502_v58  ;;  %v7556_v61 = vadd.f32 %v7470_v34, %v9932_v49  ;;  %v7568_v35 = vadd.f32 %v9935_v9, %v7502_v58  ;;  %v7572_v43 = vadd.f32 %v7470_v34, %v9936_v0 }
 0x34e   : > { %v7576_v49 = vadd.f32 %v7479_v32, %v9937_v19  ;;  %v7580_v54 = vadd.f32 %v9938_v17, %v7477_v51  ;;  %v7584_v4 = vadd.f32 %v9939_v30, %v7502_v58  ;;  %v7588_v9 = vadd.f32 %v7470_v34, %v9940_v5 }
 0x34f   : > { %v7592_v0 = vadd.f32 %v7479_v32, %v9941_v39  ;;  %v7596_v19 = vadd.f32 %v9942_v41, %v7477_v51  ;;  %v7600_v17 = vadd.f32 %v9943_v59, %v7502_v58  ;;  %v7604_v30 = vadd.f32 %v7470_v34, %v9944_v21 }
 0x350   : > { %v7608_v5 = vadd.f32 %v7479_v32, %v9945_v2  ;;  %v7612_v39 = vadd.f32 %v9946_v53, %v7477_v51  ;;  %v7616_v41 = vadd.f32 %v9947_v16, %v7502_v58  ;;  %v7620_v59 = vadd.f32 %v7470_v34, %v9948_v8 }
 0x351   : > { %v7624_v21 = vadd.f32 %v7479_v32, %v9949_v50  ;;  %v7628_v2 = vadd.f32 %v9950_v42, %v7477_v51  ;;  %v7632_v53 = vadd.f32 %v9951_v25, %v7502_v58  ;;  %v7636_v16 = vadd.f32 %v7470_v34, %v9952_v62 }
 0x352   : > { %v7640_v8 = vadd.f32 %v7479_v32, %v9953_v55  ;;  %v7644_v50 = vadd.f32 %v9954_v3, %v7477_v51  ;;  %v7648_v42 = vadd.f32 %v9955_v28, %v7502_v58  ;;  %v7652_v25 = vadd.f32 %v7470_v34, %v9956_v29 }
 0x353   : > { %v7656_v62 = vadd.f32 %v7479_v32, %v9957_v15  ;;  %v7660_v55 = vadd.f32 %v9958_v38, %v7477_v51  ;;  %v7664_v3 = vadd.f32 %v9959_v46, %v7502_v58  ;;  %v7668_v28 = vadd.f32 %v7470_v34, %v9960_v10 }
 0x354   : > { %v7672_v29 = vadd.f32 %v7479_v32, %v9961_v36  ;;  %v7676_v15 = vadd.f32 %v9962_v44, %v7477_v51  ;;  %v7680_v38 = vadd.f32 %v9963_v27, %v7502_v58  ;;  %v7684_v46 = vadd.f32 %v7470_v34, %v9965_v37 }
 0x355   : > { %v7688_v10 = vadd.f32 %v7479_v32, %v9967_v45  ;;  %v7692_v36 = vadd.f32 %v9969_v31, %v7477_v51  ;;  %v7696_v44 = vadd.f32 %v9971_v63, %v7502_v58  ;;  %v7700_v27 = vadd.f32 %v7470_v34, %v9973_v26 }
 0x356   : > { %9964 = vst [vmem:[#allocation91_spill] sm:$0xff] %v7680_v38  ;;  %9966 = vst [vmem:[#allocation95_spill] sm:$0xff] %v7684_v46  ;;  %v9975_v38 = vld [vmem:[#allocation128_spill] sm:$0xff]  ;;  %v9977_v46 = vld [vmem:[#allocation9_spill] sm:$0xff] }
 0x357   : > { %9968 = vst [vmem:[#allocation86_spill] sm:$0xff] %v7688_v10  ;;  %9970 = vst [vmem:[#allocation89_spill] sm:$0xff] %v7692_v36  ;;  %v7704_v37 = vadd.f32 %v7479_v32, %v9975_v38  ;;  %v7708_v45 = vadd.f32 %v9977_v46, %v7477_v51  ;;  %v9979_v10 = vld [vmem:[#allocation6_spill] sm:$0xff]  ;;  %v9980_v36 = vld [vmem:[#allocation11_spill] sm:$0xff] }
 0x358   : > { %9972 = vst [vmem:[#allocation93_spill] sm:$0xff] %v7696_v44  ;;  %9974 = vst [vmem:[#allocation84_spill] sm:$0xff] %v7700_v27  ;;  %v7712_v31 = vadd.f32 %v9979_v10, %v7502_v58  ;;  %v7716_v63 = vadd.f32 %v7470_v34, %v9980_v36  ;;  %v9982_v44 = vld [vmem:[#allocation8_spill] sm:$0xff]  ;;  %v9984_v27 = vld [vmem:[#allocation13_spill] sm:$0xff]  ;;  %v3110_v36 = vsel %vm550_vm3, %v7483_v11, -inf  ;;  %v3128_v11 = vsel %vm550_vm3, %v7520_v40, -inf }
 0x359   : > { %9976 = vst [vmem:[#allocation88_spill] sm:$0xff] %v7704_v37  ;;  %9978 = vst [vmem:[#allocation90_spill] sm:$0xff] %v7708_v45  ;;  %v7720_v26 = vadd.f32 %v7479_v32, %v9982_v44  ;;  %v7724_v38 = vadd.f32 %v9984_v27, %v7477_v51  ;;  %v9985_v37 = vld [vmem:[#allocation10_spill] sm:$0xff]  ;;  %v9986_v45 = vld [vmem:[#allocation15_spill] sm:$0xff]  ;;  %v3113_v44 = vsel %vm550_vm3, %v7487_v24, -inf  ;;  %v3123_v51 = vsel %vm550_vm3, %v7508_v6, -inf }
 0x35a   : > { %9981 = vst [vmem:[#allocation94_spill] sm:$0xff] %v7716_v63  ;;  %v7728_v46 = vadd.f32 %v9985_v37, %v7502_v58  ;;  %v7732_v10 = vadd.f32 %v7470_v34, %v9986_v45  ;;  %v3111_v63 = vsel %vm550_vm3, %v2983_v52, -inf  ;;  %v3124_v37 = vsel %vm550_vm3, %v2987_v14, -inf }
 0x35b   : > { %9983 = vst [vmem:[#allocation92_spill] sm:$0xff] %v7720_v26  ;;  %v3115_v26 = vsel %vm550_vm3, %v2985_v48, -inf  ;;  %v3112_v27 = vmax.f32 %v3110_v36, %v3111_v63  ;;  %v3126_v45 = vsel %vm550_vm3, %v7491_v60, -inf  ;;  %v3125_v34 = vmax.f32 %v3123_v51, %v3124_v37  ;;  %v7751_v48 = vpop.permute.xlu1 %3945  ;;  %v7757_v60 = vpop.permute.xlu0 %3940 }
 0x35c   : > { %v3136_v52 = vsel %vm550_vm3, %v7512_v47, -inf  ;;  %v3137_v24 = vsel %vm550_vm3, %v7528_v22, -inf  ;;  %9987 = vst [vmem:[#allocation97_spill] sm:$0xff] %v7751_v48  ;;  %v3139_v6 = vsel %vm550_vm3, %v7495_v23, -inf  ;;  %v3141_v14 = vsel %vm550_vm3, %v7524_v33, -inf  ;;  %9988 = vst [vmem:[#allocation96_spill] sm:$0xff] %v7757_v60 }
 0x35d   : > { %v3114_v63 = vmax.f32 %v3112_v27, %v3113_v44  ;;  %v3138_v36 = vmax.f32 %v3136_v52, %v3137_v24  ;;  %v3127_v51 = vmax.f32 %v3125_v34, %v3126_v45  ;;  %v3149_v40 = vsel %vm550_vm3, %v7532_v7, -inf  ;;  %v10081_v48 = vld [vmem:[#allocation78_spill] sm:$0xff]  ;;  %v10083_v60 = vld [vmem:[#allocation83_spill] sm:$0xff] }
 0x35e   : > { %v3150_v47 = vsel %vm550_vm3, %v7536_v56, -inf  ;;  %v3152_v22 = vsel %vm550_vm3, %v7540_v12, -inf  ;;  %v3154_v23 = vsel %vm550_vm3, %v7544_v18, -inf  ;;  %v3162_v33 = vsel %vm550_vm3, %v7548_v1, -inf }
 0x35f   : > { %v3116_v44 = vmax.f32 %v3114_v63, %v3115_v26  ;;  %v3140_v27 = vmax.f32 %v3138_v36, %v3139_v6  ;;  %v3151_v37 = vmax.f32 %v3149_v40, %v3150_v47  ;;  %v3129_v52 = vmax.f32 %v3127_v51, %v3128_v11  ;;  %v7779_v11 = vpop.permute.xlu1 %3955  ;;  %v7781_v51 = vpop.permute.xlu0 %3950 }
 0x360   : > { %v3163_v34 = vsel %vm550_vm3, %v7552_v57, -inf  ;;  %v3165_v7 = vsel %vm550_vm3, %v7556_v61, -inf  ;;  %v3167_v63 = vsel %vm550_vm3, %v7560_v20, -inf  ;;  %v3175_v18 = vsel %vm550_vm3, %v7564_v13, -inf  ;;  %9989 = vst [vmem:[#allocation99_spill] sm:$0xff] %v7779_v11  ;;  %9990 = vst [vmem:[#allocation98_spill] sm:$0xff] %v7781_v51 }
 0x361   : > { %v3117_v56 = vrot.slane %v3116_v44, 4  ;;  %v3142_v45 = vmax.f32 %v3140_v27, %v3141_v14  ;;  %v3153_v24 = vmax.f32 %v3151_v37, %v3152_v22  ;;  %v3164_v12 = vmax.f32 %v3162_v33, %v3163_v34  ;;  %v10078_v11 = vld [vmem:[#allocation26_spill] sm:$0xff]  ;;  %v10080_v51 = vld [vmem:[#allocation77_spill] sm:$0xff] }
 0x362   : > { %v3130_v26 = vrot.slane %v3129_v52, 4  ;;  %v3176_v1 = vsel %vm550_vm3, %v7568_v35, -inf  ;;  %v3178_v47 = vsel %vm550_vm3, %v7572_v43, -inf  ;;  %v3180_v20 = vsel %vm550_vm3, %v7576_v49, -inf }
 0x363   : > { %v3118_v57 = vmax.f32 %v3116_v44, %v3117_v56  ;;  %v3143_v36 = vrot.slane %v3142_v45, 4  ;;  %v3155_v6 = vmax.f32 %v3153_v24, %v3154_v23  ;;  %v3166_v61 = vmax.f32 %v3164_v12, %v3165_v7 }
 0x364   : > { %v3131_v14 = vmax.f32 %v3129_v52, %v3130_v26  ;;  %v3177_v40 = vmax.f32 %v3175_v18, %v3176_v1  ;;  %v3188_v44 = vsel %vm550_vm3, %v7580_v54, -inf  ;;  %v3189_v23 = vsel %vm550_vm3, %v7584_v4, -inf  ;;  %v7795_v1 = vpop.permute.xlu0 %3960  ;;  %v9993_v4 = vld [vmem:[#allocation12_spill] sm:$0xff] }
 0x365   : > { %v3119_v13 = vrot.slane %v3118_v57, 2  ;;  %v3144_v22 = vmax.f32 %v3142_v45, %v3143_v36  ;;  %v3156_v27 = vrot.slane %v3155_v6, 4  ;;  %v3168_v35 = vmax.f32 %v3166_v61, %v3167_v63  ;;  %v7793_v45 = vpop.permute.xlu1 %3965  ;;  %9992 = vst [vmem:[#allocation100_spill] sm:$0xff] %v7795_v1 }
 0x366   : > { %v3132_v37 = vrot.slane %v3131_v14, 2  ;;  %v3179_v33 = vmax.f32 %v3177_v40, %v3178_v47  ;;  %v3190_v12 = vmax.f32 %v3188_v44, %v3189_v23  ;;  %v3191_v49 = vsel %vm550_vm3, %v7588_v9, -inf  ;;  %9991 = vst [vmem:[#allocation101_spill] sm:$0xff] %v7793_v45 }
 0x367   : > { %v3120_v52 = vmax.f32 %v3118_v57, %v3119_v13  ;;  %v3145_v34 = vrot.slane %v3144_v22, 2  ;;  %v3157_v7 = vmax.f32 %v3155_v6, %v3156_v27  ;;  %v3169_v56 = vrot.slane %v3168_v35, 4 }
 0x368   : > { %v3133_v43 = vmax.f32 %v3131_v14, %v3132_v37  ;;  %v3181_v24 = vmax.f32 %v3179_v33, %v3180_v20  ;;  %v7799_v57 = vadd.f32 %v7479_v32, %v9993_v4  ;;  %v3192_v61 = vmax.f32 %v3190_v12, %v3191_v49  ;;  %v3874_v37 = vld [vmem:[%s6733_s22 + $0x3e0] sm:$0xff] }
 0x369   : > { %v3121_v26 = vrot.slane %v3120_v52, 1  ;;  %v3146_v63 = vmax.f32 %v3144_v22, %v3145_v34  ;;  %v3158_v18 = vrot.slane %v3157_v7, 2  ;;  %v3170_v54 = vmax.f32 %v3168_v35, %v3169_v56  ;;  %v3875_v35 = vld [vmem:[%s6733_s22 + $0x3e8] sm:$0xff]  ;;  %4500 = vperm.xlu0 %5485, %v3874_v37   ;;  %v7817_v12 = vpop.permute.xlu1 %3975 }
 0x36a   : > { %v3134_v36 = vrot.slane %v3133_v43, 1  ;;  %v3182_v6 = vrot.slane %v3181_v24, 4  ;;  %v3193_v47 = vsel %vm550_vm3, %v7592_v0, -inf  ;;  %v3201_v23 = vsel %vm550_vm3, %v7596_v19, -inf  ;;  %4505 = vperm.xlu1 %5486, %v3875_v35   ;;  %9994 = vst [vmem:[#allocation103_spill] sm:$0xff] %v7817_v12 }
 0x36b   : > { %v3147_v14 = vrot.slane %v3146_v63, 1  ;;  %v3159_v40 = vmax.f32 %v3157_v7, %v3158_v18  ;;  %v3171_v9 = vrot.slane %v3170_v54, 2  ;;  %v7803_v20 = vmax.f32 %v3120_v52, %v3121_v26  ;;  %v7825_v18 = vpop.permute.xlu0 %3970 }
 0x36c   : > { %v7805_v13 = vmax.f32 %v3133_v43, %v3134_v36  ;;  %v3183_v22 = vmax.f32 %v3181_v24, %v3182_v6  ;;  %v3194_v27 = vmax.f32 %v3192_v61, %v3193_v47  ;;  %v3202_v34 = vsel %vm550_vm3, %v7600_v17, -inf  ;;  %v3812_v43 = vld [vmem:[%s6733_s22 + $0x1f0] sm:$0xff]  ;;  %v3805_v24 = vld [vmem:[%s6733_s22 + $0x1b8] sm:$0xff]  ;;  %9995 = vst [vmem:[#allocation102_spill] sm:$0xff] %v7825_v18 }
 0x36d   : > { %v3160_v33 = vrot.slane %v3159_v40, 1  ;;  %v3172_v44 = vmax.f32 %v3170_v54, %v3171_v9  ;;  %v7813_v0 = vmax.f32 %v3146_v63, %v3147_v14  ;;  %v3203_v56 = vmax.f32 %v3201_v23, %v3202_v34  ;;  %4155 = vperm.xlu0 %5485, %v3805_v24   ;;  %v7847_v23 = vpop.permute.xlu1 %3985 }
 0x36e   : > { %v3184_v52 = vrot.slane %v3183_v22, 2  ;;  %v3195_v7 = vrot.slane %v3194_v27, 4  ;;  %v3204_v19 = vsel %vm550_vm3, %v7604_v30, -inf  ;;  %v3214_v17 = vsel %vm550_vm3, %v7612_v39, -inf  ;;  %4190 = vperm.xlu1 %5486, %v3812_v43   ;;  %9996 = vst [vmem:[#allocation105_spill] sm:$0xff] %v7847_v23  ;;  %v10068_v23 = vld [vmem:[#allocation71_spill] sm:$0xff] }
 0x36f   : > { %v7819_v49 = vmax.f32 %v3159_v40, %v3160_v33  ;;  %v3173_v26 = vrot.slane %v3172_v44, 1  ;;  %v3205_v4 = vmax.f32 %v3203_v56, %v3204_v19  ;;  %v3215_v36 = vsel %vm550_vm3, %v7616_v41, -inf }
 0x370   : > { %v3185_v63 = vmax.f32 %v3183_v22, %v3184_v52  ;;  %v3196_v54 = vmax.f32 %v3194_v27, %v3195_v7  ;;  %v3206_v61 = vsel %vm550_vm3, %v7608_v5, -inf  ;;  %v3216_v14 = vmax.f32 %v3214_v17, %v3215_v36  ;;  %v3840_v22 = vld [vmem:[%s6733_s22 + $0x2d0] sm:$0xff]  ;;  %v3833_v27 = vld [vmem:[%s6733_s22 + $0x298] sm:$0xff] }
 0x371   : > { %v7829_v6 = vmax.f32 %v3172_v44, %v3173_v26  ;;  %v3217_v30 = vsel %vm550_vm3, %v7620_v59, -inf  ;;  %v3207_v9 = vmax.f32 %v3205_v4, %v3206_v61  ;;  %v3219_v47 = vsel %vm550_vm3, %v7624_v21, -inf  ;;  %4295 = vperm.xlu0 %5485, %v3833_v27   ;;  %v3865_v26 = vld [vmem:[%s6733_s22 + $0x398] sm:$0xff] }
 0x372   : > { %v3186_v39 = vrot.slane %v3185_v63, 1  ;;  %v3197_v40 = vrot.slane %v3196_v54, 2  ;;  %v3218_v41 = vmax.f32 %v3216_v14, %v3217_v30  ;;  %v3227_v35 = vsel %vm550_vm3, %v7628_v2, -inf  ;;  %4330 = vperm.xlu1 %5486, %v3840_v22   ;;  %v7875_v22 = vpop.permute.xlu1 %3995 }
 0x373   : > { %v3228_v5 = vsel %vm550_vm3, %v7632_v53, -inf  ;;  %v3230_v59 = vsel %vm550_vm3, %v7636_v16, -inf  ;;  %v3208_v33 = vrot.slane %v3207_v9, 4  ;;  %v3232_v21 = vsel %vm550_vm3, %v7640_v8, -inf  ;;  %v7855_v16 = vpop.permute.xlu0 %3980  ;;  %v3872_v8 = vld [vmem:[%s6733_s22 + $0x3d0] sm:$0xff]  ;;  %9998 = vst [vmem:[#allocation107_spill] sm:$0xff] %v7875_v22 }
 0x374   : > { %v3198_v37 = vmax.f32 %v3196_v54, %v3197_v40  ;;  %v3229_v44 = vmax.f32 %v3227_v35, %v3228_v5  ;;  %v7849_v34 = vmax.f32 %v3185_v63, %v3186_v39  ;;  %v3220_v52 = vmax.f32 %v3218_v41, %v3219_v47  ;;  %9997 = vst [vmem:[#allocation104_spill] sm:$0xff] %v7855_v16  ;;  %v3809_v47 = vld [vmem:[%s6733_s22 + $0x1d8] sm:$0xff]  ;;  %v9999_v35 = vld [vmem:[#allocation91_spill] sm:$0xff] }
 0x375   : > { %v3240_v2 = vsel %vm550_vm3, %v7644_v50, -inf  ;;  %v3241_v53 = vsel %vm550_vm3, %v7648_v42, -inf  ;;  %v3209_v56 = vmax.f32 %v3207_v9, %v3208_v33  ;;  %v3243_v17 = vsel %vm550_vm3, %v7652_v25, -inf  ;;  %4455 = vperm.xlu0 %5485, %v3865_v26   ;;  %v3837_v9 = vld [vmem:[%s6733_s22 + $0x2b8] sm:$0xff] }
 0x376   : > { %v3199_v7 = vrot.slane %v3198_v37, 1  ;;  %v3231_v43 = vmax.f32 %v3229_v44, %v3230_v59  ;;  %v3242_v24 = vmax.f32 %v3240_v2, %v3241_v53  ;;  %v3221_v19 = vrot.slane %v3220_v52, 4  ;;  %4490 = vperm.xlu1 %5486, %v3872_v8   ;;  %v10002_v53 = vld [vmem:[#allocation86_spill] sm:$0xff]  ;;  %v3869_v26 = vld [vmem:[%s6733_s22 + $0x3b8] sm:$0xff] }
 0x377   : > { %v3245_v50 = vsel %vm550_vm3, %v7656_v62, -inf  ;;  %v3254_v42 = vsel %vm550_vm3, %v7664_v3, -inf  ;;  %v3210_v63 = vrot.slane %v3209_v56, 2  ;;  %v3253_v36 = vsel %vm550_vm3, %v7660_v55, -inf  ;;  %v7881_v5 = vpop.permute.xlu0 %3990 }
 0x378   : > { %v3233_v54 = vmax.f32 %v3231_v43, %v3232_v21  ;;  %v3244_v4 = vmax.f32 %v3242_v24, %v3243_v17  ;;  %v7867_v61 = vmax.f32 %v3198_v37, %v3199_v7  ;;  %v3222_v14 = vmax.f32 %v3220_v52, %v3221_v19  ;;  %10000 = vst [vmem:[#allocation106_spill] sm:$0xff] %v7881_v5  ;;  %v10001_v52 = vld [vmem:[#allocation95_spill] sm:$0xff]  ;;  %v10003_v24 = vld [vmem:[#allocation89_spill] sm:$0xff]  ;;  %v3844_v19 = vld [vmem:[%s6733_s22 + $0x2f0] sm:$0xff] }
 0x379   : > { %v3255_v30 = vmax.f32 %v3253_v36, %v3254_v42  ;;  %v3256_v25 = vsel %vm550_vm3, %v7668_v28, -inf  ;;  %v3211_v62 = vmax.f32 %v3209_v56, %v3210_v63  ;;  %v3258_v3 = vsel %vm550_vm3, %v7672_v29, -inf  ;;  %4175 = vperm.xlu0 %5485, %v3809_v47   ;;  %v10004_v63 = vld [vmem:[#allocation93_spill] sm:$0xff]  ;;  %v10067_v5 = vld [vmem:[#allocation70_spill] sm:$0xff] }
 0x37a   : > { %v3234_v39 = vrot.slane %v3233_v54, 4  ;;  %v3246_v40 = vmax.f32 %v3244_v4, %v3245_v50  ;;  %v3223_v55 = vrot.slane %v3222_v14, 2  ;;  %v3266_v41 = vsel %vm550_vm3, %v7676_v15, -inf  ;;  %4315 = vperm.xlu1 %5486, %v3837_v9  }
 0x37b   : > { %v3257_v27 = vmax.f32 %v3255_v30, %v3256_v25  ;;  %v3267_v28 = vsel %vm550_vm3, %v9999_v35, -inf  ;;  %v3212_v59 = vrot.slane %v3211_v62, 1  ;;  %v3269_v2 = vsel %vm550_vm3, %v10001_v52, -inf  ;;  %v7895_v25 = vpop.permute.xlu1 %4005  ;;  %v10010_v52 = vld [vmem:[#allocation94_spill] sm:$0xff] }
 0x37c   : > { %v3235_v37 = vmax.f32 %v3233_v54, %v3234_v39  ;;  %v3247_v33 = vrot.slane %v3246_v40, 4  ;;  %v3268_v29 = vmax.f32 %v3266_v41, %v3267_v28  ;;  %v3224_v44 = vmax.f32 %v3222_v14, %v3223_v55  ;;  %10005 = vst [vmem:[#allocation109_spill] sm:$0xff] %v7895_v25  ;;  %v7901_v55 = vpop.permute.xlu0 %4000 }
 0x37d   : > { %v3259_v21 = vmax.f32 %v3257_v27, %v3258_v3  ;;  %v3271_v7 = vsel %vm550_vm3, %v10002_v53, -inf  ;;  %v3279_v8 = vsel %vm550_vm3, %v10003_v24, -inf  ;;  %v7891_v17 = vmax.f32 %v3211_v62, %v3212_v59  ;;  %v10006_v3 = vld [vmem:[#allocation84_spill] sm:$0xff]  ;;  %4350 = vperm.xlu0 %5485, %v3844_v19   ;;  %10008 = vst [vmem:[#allocation108_spill] sm:$0xff] %v7901_v55  ;;  %v3813_v59 = vld [vmem:[%s6733_s22 + $0x1f8] sm:$0xff] }
 0x37e   : > { %v3236_v15 = vrot.slane %v3235_v37, 2  ;;  %v3248_v56 = vmax.f32 %v3246_v40, %v3247_v33  ;;  %v3270_v43 = vmax.f32 %v3268_v29, %v3269_v2  ;;  %v3225_v50 = vrot.slane %v3224_v44, 1  ;;  %v10007_v62 = vld [vmem:[#allocation88_spill] sm:$0xff]  ;;  %4475 = vperm.xlu1 %5486, %v3869_v26   ;;  %v10009_v29 = vld [vmem:[#allocation90_spill] sm:$0xff] }
 0x37f   : > { %v3260_v42 = vrot.slane %v3259_v21, 4  ;;  %v3280_v54 = vsel %vm550_vm3, %v10004_v63, -inf  ;;  %v3282_v9 = vsel %vm550_vm3, %v10006_v3, -inf  ;;  %v3284_v47 = vsel %vm550_vm3, %v10007_v62, -inf }
 0x380   : > { %v3237_v4 = vmax.f32 %v3235_v37, %v3236_v15  ;;  %v3249_v36 = vrot.slane %v3248_v56, 2  ;;  %v3272_v14 = vmax.f32 %v3270_v43, %v3271_v7  ;;  %v3281_v30 = vmax.f32 %v3279_v8, %v3280_v54  ;;  %v3876_v37 = vld [vmem:[%s6733_s22 + $0x3f0] sm:$0xff]  ;;  %v3873_v54 = vld [vmem:[%s6733_s22 + $0x3d8] sm:$0xff] }
 0x381   : > { %v3226_v39 = vmax.f32 %v3224_v44, %v3225_v50  ;;  %v3261_v40 = vmax.f32 %v3259_v21, %v3260_v42  ;;  %v3292_v44 = vsel %vm550_vm3, %v10009_v29, -inf  ;;  %v3293_v21 = vsel %vm550_vm3, %v7712_v31, -inf  ;;  %4510 = vperm.xlu0 %5485, %v3876_v37   ;;  %v10011_v50 = vld [vmem:[#allocation92_spill] sm:$0xff]  ;;  %v3877_v29 = vld [vmem:[%s6733_s22 + $0x3f8] sm:$0xff] }
 0x382   : > { %v3238_v27 = vrot.slane %v3237_v4, 1  ;;  %v3250_v41 = vmax.f32 %v3248_v56, %v3249_v36  ;;  %v3273_v35 = vrot.slane %v3272_v14, 4  ;;  %v3283_v28 = vmax.f32 %v3281_v30, %v3282_v9  ;;  %4195 = vperm.xlu1 %5486, %v3813_v59  }
 0x383   : > { %v3262_v33 = vrot.slane %v3261_v40, 2  ;;  %v3295_v2 = vsel %vm550_vm3, %v10010_v52, -inf  ;;  %v3294_v24 = vmax.f32 %v3292_v44, %v3293_v21  ;;  %v3305_v8 = vsel %vm550_vm3, %v7724_v38, -inf  ;;  %v3845_v21 = vld [vmem:[%s6733_s22 + $0x2f8] sm:$0xff] }
 0x384   : > { %v3239_v53 = vmax.f32 %v3237_v4, %v3238_v27  ;;  %v3251_v7 = vrot.slane %v3250_v41, 1  ;;  %v3274_v15 = vmax.f32 %v3272_v14, %v3273_v35  ;;  %v3285_v43 = vmax.f32 %v3283_v28, %v3284_v47  ;;  %v7918_v4 = vpop.permute.xlu1 %4015 }
 0x385   : > { %v3263_v56 = vmax.f32 %v3261_v40, %v3262_v33  ;;  %v3306_v26 = vsel %vm550_vm3, %v7728_v46, -inf  ;;  %v3297_v42 = vsel %vm550_vm3, %v10011_v50, -inf  ;;  %10012 = vst [vmem:[#allocation111_spill] sm:$0xff] %v7918_v4  ;;  %v3296_v30 = vmax.f32 %v3294_v24, %v3295_v2  ;;  %v3841_v40 = vld [vmem:[%s6733_s22 + $0x2d8] sm:$0xff]  ;;  %v7923_v46 = vpop.permute.xlu0 %4010 }
 0x386   : > { %v3275_v31 = vrot.slane %v3274_v15, 2  ;;  %v3286_v19 = vrot.slane %v3285_v43, 4  ;;  %v3307_v63 = vmax.f32 %v3305_v8, %v3306_v26  ;;  %v3252_v36 = vmax.f32 %v3250_v41, %v3251_v7  ;;  %10013 = vst [vmem:[#allocation110_spill] sm:$0xff] %v7923_v46  ;;  %4495 = vperm.xlu1 %5486, %v3873_v54   ;;  %4335 = vperm.xlu0 %5485, %v3841_v40   ;;  %v10015_v7 = vld [vmem:[#allocation146_spill] sm:$0xff] }
 0x387   : > { %v3264_v14 = vrot.slane %v3263_v56, 1  ;;  %v3308_v38 = vsel %vm550_vm3, %v7732_v10, -inf  ;;  %v3558_v47 = vsel %vm2015_vm4, %v7805_v13, %v7803_v20  ;;  %v3298_v27 = vmax.f32 %v3296_v30, %v3297_v42  ;;  %v10018_v42 = vld [vmem:[#allocation87_spill] sm:$0xff] }
 0x388   : > { %v3276_v3 = vmax.f32 %v3274_v15, %v3275_v31  ;;  %v3287_v9 = vmax.f32 %v3285_v43, %v3286_v19  ;;  %v3309_v62 = vmax.f32 %v3307_v63, %v3308_v38  ;;  %v3310_v41 = vsel %vm550_vm3, %v7799_v57, -inf }
 0x389   : > { %v3559_v35 = vsel %vm2017_vm5, %v7813_v0, %v3558_v47  ;;  %v3565_v10 = vsel %vm2015_vm4, %v3239_v53, %v3226_v39  ;;  %v3265_v20 = vmax.f32 %v3263_v56, %v3264_v14  ;;  %v3299_v13 = vrot.slane %v3298_v27, 4  ;;  %v10014_v53 = vld [vmem:[#allocation149_spill] sm:$0xff]  ;;  %v7949_v24 = vpop.permute.xlu0 %4020  ;;  %v10020_v14 = vld [vmem:[#allocation120_spill] sm:$0xff] }
 0x38a   : > { %v3277_v28 = vrot.slane %v3276_v3, 1  ;;  %v3288_v59 = vrot.slane %v3287_v9, 2  ;;  %v3311_v37 = vmax.f32 %v3309_v62, %v3310_v41  ;;  %v3560_v33 = vsel %vm2019_vm6, %v7819_v49, %v3559_v35  ;;  %v7944_v49 = vpop.permute.xlu1 %4025  ;;  %4515 = vperm.xlu1 %5486, %v3877_v29   ;;  %10017 = vst [vmem:[#allocation117_spill] sm:$0xff] %v7949_v24  ;;  %4355 = vperm.xlu0 %5485, %v3845_v21   ;;  %v10023_v62 = vld [vmem:[#allocation147_spill] sm:$0xff]  ;;  %v10059_v24 = vld [vmem:[#allocation25_spill] sm:$0xff] }
 0x38b   : > { %v3561_v44 = vsel %vm2021_vm7, %v7829_v6, %v3560_v33  ;;  %v3566_v57 = vsel %vm2017_vm5, %v3252_v36, %v3565_v10  ;;  %v2134_v15 = vadd.f32 %v10015_v7, %v10014_v53  ;;  %10016 = vst [vmem:[#allocation118_spill] sm:$0xff] %v7944_v49  ;;  %v3300_v43 = vmax.f32 %v3298_v27, %v3299_v13  ;;  %v10019_v36 = vld [vmem:[#allocation150_spill] sm:$0xff]  ;;  %v10024_v35 = vld [vmem:[#allocation23_spill] sm:$0xff]  ;;  %v10032_v53 = vld [vmem:[#allocation37_spill] sm:$0xff] }
 0x38c   : > { %v3278_v0 = vmax.f32 %v3276_v3, %v3277_v28  ;;  %v3289_v52 = vmax.f32 %v3287_v9, %v3288_v59  ;;  %v3312_v39 = vrot.slane %v3311_v37, 4  ;;  %v3562_v2 = vsel %vm2023_vm8, %v7849_v34, %v3561_v44  ;;  %v10021_v3 = vld [vmem:[#allocation21_spill] sm:$0xff]  ;;  %v10025_v28 = vld [vmem:[#allocation116_spill] sm:$0xff]  ;;  %v10026_v33 = vld [vmem:[#allocation22_spill] sm:$0xff] }
 0x38d   : > { %v3563_v56 = vsel %vm2025_vm9, %v7867_v61, %v3562_v2  ;;  %v3567_v6 = vsel %vm2019_vm6, %v3265_v20, %v3566_v57  ;;  %v3301_v19 = vrot.slane %v3300_v43, 2  ;;  %v2137_v63 = vadd.f32 %v10015_v7, %v10018_v42  ;;  %v10027_v20 = vld [vmem:[#allocation30_spill] sm:$0xff]  ;;  %v10028_v44 = vld [vmem:[#allocation31_spill] sm:$0xff] }
 0x38e   : > { %v3290_v8 = vrot.slane %v3289_v52, 1  ;;  %v3313_v26 = vmax.f32 %v3311_v37, %v3312_v39  ;;  %v3564_v31 = vsel %vm2027_vm10, %v7891_v17, %v3563_v56  ;;  %v3568_v34 = vsel %vm2021_vm7, %v3278_v0, %v3567_v6  ;;  %v10022_v17 = vld [vmem:[#allocation113_spill] sm:$0xff]  ;;  %v10029_v0 = vld [vmem:[#allocation20_spill] sm:$0xff]  ;;  %v10034_v6 = vld [vmem:[#allocation39_spill] sm:$0xff] }
 0x38f   : > { %v3590_v50 = vadd.f32 %v3564_v31, %v2134_v15  ;;  %v7958_v30 = vadd.f32 %v10020_v14, %v10019_v36  ;;  %v3302_v38 = vmax.f32 %v3300_v43, %v3301_v19  ;;  %v7962_v9 = vadd.f32 %v10021_v3, %v7502_v58  ;;  %v10031_v39 = vld [vmem:[#allocation36_spill] sm:$0xff]  ;;  %v10033_v43 = vld [vmem:[#allocation38_spill] sm:$0xff]  ;;  %v10036_v19 = vld [vmem:[#allocation41_spill] sm:$0xff] }
 0x390   : > { %v3291_v54 = vmax.f32 %v3289_v52, %v3290_v8  ;;  %v3314_v61 = vrot.slane %v3313_v26, 2  ;;  %v7966_v47 = vadd.f32 %v10023_v62, %v10022_v17  ;;  %v7971_v10 = vadd.f32 %v7479_v32, %v10024_v35  ;;  %v10037_v42 = vld [vmem:[#allocation42_spill] sm:$0xff]  ;;  %v10040_v17 = vld [vmem:[#allocation45_spill] sm:$0xff] }
 0x391   : > { %v3594_v40 = vmax.f32 %v3590_v50, 0.0  ;;  %v7975_v59 = vadd.f32 %v10025_v28, %v10019_v36  ;;  %v3303_v37 = vrot.slane %v3302_v38, 1  ;;  %v7979_v29 = vadd.f32 %v10026_v33, %v7502_v58  ;;  %v10041_v35 = vld [vmem:[#allocation46_spill] sm:$0xff]  ;;  %v10042_v33 = vld [vmem:[#allocation47_spill] sm:$0xff] }
 0x392   : > { %v3315_v27 = vmax.f32 %v3313_v26, %v3314_v61  ;;  %v3569_v41 = vsel %vm2023_vm8, %v3291_v54, %v3568_v34  ;;  %v7983_v13 = vadd.f32 %v10023_v62, %v10027_v20  ;;  %v7987_v57 = vadd.f32 %v7479_v32, %v10028_v44  ;;  %v10035_v26 = vld [vmem:[#allocation40_spill] sm:$0xff]  ;;  %v10038_v61 = vld [vmem:[#allocation43_spill] sm:$0xff]  ;;  %v10058_v49 = vld [vmem:[#allocation62_spill] sm:$0xff] }
 0x393   : > { %v7990_v52 = vadd.f32 %v3594_v40, %v10029_v0  ;;  %v7994_v2 = vadd.f32 %v10031_v39, %v10019_v36  ;;  %v7998_v7 = vadd.f32 %v10032_v53, %v7502_v58  ;;  %v3304_v15 = vmax.f32 %v3302_v38, %v3303_v37  ;;  %v10039_v40 = vld [vmem:[#allocation44_spill] sm:$0xff]  ;;  %v10045_v53 = vld [vmem:[#allocation50_spill] sm:$0xff] }
 0x394   : > { %v3316_v21 = vrot.slane %v3315_v27, 1  ;;  %v8002_v56 = vadd.f32 %v10023_v62, %v10033_v43  ;;  %v8006_v8 = vadd.f32 %v7479_v32, %v10034_v6  ;;  %v8010_v31 = vadd.f32 %v10035_v26, %v10019_v36  ;;  %v10046_v43 = vld [vmem:[#allocation51_spill] sm:$0xff]  ;;  %v10047_v26 = vld [vmem:[#allocation53_spill] sm:$0xff] }
 0x395   : > { %10030 = vst [vmem:[#allocation122_spill] sm:$0xff] %v7990_v52  ;;  %v8014_v50 = vadd.f32 %v10036_v19, %v7502_v58  ;;  %v8018_v54 = vadd.f32 %v10023_v62, %v10037_v42  ;;  %v8022_v14 = vadd.f32 %v7479_v32, %v10038_v61  ;;  %v3570_v38 = vsel %vm2025_vm9, %v3304_v15, %v3569_v41  ;;  %v10043_v41 = vld [vmem:[#allocation48_spill] sm:$0xff]  ;;  %v10048_v19 = vld [vmem:[#allocation119_spill] sm:$0xff] }
 0x396   : > { %v3317_v34 = vmax.f32 %v3315_v27, %v3316_v21  ;;  %v8027_v3 = vadd.f32 %v10039_v40, %v10019_v36  ;;  %v8031_v27 = vadd.f32 %v10040_v17, %v7502_v58  ;;  %v8035_v28 = vadd.f32 %v10023_v62, %v10041_v35  ;;  %v10044_v21 = vld [vmem:[#allocation49_spill] sm:$0xff]  ;;  %v10049_v61 = vld [vmem:[#allocation55_spill] sm:$0xff] }
 0x397   : > { %v8040_v20 = vadd.f32 %v7479_v32, %v10042_v33  ;;  %v8044_v44 = vadd.f32 %v10043_v41, %v10019_v36  ;;  %v8048_v0 = vadd.f32 %v10044_v21, %v7502_v58  ;;  %v8052_v15 = vadd.f32 %v10023_v62, %v10045_v53  ;;  %v10051_v17 = vld [vmem:[#allocation57_spill] sm:$0xff]  ;;  %v10052_v33 = vld [vmem:[#allocation54_spill] sm:$0xff] }
 0x398   : > { %v3571_v37 = vsel %vm2027_vm10, %v3317_v34, %v3570_v38  ;;  %v8056_v6 = vadd.f32 %v7479_v32, %v10046_v43  ;;  %v8060_v34 = vadd.f32 %v10047_v26, %v10019_v36  ;;  %v8064_v42 = vadd.f32 %v10048_v19, %v7502_v58  ;;  %v10053_v21 = vld [vmem:[#allocation61_spill] sm:$0xff]  ;;  %v10054_v43 = vld [vmem:[#allocation58_spill] sm:$0xff]  ;;  %v10055_v19 = vld [vmem:[#allocation63_spill] sm:$0xff] }
 0x399   : > { %v3591_v39 = vadd.f32 %v3571_v37, %v2137_v63  ;;  %v8068_v38 = vadd.f32 %v10023_v62, %v10049_v61  ;;  %v10050_v63 = vld [vmem:[#allocation52_spill] sm:$0xff]  ;;  %v8076_v35 = vadd.f32 %v10051_v17, %v10019_v36  ;;  %v8080_v41 = vadd.f32 %v10052_v33, %v7502_v58 }
 0x39a   : > { %v8072_v40 = vadd.f32 %v7479_v32, %v10050_v63  ;;  %v8084_v53 = vadd.f32 %v10023_v62, %v10053_v21  ;;  %v8088_v26 = vadd.f32 %v7479_v32, %v10054_v43  ;;  %v8092_v61 = vadd.f32 %v10055_v19, %v10019_v36  ;;  %v10056_v63 = vld [vmem:[#allocation60_spill] sm:$0xff]  ;;  %v10061_v43 = vld [vmem:[#allocation5_spill] sm:$0xff] }
 0x39b   : > { %v3595_v37 = vmax.f32 %v3591_v39, 0.0  ;;  %v8096_v17 = vadd.f32 %v10056_v63, %v7502_v58  ;;  %v10057_v39 = vld [vmem:[#allocation65_spill] sm:$0xff]  ;;  %v8104_v21 = vadd.f32 %v7479_v32, %v10058_v49  ;;  %v8111_v46 = vadd.f32 %v10061_v43, %v10019_v36  ;;  %v10062_v19 = vld [vmem:[#allocation64_spill] sm:$0xff]  ;;  %v10063_v63 = vld [vmem:[#allocation66_spill] sm:$0xff] }
 0x39c   : > { %v8100_v33 = vadd.f32 %v10023_v62, %v10057_v39  ;;  %v8115_v25 = vadd.f32 %v10062_v19, %v7502_v58  ;;  %v8119_v55 = vadd.f32 %v10023_v62, %v10063_v63  ;;  %v10064_v39 = vld [vmem:[#allocation67_spill] sm:$0xff]  ;;  %v10065_v49 = vld [vmem:[#allocation68_spill] sm:$0xff]  ;;  %v8135_v19 = vadd.f32 %v10023_v62, %v10067_v5  ;;  %v10072_v5 = vld [vmem:[#allocation82_spill] sm:$0xff] }
 0x39d   : > { %v8107_v4 = vadd.f32 %v3595_v37, %v10059_v24  ;;  %v8123_v22 = vadd.f32 %v7479_v32, %v10064_v39  ;;  %v8127_v24 = vadd.f32 %v10065_v49, %v10019_v36  ;;  %v10066_v37 = vld [vmem:[#allocation69_spill] sm:$0xff]  ;;  %v8141_v16 = vadd.f32 %v7479_v32, %v10068_v23  ;;  %v10069_v39 = vld [vmem:[#allocation72_spill] sm:$0xff] }
 0x39e   : > { %v8131_v43 = vadd.f32 %v10066_v37, %v7502_v58  ;;  %v8145_v12 = vadd.f32 %v10069_v39, %v10019_v36  ;;  %v10070_v49 = vld [vmem:[#allocation73_spill] sm:$0xff]  ;;  %v10071_v37 = vld [vmem:[#allocation76_spill] sm:$0xff]  ;;  %v8157_v1 = vadd.f32 %v7479_v32, %v10072_v5  ;;  %v8175_v5 = vadd.f32 %v7479_v32, %v10078_v11 }
 0x39f   : > { %10060 = vst [vmem:[#allocation121_spill] sm:$0xff] %v8107_v4  ;;  %v3602_v63 = vpack.c.bf16 %v8107_v4, %v7990_v52  ;;  %v8149_v18 = vadd.f32 %v10070_v49, %v7502_v58  ;;  %v8153_v45 = vadd.f32 %v10023_v62, %v10071_v37  ;;  %v10074_v4 = vld [vmem:[#allocation74_spill] sm:$0xff]  ;;  %v10075_v52 = vld [vmem:[#allocation75_spill] sm:$0xff] }
 0x3a0   : > { %10073 = vst [vmem:[#allocation124_spill] sm:$0xff] %v8157_v1  ;;  %v8161_v23 = vadd.f32 %v10074_v4, %v10019_v36  ;;  %v8165_v39 = vadd.f32 %v10075_v52, %v7502_v58  ;;  %v10076_v49 = vld [vmem:[#allocation79_spill] sm:$0xff]  ;;  %10079 = vst [vmem:[#allocation129_spill] sm:$0xff] %v8175_v5  ;;  %v8179_v4 = vadd.f32 %v10080_v51, %v10019_v36  ;;  %v10087_v5 = vld [vmem:[#allocation81_spill] sm:$0xff] }
 0x3a1   : > { %5455 = vmatprep.mubr.msk.bf16.mxu1 %vm550_vm3, %v3602_v63  ;;  %5463 = vmatprep.mubr.msk.bf16.mxu0 %vm550_vm3, %v3602_v63  ;;  %v8171_v37 = vadd.f32 %v10023_v62, %v10076_v49  ;;  %v8183_v52 = vadd.f32 %v10081_v48, %v7502_v58  ;;  %v8187_v1 = vadd.f32 %v10023_v62, %v10083_v60  ;;  %v10085_v63 = vld [vmem:[#allocation28_spill] sm:$0xff]  ;;  %v3318_v48 = vsel %vm550_vm3, %v7958_v30, -inf }
 0x3a2   : > { %v8191_v49 = vadd.f32 %v7479_v32, %v10085_v63  ;;  %v8199_v51 = vadd.f32 %v10087_v5, %v7502_v58  ;;  %v3321_v60 = vsel %vm550_vm3, %v7966_v47, -inf  ;;  %v3323_v63 = vsel %vm550_vm3, %v7971_v10, -inf }
 0x3a3   : > { %10077 = vst [vmem:[#allocation123_spill] sm:$0xff] %v8171_v37  ;;  %10082 = vst [vmem:[#allocation127_spill] sm:$0xff] %v8183_v52  ;;  %v10086_v37 = vld [vmem:[#allocation80_spill] sm:$0xff]  ;;  %v3319_v52 = vsel %vm550_vm3, %v7962_v9, -inf  ;;  %v3332_v5 = vsel %vm550_vm3, %v7979_v29, -inf  ;;  %v3334_v30 = vsel %vm550_vm3, %v7983_v13, -inf }
 0x3a4   : > { %10084 = vst [vmem:[#allocation17_spill] sm:$0xff] %v8187_v1  ;;  %v8195_v11 = vadd.f32 %v10086_v37, %v10019_v36  ;;  %10088 = vst [vmem:[#allocation14_spill] sm:$0xff] %v8199_v51  ;;  %v3320_v1 = vmax.f32 %v3318_v48, %v3319_v52  ;;  %v3331_v37 = vsel %vm550_vm3, %v7975_v59, -inf  ;;  %v3336_v9 = vsel %vm550_vm3, %v7987_v57, -inf }
 0x3a5   : > { %v3333_v51 = vmax.f32 %v3331_v37, %v3332_v5  ;;  %v3344_v47 = vsel %vm550_vm3, %v7994_v2, -inf  ;;  %v3345_v10 = vsel %vm550_vm3, %v7998_v7, -inf  ;;  %v3347_v59 = vsel %vm550_vm3, %v8002_v56, -inf }
 0x3a6   : > { %v3322_v52 = vmax.f32 %v3320_v1, %v3321_v60  ;;  %v3349_v29 = vsel %vm550_vm3, %v8006_v8, -inf  ;;  %v3346_v37 = vmax.f32 %v3344_v47, %v3345_v10  ;;  %v3357_v13 = vsel %vm550_vm3, %v8010_v31, -inf }
 0x3a7   : > { %v3335_v48 = vmax.f32 %v3333_v51, %v3334_v30  ;;  %v3358_v57 = vsel %vm550_vm3, %v8014_v50, -inf  ;;  %v3360_v1 = vsel %vm550_vm3, %v8018_v54, -inf  ;;  %v3362_v7 = vsel %vm550_vm3, %v8022_v14, -inf }
 0x3a8   : > { %v3324_v5 = vmax.f32 %v3322_v52, %v3323_v63  ;;  %v3359_v2 = vmax.f32 %v3357_v13, %v3358_v57  ;;  %v3348_v60 = vmax.f32 %v3346_v37, %v3347_v59  ;;  %v3370_v8 = vsel %vm550_vm3, %v8027_v3, -inf }
 0x3a9   : > { %v3337_v56 = vmax.f32 %v3335_v48, %v3336_v9  ;;  %v3371_v51 = vsel %vm550_vm3, %v8031_v27, -inf  ;;  %v3373_v50 = vsel %vm550_vm3, %v8035_v28, -inf  ;;  %v3375_v54 = vsel %vm550_vm3, %v8040_v20, -inf }
 0x3aa   : > { %v3325_v31 = vrot.slane %v3324_v5, 4  ;;  %v3361_v30 = vmax.f32 %v3359_v2, %v3360_v1  ;;  %v3372_v47 = vmax.f32 %v3370_v8, %v3371_v51  ;;  %v3350_v52 = vmax.f32 %v3348_v60, %v3349_v29 }
 0x3ab   : > { %v3338_v63 = vrot.slane %v3337_v56, 4  ;;  %v3383_v14 = vsel %vm550_vm3, %v8044_v44, -inf  ;;  %v3384_v27 = vsel %vm550_vm3, %v8048_v0, -inf  ;;  %v3386_v28 = vsel %vm550_vm3, %v8052_v15, -inf }
 0x3ac   : > { %v3326_v9 = vmax.f32 %v3324_v5, %v3325_v31  ;;  %v3363_v10 = vmax.f32 %v3361_v30, %v3362_v7  ;;  %v3374_v3 = vmax.f32 %v3372_v47, %v3373_v50  ;;  %v3351_v48 = vrot.slane %v3350_v52, 4  ;;  %v10089_v30 = vld [vmem:[#allocation27_spill] sm:$0xff] }
 0x3ad   : > { %v3339_v59 = vmax.f32 %v3337_v56, %v3338_v63  ;;  %v3385_v37 = vmax.f32 %v3383_v14, %v3384_v27  ;;  %v3388_v20 = vsel %vm550_vm3, %v8056_v6, -inf  ;;  %v3396_v1 = vsel %vm550_vm3, %v8060_v34, -inf  ;;  %v10090_v34 = vld [vmem:[#allocation2_spill] sm:$0xff] }
 0x3ae   : > { %v3327_v13 = vrot.slane %v3326_v9, 2  ;;  %v3364_v29 = vrot.slane %v3363_v10, 4  ;;  %v3376_v57 = vmax.f32 %v3374_v3, %v3375_v54  ;;  %v3352_v44 = vmax.f32 %v3350_v52, %v3351_v48 }
 0x3af   : > { %v3340_v2 = vrot.slane %v3339_v59, 2  ;;  %v3387_v5 = vmax.f32 %v3385_v37, %v3386_v28  ;;  %v3397_v60 = vsel %vm550_vm3, %v8064_v42, -inf  ;;  %v8255_v47 = vadd.f32 %v10023_v62, %v10089_v30 }
 0x3b0   : > { %v3328_v7 = vmax.f32 %v3326_v9, %v3327_v13  ;;  %v3365_v0 = vmax.f32 %v3363_v10, %v3364_v29  ;;  %v3377_v56 = vrot.slane %v3376_v57, 4  ;;  %v3353_v15 = vrot.slane %v3352_v44, 2  ;;  %v10091_v9 = vld [vmem:[#allocation24_spill] sm:$0xff]  ;;  %v10092_v13 = vld [vmem:[#allocation114_spill] sm:$0xff] }
 0x3b1   : > { %v3341_v8 = vmax.f32 %v3339_v59, %v3340_v2  ;;  %v3389_v51 = vmax.f32 %v3387_v5, %v3388_v20  ;;  %v3398_v31 = vmax.f32 %v3396_v1, %v3397_v60  ;;  %v3399_v63 = vsel %vm550_vm3, %v8068_v38, -inf }
 0x3b2   : > { %v3366_v6 = vrot.slane %v3365_v0, 2  ;;  %v3378_v50 = vmax.f32 %v3376_v57, %v3377_v56  ;;  %v8261_v52 = vadd.f32 %v7479_v32, %v10090_v34  ;;  %v3354_v54 = vmax.f32 %v3352_v44, %v3353_v15  ;;  %v10094_v15 = vld [vmem:[#allocation33_spill] sm:$0xff] }
 0x3b3   : > { %v3390_v14 = vrot.slane %v3389_v51, 4  ;;  %v3400_v42 = vmax.f32 %v3398_v31, %v3399_v63  ;;  %v8265_v10 = vadd.f32 %v10091_v9, %v10019_v36  ;;  %v3401_v59 = vsel %vm550_vm3, %v8072_v40, -inf  ;;  %v10093_v40 = vld [vmem:[#allocation29_spill] sm:$0xff] }
 0x3b4   : > { %v3367_v3 = vmax.f32 %v3365_v0, %v3366_v6  ;;  %v3379_v27 = vrot.slane %v3378_v50, 2  ;;  %v3329_v48 = vrot.slane %v3328_v7, 1  ;;  %v3342_v37 = vrot.slane %v3341_v8, 1 }
 0x3b5   : > { %v3391_v28 = vmax.f32 %v3389_v51, %v3390_v14  ;;  %v3402_v38 = vmax.f32 %v3400_v42, %v3401_v59  ;;  %v8271_v29 = vadd.f32 %v10092_v13, %v7502_v58  ;;  %v3409_v20 = vsel %vm550_vm3, %v8076_v35, -inf }
 0x3b6   : > { %v3380_v57 = vmax.f32 %v3378_v50, %v3379_v27  ;;  %v3410_v36 = vsel %vm550_vm3, %v8080_v41, -inf  ;;  %v3355_v2 = vrot.slane %v3354_v54, 1  ;;  %v3368_v44 = vrot.slane %v3367_v3, 1 }
 0x3b7   : > { %v3403_v5 = vrot.slane %v3402_v38, 4  ;;  %v3411_v1 = vmax.f32 %v3409_v20, %v3410_v36  ;;  %v8279_v0 = vadd.f32 %v10023_v62, %v10093_v40  ;;  %v3392_v60 = vrot.slane %v3391_v28, 2 }
 0x3b8   : > { %v3381_v56 = vrot.slane %v3380_v57, 1  ;;  %v3412_v58 = vsel %vm550_vm3, %v8084_v53, -inf  ;;  %v8285_v51 = vadd.f32 %v7479_v32, %v10094_v15  ;;  %v8287_v35 = vmax.f32 %v3328_v7, %v3329_v48 }
 0x3b9   : > { %v8289_v41 = vmax.f32 %v3341_v8, %v3342_v37  ;;  %v3413_v31 = vmax.f32 %v3411_v1, %v3412_v58  ;;  %v3404_v30 = vmax.f32 %v3402_v38, %v3403_v5  ;;  %v3414_v6 = vsel %vm550_vm3, %v8088_v26, -inf  ;;  %v10095_v58 = vld [vmem:[#allocation124_spill] sm:$0xff] }
 0x3ba   : > { %v3422_v62 = vsel %vm550_vm3, %v8092_v61, -inf  ;;  %v3423_v50 = vsel %vm550_vm3, %v8096_v17, -inf  ;;  %v8297_v53 = vmax.f32 %v3354_v54, %v3355_v2  ;;  %v8299_v63 = vmax.f32 %v3367_v3, %v3368_v44 }
 0x3bb   : > { %v3415_v32 = vmax.f32 %v3413_v31, %v3414_v6  ;;  %v3424_v7 = vmax.f32 %v3422_v62, %v3423_v50  ;;  %v8301_v34 = vmax.f32 %v3380_v57, %v3381_v56  ;;  %v8303_v8 = vmax.f32 %v3391_v28, %v3392_v60  ;;  %v10096_v62 = vld [vmem:[#allocation123_spill] sm:$0xff]  ;;  %v8343_v50 = vpop.permute.xlu0 %4030 }
 0x3bc   : > { %v3425_v14 = vsel %vm550_vm3, %v8100_v33, -inf  ;;  %v3436_v26 = vsel %vm550_vm3, %v8115_v25, -inf  ;;  %v3427_v17 = vsel %vm550_vm3, %v8104_v21, -inf  ;;  %v3435_v54 = vsel %vm550_vm3, %v8111_v46, -inf }
 0x3bd   : > { %v3416_v61 = vrot.slane %v3415_v32, 4  ;;  %v3426_v42 = vmax.f32 %v3424_v7, %v3425_v14  ;;  %v3405_v9 = vrot.slane %v3404_v30, 2  ;;  %v3437_v3 = vmax.f32 %v3435_v54, %v3436_v26  ;;  %v10097_v14 = vld [vmem:[#allocation129_spill] sm:$0xff]  ;;  %v8347_v26 = vpop.permute.xlu1 %4035  ;;  %v10098_v54 = vld [vmem:[#allocation127_spill] sm:$0xff] }
 0x3be   : > { %v3448_v27 = vsel %vm550_vm3, %v8127_v24, -inf  ;;  %v3449_v59 = vsel %vm550_vm3, %v8131_v43, -inf  ;;  %v3438_v25 = vsel %vm550_vm3, %v8119_v55, -inf  ;;  %v3394_v28 = vrot.slane %v8303_v8, 1 }
 0x3bf   : > { %v3417_v33 = vmax.f32 %v3415_v32, %v3416_v61  ;;  %v3428_v48 = vmax.f32 %v3426_v42, %v3427_v17  ;;  %v3450_v37 = vmax.f32 %v3448_v27, %v3449_v59  ;;  %v3439_v21 = vmax.f32 %v3437_v3, %v3438_v25 }
 0x3c0   : > { %v3451_v46 = vsel %vm550_vm3, %v8135_v19, -inf  ;;  %v3462_v38 = vsel %vm550_vm3, %v8149_v18, -inf  ;;  %v3440_v24 = vsel %vm550_vm3, %v8123_v22, -inf  ;;  %v3461_v57 = vsel %vm550_vm3, %v8145_v12, -inf }
 0x3c1   : > { %v3429_v13 = vrot.slane %v3428_v48, 4  ;;  %v3452_v43 = vmax.f32 %v3450_v37, %v3451_v46  ;;  %v8328_v20 = vmax.f32 %v3404_v30, %v3405_v9  ;;  %v3441_v55 = vmax.f32 %v3439_v21, %v3440_v24  ;;  %v10099_v46 = vld [vmem:[#allocation17_spill] sm:$0xff] }
 0x3c2   : > { %v3453_v36 = vsel %vm550_vm3, %v8141_v16, -inf  ;;  %v3463_v2 = vmax.f32 %v3461_v57, %v3462_v38  ;;  %v3418_v44 = vrot.slane %v3417_v33, 2  ;;  %v3464_v18 = vsel %vm550_vm3, %v8153_v45, -inf }
 0x3c3   : > { %v3430_v19 = vmax.f32 %v3428_v48, %v3429_v13  ;;  %v3454_v5 = vmax.f32 %v3452_v43, %v3453_v36  ;;  %v3442_v1 = vrot.slane %v3441_v55, 4  ;;  %v3474_v22 = vsel %vm550_vm3, %v8161_v23, -inf  ;;  %v10100_v36 = vld [vmem:[#allocation14_spill] sm:$0xff] }
 0x3c4   : > { %v3465_v40 = vmax.f32 %v3463_v2, %v3464_v18  ;;  %v3475_v12 = vsel %vm550_vm3, %v8165_v39, -inf  ;;  %v3466_v16 = vsel %vm550_vm3, %v10095_v58, -inf  ;;  %v3407_v31 = vrot.slane %v8328_v20, 1 }
 0x3c5   : > { %v3431_v56 = vrot.slane %v3430_v19, 2  ;;  %v3455_v60 = vrot.slane %v3454_v5, 4  ;;  %v3476_v15 = vmax.f32 %v3474_v22, %v3475_v12  ;;  %v3443_v30 = vmax.f32 %v3441_v55, %v3442_v1 }
 0x3c6   : > { %v3467_v6 = vmax.f32 %v3465_v40, %v3466_v16  ;;  %v3477_v45 = vsel %vm550_vm3, %v10096_v62, -inf  ;;  %v3479_v39 = vsel %vm550_vm3, %v10097_v14, -inf  ;;  %v3487_v17 = vsel %vm550_vm3, %v8179_v4, -inf  ;;  %v8365_v40 = vpop.permute.xlu1 %4045 }
 0x3c7   : > { %v3432_v32 = vmax.f32 %v3430_v19, %v3431_v56  ;;  %v3456_v23 = vmax.f32 %v3454_v5, %v3455_v60  ;;  %v3478_v7 = vmax.f32 %v3476_v15, %v3477_v45  ;;  %v3444_v61 = vrot.slane %v3443_v30, 2 }
 0x3c8   : > { %v3468_v42 = vrot.slane %v3467_v6, 4  ;;  %v3488_v9 = vsel %vm550_vm3, %v10098_v54, -inf  ;;  %v8353_v3 = vmax.f32 %v3417_v33, %v3418_v44  ;;  %v3490_v38 = vsel %vm550_vm3, %v10099_v46, -inf  ;;  %v8363_v44 = vpop.permute.xlu0 %4040 }
 0x3c9   : > { %v3457_v27 = vrot.slane %v3456_v23, 2  ;;  %v3480_v59 = vmax.f32 %v3478_v7, %v3479_v39  ;;  %v3489_v48 = vmax.f32 %v3487_v17, %v3488_v9  ;;  %v3433_v25 = vrot.slane %v3432_v32, 1 }
 0x3ca   : > { %v3445_v37 = vmax.f32 %v3443_v30, %v3444_v61  ;;  %v3469_v21 = vmax.f32 %v3467_v6, %v3468_v42  ;;  %v3492_v4 = vsel %vm550_vm3, %v8191_v49, -inf  ;;  %v3500_v33 = vsel %vm550_vm3, %v8195_v11, -inf  ;;  %v8384_v54 = vpop.permute.xlu1 %4055 }
 0x3cb   : > { %v3458_v13 = vmax.f32 %v3456_v23, %v3457_v27  ;;  %v3481_v24 = vrot.slane %v3480_v59, 4  ;;  %v3491_v43 = vmax.f32 %v3489_v48, %v3490_v38  ;;  %v3501_v2 = vsel %vm550_vm3, %v10100_v36, -inf }
 0x3cc   : > { %v3446_v57 = vrot.slane %v3445_v37, 1  ;;  %v3470_v55 = vrot.slane %v3469_v21, 2  ;;  %v3502_v1 = vmax.f32 %v3500_v33, %v3501_v2  ;;  %v3434_v22 = vmax.f32 %v3432_v32, %v3433_v25  ;;  %v8382_v61 = vpop.permute.xlu0 %4050 }
 0x3cd   : > { %v3459_v19 = vrot.slane %v3458_v13, 1  ;;  %v3482_v5 = vmax.f32 %v3480_v59, %v3481_v24  ;;  %v3493_v18 = vmax.f32 %v3491_v43, %v3492_v4  ;;  %v3503_v49 = vsel %vm550_vm3, %v8255_v47, -inf }
 0x3ce   : > { %v3447_v12 = vmax.f32 %v3445_v37, %v3446_v57  ;;  %v3471_v56 = vmax.f32 %v3469_v21, %v3470_v55  ;;  %v3504_v11 = vmax.f32 %v3502_v1, %v3503_v49  ;;  %v3505_v16 = vsel %vm550_vm3, %v8261_v52, -inf  ;;  %v8408_v55 = vpop.permute.xlu1 %4065 }
 0x3cf   : > { %v3483_v60 = vrot.slane %v3482_v5, 2  ;;  %v3494_v58 = vrot.slane %v3493_v18, 4  ;;  %v3460_v15 = vmax.f32 %v3458_v13, %v3459_v19  ;;  %v3513_v6 = vsel %vm550_vm3, %v8265_v10, -inf }
 0x3d0   : > { %v3472_v30 = vrot.slane %v3471_v56, 1  ;;  %v3514_v62 = vsel %vm550_vm3, %v8271_v29, -inf  ;;  %v3506_v23 = vmax.f32 %v3504_v11, %v3505_v16  ;;  %v3420_v47 = vrot.slane %v8353_v3, 1  ;;  %v8405_v4 = vpop.permute.xlu0 %4060  ;;  %v10102_v11 = vld [vmem:[#allocation85_spill] sm:$0xff] }
 0x3d1   : > { %v3484_v45 = vmax.f32 %v3482_v5, %v3483_v60  ;;  %v3495_v32 = vmax.f32 %v3493_v18, %v3494_v58  ;;  %v3515_v7 = vmax.f32 %v3513_v6, %v3514_v62  ;;  %v3516_v14 = vsel %vm550_vm3, %v8279_v0, -inf  ;;  %v10103_v62 = vld [vmem:[#allocation56_spill] sm:$0xff] }
 0x3d2   : > { %v3572_v52 = vsel %vm2015_vm4, %v8289_v41, %v8287_v35  ;;  %v3579_v39 = vsel %vm2015_vm4, %v3447_v12, %v3434_v22  ;;  %v3507_v29 = vrot.slane %v3506_v23, 4  ;;  %v3473_v9 = vmax.f32 %v3471_v56, %v3472_v30  ;;  %v8416_v56 = vpop.permute.xlu1 %4075 }
 0x3d3   : > { %v3485_v10 = vrot.slane %v3484_v45, 1  ;;  %v3496_v42 = vrot.slane %v3495_v32, 2  ;;  %v3517_v17 = vmax.f32 %v3515_v7, %v3516_v14  ;;  %v3518_v27 = vsel %vm550_vm3, %v8285_v51, -inf }
 0x3d4   : > { %v3573_v0 = vsel %vm2017_vm5, %v8297_v53, %v3572_v52  ;;  %v3580_v59 = vsel %vm2017_vm5, %v3460_v15, %v3579_v39  ;;  %v3395_v35 = vmax.f32 %v8303_v8, %v3394_v28  ;;  %v3508_v48 = vmax.f32 %v3506_v23, %v3507_v29  ;;  %v8413_v1 = vpop.permute.xlu0 %4070 }
 0x3d5   : > { %v3497_v41 = vmax.f32 %v3495_v32, %v3496_v42  ;;  %v3519_v25 = vmax.f32 %v3517_v17, %v3518_v27  ;;  %v3408_v37 = vmax.f32 %v8328_v20, %v3407_v31  ;;  %v3486_v21 = vmax.f32 %v3484_v45, %v3485_v10  ;;  %v10105_v32 = vld [vmem:[#allocation59_spill] sm:$0xff] }
 0x3d6   : > { %v3574_v51 = vsel %vm2019_vm6, %v8299_v63, %v3573_v0  ;;  %v3581_v46 = vsel %vm2019_vm6, %v3473_v9, %v3580_v59  ;;  %v3509_v38 = vrot.slane %v3508_v48, 2  ;;  %v3421_v8 = vmax.f32 %v8353_v3, %v3420_v47  ;;  %v10101_v3 = vld [vmem:[#allocation148_spill] sm:$0xff]  ;;  %v8422_v30 = vpop.permute.xlu1 %4085 }
 0x3d7   : > { %v3498_v53 = vrot.slane %v3497_v41, 1  ;;  %v3520_v13 = vrot.slane %v3519_v25, 4  ;;  %v3575_v24 = vsel %vm2021_vm7, %v8301_v34, %v3574_v51  ;;  %v3582_v43 = vsel %vm2021_vm7, %v3486_v21, %v3581_v46 }
 0x3d8   : > { %v3576_v28 = vsel %vm2023_vm8, %v3395_v35, %v3575_v24  ;;  %v3510_v31 = vmax.f32 %v3508_v48, %v3509_v38  ;;  %v8420_v15 = vpop.permute.xlu0 %4080 }
 0x3d9   : > { %v3499_v20 = vmax.f32 %v3497_v41, %v3498_v53  ;;  %v3521_v57 = vmax.f32 %v3519_v25, %v3520_v13  ;;  %v3577_v63 = vsel %vm2025_vm9, %v3408_v37, %v3576_v28 }
 0x3da   : > { %v3578_v33 = vsel %vm2027_vm10, %v3421_v8, %v3577_v63  ;;  %v3511_v36 = vrot.slane %v3510_v31, 1  ;;  %v8434_v14 = vpop.permute.xlu1 %4095  ;;  %v5499_v63 = vld [vmem:[%s9496_s9] sm:$0xff]  }
 0x3db   : > { %v3522_v2 = vrot.slane %v3521_v57, 2  ;;  %v3583_v34 = vsel %vm2023_vm8, %v3499_v20, %v3582_v43  ;;  %v3592_v19 = vadd.f32 %v3578_v33, %v10101_v3  ;;  %v5500_v33 = vld [vmem:[%s9496_s9 + $0x8] sm:$0xff]   ;;  %5467 = vmatprep.subr.bf16.mxu1 %v5499_v63 }
 0x3dc   : > { %v3512_v5 = vmax.f32 %v3510_v31, %v3511_v36  ;;  %v8432_v47 = vpop.permute.xlu0 %4090 }
 0x3dd   : > { %v3523_v18 = vmax.f32 %v3521_v57, %v3522_v2  ;;  %v3596_v60 = vmax.f32 %v3592_v19, 0.0 }
 0x3de   : > { %v3584_v12 = vsel %vm2025_vm9, %v3512_v5, %v3583_v34  ;;  %v8440_v39 = vpop.permute.xlu1 %4200 }
 0x3df   : > { %v3524_v22 = vrot.slane %v3523_v18, 1  ;;  %v8425_v45 = vadd.f32 %v3596_v60, %v10103_v62  ;;  %10107 = vst [vmem:[#allocation130_spill] sm:$0xff] %v8440_v39  ;;  %v10189_v39 = vld [vmem:[#allocation103_spill] sm:$0xff] }
 0x3e0   : > { %v8438_v52 = vpop.permute.xlu0 %4100 }
 0x3e1   : > { %v3525_v49 = vmax.f32 %v3523_v18, %v3524_v22  ;;  %10104 = vst [vmem:[#allocation19_spill] sm:$0xff] %v8425_v45 }
 0x3e2   : > { %v8444_v42 = vpop.permute.xlu1 %4220 }
 0x3e3   : > { %v3585_v58 = vsel %vm2027_vm10, %v3525_v49, %v3584_v12  ;;  %10109 = vst [vmem:[#allocation132_spill] sm:$0xff] %v8444_v42  ;;  %v10183_v42 = vld [vmem:[#allocation99_spill] sm:$0xff] }
 0x3e4   : > { %v3593_v16 = vadd.f32 %v3585_v58, %v10102_v11  ;;  %v8442_v10 = vpop.permute.xlu0 %4205 }
 0x3e5   : > { %10108 = vst [vmem:[#allocation18_spill] sm:$0xff] %v8442_v10  ;;  %v10187_v10 = vld [vmem:[#allocation102_spill] sm:$0xff] }
 0x3e6   : > { %v3597_v6 = vmax.f32 %v3593_v16, 0.0  ;;  %v8448_v17 = vpop.permute.xlu1 %4360 }
 0x3e7   : > { %10111 = vst [vmem:[#allocation134_spill] sm:$0xff] %v8448_v17 }
 0x3e8   : > { %v8428_v23 = vadd.f32 %v3597_v6, %v10105_v32  ;;  %v8446_v29 = vpop.permute.xlu0 %4225 }
 0x3e9   : > { %10110 = vst [vmem:[#allocation131_spill] sm:$0xff] %v8446_v29  ;;  %v10182_v29 = vld [vmem:[#allocation98_spill] sm:$0xff] }
 0x3ea   : > { %10106 = vst [vmem:[#allocation16_spill] sm:$0xff] %v8428_v23  ;;  %v3603_v7 = vpack.c.bf16 %v8428_v23, %v8425_v45  ;;  %v8452_v27 = vpop.permute.xlu1 %4380 }
 0x3eb   : > { %10113 = vst [vmem:[#allocation136_spill] sm:$0xff] %v8452_v27 }
 0x3ec   : > { %5456 = vmatmul.mubr.msk.bf16.vlgmr.msra.gmra.mrb[8].mxu1 %vm550_vm3, %v3603_v7  ;;  %5464 = vmatmul.mubr.msk.bf16.vlgmr.msra.gmra.mrb[12].mxu0 %vm550_vm3, %v3603_v7  ;;  %v8450_v9 = vpop.permute.xlu0 %4365 }
 0x3ed   : > { %10112 = vst [vmem:[#allocation133_spill] sm:$0xff] %v8450_v9  ;;  %5468 = vmatpush3.bf16.msra.mxu1 %v5499_v63 }
 0x3ee   : > { %v8456_v59 = vpop.permute.xlu1 %4105  ;;  %5469 = vmatprep.subr.bf16.mxu1 %v5500_v33 }
 0x3f0   : > { %v8454_v0 = vpop.permute.xlu0 %4385 }
 0x3f1   : > { %10114 = vst [vmem:[#allocation135_spill] sm:$0xff] %v8454_v0  ;;  %5470 = vmatpush3.bf16.msra.mxu1 %v5500_v33 }
 0x3f2   : > { %v8460_v41 = vpop.permute.xlu1 %4245 }
 0x3f3   : > { %10116 = vst [vmem:[#allocation137_spill] sm:$0xff] %v8460_v41  ;;  %v10177_v41 = vld [vmem:[#allocation4_spill] sm:$0xff] }
 0x3f4   : > { %v8458_v35 = vpop.permute.xlu0 %4240 }
 0x3f5   : > { %10115 = vst [vmem:[#allocation138_spill] sm:$0xff] %v8458_v35  ;;  %v10178_v35 = vld [vmem:[#allocation144_spill] sm:$0xff] }
 0x3f6   : > { %v8464_v25 = vpop.permute.xlu1 %4405 }
 0x3f7   : > { %10118 = vst [vmem:[#allocation139_spill] sm:$0xff] %v8464_v25 }
 0x3f8   : > { %v8462_v48 = vpop.permute.xlu0 %4400 }
 0x3f9   : > { %10117 = vst [vmem:[#allocation140_spill] sm:$0xff] %v8462_v48 }
 0x3fa   : > { %v8468_v21 = vpop.permute.xlu1 %4125 }
 0x3fc   : > { %v8466_v37 = vpop.permute.xlu0 %4120 }
 0x3fe   : > { %v8472_v46 = vpop.permute.xlu1 %4230 }
 0x3ff   : > { %10120 = vst [vmem:[#allocation125_spill] sm:$0xff] %v8472_v46 }
 0x400   : > { %v8470_v51 = vpop.permute.xlu0 %4210 }
 0x401   : > { %10119 = vst [vmem:[#allocation126_spill] sm:$0xff] %v8470_v51  ;;  %v10185_v51 = vld [vmem:[#allocation101_spill] sm:$0xff] }
 0x402   : > { %v8476_v38 = vpop.permute.xlu1 %4265 }
 0x403   : > { %10122 = vst [vmem:[#allocation128_spill] sm:$0xff] %v8476_v38 }
 0x404   : > { %v8474_v53 = vpop.permute.xlu0 %4260 }
 0x405   : > { %10121 = vst [vmem:[#allocation7_spill] sm:$0xff] %v8474_v53 }
 0x406   : > { %v8480_v24 = vpop.permute.xlu1 %4390 }
 0x407   : > { %10124 = vst [vmem:[#allocation6_spill] sm:$0xff] %v8480_v24 }
 0x408   : > { %v8478_v13 = vpop.permute.xlu0 %4370 }
 0x409   : > { %10123 = vst [vmem:[#allocation9_spill] sm:$0xff] %v8478_v13  ;;  %v8585_v13 = vld [vmem:[%s9495_s8 + $0x2] ss:$0 sm:$0xff] }
 0x40a   : > { %v8484_v28 = vpop.permute.xlu1 %4425  ;;  %10159 = vst [vmem:[#allocation40_spill] sm:$0xff] %v8585_v13 }
 0x40b   : > { %10126 = vst [vmem:[#allocation8_spill] sm:$0xff] %v8484_v28 }
 0x40c   : > { %v8482_v8 = vpop.permute.xlu0 %4420 }
 0x40d   : > { %10125 = vst [vmem:[#allocation11_spill] sm:$0xff] %v8482_v8 }
 0x40e   : > { %v8488_v20 = vpop.permute.xlu1 %4140 }
 0x410   : > { %v8486_v43 = vpop.permute.xlu0 %4110 }
 0x412   : > { %v8492_v57 = vpop.permute.xlu1 %4250 }
 0x413   : > { %10127 = vst [vmem:[#allocation13_spill] sm:$0xff] %v8492_v57 }
 0x414   : > { %v8490_v31 = vpop.permute.xlu0 %4145 }
 0x416   : > { %v8502_v2 = vpop.permute.xlu1 %4285 }
 0x417   : > { %10129 = vst [vmem:[#allocation15_spill] sm:$0xff] %v8502_v2 }
 0x418   : > { %v8500_v36 = vpop.permute.xlu0 %4280 }
 0x419   : > { %10128 = vst [vmem:[#allocation10_spill] sm:$0xff] %v8500_v36 }
 0x41a   : > { %v8506_v3 = vpop.permute.xlu1 %4440 }
 0x41b   : > { %10131 = vst [vmem:[#allocation91_spill] sm:$0xff] %v8506_v3 }
 0x41c   : > { %v8504_v34 = vpop.permute.xlu0 %4410 }
 0x41d   : > { %10130 = vst [vmem:[#allocation12_spill] sm:$0xff] %v8504_v34 }
 0x41e   : > { %v8510_v5 = vpop.permute.xlu1 %4130 }
 0x420   : > { %v8508_v19 = vpop.permute.xlu0 %4445 }
 0x421   : > { %10132 = vst [vmem:[#allocation95_spill] sm:$0xff] %v8508_v19 }
 0x422   : > { %v8514_v22 = vpop.permute.xlu1 %4165 }
 0x424   : > { %v8512_v18 = vpop.permute.xlu0 %4160 }
 0x426   : > { %v8518_v49 = vpop.permute.xlu1 %4235 }
 0x427   : > { %10134 = vst [vmem:[#allocation89_spill] sm:$0xff] %v8518_v49 }
 0x428   : > { %v8516_v12 = vpop.permute.xlu0 %4215 }
 0x429   : > { %10133 = vst [vmem:[#allocation86_spill] sm:$0xff] %v8516_v12  ;;  %v10184_v12 = vld [vmem:[#allocation100_spill] sm:$0xff] }
 0x42a   : > { %v8522_v58 = vpop.permute.xlu1 %4300 }
 0x42b   : > { %10136 = vst [vmem:[#allocation84_spill] sm:$0xff] %v8522_v58  ;;  %v10166_v58 = vld [vmem:[#allocation141_spill] sm:$0xff] }
 0x42c   : > { %v8520_v60 = vpop.permute.xlu0 %4270 }
 0x42d   : > { %10135 = vst [vmem:[#allocation93_spill] sm:$0xff] %v8520_v60 }
 0x42e   : > { %v8526_v16 = vpop.permute.xlu1 %4375 }
 0x42f   : > { %10138 = vst [vmem:[#allocation90_spill] sm:$0xff] %v8526_v16 }
 0x430   : > { %v8524_v11 = vpop.permute.xlu0 %4305 }
 0x431   : > { %10137 = vst [vmem:[#allocation88_spill] sm:$0xff] %v8524_v11 }
 0x432   : > { %v8530_v62 = vpop.permute.xlu1 %4430 }
 0x433   : > { %10140 = vst [vmem:[#allocation92_spill] sm:$0xff] %v8530_v62 }
 0x434   : > { %v8528_v6 = vpop.permute.xlu0 %4395 }
 0x435   : > { %10139 = vst [vmem:[#allocation94_spill] sm:$0xff] %v8528_v6 }
 0x436   : > { %v8534_v7 = vpop.permute.xlu1 %4465 }
 0x437   : > { %10142 = vst [vmem:[#allocation146_spill] sm:$0xff] %v8534_v7 }
 0x438   : > { %v8532_v32 = vpop.permute.xlu0 %4460 }
 0x439   : > { %10141 = vst [vmem:[#allocation149_spill] sm:$0xff] %v8532_v32 }
 0x43a   : > { %v8538_v33 = vpop.permute.xlu1 %4150 }
 0x43c   : > { %v8536_v63 = vpop.permute.xlu0 %4115 }
 0x43e   : > { %v8542_v45 = vpop.permute.xlu1 %4185 }
 0x440   : > { %v8540_v23 = vpop.permute.xlu0 %4180 }
 0x442   : > { %v8546_v3 = vpop.permute.xlu1 %4290 }
 0x443   : > { %10144 = vst [vmem:[#allocation150_spill] sm:$0xff] %v8546_v3 }
 0x444   : > { %v8544_v19 = vpop.permute.xlu0 %4255 }
 0x445   : > { %10143 = vst [vmem:[#allocation87_spill] sm:$0xff] %v8544_v19  ;;  %v10176_v19 = vld [vmem:[#allocation115_spill] sm:$0xff] }
 0x446   : > { %v8550_v8 = vpop.permute.xlu1 %4325 }
 0x447   : > { %10146 = vst [vmem:[#allocation21_spill] sm:$0xff] %v8550_v8  ;;  %v10164_v8 = vld [vmem:[#allocation35_spill] sm:$0xff] }
 0x448   : > { %v8548_v28 = vpop.permute.xlu0 %4320 }
 0x449   : > { %10145 = vst [vmem:[#allocation120_spill] sm:$0xff] %v8548_v28 }
 0x44a   : > { %v8554_v32 = vpop.permute.xlu1 %4450 }
 0x44b   : > { %10148 = vst [vmem:[#allocation147_spill] sm:$0xff] %v8554_v32 }
 0x44c   : > { %v8552_v62 = vpop.permute.xlu0 %4415 }
 0x44d   : > { %10147 = vst [vmem:[#allocation113_spill] sm:$0xff] %v8552_v62 }
 0x44e   : > { %v8558_v34 = vpop.permute.xlu1 %4485 }
 0x44f   : > { %10150 = vst [vmem:[#allocation116_spill] sm:$0xff] %v8558_v34 }
 0x450   : > { %v8556_v7 = vpop.permute.xlu0 %4480 }
 0x451   : > { %10149 = vst [vmem:[#allocation23_spill] sm:$0xff] %v8556_v7 }
 0x452   : > { %v8562_v48 = vpop.permute.xlu1 %4170 }
 0x454   : > { %v8560_v25 = vpop.permute.xlu0 %4135 }
 0x456   : > { %v8566_v24 = vpop.permute.xlu1 %4310 }
 0x457   : > { %10152 = vst [vmem:[#allocation30_spill] sm:$0xff] %v8566_v24  ;;  %v10165_v24 = vld [vmem:[#allocation112_spill] sm:$0xff] }
 0x458   : > { %v8564_v6 = vpop.permute.xlu0 %4275 }
 0x459   : > { %10151 = vst [vmem:[#allocation22_spill] sm:$0xff] %v8564_v6 }
 0x45a   : > { %v8570_v27 = vpop.permute.xlu1 %4345 }
 0x45b   : > { %10154 = vst [vmem:[#allocation20_spill] sm:$0xff] %v8570_v27 }
 0x45c   : > { %v8568_v0 = vpop.permute.xlu0 %4340 }
 0x45d   : > { %10153 = vst [vmem:[#allocation31_spill] sm:$0xff] %v8568_v0 }
 0x45e   : > { %v8574_v62 = vpop.permute.xlu1 %4470 }
 0x45f   : > { %10156 = vst [vmem:[#allocation37_spill] sm:$0xff] %v8574_v62 }
 0x460   : > { %v8572_v16 = vpop.permute.xlu0 %4435 }
 0x461   : > { %10155 = vst [vmem:[#allocation36_spill] sm:$0xff] %v8572_v16 }
 0x462   : > { %v8578_v7 = vpop.permute.xlu1 %4505 }
 0x463   : > { %10158 = vst [vmem:[#allocation39_spill] sm:$0xff] %v8578_v7 }
 0x464   : > { %v8576_v32 = vpop.permute.xlu0 %4500 }
 0x465   : > { %10157 = vst [vmem:[#allocation38_spill] sm:$0xff] %v8576_v32 }
 0x466   : > { %v8587_v9 = vpop.permute.xlu1 %4190 }
 0x468   : > { %v8580_v34 = vpop.permute.xlu0 %4155 }
 0x4bf   : > { %v5457_v17 = vpop.f32.mrb[8].mxu1  ;;  %v8589_v0 = vpop.f32.mrb[12].mxu0 }
 0x4c0   : > { %10160 = vst [vmem:[#allocation41_spill] sm:$0xff] %v8589_v0  ;;  %v8592_v16 = vadd.f32 %v5457_v17, %v8585_v13  ;;  %v8594_v62 = vpop.f32.mrb[9].mxu1  ;;  %v8596_v32 = vpop.f32.mrb[13].mxu0  ;;  %v8606_v11 = vadd.f32 %v8589_v0, %v10165_v24  ;;  %v8610_v3 = vadd.f32 %v8589_v0, %v10166_v58  ;;  %v10167_v17 = vld [vmem:[#allocation145_spill] sm:$0xff]  ;;  %v10172_v24 = vld [vmem:[#allocation3_spill] sm:$0xff] }
 0x4c1   : > { %10162 = vst [vmem:[#allocation43_spill] sm:$0xff] %v8594_v62  ;;  %10163 = vst [vmem:[#allocation44_spill] sm:$0xff] %v8596_v32  ;;  %v5458_v7 = vpop.f32.mrb[10].mxu1  ;;  %v8598_v27 = vpop.f32.mrb[14].mxu0  ;;  %v8602_v28 = vadd.f32 %v10164_v8, %v8596_v32  ;;  %v10171_v8 = vld [vmem:[#allocation34_spill] sm:$0xff]  ;;  %v8629_v38 = vadd.f32 %v10172_v24, %v8596_v32  ;;  %v10173_v58 = vld [vmem:[#allocation143_spill] sm:$0xff] }
 0x4c2   : > { %10161 = vst [vmem:[#allocation42_spill] sm:$0xff] %v8592_v16  ;;  %v8614_v16 = vadd.f32 %v8589_v0, %v10167_v17  ;;  %v8617_v2 = vadd.f32 %v5458_v7, %v8585_v13  ;;  %v8619_v36 = vpop.f32.mrb[11].mxu1  ;;  %v8621_v6 = vpop.f32.mrb[15].mxu0  ;;  %v8625_v60 = vadd.f32 %v8598_v27, %v10171_v8  ;;  %v8633_v53 = vadd.f32 %v10173_v58, %v8596_v32  ;;  %v10175_v7 = vld [vmem:[#allocation32_spill] sm:$0xff]  ;;  %v10179_v58 = vld [vmem:[#allocation142_spill] sm:$0xff]  ;;  %v10193_v13 = vld [vmem:[#allocation105_spill] sm:$0xff] }
 0x4c3   : > { %10169 = vst [vmem:[#allocation46_spill] sm:$0xff] %v8619_v36  ;;  %10170 = vst [vmem:[#allocation47_spill] sm:$0xff] %v8621_v6  ;;  %v8635_v17 = vpop.permute.xlu0 %4295  ;;  %v8641_v57 = vadd.f32 %v10176_v19, %v8621_v6  ;;  %v8645_v8 = vadd.f32 %v8598_v27, %v10177_v41  ;;  %v8649_v24 = vadd.f32 %v8598_v27, %v10178_v35  ;;  %v10191_v36 = vld [vmem:[#allocation104_spill] sm:$0xff]  ;;  %v10195_v62 = vld [vmem:[#allocation106_spill] sm:$0xff] }
 0x4c4   : > { %10168 = vst [vmem:[#allocation45_spill] sm:$0xff] %v8617_v2  ;;  %10174 = vst [vmem:[#allocation48_spill] sm:$0xff] %v8635_v17  ;;  %v4519_v2 = vadd.f32 %v10175_v7, %v8621_v6  ;;  %v8653_v49 = vadd.f32 %v10179_v58, %v8621_v6  ;;  %v10180_v17 = vld [vmem:[#allocation96_spill] sm:$0xff]  ;;  %v10181_v7 = vld [vmem:[#allocation97_spill] sm:$0xff]  ;;  %v8665_v41 = vadd.f32 %v8589_v0, %v10182_v29 }
 0x4c5   : > { %v8657_v46 = vadd.f32 %v10180_v17, %v8596_v32  ;;  %v8661_v19 = vadd.f32 %v10181_v7, %v8621_v6  ;;  %v8669_v35 = vadd.f32 %v8598_v27, %v10183_v42  ;;  %v8673_v58 = vadd.f32 %v10184_v12, %v8596_v32 }
 0x4c6   : > { %v8677_v17 = vadd.f32 %v10185_v51, %v8621_v6  ;;  %v8681_v7 = vadd.f32 %v8589_v0, %v10187_v10  ;;  %v8685_v29 = vadd.f32 %v8598_v27, %v10189_v39  ;;  %v8689_v42 = vadd.f32 %v10191_v36, %v8596_v32 }
 0x4c7   : > { %v8693_v12 = vadd.f32 %v10193_v13, %v8621_v6  ;;  %v8697_v51 = vadd.f32 %v8589_v0, %v10195_v62  ;;  %v10204_v62 = vld [vmem:[#allocation111_spill] sm:$0xff] }
 0x4c8   : > { %10186 = vst [vmem:[#allocation49_spill] sm:$0xff] %v8677_v17  ;;  %10188 = vst [vmem:[#allocation50_spill] sm:$0xff] %v8681_v7  ;;  %v10197_v17 = vld [vmem:[#allocation107_spill] sm:$0xff]  ;;  %v10199_v7 = vld [vmem:[#allocation108_spill] sm:$0xff] }
 0x4c9   : > { %10190 = vst [vmem:[#allocation51_spill] sm:$0xff] %v8685_v29  ;;  %10192 = vst [vmem:[#allocation53_spill] sm:$0xff] %v8689_v42  ;;  %v8701_v10 = vadd.f32 %v8598_v27, %v10197_v17  ;;  %v8705_v39 = vadd.f32 %v10199_v7, %v8596_v32  ;;  %v10201_v29 = vld [vmem:[#allocation109_spill] sm:$0xff]  ;;  %v10202_v42 = vld [vmem:[#allocation110_spill] sm:$0xff] }
 0x4ca   : > { %10194 = vst [vmem:[#allocation119_spill] sm:$0xff] %v8693_v12  ;;  %10196 = vst [vmem:[#allocation55_spill] sm:$0xff] %v8697_v51  ;;  %v8709_v36 = vadd.f32 %v10201_v29, %v8621_v6  ;;  %v8713_v13 = vadd.f32 %v8589_v0, %v10202_v42  ;;  %v8715_v12 = vpop.permute.xlu1 %4330  ;;  %v8719_v51 = vadd.f32 %v8598_v27, %v10204_v62  ;;  %v10205_v17 = vld [vmem:[#allocation117_spill] sm:$0xff]  ;;  %v10206_v7 = vld [vmem:[#allocation118_spill] sm:$0xff]  ;;  %v8733_v42 = vpop.permute.xlu0 %4455 }
 0x4cb   : > { %10198 = vst [vmem:[#allocation52_spill] sm:$0xff] %v8701_v10  ;;  %10200 = vst [vmem:[#allocation57_spill] sm:$0xff] %v8705_v39  ;;  %v8723_v10 = vadd.f32 %v10205_v17, %v8596_v32  ;;  %v8727_v39 = vadd.f32 %v10206_v7, %v8621_v6  ;;  %v8731_v29 = vadd.f32 %v8589_v0, %v8343_v50 }
 0x4cc   : > { %10203 = vst [vmem:[#allocation54_spill] sm:$0xff] %v8715_v12  ;;  %10207 = vst [vmem:[#allocation61_spill] sm:$0xff] %v8733_v42  ;;  %v8737_v12 = vadd.f32 %v8598_v27, %v8347_v26  ;;  %v8741_v62 = vadd.f32 %v8363_v44, %v8596_v32  ;;  %v8745_v17 = vadd.f32 %v8365_v40, %v8621_v6 }
 0x4cd   : > { %v8749_v7 = vadd.f32 %v8589_v0, %v8382_v61  ;;  %v8753_v50 = vadd.f32 %v8598_v27, %v8384_v54  ;;  %v8757_v26 = vadd.f32 %v8405_v4, %v8596_v32  ;;  %v8761_v44 = vadd.f32 %v8408_v55, %v8621_v6 }
 0x4ce   : > { %v8765_v40 = vadd.f32 %v8589_v0, %v8413_v1  ;;  %v8769_v61 = vadd.f32 %v8598_v27, %v8416_v56  ;;  %v8773_v54 = vadd.f32 %v8420_v15, %v8596_v32  ;;  %v8777_v4 = vadd.f32 %v8422_v30, %v8621_v6  ;;  %v8815_v42 = vpop.permute.xlu1 %4490 }
 0x4cf   : > { %v8781_v55 = vadd.f32 %v8589_v0, %v8432_v47  ;;  %v8785_v1 = vadd.f32 %v8598_v27, %v8434_v14  ;;  %v8789_v56 = vadd.f32 %v8438_v52, %v8596_v32  ;;  %v8793_v15 = vadd.f32 %v8456_v59, %v8621_v6  ;;  %10208 = vst [vmem:[#allocation58_spill] sm:$0xff] %v8815_v42 }
 0x4d0   : > { %v8797_v30 = vadd.f32 %v8589_v0, %v8486_v43  ;;  %v8801_v47 = vadd.f32 %v8598_v27, %v8536_v63  ;;  %v8805_v14 = vadd.f32 %v8466_v37, %v8596_v32  ;;  %v8809_v52 = vadd.f32 %v8468_v21, %v8621_v6 }
 0x4d1   : > { %v8813_v59 = vadd.f32 %v8589_v0, %v8510_v5  ;;  %v8819_v43 = vadd.f32 %v8598_v27, %v8560_v25  ;;  %v8823_v63 = vadd.f32 %v8488_v20, %v8596_v32  ;;  %v8827_v37 = vadd.f32 %v8490_v31, %v8621_v6  ;;  %v4176_v5 = vpop.permute.xlu0 %4175 }
 0x4d2   : > { %v8831_v21 = vadd.f32 %v8589_v0, %v8538_v33  ;;  %v8835_v42 = vadd.f32 %v8598_v27, %v8580_v34  ;;  %v8839_v25 = vadd.f32 %v8512_v18, %v8596_v32  ;;  %v8843_v20 = vadd.f32 %v8514_v22, %v8621_v6 }
 0x4d3   : > { %v8847_v31 = vadd.f32 %v8589_v0, %v8562_v48  ;;  %v8850_v33 = vadd.f32 %v8598_v27, %v4176_v5  ;;  %v8858_v34 = vadd.f32 %v8542_v45, %v8621_v6  ;;  %v8862_v18 = vadd.f32 %v8589_v0, %v8587_v9 }
 0x4d4   : > { %10209 = vst [vmem:[#allocation63_spill] sm:$0xff] %v8831_v21  ;;  %v8854_v21 = vadd.f32 %v8540_v23, %v8596_v32  ;;  %v4646_v22 = vsel %vm550_vm3, %v8602_v28, -inf  ;;  %v4647_v48 = vsel %vm550_vm3, %v4519_v2, -inf  ;;  %v4649_v5 = vsel %vm550_vm3, %v8606_v11, -inf  ;;  %v8883_v11 = vpop.permute.xlu1 %4315 }
 0x4d5   : > { %10210 = vst [vmem:[#allocation60_spill] sm:$0xff] %v8850_v33  ;;  %10212 = vst [vmem:[#allocation62_spill] sm:$0xff] %v8858_v34  ;;  %v4651_v23 = vsel %vm550_vm3, %v8625_v60, -inf  ;;  %v4648_v32 = vmax.f32 %v4646_v22, %v4647_v48  ;;  %v4659_v45 = vsel %vm550_vm3, %v8629_v38, -inf  ;;  %v4660_v6 = vsel %vm550_vm3, %v8641_v57, -inf }
 0x4d6   : > { %10211 = vst [vmem:[#allocation65_spill] sm:$0xff] %v8854_v21  ;;  %10213 = vst [vmem:[#allocation25_spill] sm:$0xff] %v8862_v18  ;;  %v4662_v9 = vsel %vm550_vm3, %v8610_v3, -inf  ;;  %v4661_v0 = vmax.f32 %v4659_v45, %v4660_v6  ;;  %v4664_v28 = vsel %vm550_vm3, %v8645_v8, -inf  ;;  %v4672_v2 = vsel %vm550_vm3, %v8633_v53, -inf  ;;  %v10222_v21 = vld [vmem:[#allocation57_spill] sm:$0xff] }
 0x4d7   : > { %v4673_v60 = vsel %vm550_vm3, %v8653_v49, -inf  ;;  %10214 = vst [vmem:[#allocation5_spill] sm:$0xff] %v8883_v11  ;;  %v4650_v22 = vmax.f32 %v4648_v32, %v4649_v5  ;;  %v4675_v57 = vsel %vm550_vm3, %v8614_v16, -inf  ;;  %v4677_v3 = vsel %vm550_vm3, %v8649_v24, -inf }
 0x4d8   : > { %v4674_v38 = vmax.f32 %v4672_v2, %v4673_v60  ;;  %v4663_v6 = vmax.f32 %v4661_v0, %v4662_v9  ;;  %v4685_v8 = vsel %vm550_vm3, %v8657_v46, -inf  ;;  %v4686_v53 = vsel %vm550_vm3, %v8661_v19, -inf  ;;  %v10215_v0 = vld [vmem:[#allocation49_spill] sm:$0xff]  ;;  %v10216_v46 = vld [vmem:[#allocation50_spill] sm:$0xff] }
 0x4d9   : > { %v4688_v49 = vsel %vm550_vm3, %v8665_v41, -inf  ;;  %v4652_v48 = vmax.f32 %v4650_v22, %v4651_v23  ;;  %v4687_v32 = vmax.f32 %v4685_v8, %v4686_v53  ;;  %v4690_v5 = vsel %vm550_vm3, %v8669_v35, -inf  ;;  %v10217_v22 = vld [vmem:[#allocation51_spill] sm:$0xff] }
 0x4da   : > { %v4676_v45 = vmax.f32 %v4674_v38, %v4675_v57  ;;  %v4665_v16 = vmax.f32 %v4663_v6, %v4664_v28  ;;  %v4698_v24 = vsel %vm550_vm3, %v8673_v58, -inf  ;;  %v4699_v9 = vsel %vm550_vm3, %v10215_v0, -inf  ;;  %v10218_v57 = vld [vmem:[#allocation53_spill] sm:$0xff]  ;;  %v10219_v28 = vld [vmem:[#allocation119_spill] sm:$0xff]  ;;  %v8909_v6 = vpop.permute.xlu1 %4475 }
 0x4db   : > { %v4701_v2 = vsel %vm550_vm3, %v10216_v46, -inf  ;;  %v4653_v19 = vrot.slane %v4652_v48, 4  ;;  %v4689_v11 = vmax.f32 %v4687_v32, %v4688_v49  ;;  %v4700_v41 = vmax.f32 %v4698_v24, %v4699_v9  ;;  %v10220_v49 = vld [vmem:[#allocation55_spill] sm:$0xff]  ;;  %v10221_v32 = vld [vmem:[#allocation52_spill] sm:$0xff] }
 0x4dc   : > { %v4678_v60 = vmax.f32 %v4676_v45, %v4677_v3  ;;  %v4666_v23 = vrot.slane %v4665_v16, 4  ;;  %v4703_v38 = vsel %vm550_vm3, %v10217_v22, -inf  ;;  %v4711_v35 = vsel %vm550_vm3, %v10218_v57, -inf }
 0x4dd   : > { %v4712_v58 = vsel %vm550_vm3, %v10219_v28, -inf  ;;  %v4654_v8 = vmax.f32 %v4652_v48, %v4653_v19  ;;  %v4691_v0 = vmax.f32 %v4689_v11, %v4690_v5  ;;  %v4702_v46 = vmax.f32 %v4700_v41, %v4701_v2 }
 0x4de   : > { %v4679_v53 = vrot.slane %v4678_v60, 4  ;;  %v4667_v18 = vmax.f32 %v4665_v16, %v4666_v23  ;;  %v4713_v3 = vmax.f32 %v4711_v35, %v4712_v58  ;;  %v4714_v45 = vsel %vm550_vm3, %v10220_v49, -inf  ;;  %v4196_v58 = vpop.permute.xlu1 %4195 }
 0x4df   : > { %v4716_v24 = vsel %vm550_vm3, %v10221_v32, -inf  ;;  %v4655_v9 = vrot.slane %v4654_v8, 2  ;;  %v4692_v57 = vrot.slane %v4691_v0, 4  ;;  %v4704_v33 = vmax.f32 %v4702_v46, %v4703_v38 }
 0x4e0   : > { %v4680_v22 = vmax.f32 %v4678_v60, %v4679_v53  ;;  %v4668_v34 = vrot.slane %v4667_v18, 2  ;;  %v4715_v28 = vmax.f32 %v4713_v3, %v4714_v45  ;;  %v4724_v48 = vsel %vm550_vm3, %v10222_v21, -inf }
 0x4e1   : > { %v4725_v11 = vsel %vm550_vm3, %v8709_v36, -inf  ;;  %v4656_v5 = vmax.f32 %v4654_v8, %v4655_v9  ;;  %v4693_v2 = vmax.f32 %v4691_v0, %v4692_v57  ;;  %v4705_v19 = vrot.slane %v4704_v33, 4 }
 0x4e2   : > { %v4681_v16 = vrot.slane %v4680_v22, 2  ;;  %v4669_v41 = vmax.f32 %v4667_v18, %v4668_v34  ;;  %v4717_v23 = vmax.f32 %v4715_v28, %v4716_v24  ;;  %v4726_v35 = vmax.f32 %v4724_v48, %v4725_v11 }
 0x4e3   : > { %v4727_v60 = vsel %vm550_vm3, %v8713_v13, -inf  ;;  %v4657_v38 = vrot.slane %v4656_v5, 1  ;;  %v4694_v46 = vrot.slane %v4693_v2, 2  ;;  %v4706_v3 = vmax.f32 %v4704_v33, %v4705_v19 }
 0x4e4   : > { %v4682_v53 = vmax.f32 %v4680_v22, %v4681_v16  ;;  %v8922_v21 = vadd.f32 %v8598_v27, %v4196_v58  ;;  %v4670_v49 = vrot.slane %v4669_v41, 1  ;;  %v4718_v36 = vrot.slane %v4717_v23, 4 }
 0x4e5   : > { %v4728_v8 = vmax.f32 %v4726_v35, %v4727_v60  ;;  %v4695_v0 = vmax.f32 %v4693_v2, %v4694_v46  ;;  %v4707_v32 = vrot.slane %v4706_v3, 2  ;;  %v4729_v34 = vsel %vm550_vm3, %v8719_v51, -inf }
 0x4e6   : > { %v4683_v45 = vrot.slane %v4682_v53, 1  ;;  %v8926_v18 = vmax.f32 %v4656_v5, %v4657_v38  ;;  %v8928_v13 = vmax.f32 %v4669_v41, %v4670_v49  ;;  %v4719_v24 = vmax.f32 %v4717_v23, %v4718_v36 }
 0x4e7   : > { %v4730_v9 = vmax.f32 %v4728_v8, %v4729_v34  ;;  %v4696_v22 = vrot.slane %v4695_v0, 1  ;;  %v4708_v33 = vmax.f32 %v4706_v3, %v4707_v32  ;;  %v4737_v57 = vsel %vm550_vm3, %v8723_v10, -inf }
 0x4e8   : > { %v4738_v28 = vsel %vm550_vm3, %v8727_v39, -inf  ;;  %v8934_v48 = vmax.f32 %v4682_v53, %v4683_v45  ;;  %v4720_v11 = vrot.slane %v4719_v24, 2  ;;  %v4740_v19 = vsel %vm550_vm3, %v8731_v29, -inf }
 0x4e9   : > { %v4731_v16 = vrot.slane %v4730_v9, 4  ;;  %v4739_v2 = vmax.f32 %v4737_v57, %v4738_v28  ;;  %v8936_v51 = vmax.f32 %v4695_v0, %v4696_v22  ;;  %v4709_v5 = vrot.slane %v4708_v33, 1 }
 0x4ea   : > { %v4750_v41 = vsel %vm550_vm3, %v8741_v62, -inf  ;;  %v4721_v23 = vmax.f32 %v4719_v24, %v4720_v11  ;;  %v4751_v39 = vsel %vm550_vm3, %v8745_v17, -inf  ;;  %v4742_v58 = vsel %vm550_vm3, %v8737_v12, -inf }
 0x4eb   : > { %v4732_v35 = vmax.f32 %v4730_v9, %v4731_v16  ;;  %v4741_v10 = vmax.f32 %v4739_v2, %v4740_v19  ;;  %v8944_v60 = vmax.f32 %v4708_v33, %v4709_v5  ;;  %v4752_v38 = vmax.f32 %v4750_v41, %v4751_v39 }
 0x4ec   : > { %v4753_v53 = vsel %vm550_vm3, %v8749_v7, -inf  ;;  %v4722_v46 = vrot.slane %v4721_v23, 1  ;;  %v4755_v62 = vsel %vm550_vm3, %v8753_v50, -inf  ;;  %v4763_v36 = vsel %vm550_vm3, %v8757_v26, -inf }
 0x4ed   : > { %v4733_v29 = vrot.slane %v4732_v35, 2  ;;  %v4743_v3 = vmax.f32 %v4741_v10, %v4742_v58  ;;  %v4754_v49 = vmax.f32 %v4752_v38, %v4753_v53  ;;  %v4764_v17 = vsel %vm550_vm3, %v8761_v44, -inf }
 0x4ee   : > { %v4766_v12 = vsel %vm550_vm3, %v8765_v40, -inf  ;;  %v4765_v0 = vmax.f32 %v4763_v36, %v4764_v17  ;;  %v4768_v7 = vsel %vm550_vm3, %v8769_v61, -inf  ;;  %v8960_v32 = vmax.f32 %v4721_v23, %v4722_v46 }
 0x4ef   : > { %v4734_v8 = vmax.f32 %v4732_v35, %v4733_v29  ;;  %v4744_v45 = vrot.slane %v4743_v3, 4  ;;  %v4756_v34 = vmax.f32 %v4754_v49, %v4755_v62  ;;  %v4776_v50 = vsel %vm550_vm3, %v8773_v54, -inf }
 0x4f0   : > { %v4777_v26 = vsel %vm550_vm3, %v8777_v4, -inf  ;;  %v4767_v9 = vmax.f32 %v4765_v0, %v4766_v12  ;;  %v4779_v33 = vsel %vm550_vm3, %v8781_v55, -inf  ;;  %v4781_v61 = vsel %vm550_vm3, %v8785_v1, -inf }
 0x4f1   : > { %v4735_v24 = vrot.slane %v4734_v8, 1  ;;  %v4745_v44 = vmax.f32 %v4743_v3, %v4744_v45  ;;  %v4778_v22 = vmax.f32 %v4776_v50, %v4777_v26  ;;  %v4757_v40 = vrot.slane %v4756_v34, 4 }
 0x4f2   : > { %v4790_v57 = vsel %vm550_vm3, %v8793_v15, -inf  ;;  %v4769_v11 = vmax.f32 %v4767_v9, %v4768_v7  ;;  %v4789_v4 = vsel %vm550_vm3, %v8789_v56, -inf  ;;  %v4792_v19 = vsel %vm550_vm3, %v8797_v30, -inf }
 0x4f3   : > { %v4746_v28 = vrot.slane %v4745_v44, 2  ;;  %v4780_v54 = vmax.f32 %v4778_v22, %v4779_v33  ;;  %v8974_v16 = vmax.f32 %v4734_v8, %v4735_v24  ;;  %v4758_v2 = vmax.f32 %v4756_v34, %v4757_v40 }
 0x4f4   : > { %v4791_v5 = vmax.f32 %v4789_v4, %v4790_v57  ;;  %v4770_v41 = vrot.slane %v4769_v11, 4  ;;  %v4794_v1 = vsel %vm550_vm3, %v8801_v47, -inf  ;;  %v4802_v10 = vsel %vm550_vm3, %v8805_v14, -inf  ;;  %v10224_v4 = vld [vmem:[#allocation65_spill] sm:$0xff] }
 0x4f5   : > { %v4747_v55 = vmax.f32 %v4745_v44, %v4746_v28  ;;  %v4782_v23 = vmax.f32 %v4780_v54, %v4781_v61  ;;  %v4759_v15 = vrot.slane %v4758_v2, 2  ;;  %v4803_v56 = vsel %vm550_vm3, %v8809_v52, -inf }
 0x4f6   : > { %v4793_v35 = vmax.f32 %v4791_v5, %v4792_v19  ;;  %v4771_v58 = vmax.f32 %v4769_v11, %v4770_v41  ;;  %v4804_v53 = vmax.f32 %v4802_v10, %v4803_v56  ;;  %v4805_v29 = vsel %vm550_vm3, %v8813_v59, -inf  ;;  %v10225_v5 = vld [vmem:[#allocation62_spill] sm:$0xff]  ;;  %v10226_v41 = vld [vmem:[#allocation60_spill] sm:$0xff] }
 0x4f7   : > { %v4748_v39 = vrot.slane %v4747_v55, 1  ;;  %v4783_v38 = vrot.slane %v4782_v23, 4  ;;  %v4760_v46 = vmax.f32 %v4758_v2, %v4759_v15  ;;  %v4807_v47 = vsel %vm550_vm3, %v8819_v43, -inf  ;;  %v10223_v43 = vld [vmem:[#allocation63_spill] sm:$0xff] }
 0x4f8   : > { %v4795_v30 = vmax.f32 %v4793_v35, %v4794_v1  ;;  %v4772_v3 = vrot.slane %v4771_v58, 2  ;;  %v4806_v49 = vmax.f32 %v4804_v53, %v4805_v29  ;;  %v4815_v14 = vsel %vm550_vm3, %v8823_v63, -inf  ;;  %v10227_v35 = vld [vmem:[#allocation25_spill] sm:$0xff]  ;;  %v9015_v53 = vpop.permute.xlu0 %4350 }
 0x4f9   : > { %v4784_v62 = vmax.f32 %v4782_v23, %v4783_v38  ;;  %v8990_v36 = vmax.f32 %v4747_v55, %v4748_v39  ;;  %v4761_v52 = vrot.slane %v4760_v46, 1  ;;  %v4816_v12 = vsel %vm550_vm3, %v8827_v37, -inf }
 0x4fa   : > { %v4796_v17 = vrot.slane %v4795_v30, 4  ;;  %v4773_v8 = vmax.f32 %v4771_v58, %v4772_v3  ;;  %v4808_v0 = vmax.f32 %v4806_v49, %v4807_v47  ;;  %v4817_v59 = vmax.f32 %v4815_v14, %v4816_v12 }
 0x4fb   : > { %v4785_v45 = vrot.slane %v4784_v62, 2  ;;  %v4762_v7 = vmax.f32 %v4760_v46, %v4761_v52  ;;  %v4818_v50 = vsel %vm550_vm3, %v10223_v43, -inf  ;;  %v4820_v26 = vsel %vm550_vm3, %v8835_v42, -inf }
 0x4fc   : > { %v4797_v34 = vmax.f32 %v4795_v30, %v4796_v17  ;;  %v4774_v63 = vrot.slane %v4773_v8, 1  ;;  %v4809_v44 = vrot.slane %v4808_v0, 4  ;;  %v4819_v9 = vmax.f32 %v4817_v59, %v4818_v50 }
 0x4fd   : > { %v4786_v24 = vmax.f32 %v4784_v62, %v4785_v45  ;;  %v4828_v37 = vsel %vm550_vm3, %v8839_v25, -inf  ;;  %v4829_v40 = vsel %vm550_vm3, %v8843_v20, -inf  ;;  %v4831_v33 = vsel %vm550_vm3, %v8847_v31, -inf  ;;  %v10228_v45 = vld [vmem:[#allocation43_spill] sm:$0xff] }
 0x4fe   : > { %v4798_v22 = vrot.slane %v4797_v34, 2  ;;  %v4775_v61 = vmax.f32 %v4773_v8, %v4774_v63  ;;  %v4810_v28 = vmax.f32 %v4808_v0, %v4809_v44  ;;  %v4821_v11 = vmax.f32 %v4819_v9, %v4820_v26  ;;  %v10229_v0 = vld [vmem:[#allocation40_spill] sm:$0xff]  ;;  %v9037_v63 = vpop.permute.xlu0 %4510  ;;  %v10230_v44 = vld [vmem:[#allocation46_spill] sm:$0xff] }
 0x4ff   : > { %v4787_v57 = vrot.slane %v4786_v24, 1  ;;  %v4830_v42 = vmax.f32 %v4828_v37, %v4829_v40  ;;  %v4841_v2 = vsel %vm550_vm3, %v10224_v4, -inf  ;;  %v4842_v19 = vsel %vm550_vm3, %v10225_v5, -inf  ;;  %v10235_v4 = vld [vmem:[#allocation126_spill] sm:$0xff] }
 0x500   : > { %v4799_v54 = vmax.f32 %v4797_v34, %v4798_v22  ;;  %v4811_v55 = vrot.slane %v4810_v28, 2  ;;  %v4822_v25 = vrot.slane %v4821_v11, 4  ;;  %v4833_v20 = vsel %vm550_vm3, %v10226_v41, -inf  ;;  %v10238_v41 = vld [vmem:[#allocation132_spill] sm:$0xff] }
 0x501   : > { %v4843_v23 = vmax.f32 %v4841_v2, %v4842_v19  ;;  %v4788_v1 = vmax.f32 %v4786_v24, %v4787_v57  ;;  %v4832_v15 = vmax.f32 %v4830_v42, %v4831_v33  ;;  %v4844_v10 = vsel %vm550_vm3, %v10227_v35, -inf  ;;  %v10231_v33 = vld [vmem:[#allocation44_spill] sm:$0xff]  ;;  %v10236_v2 = vld [vmem:[#allocation41_spill] sm:$0xff]  ;;  %v10237_v19 = vld [vmem:[#allocation86_spill] sm:$0xff] }
 0x502   : > { %v4800_v31 = vrot.slane %v4799_v54, 1  ;;  %v4812_v56 = vmax.f32 %v4810_v28, %v4811_v55  ;;  %v4823_v39 = vmax.f32 %v4821_v11, %v4822_v25  ;;  %v5094_v38 = vsel %vm2015_vm4, %v8928_v13, %v8926_v18  ;;  %v10233_v28 = vld [vmem:[#allocation47_spill] sm:$0xff]  ;;  %v10234_v11 = vld [vmem:[#allocation18_spill] sm:$0xff] }
 0x503   : > { %v4845_v58 = vmax.f32 %v4843_v23, %v4844_v10  ;;  %v4834_v46 = vmax.f32 %v4832_v15, %v4833_v20  ;;  %v4846_v30 = vsel %vm550_vm3, %v8922_v21, -inf  ;;  %v5095_v29 = vsel %vm2017_vm5, %v8934_v48, %v5094_v38  ;;  %v10239_v23 = vld [vmem:[#allocation131_spill] sm:$0xff]  ;;  %v10241_v10 = vld [vmem:[#allocation89_spill] sm:$0xff] }
 0x504   : > { %v5101_v47 = vsel %vm2015_vm4, %v4775_v61, %v4762_v7  ;;  %v4813_v3 = vrot.slane %v4812_v56, 1  ;;  %v4824_v62 = vrot.slane %v4823_v39, 2  ;;  %v5096_v14 = vsel %vm2019_vm6, %v8936_v51, %v5095_v29  ;;  %v10232_v61 = vld [vmem:[#allocation130_spill] sm:$0xff]  ;;  %v10243_v38 = vld [vmem:[#allocation137_spill] sm:$0xff] }
 0x505   : > { %v4847_v49 = vmax.f32 %v4845_v58, %v4846_v30  ;;  %v4801_v52 = vmax.f32 %v4799_v54, %v4800_v31  ;;  %v4835_v17 = vrot.slane %v4834_v46, 4  ;;  %v5097_v18 = vsel %vm2021_vm7, %v8944_v60, %v5096_v14  ;;  %v10240_v31 = vld [vmem:[#allocation125_spill] sm:$0xff]  ;;  %v4336_v30 = vpop.permute.xlu0 %4335  ;;  %v10246_v14 = vld [vmem:[#allocation87_spill] sm:$0xff] }
 0x506   : > { %v5102_v13 = vsel %vm2017_vm5, %v4788_v1, %v5101_v47  ;;  %v4814_v12 = vmax.f32 %v4812_v56, %v4813_v3  ;;  %v4825_v21 = vmax.f32 %v4823_v39, %v4824_v62  ;;  %v5098_v48 = vsel %vm2023_vm8, %v8960_v32, %v5097_v18  ;;  %v10242_v39 = vld [vmem:[#allocation138_spill] sm:$0xff]  ;;  %v10245_v62 = vld [vmem:[#allocation13_spill] sm:$0xff]  ;;  %v10247_v18 = vld [vmem:[#allocation7_spill] sm:$0xff] }
 0x507   : > { %v4848_v8 = vrot.slane %v4847_v49, 4  ;;  %v3670_v59 = vadd.f32 %v10229_v0, %v10228_v45  ;;  %v4836_v7 = vmax.f32 %v4834_v46, %v4835_v17  ;;  %v5099_v51 = vsel %vm2025_vm9, %v8974_v16, %v5098_v48  ;;  %v10244_v47 = vld [vmem:[#allocation122_spill] sm:$0xff] }
 0x508   : > { %v5103_v34 = vsel %vm2019_vm6, %v4801_v52, %v5102_v13  ;;  %v4826_v43 = vrot.slane %v4825_v21, 1  ;;  %v5100_v60 = vsel %vm2027_vm10, %v8990_v36, %v5099_v51  ;;  %v3673_v9 = vadd.f32 %v10229_v0, %v10230_v44  ;;  %v10250_v0 = vld [vmem:[#allocation22_spill] sm:$0xff]  ;;  %v10255_v44 = vld [vmem:[#allocation84_spill] sm:$0xff] }
 0x509   : > { %v4849_v50 = vmax.f32 %v4847_v49, %v4848_v8  ;;  %v5104_v26 = vsel %vm2021_vm7, %v4814_v12, %v5103_v34  ;;  %v4837_v24 = vrot.slane %v4836_v7, 2  ;;  %v5126_v32 = vadd.f32 %v5100_v60, %v3670_v59  ;;  %v10248_v12 = vld [vmem:[#allocation128_spill] sm:$0xff]  ;;  %v10249_v8 = vld [vmem:[#allocation93_spill] sm:$0xff]  ;;  %v10252_v34 = vld [vmem:[#allocation15_spill] sm:$0xff] }
 0x50a   : > { %v4827_v22 = vmax.f32 %v4825_v21, %v4826_v43  ;;  %v9043_v57 = vadd.f32 %v10232_v61, %v10231_v33  ;;  %v9047_v36 = vadd.f32 %v10234_v11, %v10233_v28  ;;  %v9052_v5 = vadd.f32 %v10236_v2, %v10235_v4  ;;  %v10253_v60 = vld [vmem:[#allocation150_spill] sm:$0xff]  ;;  %v10259_v4 = vld [vmem:[#allocation120_spill] sm:$0xff] }
 0x50b   : > { %v4850_v37 = vrot.slane %v4849_v50, 2  ;;  %v4838_v40 = vmax.f32 %v4836_v7, %v4837_v24  ;;  %v5130_v16 = vmax.f32 %v5126_v32, 0.0  ;;  %v9056_v55 = vadd.f32 %v8598_v27, %v10237_v19  ;;  %v10251_v7 = vld [vmem:[#allocation10_spill] sm:$0xff]  ;;  %v10254_v24 = vld [vmem:[#allocation48_spill] sm:$0xff] }
 0x50c   : > { %v5105_v42 = vsel %vm2023_vm8, %v4827_v22, %v5104_v26  ;;  %v9060_v20 = vadd.f32 %v10238_v41, %v10231_v33  ;;  %v9064_v1 = vadd.f32 %v10239_v23, %v10233_v28  ;;  %v9068_v15 = vadd.f32 %v10236_v2, %v10240_v31  ;;  %v10257_v61 = vld [vmem:[#allocation30_spill] sm:$0xff] }
 0x50d   : > { %v4851_v54 = vmax.f32 %v4849_v50, %v4850_v37  ;;  %v4839_v25 = vrot.slane %v4838_v40, 1  ;;  %v9072_v56 = vadd.f32 %v8598_v27, %v10241_v10  ;;  %v9076_v58 = vadd.f32 %v10242_v39, %v10231_v33  ;;  %v10262_v39 = vld [vmem:[#allocation31_spill] sm:$0xff] }
 0x50e   : > { %v9080_v46 = vadd.f32 %v10243_v38, %v10233_v28  ;;  %v5134_v3 = vadd.f32 %v5130_v16, %v10244_v47  ;;  %v9085_v49 = vadd.f32 %v10236_v2, %v10245_v62  ;;  %v9089_v52 = vadd.f32 %v8598_v27, %v10246_v14 }
 0x50f   : > { %v4852_v35 = vrot.slane %v4851_v54, 1  ;;  %v4840_v29 = vmax.f32 %v4838_v40, %v4839_v25  ;;  %v9093_v13 = vadd.f32 %v10247_v18, %v10231_v33  ;;  %v9097_v21 = vadd.f32 %v10248_v12, %v10233_v28  ;;  %v10256_v40 = vld [vmem:[#allocation88_spill] sm:$0xff]  ;;  %v10260_v25 = vld [vmem:[#allocation21_spill] sm:$0xff] }
 0x510   : > { %v9101_v48 = vadd.f32 %v10236_v2, %v10249_v8  ;;  %v9106_v59 = vadd.f32 %v8598_v27, %v10250_v0  ;;  %v9110_v51 = vadd.f32 %v10251_v7, %v10231_v33  ;;  %v9114_v43 = vadd.f32 %v10252_v34, %v10233_v28  ;;  %v10265_v18 = vld [vmem:[#allocation133_spill] sm:$0xff]  ;;  %v10268_v34 = vld [vmem:[#allocation90_spill] sm:$0xff] }
 0x511   : > { %v4853_v17 = vmax.f32 %v4851_v54, %v4852_v35  ;;  %v5106_v45 = vsel %vm2025_vm9, %v4840_v29, %v5105_v42  ;;  %v9119_v26 = vadd.f32 %v10236_v2, %v10253_v60  ;;  %v9123_v32 = vadd.f32 %v8598_v27, %v10254_v24  ;;  %v10258_v54 = vld [vmem:[#allocation5_spill] sm:$0xff]  ;;  %v4356_v35 = vpop.permute.xlu0 %4355  ;;  %v10263_v29 = vld [vmem:[#allocation20_spill] sm:$0xff]  ;;  %v10270_v24 = vld [vmem:[#allocation135_spill] sm:$0xff] }
 0x512   : > { %v9127_v22 = vadd.f32 %v10255_v44, %v10231_v33  ;;  %v9131_v16 = vadd.f32 %v10256_v40, %v10233_v28  ;;  %v9135_v11 = vadd.f32 %v10236_v2, %v10257_v61  ;;  %v9139_v42 = vadd.f32 %v8598_v27, %v10258_v54  ;;  %v10266_v8 = vld [vmem:[#allocation9_spill] sm:$0xff]  ;;  %v10272_v61 = vld [vmem:[#allocation94_spill] sm:$0xff] }
 0x513   : > { %v5107_v50 = vsel %vm2027_vm10, %v4853_v17, %v5106_v45  ;;  %v9143_v19 = vadd.f32 %v10259_v4, %v10231_v33  ;;  %v9147_v41 = vadd.f32 %v10260_v25, %v10233_v28  ;;  %v9154_v31 = vadd.f32 %v8598_v27, %v4336_v30  ;;  %v10264_v30 = vld [vmem:[#allocation134_spill] sm:$0xff]  ;;  %v10267_v0 = vld [vmem:[#allocation121_spill] sm:$0xff]  ;;  %v10273_v4 = vld [vmem:[#allocation140_spill] sm:$0xff] }
 0x514   : > { %v5127_v37 = vadd.f32 %v5107_v50, %v3673_v9  ;;  %v10261_v9 = vld [vmem:[#allocation54_spill] sm:$0xff]  ;;  %v9158_v38 = vadd.f32 %v10262_v39, %v10231_v33  ;;  %v9162_v47 = vadd.f32 %v10263_v29, %v10233_v28  ;;  %v9166_v62 = vadd.f32 %v10236_v2, %v9015_v53  ;;  %v10269_v50 = vld [vmem:[#allocation136_spill] sm:$0xff] }
 0x515   : > { %v9151_v23 = vadd.f32 %v10236_v2, %v10261_v9  ;;  %v9169_v14 = vadd.f32 %v8598_v27, %v4356_v35  ;;  %v9173_v17 = vadd.f32 %v10264_v30, %v10231_v33  ;;  %v9177_v12 = vadd.f32 %v10265_v18, %v10233_v28  ;;  %v10274_v9 = vld [vmem:[#allocation139_spill] sm:$0xff]  ;;  %v10275_v39 = vld [vmem:[#allocation12_spill] sm:$0xff]  ;;  %v10276_v30 = vld [vmem:[#allocation113_spill] sm:$0xff] }
 0x516   : > { %v5131_v10 = vmax.f32 %v5127_v37, 0.0  ;;  %v9181_v45 = vadd.f32 %v10236_v2, %v10266_v8  ;;  %v9186_v53 = vadd.f32 %v8598_v27, %v10268_v34  ;;  %v9190_v60 = vadd.f32 %v10269_v50, %v10231_v33  ;;  %v10271_v37 = vld [vmem:[#allocation6_spill] sm:$0xff]  ;;  %v10277_v8 = vld [vmem:[#allocation11_spill] sm:$0xff]  ;;  %v10278_v34 = vld [vmem:[#allocation8_spill] sm:$0xff] }
 0x517   : > { %v9194_v44 = vadd.f32 %v10270_v24, %v10233_v28  ;;  %v9198_v40 = vadd.f32 %v10236_v2, %v10271_v37  ;;  %v9202_v54 = vadd.f32 %v8598_v27, %v10272_v61  ;;  %v9206_v25 = vadd.f32 %v10273_v4, %v10231_v33  ;;  %v10279_v24 = vld [vmem:[#allocation92_spill] sm:$0xff]  ;;  %v10282_v61 = vld [vmem:[#allocation91_spill] sm:$0xff] }
 0x518   : > { %v5135_v7 = vadd.f32 %v5131_v10, %v10267_v0  ;;  %v9210_v35 = vadd.f32 %v10274_v9, %v10233_v28  ;;  %v9214_v29 = vadd.f32 %v10236_v2, %v10275_v39  ;;  %v9218_v18 = vadd.f32 %v8598_v27, %v10276_v30  ;;  %v10284_v9 = vld [vmem:[#allocation95_spill] sm:$0xff] }
 0x519   : > { %v9222_v0 = vadd.f32 %v10277_v8, %v10231_v33  ;;  %v9226_v50 = vadd.f32 %v10278_v34, %v10233_v28  ;;  %v9230_v37 = vadd.f32 %v10236_v2, %v10279_v24  ;;  %v9238_v4 = vadd.f32 %v10282_v61, %v10231_v33  ;;  %v10285_v30 = vld [vmem:[#allocation147_spill] sm:$0xff]  ;;  %v10287_v34 = vld [vmem:[#allocation61_spill] sm:$0xff]  ;;  %v10290_v61 = vld [vmem:[#allocation146_spill] sm:$0xff] }
 0x51a   : > { %v5138_v10 = vpack.c.bf16 %v5135_v7, %v5134_v3  ;;  %v10280_v3 = vld [vmem:[#allocation36_spill] sm:$0xff]  ;;  %v9243_v39 = vadd.f32 %v10284_v9, %v10233_v28  ;;  %v9247_v8 = vadd.f32 %v10236_v2, %v10285_v30  ;;  %v9251_v24 = vadd.f32 %v8598_v27, %v10287_v34 }
 0x51b   : > { %v9234_v7 = vadd.f32 %v8598_v27, %v10280_v3  ;;  %10283 = vst [vmem:[#allocation66_spill] sm:$0xff] %v9238_v4  ;;  %v10289_v3 = vld [vmem:[#allocation149_spill] sm:$0xff]  ;;  %v9259_v4 = vadd.f32 %v10290_v61, %v10233_v28  ;;  %v9267_v30 = vadd.f32 %v8598_v27, %v8909_v6  ;;  %v4854_v61 = vsel %vm550_vm3, %v9043_v57, -inf }
 0x51c   : > { %5471 = vmatprep.mubr.msk.bf16.mxu1 %vm550_vm3, %v5138_v10  ;;  %10286 = vst [vmem:[#allocation67_spill] sm:$0xff] %v9247_v8  ;;  %10288 = vst [vmem:[#allocation68_spill] sm:$0xff] %v9251_v24  ;;  %v10292_v10 = vld [vmem:[#allocation37_spill] sm:$0xff]  ;;  %v10294_v8 = vld [vmem:[#allocation23_spill] sm:$0xff]  ;;  %v4859_v6 = vsel %vm550_vm3, %v9056_v55, -inf  ;;  %v4870_v57 = vsel %vm550_vm3, %v9068_v15, -inf }
 0x51d   : > { %10281 = vst [vmem:[#allocation64_spill] sm:$0xff] %v9234_v7  ;;  %v9255_v7 = vadd.f32 %v10289_v3, %v10231_v33  ;;  %10291 = vst [vmem:[#allocation69_spill] sm:$0xff] %v9259_v4  ;;  %v9263_v9 = vadd.f32 %v10236_v2, %v10292_v10  ;;  %v9271_v34 = vadd.f32 %v10294_v8, %v10231_v33  ;;  %v10295_v24 = vld [vmem:[#allocation116_spill] sm:$0xff]  ;;  %v4855_v4 = vsel %vm550_vm3, %v9047_v36, -inf }
 0x51e   : > { %v9275_v3 = vadd.f32 %v10295_v24, %v10233_v28  ;;  %v4857_v10 = vsel %vm550_vm3, %v9052_v5, -inf  ;;  %v4867_v8 = vsel %vm550_vm3, %v9060_v20, -inf  ;;  %v4868_v24 = vsel %vm550_vm3, %v9064_v1, -inf }
 0x51f   : > { %10293 = vst [vmem:[#allocation70_spill] sm:$0xff] %v9263_v9  ;;  %v4856_v9 = vmax.f32 %v4854_v61, %v4855_v4  ;;  %v4872_v36 = vsel %vm550_vm3, %v9072_v56, -inf  ;;  %v4880_v5 = vsel %vm550_vm3, %v9076_v58, -inf  ;;  %v4881_v55 = vsel %vm550_vm3, %v9080_v46, -inf }
 0x520   : > { %10296 = vst [vmem:[#allocation71_spill] sm:$0xff] %v9275_v3  ;;  %v4869_v3 = vmax.f32 %v4867_v8, %v4868_v24  ;;  %v4883_v20 = vsel %vm550_vm3, %v9085_v49, -inf  ;;  %v4885_v1 = vsel %vm550_vm3, %v9089_v52, -inf  ;;  %v4882_v8 = vmax.f32 %v4880_v5, %v4881_v55 }
 0x521   : > { %v4858_v4 = vmax.f32 %v4856_v9, %v4857_v10  ;;  %v4893_v15 = vsel %vm550_vm3, %v9093_v13, -inf  ;;  %v4894_v56 = vsel %vm550_vm3, %v9097_v21, -inf  ;;  %v4896_v9 = vsel %vm550_vm3, %v9101_v48, -inf }
 0x522   : > { %v4871_v61 = vmax.f32 %v4869_v3, %v4870_v57  ;;  %v4895_v58 = vmax.f32 %v4893_v15, %v4894_v56  ;;  %v4898_v46 = vsel %vm550_vm3, %v9106_v59, -inf  ;;  %v4884_v10 = vmax.f32 %v4882_v8, %v4883_v20 }
 0x523   : > { %v4860_v24 = vmax.f32 %v4858_v4, %v4859_v6  ;;  %v4906_v52 = vsel %vm550_vm3, %v9110_v51, -inf  ;;  %v4907_v3 = vsel %vm550_vm3, %v9114_v43, -inf  ;;  %v4909_v21 = vsel %vm550_vm3, %v9119_v26, -inf }
 0x524   : > { %v4873_v49 = vmax.f32 %v4871_v61, %v4872_v36  ;;  %v4897_v57 = vmax.f32 %v4895_v58, %v4896_v9  ;;  %v4908_v5 = vmax.f32 %v4906_v52, %v4907_v3  ;;  %v4886_v4 = vmax.f32 %v4884_v10, %v4885_v1 }
 0x525   : > { %v4861_v13 = vrot.slane %v4860_v24, 4  ;;  %v4911_v48 = vsel %vm550_vm3, %v9123_v32, -inf  ;;  %v4919_v59 = vsel %vm550_vm3, %v9127_v22, -inf  ;;  %v4920_v43 = vsel %vm550_vm3, %v9131_v16, -inf }
 0x526   : > { %v4874_v6 = vrot.slane %v4873_v49, 4  ;;  %v4899_v55 = vmax.f32 %v4897_v57, %v4898_v46  ;;  %v4910_v51 = vmax.f32 %v4908_v5, %v4909_v21  ;;  %v4887_v61 = vrot.slane %v4886_v4, 4  ;;  %v4496_v57 = vpop.permute.xlu1 %4495  ;;  %v10297_v5 = vld [vmem:[#allocation58_spill] sm:$0xff] }
 0x527   : > { %v4862_v36 = vmax.f32 %v4860_v24, %v4861_v13  ;;  %v4921_v8 = vmax.f32 %v4919_v59, %v4920_v43  ;;  %v4922_v26 = vsel %vm550_vm3, %v9135_v11, -inf  ;;  %v4924_v32 = vsel %vm550_vm3, %v9139_v42, -inf }
 0x528   : > { %v4875_v20 = vmax.f32 %v4873_v49, %v4874_v6  ;;  %v4900_v1 = vrot.slane %v4899_v55, 4  ;;  %v4912_v56 = vmax.f32 %v4910_v51, %v4911_v48  ;;  %v4888_v22 = vmax.f32 %v4886_v4, %v4887_v61 }
 0x529   : > { %v4863_v15 = vrot.slane %v4862_v36, 2  ;;  %v4923_v24 = vmax.f32 %v4921_v8, %v4922_v26  ;;  %v4932_v9 = vsel %vm550_vm3, %v9143_v19, -inf  ;;  %v4933_v10 = vsel %vm550_vm3, %v9147_v41, -inf }
 0x52a   : > { %v4876_v58 = vrot.slane %v4875_v20, 2  ;;  %v4901_v16 = vmax.f32 %v4899_v55, %v4900_v1  ;;  %v4913_v49 = vrot.slane %v4912_v56, 4  ;;  %v4889_v11 = vrot.slane %v4888_v22, 2 }
 0x52b   : > { %v4864_v46 = vmax.f32 %v4862_v36, %v4863_v15  ;;  %v4925_v3 = vmax.f32 %v4923_v24, %v4924_v32  ;;  %v4934_v13 = vmax.f32 %v4932_v9, %v4933_v10  ;;  %v9331_v42 = vadd.f32 %v10236_v2, %v10297_v5  ;;  %v10298_v36 = vld [vmem:[#allocation38_spill] sm:$0xff] }
 0x52c   : > { %v4877_v52 = vmax.f32 %v4875_v20, %v4876_v58  ;;  %v4902_v21 = vrot.slane %v4901_v16, 2  ;;  %v4914_v6 = vmax.f32 %v4912_v56, %v4913_v49  ;;  %v4935_v19 = vsel %vm550_vm3, %v9151_v23, -inf  ;;  %v10299_v23 = vld [vmem:[#allocation39_spill] sm:$0xff] }
 0x52d   : > { %v9336_v4 = vadd.f32 %v8598_v27, %v4496_v57  ;;  %v4890_v48 = vmax.f32 %v4888_v22, %v4889_v11  ;;  %v4926_v59 = vrot.slane %v4925_v3, 4  ;;  %v4936_v41 = vmax.f32 %v4934_v13, %v4935_v19 }
 0x52e   : > { %v9340_v55 = vadd.f32 %v10298_v36, %v10231_v33  ;;  %v4903_v51 = vmax.f32 %v4901_v16, %v4902_v21  ;;  %v4915_v43 = vrot.slane %v4914_v6, 2  ;;  %v4937_v20 = vsel %vm550_vm3, %v9154_v31, -inf  ;;  %v4516_v31 = vpop.permute.xlu1 %4515 }
 0x52f   : > { %v4865_v61 = vrot.slane %v4864_v46, 1  ;;  %v4878_v8 = vrot.slane %v4877_v52, 1  ;;  %v4927_v26 = vmax.f32 %v4925_v3, %v4926_v59  ;;  %v4938_v15 = vmax.f32 %v4936_v41, %v4937_v20 }
 0x530   : > { %v9346_v1 = vadd.f32 %v10299_v23, %v10233_v28  ;;  %v4916_v56 = vmax.f32 %v4914_v6, %v4915_v43  ;;  %v4945_v32 = vsel %vm550_vm3, %v9158_v38, -inf  ;;  %v4946_v33 = vsel %vm550_vm3, %v9162_v47, -inf }
 0x531   : > { %v4891_v58 = vrot.slane %v4890_v48, 1  ;;  %v4904_v22 = vrot.slane %v4903_v51, 1  ;;  %v4939_v24 = vrot.slane %v4938_v15, 4  ;;  %v4947_v9 = vmax.f32 %v4945_v32, %v4946_v33 }
 0x532   : > { %v9354_v16 = vadd.f32 %v10236_v2, %v9037_v63  ;;  %v4917_v49 = vrot.slane %v4916_v56, 1  ;;  %v4928_v10 = vrot.slane %v4927_v26, 2  ;;  %v4948_v28 = vsel %vm550_vm3, %v9166_v62, -inf }
 0x533   : > { %v9359_v11 = vadd.f32 %v8598_v27, %v4516_v31  ;;  %v9361_v38 = vmax.f32 %v4864_v46, %v4865_v61  ;;  %v9363_v47 = vmax.f32 %v4877_v52, %v4878_v8  ;;  %v4949_v3 = vmax.f32 %v4947_v9, %v4948_v28 }
 0x534   : > { %v4940_v13 = vmax.f32 %v4938_v15, %v4939_v24  ;;  %v4950_v57 = vsel %vm550_vm3, %v9169_v14, -inf  ;;  %v4958_v63 = vsel %vm550_vm3, %v9173_v17, -inf  ;;  %v4959_v2 = vsel %vm550_vm3, %v9177_v12, -inf }
 0x535   : > { %v9371_v5 = vmax.f32 %v4890_v48, %v4891_v58  ;;  %v9373_v62 = vmax.f32 %v4903_v51, %v4904_v22  ;;  %v4951_v27 = vmax.f32 %v4949_v3, %v4950_v57  ;;  %v4960_v46 = vmax.f32 %v4958_v63, %v4959_v2  ;;  %v10302_v63 = vld [vmem:[#allocation67_spill] sm:$0xff] }
 0x536   : > { %v9375_v21 = vmax.f32 %v4916_v56, %v4917_v49  ;;  %v9377_v52 = vmax.f32 %v4927_v26, %v4928_v10  ;;  %v4961_v6 = vsel %vm550_vm3, %v9181_v45, -inf  ;;  %v4972_v14 = vsel %vm550_vm3, %v9194_v44, -inf  ;;  %v10301_v10 = vld [vmem:[#allocation64_spill] sm:$0xff] }
 0x537   : > { %v4952_v17 = vrot.slane %v4951_v27, 4  ;;  %v4962_v19 = vmax.f32 %v4960_v46, %v4961_v6  ;;  %v4963_v12 = vsel %vm550_vm3, %v9186_v53, -inf  ;;  %v4971_v48 = vsel %vm550_vm3, %v9190_v60, -inf  ;;  %v10303_v6 = vld [vmem:[#allocation68_spill] sm:$0xff] }
 0x538   : > { %v4941_v59 = vrot.slane %v4940_v13, 2  ;;  %v4973_v41 = vmax.f32 %v4971_v48, %v4972_v14  ;;  %v4984_v36 = vsel %vm550_vm3, %v9206_v25, -inf  ;;  %v4985_v51 = vsel %vm550_vm3, %v9210_v35, -inf }
 0x539   : > { %v4953_v45 = vmax.f32 %v4951_v27, %v4952_v17  ;;  %v4964_v43 = vmax.f32 %v4962_v19, %v4963_v12  ;;  %v4974_v44 = vsel %vm550_vm3, %v9198_v40, -inf  ;;  %v4986_v20 = vmax.f32 %v4984_v36, %v4985_v51  ;;  %v10304_v12 = vld [vmem:[#allocation69_spill] sm:$0xff] }
 0x53a   : > { %v4930_v61 = vrot.slane %v9377_v52, 1  ;;  %v4975_v53 = vmax.f32 %v4973_v41, %v4974_v44  ;;  %v4987_v60 = vsel %vm550_vm3, %v9214_v29, -inf  ;;  %v4998_v8 = vsel %vm550_vm3, %v9226_v50, -inf }
 0x53b   : > { %v4965_v26 = vrot.slane %v4964_v43, 4  ;;  %v4976_v25 = vsel %vm550_vm3, %v9202_v54, -inf  ;;  %v4988_v35 = vmax.f32 %v4986_v20, %v4987_v60  ;;  %v4997_v15 = vsel %vm550_vm3, %v9222_v0, -inf  ;;  %v10300_v54 = vld [vmem:[#allocation66_spill] sm:$0xff] }
 0x53c   : > { %v9402_v23 = vmax.f32 %v4940_v13, %v4941_v59  ;;  %v4977_v40 = vmax.f32 %v4975_v53, %v4976_v25  ;;  %v4989_v56 = vsel %vm550_vm3, %v9218_v18, -inf  ;;  %v4999_v32 = vmax.f32 %v4997_v15, %v4998_v8  ;;  %v10305_v53 = vld [vmem:[#allocation70_spill] sm:$0xff] }
 0x53d   : > { %v4954_v33 = vrot.slane %v4953_v45, 2  ;;  %v4966_v29 = vmax.f32 %v4964_v43, %v4965_v26  ;;  %v4990_v58 = vmax.f32 %v4988_v35, %v4989_v56  ;;  %v5000_v50 = vsel %vm550_vm3, %v9230_v37, -inf }
 0x53e   : > { %v4978_v22 = vrot.slane %v4977_v40, 4  ;;  %v5001_v24 = vmax.f32 %v4999_v32, %v5000_v50  ;;  %v5010_v9 = vsel %vm550_vm3, %v10300_v54, -inf  ;;  %v5011_v0 = vsel %vm550_vm3, %v9243_v39, -inf }
 0x53f   : > { %v4967_v31 = vrot.slane %v4966_v29, 2  ;;  %v4991_v49 = vrot.slane %v4990_v58, 4  ;;  %v5002_v18 = vsel %vm550_vm3, %v10301_v10, -inf  ;;  %v5012_v28 = vmax.f32 %v5010_v9, %v5011_v0 }
 0x540   : > { %v4943_v3 = vrot.slane %v9402_v23, 1  ;;  %v4979_v13 = vmax.f32 %v4977_v40, %v4978_v22  ;;  %v5003_v57 = vmax.f32 %v5001_v24, %v5002_v18  ;;  %v5013_v37 = vsel %vm550_vm3, %v10302_v63, -inf  ;;  %v10306_v40 = vld [vmem:[#allocation71_spill] sm:$0xff] }
 0x541   : > { %v4968_v2 = vmax.f32 %v4966_v29, %v4967_v31  ;;  %v4992_v27 = vmax.f32 %v4990_v58, %v4991_v49  ;;  %v5014_v46 = vmax.f32 %v5012_v28, %v5013_v37  ;;  %v5015_v14 = vsel %vm550_vm3, %v10303_v6, -inf }
 0x542   : > { %v4980_v39 = vrot.slane %v4979_v13, 2  ;;  %v5004_v17 = vrot.slane %v5003_v57, 4  ;;  %v5023_v19 = vsel %vm550_vm3, %v9255_v7, -inf  ;;  %v5024_v48 = vsel %vm550_vm3, %v10304_v12, -inf }
 0x543   : > { %v4955_v59 = vmax.f32 %v4953_v45, %v4954_v33  ;;  %v4993_v41 = vrot.slane %v4992_v27, 2  ;;  %v5016_v36 = vmax.f32 %v5014_v46, %v5015_v14  ;;  %v5025_v51 = vmax.f32 %v5023_v19, %v5024_v48 }
 0x544   : > { %v4969_v43 = vrot.slane %v4968_v2, 1  ;;  %v4981_v44 = vmax.f32 %v4979_v13, %v4980_v39  ;;  %v5005_v20 = vmax.f32 %v5003_v57, %v5004_v17  ;;  %v5026_v60 = vsel %vm550_vm3, %v10305_v53, -inf }
 0x545   : > { %v4994_v8 = vmax.f32 %v4992_v27, %v4993_v41  ;;  %v5017_v26 = vrot.slane %v5016_v36, 4  ;;  %v5027_v25 = vmax.f32 %v5025_v51, %v5026_v60  ;;  %v5028_v35 = vsel %vm550_vm3, %v9267_v30, -inf }
 0x546   : > { %v4982_v7 = vrot.slane %v4981_v44, 1  ;;  %v5006_v15 = vrot.slane %v5005_v20, 2  ;;  %v5036_v45 = vsel %vm550_vm3, %v9271_v34, -inf  ;;  %v5037_v56 = vsel %vm550_vm3, %v10306_v40, -inf }
 0x547   : > { %v4995_v32 = vrot.slane %v4994_v8, 1  ;;  %v5018_v33 = vmax.f32 %v5016_v36, %v5017_v26  ;;  %v5029_v29 = vmax.f32 %v5027_v25, %v5028_v35  ;;  %v5038_v58 = vmax.f32 %v5036_v45, %v5037_v56  ;;  %v10307_v25 = vld [vmem:[#allocation42_spill] sm:$0xff] }
 0x548   : > { %v4970_v50 = vmax.f32 %v4968_v2, %v4969_v43  ;;  %v4983_v22 = vmax.f32 %v4981_v44, %v4982_v7  ;;  %v5007_v24 = vmax.f32 %v5005_v20, %v5006_v15  ;;  %v5039_v54 = vsel %vm550_vm3, %v9331_v42, -inf }
 0x549   : > { %v5019_v9 = vrot.slane %v5018_v33, 2  ;;  %v5030_v30 = vrot.slane %v5029_v29, 4  ;;  %v5040_v0 = vmax.f32 %v5038_v58, %v5039_v54  ;;  %v5041_v31 = vsel %vm550_vm3, %v9336_v4, -inf  ;;  %v10309_v58 = vld [vmem:[#allocation19_spill] sm:$0xff] }
 0x54a   : > { %v4996_v34 = vmax.f32 %v4994_v8, %v4995_v32  ;;  %v5008_v49 = vrot.slane %v5007_v24, 1  ;;  %v5049_v10 = vsel %vm550_vm3, %v9340_v55, -inf  ;;  %v5050_v18 = vsel %vm550_vm3, %v9346_v1, -inf  ;;  %v10308_v32 = vld [vmem:[#allocation45_spill] sm:$0xff] }
 0x54b   : > { %v5020_v28 = vmax.f32 %v5018_v33, %v5019_v9  ;;  %v5031_v13 = vmax.f32 %v5029_v29, %v5030_v30  ;;  %v5042_v57 = vmax.f32 %v5040_v0, %v5041_v31  ;;  %v5051_v63 = vmax.f32 %v5049_v10, %v5050_v18 }
 0x54c   : > { %v4956_v37 = vrot.slane %v4955_v59, 1  ;;  %v5052_v42 = vsel %vm550_vm3, %v9354_v16, -inf  ;;  %v5108_v4 = vsel %vm2015_vm4, %v9363_v47, %v9361_v38  ;;  %v5115_v2 = vsel %vm2015_vm4, %v4983_v22, %v4970_v50  ;;  %v10310_v22 = vld [vmem:[#allocation16_spill] sm:$0xff] }
 0x54d   : > { %v5021_v27 = vrot.slane %v5020_v28, 1  ;;  %v5032_v46 = vrot.slane %v5031_v13, 2  ;;  %v5043_v55 = vrot.slane %v5042_v57, 4  ;;  %v5053_v6 = vmax.f32 %v5051_v63, %v5052_v42 }
 0x54e   : > { %v5009_v14 = vmax.f32 %v5007_v24, %v5008_v49  ;;  %v5054_v1 = vsel %vm550_vm3, %v9359_v11, -inf  ;;  %v5109_v39 = vsel %vm2017_vm5, %v9371_v5, %v5108_v4  ;;  %v5116_v17 = vsel %vm2017_vm5, %v4996_v34, %v5115_v2 }
 0x54f   : > { %v4931_v16 = vmax.f32 %v9377_v52, %v4930_v61  ;;  %v5033_v38 = vmax.f32 %v5031_v13, %v5032_v46  ;;  %v5044_v47 = vmax.f32 %v5042_v57, %v5043_v55  ;;  %v5055_v19 = vmax.f32 %v5053_v6, %v5054_v1 }
 0x550   : > { %v4944_v12 = vmax.f32 %v9402_v23, %v4943_v3  ;;  %v5022_v48 = vmax.f32 %v5020_v28, %v5021_v27  ;;  %v5110_v11 = vsel %vm2019_vm6, %v9373_v62, %v5109_v39  ;;  %v5117_v41 = vsel %vm2019_vm6, %v5009_v14, %v5116_v17  ;;  %v5224_v27 = vld [vmem:[%s9497_s10] sm:$0x1] }
 0x551   : > { %v5034_v5 = vrot.slane %v5033_v38, 1  ;;  %v5045_v36 = vrot.slane %v5044_v47, 2  ;;  %v5056_v51 = vrot.slane %v5055_v19, 4  ;;  %v5111_v43 = vsel %vm2021_vm7, %v9375_v21, %v5110_v11 }
 0x552   : > { %v4957_v52 = vmax.f32 %v4955_v59, %v4956_v37  ;;  %v5112_v61 = vsel %vm2023_vm8, %v4931_v16, %v5111_v43  ;;  %v5118_v44 = vsel %vm2021_vm7, %v5022_v48, %v5117_v41 }
 0x553   : > { %v5035_v20 = vmax.f32 %v5033_v38, %v5034_v5  ;;  %v5046_v53 = vmax.f32 %v5044_v47, %v5045_v36  ;;  %v5057_v23 = vmax.f32 %v5055_v19, %v5056_v51  ;;  %v5113_v3 = vsel %vm2025_vm9, %v4944_v12, %v5112_v61 }
 0x554   : > { %v5114_v62 = vsel %vm2027_vm10, %v4957_v52, %v5113_v3 }
 0x555   : > { %v5047_v60 = vrot.slane %v5046_v53, 1  ;;  %v5058_v8 = vrot.slane %v5057_v23, 2  ;;  %v5119_v26 = vsel %vm2023_vm8, %v5035_v20, %v5118_v44  ;;  %v5128_v35 = vadd.f32 %v5114_v62, %v10307_v25 }
 0x557   : > { %v5048_v7 = vmax.f32 %v5046_v53, %v5047_v60  ;;  %v5059_v21 = vmax.f32 %v5057_v23, %v5058_v8  ;;  %v5132_v40 = vmax.f32 %v5128_v35, 0.0 }
 0x559   : > { %v5060_v59 = vrot.slane %v5059_v21, 1  ;;  %v5120_v15 = vsel %vm2025_vm9, %v5048_v7, %v5119_v26  ;;  %v5136_v50 = vadd.f32 %v5132_v40, %v10309_v58 }
 0x55b   : > { %v5061_v45 = vmax.f32 %v5059_v21, %v5060_v59 }
 0x55d   : > { %v5121_v56 = vsel %vm2027_vm10, %v5061_v45, %v5120_v15 }
 0x55e   : > { %v5129_v33 = vadd.f32 %v5121_v56, %v10308_v32 }
 0x560   : > { %v5133_v29 = vmax.f32 %v5129_v33, 0.0 }
 0x562   : > { %v5137_v24 = vadd.f32 %v5133_v29, %v10310_v22 }
 0x564   : > { %v5139_v54 = vpack.c.bf16 %v5137_v24, %v5136_v50 }
 0x566   : > { %5472 = vmatmul.mubr.msk.bf16.vlgmr.msra.gmra.mrb[12].mxu1 %vm550_vm3, %v5139_v54 }
 0x639   : > { %v5473_v9 = vpop.f32.mrb[12].mxu1 }
 0x63a   : > { %v5196_v30 = vpop.f32.mrb[13].mxu1  ;;  %v5213_v31 = vsel %vm550_vm3, %v5473_v9, -inf }
 0x63b   : > { %v5474_v0 = vpop.f32.mrb[14].mxu1  ;;  %v5211_v10 = vsel %vm550_vm3, %v5196_v30, -inf }
 0x63c   : > { %v5214_v34 = vsel %vm550_vm3, %v5474_v0, -inf  ;;  %v5199_v49 = vpop.f32.mrb[15].mxu1 }
 0x63d   : > { %v5216_v18 = vmax.f32 %v5213_v31, %v5214_v34  ;;  %v5212_v28 = vsel %vm550_vm3, %v5199_v49, -inf }
 0x63e   : > { %v5215_v13 = vmax.f32 %v5211_v10, %v5212_v28 }
 0x640   : > { %v5217_v57 = vmax.f32 %v5215_v13, %v5216_v18 }
 0x642   : > { %v5218_v63 = vrot.slane %v5217_v57, 4 }
 0x644   : > { %v5219_v37 = vmax.f32 %v5217_v57, %v5218_v63 }
 0x646   : > { %v5220_v42 = vrot.slane %v5219_v37, 2 }
 0x648   : > { %v5221_v4 = vmax.f32 %v5219_v37, %v5220_v42 }
 0x64a   : > { %v5222_v2 = vrot.slane %v5221_v4, 1 }
 0x64c   : > { %v5223_v46 = vmax.f32 %v5221_v4, %v5222_v2 }
 0x64e   : > { %v5225_v55 = vadd.f32 %v5224_v27, %v5223_v46 }
 0x650   : > { %5227 = vst.msk [vmem:[%s442_s26] sm:$0x1] %vm5226_vm11, %v5225_v55 }
 0x651 PF: > { %s21_s17 = sadd.s32 1, %s5507_s17  }
 0x652   : > { %p18_p4 = scmp.ge.s32.totalorder %s21_s17, 6  }
 0x654   :  { %20 = sbr.rel (!%p18_p4) target bundleno = 1 (0x1), region = 109 }

// kernel: run.10
= control target key start
LH: loop header
LB: loop body
LE: loop exit
PB: predicated region body
PF: predicated region fallthrough
CT: control target
= control target key end

     0   :  { %v905_v0 = vmov 0.0   ;;  %vm906_vm0 = vmmov 0   ;;  %vm56_vm1 = vcmask 130048   ;;  %v907_v8 = vmov 0   ;;  %s1140_s4 = inlined_call_operand.vmem [shape: bf16[16,32], index: 4, kind: input, shape index: {}]   ;;  %s1141_s0 = inlined_call_operand.vmem [shape: f32[1,4,16], index: 0, kind: input, shape index: {}]   ;;  %s1142_s7 = inlined_call_operand.vmem [shape: bf16[3,32,32], index: 7, kind: input, shape index: {}]   ;;  %s1143_s6 = inlined_call_operand.vmem [shape: bf16[3,32,32], index: 6, kind: input, shape index: {}]   ;;  %s1144_s1 = inlined_call_operand.vmem [shape: f32[1,4,4,1], index: 1, kind: input, shape index: {}]   ;;  %s1145_s2 = inlined_call_operand.vmem [shape: f32[1,4,4,1], index: 2, kind: input, shape index: {}]   ;;  %s1146_s3 = inlined_call_operand.vmem [shape: f32[1,4,4,1], index: 3, kind: input, shape index: {}]   ;;  %s1147_s5 = inlined_call_operand.vmem [shape: f32[1,32], index: 5, kind: input, shape index: {}]   ;;  %s1148_s8 = inlined_call_operand.vmem [shape: f32[3,1,32], index: 8, kind: input, shape index: {}]   ;;  %s1149_s9 = inlined_call_operand.vmem [shape: bf16[32,32], index: 9, kind: input, shape index: {}]   ;;  %s1150_s10 = inlined_call_operand.vmem [shape: f32[1,32], index: 10, kind: input, shape index: {}]   ;;  %s1151_s11 = inlined_call_operand.vmem [shape: f32[1,4,32], index: 11, kind: output, shape index: {}]  }
   0x1   :  { %823 = vmatprep.subr.bf16.mxu0 %v905_v0  ;;  %v890_v1 = vld [vmem:[%s1140_s4] sm:$0xff]   ;;  %825 = vmatprep.mubr.msk.bf16.mxu0 %vm906_vm0, %v905_v0  ;;  %v893_v6 = vld [vmem:[%s1142_s7 + $0x8] sm:$0xff]   ;;  %vm125_vm2 = vcmask 261120   ;;  %v895_v29 = vld [vmem:[%s1142_s7 + $0x10] sm:$0xff]   ;;  %vm253_vm3 = vcmask 257024   ;;  %vm286_vm4 = vcmask 1041409  }
   0x2   :  { %v39_v2 = vld [vmem:[%s1141_s0] sm:$0xf]  ;;  %829 = vmatprep.subr.bf16.mxu1 %v905_v0  ;;  %833 = vmatprep.mubr.msk.bf16.mxu1 %vm906_vm0, %v905_v0  ;;  %v894_v7 = vld [vmem:[%s1143_s6 + $0x8] sm:$0xff]   ;;  %v226_v11 = vld [vmem:[%s1144_s1 + $0x4] sm:$0xf]  ;;  %vm288_vm5 = vcmask 1042434  }
   0x3   :  { %824 = vmatpush3.bf16.msra.mxu0 %v890_v1  ;;  %v40_v3 = vpack.c.bf16 %v39_v2, %v39_v2  ;;  %v891_v4 = vld [vmem:[%s1142_s7] sm:$0xff]   ;;  %888 = vset.pattern.permute.xlu0 %v907_v8  ;;  %v227_v10 = vld [vmem:[%s1144_s1 + $0x8] sm:$0xf]  ;;  %v228_v12 = vld [vmem:[%s1144_s1 + $0xc] sm:$0xf]  ;;  %vm290_vm6 = vcmask 1043459  }
   0x4   :  { %837 = vmatprep.subr.bf16.mxu0 %v905_v0  ;;  %v892_v5 = vld [vmem:[%s1143_s6] sm:$0xff]   ;;  %889 = vset.pattern.permute.xlu1 %v907_v8  ;;  %v424_v15 = vld [vmem:[%s1145_s2 + $0x8] sm:$0xf]  ;;  %v425_v16 = vld [vmem:[%s1145_s2 + $0xc] sm:$0xf] }
   0x5   :  { %830 = vmatpush3.bf16.msra.mxu1 %v892_v5  ;;  %v225_v9 = vld [vmem:[%s1144_s1] sm:$0xf]  ;;  %241 = vperm.xlu1 %889, %v227_v10   ;;  %v423_v14 = vld [vmem:[%s1145_s2 + $0x4] sm:$0xf]  ;;  %v617_v19 = vld [vmem:[%s1146_s3 + $0x8] sm:$0xf] }
   0x6   :  { %826 = vmatmul.mubr.msk.bf16.vlgmr.msra.gmra.mrb[0].mxu0 %vm56_vm1, %v40_v3  ;;  %831 = vmatprep.subr.bf16.mxu1 %v905_v0  ;;  %v422_v13 = vld [vmem:[%s1145_s2] sm:$0xf]  ;;  %v616_v18 = vld [vmem:[%s1146_s3 + $0x4] sm:$0xf]  ;;  %v618_v20 = vld [vmem:[%s1146_s3 + $0xc] sm:$0xf] }
   0x7   :  { %838 = vmatpush3.bf16.msra.mxu0 %v891_v4  ;;  %841 = vmatprep.mubr.msk.bf16.mxu0 %vm906_vm0, %v905_v0  ;;  %v615_v17 = vld [vmem:[%s1146_s3] sm:$0xf]  ;;  %v896_v30 = vld [vmem:[%s1143_s6 + $0x10] sm:$0xff]   ;;  %v897_v31 = vld [vmem:[%s1142_s7 + $0x18] sm:$0xff]  }
   0x8   :  { %839 = vmatprep.subr.bf16.mxu0 %v905_v0  ;;  %231 = vperm.xlu0 %888, %v225_v9   ;;  %v754_v21 = vld [vmem:[%s1147_s5] ss:$0 sm:$0xff]  ;;  %v898_v32 = vld [vmem:[%s1143_s6 + $0x18] sm:$0xff]  }
   0x9   :  { %832 = vmatpush3.bf16.msra.mxu1 %v894_v7  ;;  %246 = vperm.xlu1 %889, %v228_v12   ;;  %v757_v10 = vld [vmem:[%s1148_s8] ss:$0 sm:$0xff] }
   0xa   :  { %845 = vmatprep.subr.bf16.mxu1 %v905_v0 }
   0xb   :  { %840 = vmatpush3.bf16.msra.mxu0 %v893_v6 }
   0xc   :  { %853 = vmatprep.subr.bf16.mxu0 %v905_v0  ;;  %236 = vperm.xlu0 %888, %v226_v11  }
   0xd   :  { %433 = vperm.xlu1 %889, %v423_v14  }
  0x10   :  { %428 = vperm.xlu0 %888, %v422_v13  }
  0x11   :  { %443 = vperm.xlu1 %889, %v425_v16  }
  0x14   :  { %438 = vperm.xlu0 %888, %v424_v15  }
  0x15   :  { %626 = vperm.xlu1 %889, %v616_v18  }
  0x18   :  { %621 = vperm.xlu0 %888, %v615_v17  }
  0x19   :  { %636 = vperm.xlu1 %889, %v618_v20  }
  0x1c   :  { %631 = vperm.xlu0 %888, %v617_v19  }
  0x84   :  { %v242_v34 = vpop.permute.xlu1 %241 }
  0x87   :  { %v232_v33 = vpop.permute.xlu0 %231 }
  0x88   :  { %v247_v36 = vpop.permute.xlu1 %246 }
  0x8b   :  { %v237_v35 = vpop.permute.xlu0 %236 }
  0xd9   :  { %v94_v22 = vpop.f32.mrb[0].mxu0 }
  0xda   :  { %v95_v23 = vadd.f32 %v754_v21, %v94_v22  ;;  %v827_v24 = vpop.f32.mrb[1].mxu0 }
  0xdb   :  { %v97_v25 = vpop.f32.mrb[2].mxu0  ;;  %v900_v24 = vld [vmem:[%s1143_s6 + $0x20] sm:$0xff]  }
  0xdc   :  { %v1038_v26 = vmax.f32 %v95_v23, 0.0  ;;  %v828_v27 = vpop.f32.mrb[3].mxu0  ;;  %v899_v23 = vld [vmem:[%s1142_s7 + $0x20] sm:$0xff]   ;;  %v901_v25 = vld [vmem:[%s1142_s7 + $0x28] sm:$0xff]  }
  0xdd   :  { %v429_v27 = vpop.permute.xlu0 %428 }
  0xde   :  { %v101_v28 = vpack.c.bf16 %v1038_v26, %v1038_v26 }
  0xe0   :  { %834 = vmatmul.mubr.msk.bf16.vlgmr.msra.gmra.mrb[0].mxu1 %vm125_vm2, %v101_v28  ;;  %842 = vmatmul.mubr.msk.bf16.vlgmr.msra.gmra.mrb[4].mxu0 %vm125_vm2, %v101_v28  ;;  %v434_v28 = vpop.permute.xlu1 %433 }
  0xe1   :  { %849 = vmatprep.mubr.msk.bf16.mxu1 %vm906_vm0, %v905_v0  ;;  %857 = vmatprep.mubr.msk.bf16.mxu0 %vm906_vm0, %v905_v0 }
  0xe2   :  { %854 = vmatpush3.bf16.msra.mxu0 %v895_v29  ;;  %846 = vmatpush3.bf16.msra.mxu1 %v896_v30  ;;  %v439_v29 = vpop.permute.xlu0 %438 }
  0xe3   :  { %855 = vmatprep.subr.bf16.mxu0 %v905_v0  ;;  %847 = vmatprep.subr.bf16.mxu1 %v905_v0 }
  0xe4   :  { %v444_v30 = vpop.permute.xlu1 %443 }
  0xe6   :  { %856 = vmatpush3.bf16.msra.mxu0 %v897_v31  ;;  %848 = vmatpush3.bf16.msra.mxu1 %v898_v32 }
  0xe7   :  { %869 = vmatprep.subr.bf16.mxu0 %v905_v0  ;;  %861 = vmatprep.subr.bf16.mxu1 %v905_v0 }
 0x1b3   :  { %v163_v37 = vpop.f32.mrb[0].mxu1  ;;  %v219_v38 = vpop.f32.mrb[4].mxu0 }
 0x1b4   :  { %v249_v39 = vadd.f32 %v232_v33, %v219_v38  ;;  %v250_v40 = vadd.f32 %v237_v35, %v219_v38  ;;  %v251_v41 = vadd.f32 %v242_v34, %v219_v38  ;;  %v835_v42 = vpop.f32.mrb[1].mxu1  ;;  %v843_v43 = vpop.f32.mrb[5].mxu0  ;;  %v252_v44 = vadd.f32 %v247_v36, %v219_v38 }
 0x1b5   :  { %v166_v45 = vpop.f32.mrb[2].mxu1  ;;  %v222_v46 = vpop.f32.mrb[6].mxu0  ;;  %v164_v16 = vadd.f32 %v757_v10, %v163_v37 }
 0x1b6   :  { %v254_v47 = vsel %vm253_vm3, %v249_v39, -inf  ;;  %v261_v48 = vsel %vm253_vm3, %v250_v40, -inf  ;;  %v268_v49 = vsel %vm253_vm3, %v251_v41, -inf  ;;  %v836_v50 = vpop.f32.mrb[3].mxu1  ;;  %v844_v51 = vpop.f32.mrb[7].mxu0  ;;  %v275_v55 = vsel %vm253_vm3, %v252_v44, -inf }
 0x1b7   :  { %v255_v52 = vrot.slane %v254_v47, 4  ;;  %v262_v53 = vrot.slane %v261_v48, 4  ;;  %v269_v54 = vrot.slane %v268_v49, 4  ;;  %v276_v56 = vrot.slane %v275_v55, 4 }
 0x1b9   :  { %v256_v57 = vmax.f32 %v254_v47, %v255_v52  ;;  %v263_v58 = vmax.f32 %v261_v48, %v262_v53  ;;  %v270_v59 = vmax.f32 %v268_v49, %v269_v54  ;;  %v277_v60 = vmax.f32 %v275_v55, %v276_v56 }
 0x1bb   :  { %v257_v61 = vrot.slane %v256_v57, 2  ;;  %v264_v62 = vrot.slane %v263_v58, 2  ;;  %v271_v63 = vrot.slane %v270_v59, 2  ;;  %v278_v1 = vrot.slane %v277_v60, 2 }
 0x1bd   :  { %v258_v2 = vmax.f32 %v256_v57, %v257_v61  ;;  %v265_v3 = vmax.f32 %v263_v58, %v264_v62  ;;  %v272_v4 = vmax.f32 %v270_v59, %v271_v63  ;;  %v279_v5 = vmax.f32 %v277_v60, %v278_v1 }
 0x1bf   :  { %v259_v6 = vrot.slane %v258_v2, 1  ;;  %v266_v7 = vrot.slane %v265_v3, 1  ;;  %v273_v8 = vrot.slane %v272_v4, 1  ;;  %v280_v9 = vrot.slane %v279_v5, 1 }
 0x1c1   :  { %v260_v11 = vmax.f32 %v258_v2, %v259_v6  ;;  %v267_v12 = vmax.f32 %v265_v3, %v266_v7  ;;  %v274_v13 = vmax.f32 %v272_v4, %v273_v8  ;;  %v281_v14 = vmax.f32 %v279_v5, %v280_v9  ;;  %v769_v4 = vld [vmem:[%s1148_s8 + $0x1] ss:$0 sm:$0xff] }
 0x1c3   :  { %v287_v15 = vsel %vm286_vm4, %v267_v12, %v260_v11 }
 0x1c4   :  { %v289_v17 = vsel %vm288_vm5, %v274_v13, %v287_v15 }
 0x1c5   :  { %v291_v18 = vsel %vm290_vm6, %v281_v14, %v289_v17  ;;  %v903_v17 = vld [vmem:[%s1149_s9] sm:$0xff]  }
 0x1c6   :  { %v293_v19 = vadd.f32 %v291_v18, %v164_v16  ;;  %v904_v18 = vld [vmem:[%s1149_s9 + $0x8] sm:$0xff]  }
 0x1c8   :  { %v294_v20 = vmax.f32 %v293_v19, 0.0  ;;  %v622_v19 = vpop.permute.xlu0 %621 }
 0x1ca   :  { %v1075_v21 = vadd.f32 %v294_v20, %v1038_v26  ;;  %v902_v26 = vld [vmem:[%s1143_s6 + $0x28] sm:$0xff]   ;;  %v627_v20 = vpop.permute.xlu1 %626 }
 0x1cc   :  { %v296_v22 = vpack.c.bf16 %v1075_v21, %v1075_v21 }
 0x1ce   :  { %850 = vmatmul.mubr.msk.bf16.vlgmr.msra.gmra.mrb[4].mxu1 %vm125_vm2, %v296_v22  ;;  %858 = vmatmul.mubr.msk.bf16.vlgmr.msra.gmra.mrb[8].mxu0 %vm125_vm2, %v296_v22  ;;  %v637_v22 = vpop.permute.xlu1 %636 }
 0x1cf   :  { %865 = vmatprep.mubr.msk.bf16.mxu1 %vm906_vm0, %v905_v0  ;;  %873 = vmatprep.mubr.msk.bf16.mxu0 %vm906_vm0, %v905_v0 }
 0x1d0   :  { %870 = vmatpush3.bf16.msra.mxu0 %v899_v23  ;;  %862 = vmatpush3.bf16.msra.mxu1 %v900_v24 }
 0x1d1   :  { %871 = vmatprep.subr.bf16.mxu0 %v905_v0  ;;  %863 = vmatprep.subr.bf16.mxu1 %v905_v0 }
 0x1d4   :  { %872 = vmatpush3.bf16.msra.mxu0 %v901_v25  ;;  %864 = vmatpush3.bf16.msra.mxu1 %v902_v26 }
 0x1d5   :  { %877 = vmatprep.subr.bf16.mxu1 %v905_v0 }
 0x2a1   :  { %v359_v31 = vpop.f32.mrb[4].mxu1  ;;  %v416_v32 = vpop.f32.mrb[8].mxu0 }
 0x2a2   :  { %v446_v33 = vadd.f32 %v429_v27, %v416_v32  ;;  %v447_v34 = vadd.f32 %v434_v28, %v416_v32  ;;  %v448_v35 = vadd.f32 %v439_v29, %v416_v32  ;;  %v851_v36 = vpop.f32.mrb[5].mxu1  ;;  %v859_v37 = vpop.f32.mrb[9].mxu0  ;;  %v449_v38 = vadd.f32 %v444_v30, %v416_v32 }
 0x2a3   :  { %v362_v39 = vpop.f32.mrb[6].mxu1  ;;  %v419_v40 = vpop.f32.mrb[10].mxu0  ;;  %v360_v10 = vadd.f32 %v769_v4, %v359_v31 }
 0x2a4   :  { %v450_v41 = vsel %vm253_vm3, %v446_v33, -inf  ;;  %v457_v42 = vsel %vm253_vm3, %v447_v34, -inf  ;;  %v464_v43 = vsel %vm253_vm3, %v448_v35, -inf  ;;  %v852_v44 = vpop.f32.mrb[7].mxu1  ;;  %v860_v45 = vpop.f32.mrb[11].mxu0  ;;  %v471_v49 = vsel %vm253_vm3, %v449_v38, -inf }
 0x2a5   :  { %v451_v46 = vrot.slane %v450_v41, 4  ;;  %v458_v47 = vrot.slane %v457_v42, 4  ;;  %v465_v48 = vrot.slane %v464_v43, 4  ;;  %v472_v50 = vrot.slane %v471_v49, 4 }
 0x2a7   :  { %v452_v51 = vmax.f32 %v450_v41, %v451_v46  ;;  %v459_v52 = vmax.f32 %v457_v42, %v458_v47  ;;  %v466_v53 = vmax.f32 %v464_v43, %v465_v48  ;;  %v473_v54 = vmax.f32 %v471_v49, %v472_v50 }
 0x2a9   :  { %v453_v55 = vrot.slane %v452_v51, 2  ;;  %v460_v56 = vrot.slane %v459_v52, 2  ;;  %v467_v57 = vrot.slane %v466_v53, 2  ;;  %v474_v58 = vrot.slane %v473_v54, 2 }
 0x2ab   :  { %v454_v59 = vmax.f32 %v452_v51, %v453_v55  ;;  %v461_v60 = vmax.f32 %v459_v52, %v460_v56  ;;  %v468_v61 = vmax.f32 %v466_v53, %v467_v57  ;;  %v475_v62 = vmax.f32 %v473_v54, %v474_v58  ;;  %v785_v58 = vld [vmem:[%s1148_s8 + $0x2] ss:$0 sm:$0xff] }
 0x2ad   :  { %v455_v63 = vrot.slane %v454_v59, 1  ;;  %v462_v1 = vrot.slane %v461_v60, 1  ;;  %v469_v2 = vrot.slane %v468_v61, 1  ;;  %v476_v3 = vrot.slane %v475_v62, 1 }
 0x2af   :  { %v456_v5 = vmax.f32 %v454_v59, %v455_v63  ;;  %v463_v6 = vmax.f32 %v461_v60, %v462_v1  ;;  %v470_v7 = vmax.f32 %v468_v61, %v469_v2  ;;  %v477_v8 = vmax.f32 %v475_v62, %v476_v3 }
 0x2b1   :  { %v482_v9 = vsel %vm286_vm4, %v463_v6, %v456_v5 }
 0x2b2   :  { %v483_v11 = vsel %vm288_vm5, %v470_v7, %v482_v9 }
 0x2b3   :  { %v484_v12 = vsel %vm290_vm6, %v477_v8, %v483_v11  ;;  %v796_v8 = vld [vmem:[%s1150_s10] ss:$0 sm:$0xff] }
 0x2b4   :  { %v486_v13 = vadd.f32 %v484_v12, %v360_v10 }
 0x2b6   :  { %v487_v14 = vmax.f32 %v486_v13, 0.0 }
 0x2b8   :  { %v488_v15 = vadd.f32 %v487_v14, %v1075_v21  ;;  %v632_v21 = vpop.permute.xlu0 %631 }
 0x2ba   :  { %v489_v16 = vpack.c.bf16 %v488_v15, %v488_v15 }
 0x2bc   :  { %866 = vmatmul.mubr.msk.bf16.vlgmr.msra.gmra.mrb[8].mxu1 %vm125_vm2, %v489_v16  ;;  %874 = vmatmul.mubr.msk.bf16.vlgmr.msra.gmra.mrb[12].mxu0 %vm125_vm2, %v489_v16 }
 0x2bd   :  { %881 = vmatprep.mubr.msk.bf16.mxu1 %vm906_vm0, %v905_v0  ;;  %878 = vmatpush3.bf16.msra.mxu1 %v903_v17 }
 0x2be   :  { %879 = vmatprep.subr.bf16.mxu1 %v905_v0 }
 0x2c1   :  { %880 = vmatpush3.bf16.msra.mxu1 %v904_v18 }
 0x38f   :  { %v552_v23 = vpop.f32.mrb[8].mxu1  ;;  %v609_v24 = vpop.f32.mrb[12].mxu0 }
 0x390   :  { %v639_v25 = vadd.f32 %v622_v19, %v609_v24  ;;  %v640_v26 = vadd.f32 %v627_v20, %v609_v24  ;;  %v641_v27 = vadd.f32 %v632_v21, %v609_v24  ;;  %v867_v28 = vpop.f32.mrb[9].mxu1  ;;  %v875_v29 = vpop.f32.mrb[13].mxu0  ;;  %v642_v30 = vadd.f32 %v637_v22, %v609_v24 }
 0x391   :  { %v555_v31 = vpop.f32.mrb[10].mxu1  ;;  %v612_v32 = vpop.f32.mrb[14].mxu0  ;;  %v553_v1 = vadd.f32 %v785_v58, %v552_v23 }
 0x392   :  { %v643_v33 = vsel %vm253_vm3, %v639_v25, -inf  ;;  %v650_v34 = vsel %vm253_vm3, %v640_v26, -inf  ;;  %v657_v0 = vsel %vm253_vm3, %v641_v27, -inf  ;;  %v868_v35 = vpop.f32.mrb[11].mxu1  ;;  %v876_v36 = vpop.f32.mrb[15].mxu0  ;;  %v664_v40 = vsel %vm253_vm3, %v642_v30, -inf }
 0x393   :  { %v644_v37 = vrot.slane %v643_v33, 4  ;;  %v651_v38 = vrot.slane %v650_v34, 4  ;;  %v658_v39 = vrot.slane %v657_v0, 4  ;;  %v665_v41 = vrot.slane %v664_v40, 4 }
 0x395   :  { %v645_v42 = vmax.f32 %v643_v33, %v644_v37  ;;  %v652_v43 = vmax.f32 %v650_v34, %v651_v38  ;;  %v659_v44 = vmax.f32 %v657_v0, %v658_v39  ;;  %v666_v45 = vmax.f32 %v664_v40, %v665_v41 }
 0x397   :  { %v646_v46 = vrot.slane %v645_v42, 2  ;;  %v653_v47 = vrot.slane %v652_v43, 2  ;;  %v660_v48 = vrot.slane %v659_v44, 2  ;;  %v667_v49 = vrot.slane %v666_v45, 2 }
 0x399   :  { %v647_v50 = vmax.f32 %v645_v42, %v646_v46  ;;  %v654_v51 = vmax.f32 %v652_v43, %v653_v47  ;;  %v661_v52 = vmax.f32 %v659_v44, %v660_v48  ;;  %v668_v53 = vmax.f32 %v666_v45, %v667_v49 }
 0x39b   :  { %v648_v54 = vrot.slane %v647_v50, 1  ;;  %v655_v55 = vrot.slane %v654_v51, 1  ;;  %v662_v56 = vrot.slane %v661_v52, 1  ;;  %v669_v57 = vrot.slane %v668_v53, 1 }
 0x39d   :  { %v649_v59 = vmax.f32 %v647_v50, %v648_v54  ;;  %v656_v60 = vmax.f32 %v654_v51, %v655_v55  ;;  %v663_v61 = vmax.f32 %v661_v52, %v662_v56  ;;  %v670_v62 = vmax.f32 %v668_v53, %v669_v57 }
 0x39f   :  { %v675_v63 = vsel %vm286_vm4, %v656_v60, %v649_v59 }
 0x3a0   :  { %v676_v2 = vsel %vm288_vm5, %v663_v61, %v675_v63 }
 0x3a1   :  { %v677_v3 = vsel %vm290_vm6, %v670_v62, %v676_v2 }
 0x3a2   :  { %v679_v4 = vadd.f32 %v677_v3, %v553_v1 }
 0x3a4   :  { %v680_v5 = vmax.f32 %v679_v4, 0.0 }
 0x3a6   :  { %v681_v6 = vadd.f32 %v680_v5, %v488_v15 }
 0x3a8   :  { %v682_v7 = vpack.c.bf16 %v681_v6, %v681_v6 }
 0x3aa   :  { %882 = vmatmul.mubr.msk.bf16.vlgmr.msra.gmra.mrb[12].mxu1 %vm125_vm2, %v682_v7 }
 0x47d   :  { %v743_v9 = vpop.f32.mrb[12].mxu1 }
 0x47e   :  { %v744_v10 = vadd.f32 %v796_v8, %v743_v9  ;;  %v883_v11 = vpop.f32.mrb[13].mxu1 }
 0x47f   :  { %v746_v12 = vpop.f32.mrb[14].mxu1 }
 0x480   :  { %749 = vst.msk [vmem:[%s1151_s11] sm:$0xf] %vm253_vm3, %v744_v10  ;;  %v884_v13 = vpop.f32.mrb[15].mxu1 }

// kernel: run.11
= control target key start
LH: loop header
LB: loop body
LE: loop exit
PB: predicated region body
PF: predicated region fallthrough
CT: control target
= control target key end

     0   :  { %s1310_s21 = smov 0   ;;  %s1442_s0 = inlined_call_operand.vmem [shape: f32[4,1,32], index: 0, kind: input, shape index: {}]   ;;  %s1443_s1 = inlined_call_operand.vmem [shape: f32[32,2], index: 1, kind: input, shape index: {}]   ;;  %s1444_s2 = inlined_call_operand.vmem [shape: f32[32,32], index: 2, kind: input, shape index: {}]   ;;  %s1445_s3 = inlined_call_operand.vmem [shape: f32[2,32], index: 3, kind: input, shape index: {}]   ;;  %s1446_s4 = inlined_call_operand.vmem [shape: f32[1,32], index: 4, kind: input, shape index: {}]   ;;  %s1447_s5 = inlined_call_operand.vmem [shape: f32[32,3], index: 5, kind: input, shape index: {}]   ;;  %s1448_s6 = inlined_call_operand.vmem [shape: f32[1,3], index: 6, kind: input, shape index: {}]   ;;  %s1449_s7 = inlined_call_operand.vmem [shape: f32[32,32], index: 7, kind: input, shape index: {}]   ;;  %s1450_s8 = inlined_call_operand.vmem [shape: f32[3,32], index: 8, kind: input, shape index: {}]   ;;  %s1451_s9 = inlined_call_operand.vmem [shape: f32[1,32], index: 9, kind: input, shape index: {}]   ;;  %s1452_s10 = inlined_call_operand.vmem [shape: f32[32,3], index: 10, kind: input, shape index: {}]   ;;  %s1453_s11 = inlined_call_operand.vmem [shape: f32[1,3], index: 11, kind: input, shape index: {}]   ;;  %s1454_s12 = inlined_call_operand.vmem [shape: f32[4,32,3], index: 12, kind: output, shape index: {}]  }
   0x1 LB: > { %s1061_s22 = sadd.s32 4294967295, %s1240_s21   ;;  %p1065_p0 = scmp.ge.s32.totalorder %s1240_s21, 1  ;;  %s1240_s21 = sphi %s1310_s21, %s22_s21  }
   0x2   : > { %p360_p1 = scmp.lt.s32.totalorder %s1240_s21, 5 }
   0x4   : > { %p361_p2 = pnand %p1065_p0, %p360_p1 }
   0x5   : > { %v413_v0 = vld [vmem:[%s1444_s2] sm:$0xff] (!%p361_p2)  ;;  %v414_v1 = vld [vmem:[%s1444_s2 + $0x8] sm:$0xff] (!%p361_p2)  ;;  %v415_v2 = vld [vmem:[%s1444_s2 + $0x10] sm:$0xff] (!%p361_p2)  ;;  %v1242_v3 = vmov (!%p361_p2), 0.0|0.0   ;;  %vm1243_vm0 = vmmov (!%p361_p2), 0   ;;  %v1244_v6 = vmov (!%p361_p2), 0.0   ;;  %v493_v20 = vlaneseq (!%p361_p2) }
   0x6   : > { %364 = sbr.rel (%p361_p2) target bundleno = 892 (0x37c), region = 68  ;;  %1195 = vmatprep.subr.bf16.mxu0 (!%p361_p2), %v1242_v3  ;;  %v1196_v4 = vpack.c.bf16 (!%p361_p2), %v414_v1, %v413_v0  ;;  %v416_v5 = vld [vmem:[%s1444_s2 + $0x18] sm:$0xff] (!%p361_p2)  ;;  %1137 = vmatprep.mubr.msk.f32.mxu0 (!%p361_p2), %vm1243_vm0, %v1244_v6  ;;  %p400_p3 = scmp.lt.s32.totalorder (!%p361_p2), %s1061_s22, 3  ;;  %v492_v8 = vld [vmem:[%s1445_s3] sm:$0x3] (!%p361_p2)  ;;  %vm510_vm1 = vcmask (!%p361_p2), 1041408  }
   0x7   : > { %v1199_v7 = vpack.c.bf16 (!%p361_p2), %v416_v5, %v415_v2  ;;  %vm418_vm2 = vcmask (!%p361_p2), 261120   ;;  %v409_v10 = vld [vmem:[%s1443_s1] sm:$0xff] (!%p361_p2)  ;;  %vm497_vm3 = vcmask (!%p361_p2), 15360   ;;  %v410_v11 = vld [vmem:[%s1443_s1 + $0x8] sm:$0xff] (!%p361_p2)  ;;  %v411_v12 = vld [vmem:[%s1443_s1 + $0x10] sm:$0xff] (!%p361_p2)  ;;  %v1369_v21 = vshrl.u32 (!%p361_p2), %v493_v20, 7 }
   0x8   : > { %1197 = vmatpush3.bf16.msra.mxu0 (!%p361_p2), %v1196_v4  ;;  %v412_v13 = vld [vmem:[%s1443_s1 + $0x18] sm:$0xff] (!%p361_p2)  ;;  %v603_v14 = vld [vmem:[%s1447_s5] sm:$0xff] (!%p361_p2)  ;;  %v604_v15 = vld [vmem:[%s1447_s5 + $0x8] sm:$0xff] (!%p361_p2)  ;;  %vm804_vm4 = vcmask (!%p361_p2), 1042432   ;;  %vm791_vm5 = vcmask (!%p361_p2), 23552  }
   0x9   : > { %1198 = vmatprep.subr.bf16.mxu0 (!%p361_p2), %v1242_v3  ;;  %v1201_v16 = vpack.c.bf16 (!%p361_p2), %v604_v15, %v603_v14  ;;  %v605_v17 = vld [vmem:[%s1447_s5 + $0x10] sm:$0xff] (!%p361_p2)  ;;  %v606_v18 = vld [vmem:[%s1447_s5 + $0x18] sm:$0xff] (!%p361_p2)  ;;  %v417_v22 = vld [vmem:[%s1446_s4] sm:$0x1] (!%p361_p2)  ;;  %v495_v23 = vsub.s32 (!%p361_p2), 0, %v1369_v21 }
   0xa   : > { %v1205_v19 = vpack.c.bf16 (!%p361_p2), %v606_v18, %v605_v17  ;;  %v711_v31 = vld [vmem:[%s1449_s7] sm:$0xff] (!%p361_p2)  ;;  %v712_v32 = vld [vmem:[%s1449_s7 + $0x8] sm:$0xff] (!%p361_p2)  ;;  %v713_v40 = vld [vmem:[%s1449_s7 + $0x10] sm:$0xff] (!%p361_p2) }
   0xb   : > { %1202 = vmatprep.subr.bf16.mxu1 (!%p361_p2), %v1201_v16  ;;  %v1210_v36 = vpack.c.bf16 (!%p361_p2), %v712_v32, %v711_v31  ;;  %v714_v41 = vld [vmem:[%s1449_s7 + $0x18] sm:$0xff] (!%p361_p2)  ;;  %v786_v46 = vld [vmem:[%s1450_s8] sm:$0x7] (!%p361_p2)  ;;  %v898_v48 = vld [vmem:[%s1452_s10 + $0x8] sm:$0xff] (!%p361_p2) }
   0xc   : > { %1200 = vmatpush3.bf16.msra.mxu0 (!%p361_p2), %v1199_v7  ;;  %1204 = vmatpush3.bf16.msra.mxu1 (!%p361_p2), %v1201_v16  ;;  %v1213_v44 = vpack.c.bf16 (!%p361_p2), %v714_v41, %v713_v40  ;;  %v897_v47 = vld [vmem:[%s1452_s10] sm:$0xff] (!%p361_p2)  ;;  %v899_v61 = vld [vmem:[%s1452_s10 + $0x10] sm:$0xff] (!%p361_p2)  ;;  %v900_v62 = vld [vmem:[%s1452_s10 + $0x18] sm:$0xff] (!%p361_p2) }
   0xd   : > { %s1456_s22 = smov (!%p400_p3, %s1061_s22), 3  ;;  %1140 = vmatprep.subr.msk.mxu0 %vm510_vm1, %v492_v8  ;;  %1206 = vmatprep.subr.bf16.mxu1 %v1205_v19  ;;  %v1215_v49 = vpack.c.bf16 %v898_v48, %v897_v47  ;;  %v1074_v50 = vld [vmem:[%s1448_s6] ss:$0 sm:$0xff]  ;;  %v1219_v63 = vpack.c.bf16 %v900_v62, %v899_v61 }
   0xe   : > { %s402_s15 = scalar_lea.vmem %s1442_s0, %s1456_s22  ;;  %v715_v0 = vld [vmem:[%s1451_s9] sm:$0x1]  ;;  %s1092_s28 = sshll.u32 %s1456_s22, 5 }
   0xf   : > { %v408_v9 = vld [vmem:[%s402_s15] sm:$0x1]  ;;  %s407_s15 = scalar_lea.vmem %s1454_s12, %s1092_s28 }
  0x10   : > { %1138 = vmatmul.mubr.msk.f32.vlgmr.msra.gmra.mrb[0].mxu0 %vm418_vm2, %v408_v9  ;;  %1208 = vmatpush3.bf16.msra.mxu1 %v1205_v19  ;;  %v1085_v15 = vld [vmem:[%s1453_s11] ss:$0 sm:$0xff] }
  0x11   : > { %1141 = vmatpush3.msk.msra.mxu0 %vm510_vm1, %v492_v8  ;;  %1142 = vmatprep.mubr.msk.f32.mxu0 %vm497_vm3, %v409_v10 }
  0x12   : > { %1209 = vmatprep.subr.bf16.mxu1 %v1242_v3  ;;  %1216 = vmatprep.subr.bf16.mxu0 %v1215_v49 }
  0x14   : > { %1143 = vmatmul.mubr.msk.f32.vlgmr.msra.gmra.mrb[2].mxu0 %vm497_vm3, %v410_v11 }
  0x15   : > { %1145 = vmatprep.mubr.msk.f32.mxu0 %vm497_vm3, %v411_v12  ;;  %1218 = vmatpush3.bf16.msra.mxu0 %v1215_v49 }
  0x16   : > { %1220 = vmatprep.subr.bf16.mxu0 %v1219_v63 }
  0x18   : > { %1146 = vmatmul.mubr.msk.f32.gmra.mrb[4].mxu0 %vm497_vm3, %v412_v13 }
  0x19   : > { %1222 = vmatpush3.bf16.msra.mxu0 %v1219_v63 }
  0xe3   : > { %v488_v24 = vpop.f32.mrb[0].mxu0 }
  0xe4   : > { %v489_v25 = vadd.f32 %v488_v24, %v417_v22  ;;  %v1139_v26 = vpop.f32.mrb[1].mxu0 }
  0xe6   : > { %v496_v27 = vrot.slane %v489_v25, %v495_v23 }
  0xe7   : > { %v1144_v28 = vpop.f32.mrb[2].mxu0 }
  0xe8   : > { %v586_v29 = vadd.f32 %v1144_v28, %v496_v27  ;;  %v580_v30 = vpop.f32.mrb[3].mxu0 }
  0xe9   : > { %v581_v33 = vadd.f32 %v580_v30, %v496_v27 }
  0xea   : > { %v600_v37 = vmax.f32 %v586_v29, 0.0 }
  0xeb   : > { %v599_v34 = vmax.f32 %v581_v33, 0.0  ;;  %v1147_v35 = vpop.f32.mrb[4].mxu0 }
  0xec   : > { %v596_v38 = vadd.f32 %v1147_v35, %v496_v27  ;;  %v590_v39 = vpop.f32.mrb[5].mxu0 }
  0xed   : > { %v591_v42 = vadd.f32 %v590_v39, %v496_v27  ;;  %1156 = vmatprep.mubr.msk.f32.mxu1 %vm418_vm2, %v599_v34 }
  0xee   : > { %1157 = vmatmul.mubr.msk.f32.vlgmr.msra.gmra.mrb[0].mxu1 %vm418_vm2, %v600_v37  ;;  %v602_v45 = vmax.f32 %v596_v38, 0.0 }
  0xef   : > { %v601_v43 = vmax.f32 %v591_v42, 0.0  ;;  %1211 = vmatpush3.bf16.msra.mxu1 %v1210_v36 }
  0xf0   : > { %1212 = vmatprep.subr.bf16.mxu1 %v1242_v3 }
  0xf1   : > { %1159 = vmatprep.mubr.msk.f32.mxu1 %vm418_vm2, %v601_v43 }
  0xf2   : > { %1160 = vmatmul.mubr.msk.f32.gmra.mrb[2].mxu1 %vm418_vm2, %v602_v45 }
  0xf3   : > { %1214 = vmatpush3.bf16.msra.mxu1 %v1213_v44  ;;  %1170 = vmatprep.mubr.msk.f32.mxu1 %vm1243_vm0, %v1244_v6 }
  0xf4   : > { %1173 = vmatprep.subr.msk.mxu1 %vm804_vm4, %v786_v46 }
  0xf6   : > { %1171 = vmatmul.mubr.msk.f32.vlgmr.msra.gmra.mrb[4].mxu1 %vm418_vm2, %v408_v9 }
  0xf7   : > { %1174 = vmatpush3.msk.msra.mxu1 %vm804_vm4, %v786_v46 }
 0x1c1   : > { %v1158_v51 = vpop.f32.mrb[0].mxu1 }
 0x1c2   : > { %v692_v52 = vpop.f32.mrb[1].mxu1  ;;  %v698_v54 = vadd.f32 %v1158_v51, %v1074_v50 }
 0x1c3   : > { %v693_v53 = vadd.f32 %v1074_v50, %v692_v52 }
 0x1c5   : > { %v1161_v55 = vpop.f32.mrb[2].mxu1  ;;  %1175 = vmatprep.mubr.msk.f32.mxu1 %vm791_vm5, %v693_v53 }
 0x1c6   : > { %v702_v56 = vpop.f32.mrb[3].mxu1  ;;  %1176 = vmatmul.mubr.msk.f32.vlgmr.msra.gmra.mrb[6].mxu1 %vm791_vm5, %v698_v54  ;;  %v708_v58 = vadd.f32 %v1161_v55, %v1074_v50 }
 0x1c7   : > { %v703_v57 = vadd.f32 %v1074_v50, %v702_v56 }
 0x1c9   : > { %1178 = vmatprep.mubr.msk.f32.mxu1 %vm791_vm5, %v703_v57  ;;  %v782_v59 = vpop.f32.mrb[4].mxu1 }
 0x1ca   : > { %1179 = vmatmul.mubr.msk.f32.gmra.mrb[8].mxu1 %vm791_vm5, %v708_v58  ;;  %v1172_v60 = vpop.f32.mrb[5].mxu1  ;;  %v783_v1 = vadd.f32 %v782_v59, %v715_v0 }
 0x1cc   : > { %v790_v2 = vrot.slane %v783_v1, %v495_v23 }
 0x299   : > { %v1177_v3 = vpop.f32.mrb[6].mxu1 }
 0x29a   : > { %v880_v4 = vadd.f32 %v1177_v3, %v790_v2  ;;  %v874_v5 = vpop.f32.mrb[7].mxu1 }
 0x29b   : > { %v875_v6 = vadd.f32 %v874_v5, %v790_v2 }
 0x29c   : > { %v894_v9 = vmax.f32 %v880_v4, 0.0 }
 0x29d   : > { %v893_v7 = vmax.f32 %v875_v6, 0.0  ;;  %v1180_v8 = vpop.f32.mrb[8].mxu1 }
 0x29e   : > { %v890_v10 = vadd.f32 %v1180_v8, %v790_v2  ;;  %v884_v11 = vpop.f32.mrb[9].mxu1 }
 0x29f   : > { %v885_v12 = vadd.f32 %v884_v11, %v790_v2  ;;  %1189 = vmatprep.mubr.msk.f32.mxu0 %vm418_vm2, %v893_v7 }
 0x2a0   : > { %1190 = vmatmul.mubr.msk.f32.vlgmr.msra.gmra.mrb[6].mxu0 %vm418_vm2, %v894_v9  ;;  %v896_v14 = vmax.f32 %v890_v10, 0.0 }
 0x2a1   : > { %v895_v13 = vmax.f32 %v885_v12, 0.0 }
 0x2a3   : > { %1192 = vmatprep.mubr.msk.f32.mxu0 %vm418_vm2, %v895_v13 }
 0x2a4   : > { %1193 = vmatmul.mubr.msk.f32.gmra.mrb[8].mxu0 %vm418_vm2, %v896_v14 }
 0x373   : > { %v1191_v16 = vpop.f32.mrb[6].mxu0 }
 0x374   : > { %v992_v17 = vadd.f32 %v1191_v16, %v1085_v15  ;;  %v986_v18 = vpop.f32.mrb[7].mxu0 }
 0x375   : > { %v987_v19 = vadd.f32 %v1085_v15, %v986_v18 }
 0x376   : > { %1006 = vst.msk [vmem:[%s407_s15 + $0x8] sm:$0xff] %vm791_vm5, %v992_v17 }
 0x377   : > { %1005 = vst.msk [vmem:[%s407_s15] sm:$0xff] %vm791_vm5, %v987_v19  ;;  %v1194_v20 = vpop.f32.mrb[8].mxu0 }
 0x378   : > { %v1002_v21 = vadd.f32 %v1194_v20, %v1085_v15  ;;  %v996_v22 = vpop.f32.mrb[9].mxu0 }
 0x379   : > { %v997_v23 = vadd.f32 %v1085_v15, %v996_v22 }
 0x37a   : > { %1008 = vst.msk [vmem:[%s407_s15 + $0x18] sm:$0xff] %vm791_vm5, %v1002_v21 }
 0x37b   : > { %1007 = vst.msk [vmem:[%s407_s15 + $0x10] sm:$0xff] %vm791_vm5, %v997_v23 }
 0x37c PF: > { %s22_s21 = sadd.s32 1, %s1240_s21  }
 0x37d   : > { %p19_p4 = scmp.ge.s32.totalorder %s22_s21, 6  }
 0x37f   :  { %21 = sbr.rel (!%p19_p4) target bundleno = 1 (0x1), region = 98 }

</bundles_post_ra>
